<compile_context>
chip_gen: v7x
topology: tpu7x:2x2x1
jax: 0.10.0
libtpu: 0.0.40
codegen_flags: <defaults>
</compile_context>

<pallas_src>
import functools

import jax
import jax.numpy as jnp
from jax.experimental import pallas as pl
from jax.experimental.pallas import tpu as pltpu

IMG_SIZE = 16  # small stand-in for the module's img_size=150 (demo sizes keep H, W even)


# ----------------------------------------------------------------------------
# Fused (im2col-matmul) Conv(3x3, pad=1) + bias + ReLU + MaxPool(2x2, stride 2).
# ----------------------------------------------------------------------------
def _conv_mm_relu_pool_kernel(p_ref, w_ref, b_ref, o_ref, *, BT, TH, W, K9, Cout):
    # p_ref: (BT, 2*TH, W, K9) bf16  im2col patches for this (batch, row-slab) tile
    # w_ref: (K9, Cout)        bf16  3x3 kernel flattened as (dy, dx, cin) along K
    # b_ref: (1, Cout)         f32
    # o_ref: (BT, TH, (W//2)*Cout) bf16  lane-dense pooled output tile
    Tin = 2 * TH
    Wh = W // 2
    M = BT * Tin * W

    patches = p_ref[...].reshape(M, K9)                                  # bf16, no casts
    y = jnp.dot(patches, w_ref[...], preferred_element_type=jnp.float32)  # (M, Cout) f32
    y = jnp.maximum(y + b_ref[...], 0.0)                                 # bias + ReLU

    # 2x2 stride-2 max-pool entirely on the in-register value (no VMEM scratch round trip)
    y = jnp.max(y.reshape(BT * Tin, Wh, 2, Cout), axis=2)                # pool along W
    y = jnp.max(y.reshape(BT * TH, 2, Wh * Cout), axis=1)                # pool row pairs
    o_ref[...] = y.reshape(BT, TH, Wh * Cout).astype(jnp.bfloat16)       # lane-dense store


def conv_block(patches, w, b):
    """patches: (B, H, W, 9*Cin) bf16; w: (9*Cin, Cout) bf16; b: (1, Cout) f32.
    Returns ReLU(conv3x3) -> maxpool2 output as (B, H//2, W//2, Cout) bf16 (NHWC)."""
    B, H, W, K9 = patches.shape
    Cout = w.shape[1]
    assert H % 2 == 0 and W % 2 == 0, (H, W)
    # TODO(synk): the real img_size=150 gives an odd 75x75 map after pool1; floor-mode
    #             MaxPool2d (edge masking / crop) at odd sizes is not implemented here.
    Hh, Wh = H // 2, W // 2

    BT = 2 if B % 2 == 0 else 1                 # batch elements folded into the matmul M dim
    # Row-slab tiling: TH pooled rows per step keeps the per-step VMEM footprint small
    # (v7x 64 MiB / v5e scoped 16 MiB) while M = BT*2*TH*W stays large enough for the MXU.
    TH = 8 if (Hh % 8 == 0 and Hh > 8) else Hh

    grid = (B // BT, Hh // TH)
    kern = functools.partial(_conv_mm_relu_pool_kernel,
                             BT=BT, TH=TH, W=W, K9=K9, Cout=Cout)
    out = pl.pallas_call(
        kern,
        out_shape=jax.ShapeDtypeStruct((B, Hh, Wh * Cout), jnp.bfloat16),
        grid=grid,
        in_specs=[
            pl.BlockSpec((BT, 2 * TH, W, K9), lambda bb, t: (bb, t, 0, 0)),
            pl.BlockSpec((K9, Cout), lambda bb, t: (0, 0)),
            pl.BlockSpec((1, Cout), lambda bb, t: (0, 0)),
        ],
        out_specs=pl.BlockSpec((BT, TH, Wh * Cout), lambda bb, t: (bb, t, 0)),
        compiler_params=pltpu.CompilerParams(
            dimension_semantics=("parallel", "parallel")),
    )(patches, w, b)
    return out.reshape(B, Hh, Wh, Cout)


def im2col_3x3(x):
    """x: (B, H, W, C) -> (B, H, W, 9*C) patches of a 3x3/pad=1 conv, K ordered (dy, dx, c)."""
    # TODO(synk): halo padding / tap gathering is wrapper-side XLA; fusing it into the conv
    #             kernel (masked edge taps) would save one small activation pass per layer.
    B, H, W, C = x.shape
    xp = jnp.pad(x, ((0, 0), (1, 1), (1, 1), (0, 0)))
    parts = [xp[:, dy:dy + H, dx:dx + W, :] for dy in range(3) for dx in range(3)]
    return jnp.concatenate(parts, axis=-1)


# ----------------------------------------------------------------------------
# FC head: Linear(64*(S/4)^2 -> 128) + ReLU + Dropout + Linear(128 -> 4), K-tiled fc1.
# ----------------------------------------------------------------------------
def _fc1_k_tile(k, target=8192):
    """fc1 K-tile: one step if K fits, else ~8K rows (~2 MB bf16 of w1 per block)."""
    if k <= target:
        return k
    return (target // 128) * 128


def _mlp_kernel(x_ref, w1_ref, b1_ref, w2_ref, b2_ref, o_ref, acc_ref):
    k = pl.program_id(0)

    @pl.when(k == 0)
    def _():
        acc_ref[...] = jnp.zeros_like(acc_ref)

    acc_ref[...] += jnp.dot(x_ref[...], w1_ref[...], preferred_element_type=jnp.float32)

    @pl.when(k == pl.num_programs(0) - 1)
    def _():
        h = jnp.maximum(acc_ref[...] + b1_ref[...], 0.0)
        # TODO(synk): nn.Dropout(0.5) is identity in eval(); training-mode RNG masking
        #             (pltpu.prng_seed / prng_random_bits) is not implemented.
        o_ref[...] = (jnp.dot(h.astype(jnp.bfloat16), w2_ref[...],
                              preferred_element_type=jnp.float32) + b2_ref[...])


def mlp(feat, w1, b1, w2, b2, *, kt):
    """feat: (B, Kp) bf16; w1: (Kp, 128) bf16 (K pre-padded); w2: (128, 4) bf16; biases f32."""
    B, Kp = feat.shape
    assert w1.shape[0] == Kp and Kp % kt == 0, (Kp, kt)
    N1, N2 = w1.shape[1], w2.shape[1]
    # TODO(synk): on v7x, split the fc1 K range across the two TensorCores (size-2 "parallel"
    #             leading grid axis with per-core partial sums) to use both cores' HBM BW.
    return pl.pallas_call(
        _mlp_kernel,
        out_shape=jax.ShapeDtypeStruct((B, N2), jnp.float32),
        grid=(Kp // kt,),
        in_specs=[
            pl.BlockSpec((B, kt), lambda k: (0, k)),
            # Large K blocks keep fc1 DMA-roofline-bound instead of grid-overhead-bound.
            pl.BlockSpec((kt, N1), lambda k: (k, 0)),
            pl.BlockSpec((1, N1), lambda k: (0, 0)),
            pl.BlockSpec((N1, N2), lambda k: (0, 0)),
            pl.BlockSpec((1, N2), lambda k: (0, 0)),
        ],
        out_specs=pl.BlockSpec((B, N2), lambda k: (0, 0)),
        scratch_shapes=[pltpu.VMEM((B, N1), jnp.float32)],
        compiler_params=pltpu.CompilerParams(dimension_semantics=("arbitrary",)),
    )(feat, w1, b1, w2, b2)


# ----------------------------------------------------------------------------
# Parameters (PyTorch-convention shapes), one-time prep, forward pass, reference.
# ----------------------------------------------------------------------------
def init_params(key):
    s = IMG_SIZE // 4
    ks = jax.random.split(key, 8)
    return dict(
        conv1_w=jax.random.normal(ks[0], (32, 3, 3, 3), jnp.float32) * 0.10,
        conv1_b=jax.random.normal(ks[1], (32,), jnp.float32) * 0.10,
        conv2_w=jax.random.normal(ks[2], (64, 32, 3, 3), jnp.float32) * 0.05,
        conv2_b=jax.random.normal(ks[3], (64,), jnp.float32) * 0.05,
        fc1_w=jax.random.normal(ks[4], (128, 64 * s * s), jnp.float32) * 0.02,
        fc1_b=jax.random.normal(ks[5], (128,), jnp.float32) * 0.02,
        fc2_w=jax.random.normal(ks[6], (4, 128), jnp.float32) * 0.05,
        fc2_b=jax.random.normal(ks[7], (4,), jnp.float32) * 0.05,
    )


def prepare_params(params, kt_target=8192):
    """One-time weight prep: transposes, dtype casts, fc1 K zero-pad (hoisted out of jit)."""
    def conv_w(w):  # (Cout, Cin, 3, 3) -> (9*Cin, Cout) bf16, K ordered as (dy, dx, cin)
        cout, cin = w.shape[0], w.shape[1]
        return jnp.transpose(w, (2, 3, 1, 0)).reshape(9 * cin, cout).astype(jnp.bfloat16)

    n1, k_in = params["fc1_w"].shape
    s = int(round((k_in // 64) ** 0.5))
    # permute fc1 input features from torch NCHW flatten (c,h,w) to NHWC flatten (h,w,c) so
    # the forward can flatten the NHWC conv output directly (no per-call activation transpose)
    fw1 = params["fc1_w"].reshape(n1, 64, s, s).transpose(0, 2, 3, 1).reshape(n1, k_in)
    fw1 = jnp.transpose(fw1).astype(jnp.bfloat16)                        # (K, 128)
    kt = _fc1_k_tile(k_in, kt_target)
    kp = ((k_in + kt - 1) // kt) * kt
    if kp != k_in:
        fw1 = jnp.pad(fw1, ((0, kp - k_in), (0, 0)))                     # one-time ragged-K pad

    return dict(
        cw1=conv_w(params["conv1_w"]),
        cb1=params["conv1_b"].reshape(1, -1).astype(jnp.float32),
        cw2=conv_w(params["conv2_w"]),
        cb2=params["conv2_b"].reshape(1, -1).astype(jnp.float32),
        fw1=fw1,
        fb1=params["fc1_b"].reshape(1, -1).astype(jnp.float32),
        fw2=jnp.transpose(params["fc2_w"]).astype(jnp.bfloat16),         # (128, 4)
        fb2=params["fc2_b"].reshape(1, -1).astype(jnp.float32),
    )


@jax.jit
def gaze_cnn_forward(x_nchw, prep):
    x = jnp.transpose(x_nchw, (0, 2, 3, 1)).astype(jnp.bfloat16)         # NCHW -> NHWC, bf16
    y1 = conv_block(im2col_3x3(x), prep["cw1"], prep["cb1"])             # (B, H/2,  W/2, 32)
    y2 = conv_block(im2col_3x3(y1), prep["cw2"], prep["cb2"])            # (B, H/4,  W/4, 64)
    feat = y2.reshape(y2.shape[0], -1)     # NHWC flatten (fc1 weight pre-permuted to match)
    k_true = feat.shape[1]
    kp = prep["fw1"].shape[0]
    if kp != k_true:                       # pad only the small activation; padded w1 rows are 0
        feat = jnp.pad(feat, ((0, 0), (0, kp - k_true)))
    return mlp(feat, prep["fw1"], prep["fb1"], prep["fw2"], prep["fb2"],
               kt=_fc1_k_tile(k_true))


def reference_forward(x_nchw, params):
    """Pure-XLA reference with the same bf16-storage / f32-accumulation points."""
    bf16, f32 = jnp.bfloat16, jnp.float32
    y = jax.lax.conv_general_dilated(
        x_nchw.astype(bf16), params["conv1_w"].astype(bf16), (1, 1), ((1, 1), (1, 1)),
        dimension_numbers=("NCHW", "OIHW", "NCHW"), preferred_element_type=f32)
    y = jax.nn.relu(y + params["conv1_b"][None, :, None, None])
    y = jax.lax.reduce_window(y, -jnp.inf, jax.lax.max, (1, 1, 2, 2), (1, 1, 2, 2), "VALID")
    y = y.astype(bf16)
    y = jax.lax.conv_general_dilated(
        y, params["conv2_w"].astype(bf16), (1, 1), ((1, 1), (1, 1)),
        dimension_numbers=("NCHW", "OIHW", "NCHW"), preferred_element_type=f32)
    y = jax.nn.relu(y + params["conv2_b"][None, :, None, None])
    y = jax.lax.reduce_window(y, -jnp.inf, jax.lax.max, (1, 1, 2, 2), (1, 1, 2, 2), "VALID")
    feat = y.astype(bf16).reshape(y.shape[0], -1)                        # torch NCHW flatten
    h = jnp.dot(feat, params["fc1_w"].T.astype(bf16), preferred_element_type=f32)
    h = jax.nn.relu(h + params["fc1_b"][None, :])
    out = jnp.dot(h.astype(bf16), params["fc2_w"].T.astype(bf16), preferred_element_type=f32)
    return out + params["fc2_b"][None, :]


if __name__ == "__main__":
    key = jax.random.PRNGKey(0)
    pkey, xkey = jax.random.split(key)
    params = init_params(pkey)
    prep = prepare_params(params)
    x = jax.random.normal(xkey, (2, 3, IMG_SIZE, IMG_SIZE), jnp.float32)

    out = jax.block_until_ready(gaze_cnn_forward(x, prep))
    assert out.shape == (2, 4), out.shape

    ref = reference_forward(x, params)
    assert jnp.allclose(out, ref, atol=1e-2, rtol=1e-2), (out, ref)

    print("KERNEL_OK")
</pallas_src>

<mosaic_0001>
module attributes {stable_mosaic.version = 11 : i64} {
  func.func @_conv_mm_relu_pool_kernel(%arg0: i32, %arg1: i32, %arg2: memref<2x16x16x27xbf16, #tpu.memory_space<vmem>>, %arg3: memref<27x32xbf16, #tpu.memory_space<vmem>>, %arg4: memref<1x32xf32, #tpu.memory_space<vmem>>, %arg5: memref<2x8x256xbf16, #tpu.memory_space<vmem>>) attributes {dimension_semantics = [#tpu.dimension_semantics<parallel>, #tpu.dimension_semantics<parallel>], iteration_bounds = array<i64: 1, 1>, scalar_prefetch = 0 : i64, scratch_operands = 0 : i64, tpu.core_type = #tpu.core_type<tc>, window_params = [{transform_indices = @transform_0, window_bounds = array<i64: 2, 16, 16, 27>}, {pipeline_mode = #tpu.pipeline_mode<synchronous>, transform_indices = @transform_1, window_bounds = array<i64: 27, 32>}, {pipeline_mode = #tpu.pipeline_mode<synchronous>, transform_indices = @transform_2, window_bounds = array<i64: 1, 32>}, {transform_indices = @transform_3, window_bounds = array<i64: 2, 8, 256>}]} {
    %c0 = arith.constant 0 : index
    %c0_0 = arith.constant 0 : index
    %c0_1 = arith.constant 0 : index
    %c0_2 = arith.constant 0 : index
    %0 = vector.load %arg2[%c0, %c0_0, %c0_1, %c0_2] : memref<2x16x16x27xbf16, #tpu.memory_space<vmem>>, vector<2x16x16x27xbf16>
    %1 = vector.shape_cast %0 : vector<2x16x16x27xbf16> to vector<512x27xbf16>
    %c0_3 = arith.constant 0 : index
    %c0_4 = arith.constant 0 : index
    %2 = vector.load %arg3[%c0_3, %c0_4] : memref<27x32xbf16, #tpu.memory_space<vmem>>, vector<27x32xbf16>
    %cst = arith.constant dense<0.000000e+00> : vector<512x32xf32>
    %3 = tpu.matmul %1, %2, %cst {dimension_numbers = #tpu.dot_dimension_numbers<[1], [0], [0], [1], [0, 0, 1, 1], [], []>} : vector<512x27xbf16>, vector<27x32xbf16>, vector<512x32xf32> -> vector<512x32xf32>
    %c0_5 = arith.constant 0 : index
    %c0_6 = arith.constant 0 : index
    %4 = vector.load %arg4[%c0_5, %c0_6] : memref<1x32xf32, #tpu.memory_space<vmem>>, vector<1x32xf32>
    %5 = vector.broadcast %4 : vector<1x32xf32> to vector<512x32xf32>
    %6 = arith.addf %3, %5 : vector<512x32xf32>
    %cst_7 = arith.constant 0.000000e+00 : f32
    %7 = vector.broadcast %cst_7 : f32 to vector<512x32xf32>
    %8 = arith.maximumf %6, %7 : vector<512x32xf32>
    %9 = vector.shape_cast %8 : vector<512x32xf32> to vector<32x8x2x32xf32>
    %cst_8 = arith.constant dense<0xFF800000> : vector<32x8x32xf32>
    %10 = vector.multi_reduction <maximumf>, %9, %cst_8 [2] : vector<32x8x2x32xf32> to vector<32x8x32xf32>
    %11 = vector.shape_cast %10 : vector<32x8x32xf32> to vector<16x2x256xf32>
    %cst_9 = arith.constant dense<0xFF800000> : vector<16x256xf32>
    %12 = vector.multi_reduction <maximumf>, %11, %cst_9 [1] : vector<16x2x256xf32> to vector<16x256xf32>
    %13 = vector.shape_cast %12 : vector<16x256xf32> to vector<2x8x256xf32>
    %14 = arith.truncf %13 : vector<2x8x256xf32> to vector<2x8x256xbf16>
    %c0_10 = arith.constant 0 : index
    %c0_11 = arith.constant 0 : index
    %c0_12 = arith.constant 0 : index
    %15 = vector.load %arg5[%c0_10, %c0_11, %c0_12] : memref<2x8x256xbf16, #tpu.memory_space<vmem>>, vector<2x8x256xbf16>
    tpu.vector_store %arg5[%c0_10, %c0_11, %c0_12], %14 {strides = array<i32>} : memref<2x8x256xbf16, #tpu.memory_space<vmem>>, vector<2x8x256xbf16>,
    return
  }
  func.func @transform_0(%arg0: i32, %arg1: i32) -> (i32, i32, i32, i32) {
    %c0_i32 = arith.constant 0 : i32
    %c0_i32_0 = arith.constant 0 : i32
    %c0_i32_1 = arith.constant 0 : i32
    return %arg0, %arg1, %c0_i32, %c0_i32_0 : i32, i32, i32, i32
  }
  func.func @transform_1(%arg0: i32, %arg1: i32) -> (i32, i32) {
    %c0_i32 = arith.constant 0 : i32
    %c0_i32_0 = arith.constant 0 : i32
    %c0_i32_1 = arith.constant 0 : i32
    return %c0_i32, %c0_i32_0 : i32, i32
  }
  func.func @transform_2(%arg0: i32, %arg1: i32) -> (i32, i32) {
    %c0_i32 = arith.constant 0 : i32
    %c0_i32_0 = arith.constant 0 : i32
    %c0_i32_1 = arith.constant 0 : i32
    return %c0_i32, %c0_i32_0 : i32, i32
  }
  func.func @transform_3(%arg0: i32, %arg1: i32) -> (i32, i32, i32) {
    %c0_i32 = arith.constant 0 : i32
    %c0_i32_0 = arith.constant 0 : i32
    return %arg0, %arg1, %c0_i32 : i32, i32, i32
  }
}

module attributes {stable_mosaic.version = 11 : i64} {
  func.func @_conv_mm_relu_pool_kernel(%arg0: i32, %arg1: i32, %arg2: memref<2x8x8x288xbf16, #tpu.memory_space<vmem>>, %arg3: memref<288x64xbf16, #tpu.memory_space<vmem>>, %arg4: memref<1x64xf32, #tpu.memory_space<vmem>>, %arg5: memref<2x4x256xbf16, #tpu.memory_space<vmem>>) attributes {dimension_semantics = [#tpu.dimension_semantics<parallel>, #tpu.dimension_semantics<parallel>], iteration_bounds = array<i64: 1, 1>, scalar_prefetch = 0 : i64, scratch_operands = 0 : i64, tpu.core_type = #tpu.core_type<tc>, window_params = [{transform_indices = @transform_0, window_bounds = array<i64: 2, 8, 8, 288>}, {pipeline_mode = #tpu.pipeline_mode<synchronous>, transform_indices = @transform_1, window_bounds = array<i64: 288, 64>}, {pipeline_mode = #tpu.pipeline_mode<synchronous>, transform_indices = @transform_2, window_bounds = array<i64: 1, 64>}, {transform_indices = @transform_3, window_bounds = array<i64: 2, 4, 256>}]} {
    %c0 = arith.constant 0 : index
    %c0_0 = arith.constant 0 : index
    %c0_1 = arith.constant 0 : index
    %c0_2 = arith.constant 0 : index
    %0 = vector.load %arg2[%c0, %c0_0, %c0_1, %c0_2] : memref<2x8x8x288xbf16, #tpu.memory_space<vmem>>, vector<2x8x8x288xbf16>
    %1 = vector.shape_cast %0 : vector<2x8x8x288xbf16> to vector<128x288xbf16>
    %c0_3 = arith.constant 0 : index
    %c0_4 = arith.constant 0 : index
    %2 = vector.load %arg3[%c0_3, %c0_4] : memref<288x64xbf16, #tpu.memory_space<vmem>>, vector<288x64xbf16>
    %cst = arith.constant dense<0.000000e+00> : vector<128x64xf32>
    %3 = tpu.matmul %1, %2, %cst {dimension_numbers = #tpu.dot_dimension_numbers<[1], [0], [0], [1], [0, 0, 1, 1], [], []>} : vector<128x288xbf16>, vector<288x64xbf16>, vector<128x64xf32> -> vector<128x64xf32>
    %c0_5 = arith.constant 0 : index
    %c0_6 = arith.constant 0 : index
    %4 = vector.load %arg4[%c0_5, %c0_6] : memref<1x64xf32, #tpu.memory_space<vmem>>, vector<1x64xf32>
    %5 = vector.broadcast %4 : vector<1x64xf32> to vector<128x64xf32>
    %6 = arith.addf %3, %5 : vector<128x64xf32>
    %cst_7 = arith.constant 0.000000e+00 : f32
    %7 = vector.broadcast %cst_7 : f32 to vector<128x64xf32>
    %8 = arith.maximumf %6, %7 : vector<128x64xf32>
    %9 = vector.shape_cast %8 : vector<128x64xf32> to vector<16x4x2x64xf32>
    %cst_8 = arith.constant dense<0xFF800000> : vector<16x4x64xf32>
    %10 = vector.multi_reduction <maximumf>, %9, %cst_8 [2] : vector<16x4x2x64xf32> to vector<16x4x64xf32>
    %11 = vector.shape_cast %10 : vector<16x4x64xf32> to vector<8x2x256xf32>
    %cst_9 = arith.constant dense<0xFF800000> : vector<8x256xf32>
    %12 = vector.multi_reduction <maximumf>, %11, %cst_9 [1] : vector<8x2x256xf32> to vector<8x256xf32>
    %13 = vector.shape_cast %12 : vector<8x256xf32> to vector<2x4x256xf32>
    %14 = arith.truncf %13 : vector<2x4x256xf32> to vector<2x4x256xbf16>
    %c0_10 = arith.constant 0 : index
    %c0_11 = arith.constant 0 : index
    %c0_12 = arith.constant 0 : index
    %15 = vector.load %arg5[%c0_10, %c0_11, %c0_12] : memref<2x4x256xbf16, #tpu.memory_space<vmem>>, vector<2x4x256xbf16>
    tpu.vector_store %arg5[%c0_10, %c0_11, %c0_12], %14 {strides = array<i32>} : memref<2x4x256xbf16, #tpu.memory_space<vmem>>, vector<2x4x256xbf16>,
    return
  }
  func.func @transform_0(%arg0: i32, %arg1: i32) -> (i32, i32, i32, i32) {
    %c0_i32 = arith.constant 0 : i32
    %c0_i32_0 = arith.constant 0 : i32
    %c0_i32_1 = arith.constant 0 : i32
    return %arg0, %arg1, %c0_i32, %c0_i32_0 : i32, i32, i32, i32
  }
  func.func @transform_1(%arg0: i32, %arg1: i32) -> (i32, i32) {
    %c0_i32 = arith.constant 0 : i32
    %c0_i32_0 = arith.constant 0 : i32
    %c0_i32_1 = arith.constant 0 : i32
    return %c0_i32, %c0_i32_0 : i32, i32
  }
  func.func @transform_2(%arg0: i32, %arg1: i32) -> (i32, i32) {
    %c0_i32 = arith.constant 0 : i32
    %c0_i32_0 = arith.constant 0 : i32
    %c0_i32_1 = arith.constant 0 : i32
    return %c0_i32, %c0_i32_0 : i32, i32
  }
  func.func @transform_3(%arg0: i32, %arg1: i32) -> (i32, i32, i32) {
    %c0_i32 = arith.constant 0 : i32
    %c0_i32_0 = arith.constant 0 : i32
    return %arg0, %arg1, %c0_i32 : i32, i32, i32
  }
}

module attributes {stable_mosaic.version = 11 : i64} {
  func.func @_mlp_kernel(%arg0: i32, %arg1: memref<2x1024xbf16, #tpu.memory_space<vmem>>, %arg2: memref<1024x128xbf16, #tpu.memory_space<vmem>>, %arg3: memref<1x128xf32, #tpu.memory_space<vmem>>, %arg4: memref<128x4xbf16, #tpu.memory_space<vmem>>, %arg5: memref<1x4xf32, #tpu.memory_space<vmem>>, %arg6: memref<2x4xf32, #tpu.memory_space<vmem>>, %arg7: memref<2x128xf32, #tpu.memory_space<vmem>>) attributes {dimension_semantics = [#tpu.dimension_semantics<arbitrary>], iteration_bounds = array<i64: 1>, scalar_prefetch = 0 : i64, scratch_operands = 1 : i64, tpu.core_type = #tpu.core_type<tc>, window_params = [{transform_indices = @transform_0, window_bounds = array<i64: 2, 1024>}, {transform_indices = @transform_1, window_bounds = array<i64: 1024, 128>}, {pipeline_mode = #tpu.pipeline_mode<synchronous>, transform_indices = @transform_2, window_bounds = array<i64: 1, 128>}, {pipeline_mode = #tpu.pipeline_mode<synchronous>, transform_indices = @transform_3, window_bounds = array<i64: 128, 4>}, {pipeline_mode = #tpu.pipeline_mode<synchronous>, transform_indices = @transform_4, window_bounds = array<i64: 1, 4>}, {pipeline_mode = #tpu.pipeline_mode<synchronous>, transform_indices = @transform_5, window_bounds = array<i64: 2, 4>}]} {
    %c0_i32 = arith.constant 0 : i32
    %0 = arith.cmpi eq, %arg0, %c0_i32 : i32
    %1 = arith.extui %0 : i1 to i32
    %c0_i32_0 = arith.constant 0 : i32
    %2 = arith.cmpi ne, %1, %c0_i32_0 : i32
    scf.if %2 {
      %cst_10 = arith.constant 0.000000e+00 : f32
      %12 = vector.broadcast %cst_10 : f32 to vector<2x128xf32>
      %c0_11 = arith.constant 0 : index
      %c0_12 = arith.constant 0 : index
      %13 = vector.load %arg7[%c0_11, %c0_12] : memref<2x128xf32, #tpu.memory_space<vmem>>, vector<2x128xf32>
      tpu.vector_store %arg7[%c0_11, %c0_12], %12 {strides = array<i32>} : memref<2x128xf32, #tpu.memory_space<vmem>>, vector<2x128xf32>,
    } else {
    }
    %c0 = arith.constant 0 : index
    %c0_1 = arith.constant 0 : index
    %3 = vector.load %arg7[%c0, %c0_1] : memref<2x128xf32, #tpu.memory_space<vmem>>, vector<2x128xf32>
    %c0_2 = arith.constant 0 : index
    %c0_3 = arith.constant 0 : index
    %4 = vector.load %arg1[%c0_2, %c0_3] : memref<2x1024xbf16, #tpu.memory_space<vmem>>, vector<2x1024xbf16>
    %c0_4 = arith.constant 0 : index
    %c0_5 = arith.constant 0 : index
    %5 = vector.load %arg2[%c0_4, %c0_5] : memref<1024x128xbf16, #tpu.memory_space<vmem>>, vector<1024x128xbf16>
    %cst = arith.constant dense<0.000000e+00> : vector<2x128xf32>
    %6 = tpu.matmul %4, %5, %cst {dimension_numbers = #tpu.dot_dimension_numbers<[1], [0], [0], [1], [0, 0, 1, 1], [], []>} : vector<2x1024xbf16>, vector<1024x128xbf16>, vector<2x128xf32> -> vector<2x128xf32>
    %7 = arith.addf %3, %6 : vector<2x128xf32>
    %c0_6 = arith.constant 0 : index
    %c0_7 = arith.constant 0 : index
    %8 = vector.load %arg7[%c0_6, %c0_7] : memref<2x128xf32, #tpu.memory_space<vmem>>, vector<2x128xf32>
    tpu.vector_store %arg7[%c0_6, %c0_7], %7 {strides = array<i32>} : memref<2x128xf32, #tpu.memory_space<vmem>>, vector<2x128xf32>,
    %c0_i32_8 = arith.constant 0 : i32
    %9 = arith.cmpi eq, %arg0, %c0_i32_8 : i32
    %10 = arith.extui %9 : i1 to i32
    %c0_i32_9 = arith.constant 0 : i32
    %11 = arith.cmpi ne, %10, %c0_i32_9 : i32
    scf.if %11 {
      %c0_10 = arith.constant 0 : index
      %c0_11 = arith.constant 0 : index
      %12 = vector.load %arg7[%c0_10, %c0_11] : memref<2x128xf32, #tpu.memory_space<vmem>>, vector<2x128xf32>
      %c0_12 = arith.constant 0 : index
      %c0_13 = arith.constant 0 : index
      %13 = vector.load %arg3[%c0_12, %c0_13] : memref<1x128xf32, #tpu.memory_space<vmem>>, vector<1x128xf32>
      %14 = vector.broadcast %13 : vector<1x128xf32> to vector<2x128xf32>
      %15 = arith.addf %12, %14 : vector<2x128xf32>
      %cst_14 = arith.constant 0.000000e+00 : f32
      %16 = vector.broadcast %cst_14 : f32 to vector<2x128xf32>
      %17 = arith.maximumf %15, %16 : vector<2x128xf32>
      %18 = arith.truncf %17 : vector<2x128xf32> to vector<2x128xbf16>
      %c0_15 = arith.constant 0 : index
      %c0_16 = arith.constant 0 : index
      %19 = vector.load %arg4[%c0_15, %c0_16] : memref<128x4xbf16, #tpu.memory_space<vmem>>, vector<128x4xbf16>
      %cst_17 = arith.constant dense<0.000000e+00> : vector<2x4xf32>
      %20 = tpu.matmul %18, %19, %cst_17 {dimension_numbers = #tpu.dot_dimension_numbers<[1], [0], [0], [1], [0, 0, 1, 1], [], []>} : vector<2x128xbf16>, vector<128x4xbf16>, vector<2x4xf32> -> vector<2x4xf32>
      %c0_18 = arith.constant 0 : index
      %c0_19 = arith.constant 0 : index
      %21 = vector.load %arg5[%c0_18, %c0_19] : memref<1x4xf32, #tpu.memory_space<vmem>>, vector<1x4xf32>
      %22 = vector.broadcast %21 : vector<1x4xf32> to vector<2x4xf32>
      %23 = arith.addf %20, %22 : vector<2x4xf32>
      %c0_20 = arith.constant 0 : index
      %c0_21 = arith.constant 0 : index
      %24 = vector.load %arg6[%c0_20, %c0_21] : memref<2x4xf32, #tpu.memory_space<vmem>>, vector<2x4xf32>
      tpu.vector_store %arg6[%c0_20, %c0_21], %23 {strides = array<i32>} : memref<2x4xf32, #tpu.memory_space<vmem>>, vector<2x4xf32>,
    } else {
    }
    return
  }
  func.func @transform_0(%arg0: i32) -> (i32, i32) {
    %c0_i32 = arith.constant 0 : i32
    %c0_i32_0 = arith.constant 0 : i32
    return %c0_i32, %arg0 : i32, i32
  }
  func.func @transform_1(%arg0: i32) -> (i32, i32) {
    %c0_i32 = arith.constant 0 : i32
    %c0_i32_0 = arith.constant 0 : i32
    return %arg0, %c0_i32 : i32, i32
  }
  func.func @transform_2(%arg0: i32) -> (i32, i32) {
    %c0_i32 = arith.constant 0 : i32
    %c0_i32_0 = arith.constant 0 : i32
    %c0_i32_1 = arith.constant 0 : i32
    return %c0_i32, %c0_i32_0 : i32, i32
  }
  func.func @transform_3(%arg0: i32) -> (i32, i32) {
    %c0_i32 = arith.constant 0 : i32
    %c0_i32_0 = arith.constant 0 : i32
    %c0_i32_1 = arith.constant 0 : i32
    return %c0_i32, %c0_i32_0 : i32, i32
  }
  func.func @transform_4(%arg0: i32) -> (i32, i32) {
    %c0_i32 = arith.constant 0 : i32
    %c0_i32_0 = arith.constant 0 : i32
    %c0_i32_1 = arith.constant 0 : i32
    return %c0_i32, %c0_i32_0 : i32, i32
  }
  func.func @transform_5(%arg0: i32) -> (i32, i32) {
    %c0_i32 = arith.constant 0 : i32
    %c0_i32_0 = arith.constant 0 : i32
    %c0_i32_1 = arith.constant 0 : i32
    return %c0_i32, %c0_i32_0 : i32, i32
  }
}

</mosaic_0001>

<bundles_post_ra>
// kernel: gaze_cnn_forward.4
= control target key start
LH: loop header
LB: loop body
LE: loop exit
PB: predicated region body
PF: predicated region fallthrough
CT: control target
= control target key end

     0   :  { %vm318_vm0 = vcmask 261120   ;;  %v2417_v58 = vmov 1983009808   ;;  %v573_v60 = vlaneseq  ;;  %vm905_vm1 = vcmask 517120   ;;  %s3296_s1 = inlined_call_operand.vmem [shape: bf16[288,64], index: 1, kind: input, shape index: {}]   ;;  %s3297_s0 = inlined_call_operand.vmem [shape: bf16[2,8,8,288], index: 0, kind: input, shape index: {}]   ;;  %s3298_s2 = inlined_call_operand.vmem [shape: f32[1,64], index: 2, kind: input, shape index: {}]   ;;  %s3299_s3 = inlined_call_operand.vmem [shape: bf16[2,4,256], index: 3, kind: output, shape index: {}]  }
   0x1   :  { %v2366_v0 = vld [vmem:[%s3296_s1 + $0x40] sm:$0xff]   ;;  %v2368_v2 = vld [vmem:[%s3296_s1 + $0x48] sm:$0xff]   ;;  %v2370_v4 = vld [vmem:[%s3296_s1 + $0x50] sm:$0xff]   ;;  %v571_v59 = vunpack.c.l.s4 %v2417_v58  ;;  %vm1418_vm2 = vcmask 1041409   ;;  %vm1420_vm3 = vcmask 1042434   ;;  %vm1422_vm4 = vcmask 1043459  }
   0x2   :  { %v2367_v1 = vld [vmem:[%s3296_s1] sm:$0xff]   ;;  %2212 = vmatprep.subr.bf16.mxu0 %v2366_v0  ;;  %2306 = vmatprep.subr.bf16.mxu1 %v2366_v0  ;;  %v2369_v3 = vld [vmem:[%s3296_s1 + $0x8] sm:$0xff]   ;;  %v2371_v5 = vld [vmem:[%s3296_s1 + $0x10] sm:$0xff]   ;;  %vm1805_vm5 = vcmask 523264   ;;  %vm1822_vm6 = vcmask 1041408  }
   0x3   :  { %2213 = vmatpush3.bf16.msra.mxu0 %v2367_v1  ;;  %2314 = vmatpush3.bf16.msra.mxu1 %v2367_v1  ;;  %v2372_v6 = vld [vmem:[%s3296_s1 + $0x58] sm:$0xff]   ;;  %v2374_v8 = vld [vmem:[%s3296_s1 + $0x60] sm:$0xff]   ;;  %v2376_v10 = vld [vmem:[%s3296_s1 + $0x68] sm:$0xff]  }
   0x4   :  { %2214 = vmatprep.subr.bf16.mxu0 %v2368_v2  ;;  %2307 = vmatprep.subr.bf16.mxu1 %v2368_v2  ;;  %v2373_v7 = vld [vmem:[%s3296_s1 + $0x18] sm:$0xff]   ;;  %v2375_v9 = vld [vmem:[%s3296_s1 + $0x20] sm:$0xff]   ;;  %v2377_v13 = vld [vmem:[%s3296_s1 + $0x28] sm:$0xff]  }
   0x5   :  { %v2384_v11 = vld [vmem:[%s3297_s0 + $0x4] ss:$12 sps:$4 sm:$0xff]   ;;  %v2387_v12 = vld [vmem:[%s3297_s0 + $0x94] ss:$12 sps:$4 sm:$0xff]   ;;  %v2380_v16 = vld [vmem:[%s3296_s1 + $0x78] sm:$0xff]  }
   0x6   :  { %v2378_v14 = vld [vmem:[%s3296_s1 + $0x70] sm:$0xff]   ;;  %375 = vmatprep.mubr.bf16.mxu0 %v2384_v11  ;;  %423 = vmatprep.mubr.bf16.mxu1 %v2387_v12  ;;  %v2381_v17 = vld [vmem:[%s3296_s1 + $0x38] sm:$0xff]   ;;  %v2382_v18 = vld [vmem:[%s3297_s0] ss:$12 sps:$4 sm:$0xff]  }
   0x7   :  { %2215 = vmatpush3.bf16.msra.mxu0 %v2369_v3  ;;  %2315 = vmatpush3.bf16.msra.mxu1 %v2369_v3  ;;  %v2379_v15 = vld [vmem:[%s3296_s1 + $0x30] sm:$0xff]   ;;  %v2388_v19 = vld [vmem:[%s3296_s1 + $0x80] sm:$0xff]   ;;  %v2389_v21 = vld [vmem:[%s3297_s0 + $0x1c] ss:$12 sps:$4 sm:$0xff]  }
   0x8   :  { %2216 = vmatprep.subr.bf16.mxu0 %v2370_v4  ;;  %2308 = vmatprep.subr.bf16.mxu1 %v2370_v4  ;;  %v2385_v20 = vld [vmem:[%s3297_s0 + $0x90] ss:$12 sps:$4 sm:$0xff]   ;;  %v2391_v22 = vld [vmem:[%s3297_s0 + $0xac] ss:$12 sps:$4 sm:$0xff]   ;;  %v2394_v25 = vld [vmem:[%s3297_s0 + $0xa8] ss:$12 sps:$4 sm:$0xff]  }
   0x9   :  { %v2395_v23 = vld [vmem:[%s3296_s1 + $0x88] sm:$0xff]   ;;  %v2393_v24 = vld [vmem:[%s3297_s0 + $0x18] ss:$12 sps:$4 sm:$0xff]   ;;  %v2396_v26 = vld [vmem:[%s3297_s0 + $0x34] ss:$12 sps:$4 sm:$0xff]  }
   0xa   :  { %v2398_v27 = vld [vmem:[%s3297_s0 + $0x8] ss:$12 sps:$4 sm:$0xff]   ;;  %v2399_v28 = vld [vmem:[%s3297_s0 + $0x30] ss:$12 sps:$4 sm:$0xff]   ;;  %v2400_v29 = vld [vmem:[%s3297_s0 + $0x20] ss:$12 sps:$4 sm:$0xff]  }
   0xb   :  { %2217 = vmatpush3.bf16.msra.mxu0 %v2371_v5  ;;  %2316 = vmatpush3.bf16.msra.mxu1 %v2371_v5  ;;  %v2401_v30 = vld [vmem:[%s3297_s0 + $0x4c] ss:$12 sps:$4 sm:$0xff]   ;;  %v2404_v32 = vld [vmem:[%s3297_s0 + $0x48] ss:$12 sps:$4 sm:$0xff]   ;;  %v2405_v33 = vld [vmem:[%s3297_s0 + $0x50] ss:$12 sps:$4 sm:$0xff]  }
   0xc   :  { %2218 = vmatprep.subr.bf16.mxu0 %v2372_v6  ;;  %2309 = vmatprep.subr.bf16.mxu1 %v2372_v6  ;;  %v2403_v31 = vld [vmem:[%s3297_s0 + $0x38] ss:$12 sps:$4 sm:$0xff]   ;;  %v2408_v35 = vld [vmem:[%s3297_s0 + $0x68] ss:$12 sps:$4 sm:$0xff]   ;;  %v2409_v36 = vld [vmem:[%s3297_s0 + $0x60] ss:$12 sps:$4 sm:$0xff]   ;;  %v572_v6 = vunpack.c.0.s8 %v571_v59 }
   0xd   :  { %v2406_v34 = vld [vmem:[%s3297_s0 + $0x64] ss:$12 sps:$4 sm:$0xff]   ;;  %v2410_v37 = vld [vmem:[%s3297_s0 + $0x80] ss:$12 sps:$4 sm:$0xff]   ;;  %v2411_v38 = vld [vmem:[%s3297_s0 + $0x7c] ss:$12 sps:$4 sm:$0xff]  }
   0xe   :  { %v2413_v39 = vld [vmem:[%s3297_s0 + $0x98] ss:$12 sps:$4 sm:$0xff]   ;;  %v2415_v41 = vld [vmem:[%s3297_s0 + $0xb0] ss:$12 sps:$4 sm:$0xff]   ;;  %v2578_v5 = vld [vmem:[%s3298_s2] ss:$0 sm:$0xff] }
   0xf   :  { %2219 = vmatpush3.bf16.msra.mxu0 %v2373_v7  ;;  %2317 = vmatpush3.bf16.msra.mxu1 %v2373_v7  ;;  %v2414_v40 = vld [vmem:[%s3297_s0 + $0x78] ss:$12 sps:$4 sm:$0xff]   ;;  %v2580_v7 = vshrl.u32 %v573_v60, 7 }
  0x10   :  { %2220 = vmatprep.subr.bf16.mxu0 %v2374_v8  ;;  %2310 = vmatprep.subr.bf16.mxu1 %v2374_v8 }
  0x11   :  { %3301 = vst [vmem:[#allocation2_spill] sm:$0xff] %v2580_v7 }
  0x13   :  { %2221 = vmatpush3.bf16.msra.mxu0 %v2375_v9  ;;  %2318 = vmatpush3.bf16.msra.mxu1 %v2375_v9 }
  0x14   :  { %2222 = vmatprep.subr.bf16.mxu0 %v2376_v10  ;;  %2311 = vmatprep.subr.bf16.mxu1 %v2376_v10 }
  0x17   :  { %2223 = vmatpush3.bf16.msra.mxu0 %v2377_v13  ;;  %2319 = vmatpush3.bf16.msra.mxu1 %v2377_v13  ;;  %v2585_v13 = vsub.s32 %v572_v6, %v2580_v7 }
  0x18   :  { %2224 = vmatprep.subr.bf16.mxu0 %v2378_v14  ;;  %2312 = vmatprep.subr.bf16.mxu1 %v2378_v14 }
  0x1b   :  { %2225 = vmatpush3.bf16.msra.mxu0 %v2379_v15  ;;  %2320 = vmatpush3.bf16.msra.mxu1 %v2379_v15 }
  0x1c   :  { %2226 = vmatprep.subr.bf16.mxu0 %v2380_v16  ;;  %2313 = vmatprep.subr.bf16.mxu1 %v2380_v16 }
  0x1f   :  { %2227 = vmatpush3.bf16.msra.mxu0 %v2381_v17  ;;  %2321 = vmatpush3.bf16.msra.mxu1 %v2381_v17 }
  0x20   :  { %2286 = vmatprep.subr.bf16.mxu1 %v2388_v19 }
  0x22   :  { %376 = vmatmul.mubr.bf16.vlgmr.msra.gmra.mrb[0].mxu0 %v2382_v18  ;;  %424 = vmatmul.mubr.bf16.vlgmr.msra.gmra.mrb[0].mxu1 %v2385_v20 }
  0x23   :  { %2287 = vmatpush3.bf16.msra.mxu1 %v2388_v19  ;;  %383 = vmatprep.mubr.bf16.mxu0 %v2389_v21 }
  0x24   :  { %431 = vmatprep.mubr.bf16.mxu1 %v2391_v22  ;;  %2288 = vmatprep.subr.bf16.mxu1 %v2395_v23 }
  0x27   :  { %2289 = vmatpush3.bf16.msra.mxu1 %v2395_v23 }
  0x2a   :  { %384 = vmatmul.mubr.bf16.gmra.mrb[4].mxu0 %v2393_v24  ;;  %432 = vmatmul.mubr.bf16.gmra.mrb[4].mxu1 %v2394_v25 }
  0x2b   :  { %391 = vmatprep.mubr.bf16.mxu0 %v2396_v26  ;;  %2290 = vmatprep.mubr.msk.bf16.mxu1 %vm318_vm0, %v2398_v27 }
  0x32   :  { %392 = vmatmul.mubr.bf16.gmra.mrb[8].mxu0 %v2399_v28  ;;  %2291 = vmatmul.mubr.msk.bf16.vlgmr.msra.gmra.mrb[8].mxu1 %vm318_vm0, %v2400_v29 }
  0x33   :  { %399 = vmatprep.mubr.bf16.mxu0 %v2401_v30  ;;  %2294 = vmatprep.mubr.msk.bf16.mxu1 %vm318_vm0, %v2403_v31 }
  0x3a   :  { %400 = vmatmul.mubr.bf16.gmra.mrb[12].mxu0 %v2404_v32  ;;  %2295 = vmatmul.mubr.msk.bf16.gmra.mrb[12].mxu1 %vm318_vm0, %v2405_v33 }
  0x3b   :  { %407 = vmatprep.mubr.bf16.mxu0 %v2406_v34  ;;  %2298 = vmatprep.mubr.msk.bf16.mxu1 %vm318_vm0, %v2408_v35 }
  0x42   :  { %408 = vmatmul.mubr.bf16.gmra.mrb[16].mxu0 %v2409_v36  ;;  %2299 = vmatmul.mubr.msk.bf16.gmra.mrb[16].mxu1 %vm318_vm0, %v2410_v37 }
  0x43   :  { %415 = vmatprep.mubr.bf16.mxu0 %v2411_v38  ;;  %2302 = vmatprep.mubr.msk.bf16.mxu1 %vm318_vm0, %v2413_v39 }
  0x4a   :  { %416 = vmatmul.mubr.bf16.gmra.mrb[20].mxu0 %v2414_v40  ;;  %2303 = vmatmul.mubr.msk.bf16.gmra.mrb[20].mxu1 %vm318_vm0, %v2415_v41 }
  0xf5   :  { %v2228_v42 = vpop.f32.mrb[0].mxu0  ;;  %v2264_v43 = vpop.f32.mrb[0].mxu1 }
  0xf6   :  { %v2229_v44 = vpop.f32.mrb[1].mxu0  ;;  %v2265_v45 = vpop.f32.mrb[1].mxu1 }
  0xf7   :  { %v2230_v46 = vadd.f32 %v2229_v44, %v2228_v42  ;;  %v2266_v47 = vadd.f32 %v2265_v45, %v2264_v43  ;;  %v2231_v48 = vpop.f32.mrb[2].mxu0  ;;  %v2267_v49 = vpop.f32.mrb[2].mxu1 }
  0xf8   :  { %v2232_v50 = vpop.f32.mrb[3].mxu0  ;;  %v2268_v51 = vpop.f32.mrb[3].mxu1 }
  0xf9   :  { %v2233_v52 = vadd.f32 %v2232_v50, %v2231_v48  ;;  %v2269_v53 = vadd.f32 %v2268_v51, %v2267_v49  ;;  %v378_v11 = vadd.f32 %v2230_v46, %v2578_v5  ;;  %v2590_v22 = vadd.f32 %v2266_v47, %v2578_v5 }
  0xfb   :  { %v381_v21 = vadd.f32 %v2233_v52, %v2578_v5  ;;  %v2596_v28 = vadd.f32 %v2269_v53, %v2578_v5 }
  0xfd   :  { %v2234_v54 = vpop.f32.mrb[4].mxu0  ;;  %v2270_v55 = vpop.f32.mrb[4].mxu1 }
  0xfe   :  { %v2235_v56 = vpop.f32.mrb[5].mxu0  ;;  %v2271_v57 = vpop.f32.mrb[5].mxu1 }
  0xff   :  { %v2236_v61 = vadd.f32 %v2235_v56, %v2234_v54  ;;  %v2272_v62 = vadd.f32 %v2271_v57, %v2270_v55  ;;  %v2237_v63 = vpop.f32.mrb[6].mxu0  ;;  %v2273_v0 = vpop.f32.mrb[6].mxu1 }
 0x100   :  { %v2238_v1 = vpop.f32.mrb[7].mxu0  ;;  %v2274_v2 = vpop.f32.mrb[7].mxu1 }
 0x101   :  { %v2239_v3 = vadd.f32 %v2238_v1, %v2237_v63  ;;  %v2275_v4 = vadd.f32 %v2274_v2, %v2273_v0  ;;  %v386_v8 = vadd.f32 %v2236_v61, %v2578_v5  ;;  %v2593_v27 = vadd.f32 %v2272_v62, %v2578_v5 }
 0x103   :  { %v389_v16 = vadd.f32 %v2239_v3, %v2578_v5  ;;  %v2599_v32 = vadd.f32 %v2275_v4, %v2578_v5 }
 0x105   :  { %v2240_v9 = vpop.f32.mrb[8].mxu0  ;;  %v2292_v10 = vpop.f32.mrb[8].mxu1 }
 0x106   :  { %v483_v12 = vadd.f32 %v2292_v10, %v386_v8  ;;  %v2241_v14 = vpop.f32.mrb[9].mxu0  ;;  %v474_v15 = vpop.f32.mrb[9].mxu1 }
 0x107   :  { %v2242_v17 = vadd.f32 %v2241_v14, %v2240_v9  ;;  %v475_v18 = vadd.f32 %v474_v15, %v378_v11  ;;  %v2243_v19 = vpop.f32.mrb[10].mxu0  ;;  %v2293_v20 = vpop.f32.mrb[10].mxu1 }
 0x108   :  { %v539_v23 = vmax.f32 %v483_v12, 0.0  ;;  %v486_v24 = vadd.f32 %v2293_v20, %v389_v16  ;;  %v2244_v25 = vpop.f32.mrb[11].mxu0  ;;  %v477_v26 = vpop.f32.mrb[11].mxu1 }
 0x109   :  { %v537_v29 = vmax.f32 %v475_v18, 0.0  ;;  %v2245_v30 = vadd.f32 %v2244_v25, %v2243_v19  ;;  %v478_v31 = vadd.f32 %v477_v26, %v381_v21  ;;  %v2605_v36 = vadd.f32 %v2242_v17, %v2578_v5 }
 0x10a   :  { %v603_v33 = vcombine.high %v539_v23, %v539_v23  ;;  %v610_v34 = vrot.slane %v539_v23, %v2585_v13  ;;  %v2602_v35 = vmax.f32 %v486_v24, 0.0 }
 0x10b   :  { %v569_v37 = vcombine.high %v537_v29, %v537_v29  ;;  %v576_v38 = vrot.slane %v537_v29, %v2585_v13  ;;  %v2608_v39 = vmax.f32 %v478_v31, 0.0  ;;  %v2611_v40 = vadd.f32 %v2245_v30, %v2578_v5 }
 0x10c   :  { %v617_v41 = vrot.slane %v603_v33, %v2585_v13  ;;  %v618_v42 = vcombine.high %v610_v34, %v610_v34  ;;  %v962_v43 = vsel %vm905_vm1, %v610_v34, -inf  ;;  %v620_v44 = vcombine.high %v2602_v35, %v2602_v35 }
 0x10d   :  { %v963_v45 = vrot.slane %v962_v43, 4  ;;  %v583_v46 = vrot.slane %v569_v37, %v2585_v13  ;;  %v584_v47 = vcombine.high %v576_v38, %v576_v38  ;;  %v906_v48 = vsel %vm905_vm1, %v576_v38, -inf  ;;  %v2619_v49 = vpop.f32.mrb[12].mxu0  ;;  %v2621_v50 = vpop.f32.mrb[12].mxu1 }
 0x10e   :  { %v619_v51 = vcombine.high %v617_v41, %v617_v41  ;;  %v969_v52 = vsel %vm905_vm1, %v618_v42, -inf  ;;  %v976_v53 = vsel %vm905_vm1, %v617_v41, -inf  ;;  %v907_v54 = vrot.slane %v906_v48, 4  ;;  %v2625_v55 = vpop.f32.mrb[13].mxu0  ;;  %v2627_v56 = vpop.f32.mrb[13].mxu1 }
 0x10f   :  { %v964_v57 = vmax.f32 %v962_v43, %v963_v45  ;;  %v970_v58 = vrot.slane %v969_v52, 4  ;;  %v977_v59 = vrot.slane %v976_v53, 4  ;;  %v585_v60 = vcombine.high %v583_v46, %v583_v46  ;;  %v2629_v61 = vpop.f32.mrb[14].mxu0  ;;  %v2631_v62 = vpop.f32.mrb[14].mxu1 }
 0x110   :  { %v983_v63 = vsel %vm905_vm1, %v619_v51, -inf  ;;  %v908_v0 = vmax.f32 %v906_v48, %v907_v54  ;;  %v913_v1 = vsel %vm905_vm1, %v584_v47, -inf  ;;  %v920_v2 = vsel %vm905_vm1, %v583_v46, -inf  ;;  %v2636_v3 = vpop.f32.mrb[15].mxu0  ;;  %v2638_v4 = vpop.f32.mrb[15].mxu1 }
 0x111   :  { %v965_v6 = vrot.slane %v964_v57, 2  ;;  %v971_v8 = vmax.f32 %v969_v52, %v970_v58  ;;  %v978_v9 = vmax.f32 %v976_v53, %v977_v59  ;;  %v984_v10 = vrot.slane %v983_v63, 4 }
 0x112   :  { %v909_v11 = vrot.slane %v908_v0, 2  ;;  %v914_v12 = vrot.slane %v913_v1, 4  ;;  %v921_v14 = vrot.slane %v920_v2, 4  ;;  %v927_v15 = vsel %vm905_vm1, %v585_v60, -inf }
 0x113   :  { %v966_v16 = vmax.f32 %v964_v57, %v965_v6  ;;  %v972_v17 = vrot.slane %v971_v8, 2  ;;  %v979_v18 = vrot.slane %v978_v9, 2  ;;  %v985_v19 = vmax.f32 %v983_v63, %v984_v10 }
 0x114   :  { %v910_v20 = vmax.f32 %v908_v0, %v909_v11  ;;  %v915_v21 = vmax.f32 %v913_v1, %v914_v12  ;;  %v922_v23 = vmax.f32 %v920_v2, %v921_v14  ;;  %v928_v24 = vrot.slane %v927_v15, 4 }
 0x115   :  { %v967_v25 = vrot.slane %v966_v16, 1  ;;  %v973_v26 = vmax.f32 %v971_v8, %v972_v17  ;;  %v980_v29 = vmax.f32 %v978_v9, %v979_v18  ;;  %v986_v30 = vrot.slane %v985_v19, 2  ;;  %v2641_v31 = vpop.f32.mrb[16].mxu0  ;;  %v2643_v33 = vpop.f32.mrb[16].mxu1 }
 0x116   :  { %v911_v34 = vrot.slane %v910_v20, 1  ;;  %v916_v37 = vrot.slane %v915_v21, 2  ;;  %v923_v38 = vrot.slane %v922_v23, 2  ;;  %v929_v41 = vmax.f32 %v927_v15, %v928_v24  ;;  %v2645_v42 = vpop.f32.mrb[17].mxu0  ;;  %v2647_v43 = vpop.f32.mrb[17].mxu1 }
 0x117   :  { %v968_v45 = vmax.f32 %v966_v16, %v967_v25  ;;  %v974_v46 = vrot.slane %v973_v26, 1  ;;  %v981_v47 = vrot.slane %v980_v29, 1  ;;  %v987_v48 = vmax.f32 %v985_v19, %v986_v30  ;;  %v2649_v51 = vpop.f32.mrb[18].mxu0  ;;  %v2651_v52 = vpop.f32.mrb[18].mxu1 }
 0x118   :  { %v912_v53 = vmax.f32 %v910_v20, %v911_v34  ;;  %v917_v54 = vmax.f32 %v915_v21, %v916_v37  ;;  %v924_v57 = vmax.f32 %v922_v23, %v923_v38  ;;  %v930_v58 = vrot.slane %v929_v41, 2  ;;  %v2653_v59 = vpop.f32.mrb[19].mxu0  ;;  %v2655_v60 = vpop.f32.mrb[19].mxu1 }
 0x119   :  { %v975_v63 = vmax.f32 %v973_v26, %v974_v46  ;;  %v2657_v0 = vmax.f32 %v980_v29, %v981_v47  ;;  %v988_v1 = vrot.slane %v987_v48, 1  ;;  %v627_v2 = vrot.slane %v2602_v35, %v2585_v13 }
 0x11a   :  { %v918_v6 = vrot.slane %v917_v54, 1  ;;  %v925_v8 = vrot.slane %v924_v57, 1  ;;  %v931_v9 = vmax.f32 %v929_v41, %v930_v58  ;;  %v634_v10 = vrot.slane %v620_v44, %v2585_v13 }
 0x11b   :  { %3302 = vst [vmem:[#allocation3_spill] sm:$0xff] %v2657_v0  ;;  %v2665_v11 = vmax.f32 %v987_v48, %v988_v1  ;;  %v2668_v12 = vsel %vm1418_vm2, %v975_v63, %v968_v45  ;;  %v635_v14 = vcombine.high %v627_v2, %v627_v2  ;;  %v990_v15 = vsel %vm905_vm1, %v627_v2, -inf }
 0x11c   :  { %3304 = vst [vmem:[#allocation5_spill] sm:$0xff] %v2668_v12  ;;  %v919_v16 = vmax.f32 %v917_v54, %v918_v6  ;;  %v2671_v17 = vmax.f32 %v924_v57, %v925_v8  ;;  %v932_v18 = vrot.slane %v931_v9, 1  ;;  %v636_v19 = vcombine.high %v634_v10, %v634_v10 }
 0x11d   :  { %3303 = vst [vmem:[#allocation4_spill] sm:$0xff] %v2665_v11  ;;  %v991_v20 = vrot.slane %v990_v15, 4  ;;  %v997_v21 = vsel %vm905_vm1, %v635_v14, -inf  ;;  %v1004_v23 = vsel %vm905_vm1, %v634_v10, -inf  ;;  %v586_v35 = vcombine.high %v2608_v39, %v2608_v39  ;;  %v2677_v44 = vpop.f32.mrb[20].mxu0  ;;  %v2679_v24 = vpop.f32.mrb[20].mxu1 }
 0x11e   :  { %v2681_v25 = vmax.f32 %v931_v9, %v932_v18  ;;  %v2684_v26 = vsel %vm1418_vm2, %v919_v16, %v912_v53  ;;  %v998_v29 = vrot.slane %v997_v21, 4  ;;  %v1005_v30 = vrot.slane %v1004_v23, 4  ;;  %v2686_v34 = vpop.f32.mrb[21].mxu0  ;;  %v2688_v37 = vpop.f32.mrb[21].mxu1 }
 0x11f   :  { %v992_v38 = vmax.f32 %v990_v15, %v991_v20  ;;  %v1011_v41 = vsel %vm905_vm1, %v636_v19, -inf  ;;  %v593_v45 = vrot.slane %v2608_v39, %v2585_v13  ;;  %v600_v46 = vrot.slane %v586_v35, %v2585_v13  ;;  %v2694_v47 = vpop.f32.mrb[22].mxu0  ;;  %v2696_v48 = vpop.f32.mrb[22].mxu1 }
 0x120   :  { %3305 = vst [vmem:[#allocation6_spill] sm:$0xff] %v2681_v25  ;;  %v999_v53 = vmax.f32 %v997_v21, %v998_v29  ;;  %v1006_v54 = vmax.f32 %v1004_v23, %v1005_v30  ;;  %v1012_v57 = vrot.slane %v1011_v41, 4  ;;  %v2248_v58 = vadd.f32 %v2625_v55, %v2619_v49  ;;  %v2700_v63 = vpop.f32.mrb[23].mxu0  ;;  %v2702_v1 = vpop.f32.mrb[23].mxu1 }
 0x121   :  { %v993_v2 = vrot.slane %v992_v38, 2  ;;  %v601_v6 = vcombine.high %v593_v45, %v593_v45  ;;  %v602_v8 = vcombine.high %v600_v46, %v600_v46  ;;  %v934_v39 = vsel %vm905_vm1, %v593_v45, -inf }
 0x122   :  { %v1000_v9 = vrot.slane %v999_v53, 2  ;;  %v1007_v10 = vrot.slane %v1006_v54, 2  ;;  %v1013_v14 = vmax.f32 %v1011_v41, %v1012_v57  ;;  %v935_v15 = vrot.slane %v934_v39, 4 }
 0x123   :  { %v994_v16 = vmax.f32 %v992_v38, %v993_v2  ;;  %v941_v18 = vsel %vm905_vm1, %v601_v6, -inf  ;;  %v948_v19 = vsel %vm905_vm1, %v600_v46, -inf  ;;  %v955_v49 = vsel %vm905_vm1, %v602_v8, -inf }
 0x124   :  { %v1001_v55 = vmax.f32 %v999_v53, %v1000_v9  ;;  %v1008_v20 = vmax.f32 %v1006_v54, %v1007_v10  ;;  %v1014_v21 = vrot.slane %v1013_v14, 2  ;;  %v936_v23 = vmax.f32 %v934_v39, %v935_v15 }
 0x125   :  { %v995_v35 = vrot.slane %v994_v16, 1  ;;  %v942_v29 = vrot.slane %v941_v18, 4  ;;  %v949_v30 = vrot.slane %v948_v19, 4  ;;  %v956_v11 = vrot.slane %v955_v49, 4 }
 0x126   :  { %v1002_v45 = vrot.slane %v1001_v55, 1  ;;  %v1009_v0 = vrot.slane %v1008_v20, 1  ;;  %v1015_v12 = vmax.f32 %v1013_v14, %v1014_v21  ;;  %v937_v41 = vrot.slane %v936_v23, 2 }
 0x127   :  { %v996_v57 = vmax.f32 %v994_v16, %v995_v35  ;;  %v943_v38 = vmax.f32 %v941_v18, %v942_v29  ;;  %v950_v2 = vmax.f32 %v948_v19, %v949_v30  ;;  %v957_v6 = vmax.f32 %v955_v49, %v956_v11 }
 0x128   :  { %v1003_v7 = vmax.f32 %v1001_v55, %v1002_v45  ;;  %v2708_v46 = vmax.f32 %v1008_v20, %v1009_v0  ;;  %v1016_v8 = vrot.slane %v1015_v12, 1  ;;  %v938_v53 = vmax.f32 %v936_v23, %v937_v41 }
 0x129   :  { %v944_v54 = vrot.slane %v943_v38, 2  ;;  %v951_v9 = vrot.slane %v950_v2, 2  ;;  %v958_v39 = vrot.slane %v957_v6, 2  ;;  %v402_v10 = vadd.f32 %v2248_v58, %v2578_v5 }
 0x12a   :  { %3306 = vst [vmem:[#allocation7_spill] sm:$0xff] %v2708_v46  ;;  %v2711_v15 = vmax.f32 %v1015_v12, %v1016_v8  ;;  %v2714_v25 = vsel %vm1418_vm2, %v1003_v7, %v996_v57  ;;  %v939_v14 = vrot.slane %v938_v53, 1  ;;  %v491_v16 = vadd.f32 %v2627_v56, %v2605_v36 }
 0x12b   :  { %3308 = vst [vmem:[#allocation9_spill] sm:$0xff] %v2714_v25  ;;  %v945_v11 = vmax.f32 %v943_v38, %v944_v54  ;;  %v952_v18 = vmax.f32 %v950_v2, %v951_v9  ;;  %v959_v0 = vmax.f32 %v957_v6, %v958_v39  ;;  %v499_v19 = vadd.f32 %v2621_v50, %v402_v10 }
 0x12c   :  { %3307 = vst [vmem:[#allocation8_spill] sm:$0xff] %v2711_v15  ;;  %v940_v49 = vmax.f32 %v938_v53, %v939_v14  ;;  %v541_v55 = vmax.f32 %v491_v16, 0.0  ;;  %v2251_v20 = vadd.f32 %v2636_v3, %v2629_v61  ;;  %v494_v12 = vadd.f32 %v2638_v4, %v2611_v40 }
 0x12d   :  { %v946_v58 = vrot.slane %v945_v11, 1  ;;  %v953_v7 = vrot.slane %v952_v18, 1  ;;  %v960_v21 = vrot.slane %v959_v0, 1  ;;  %v543_v23 = vmax.f32 %v499_v19, 0.0 }
 0x12e   :  { %v637_v35 = vcombine.high %v541_v55, %v541_v55  ;;  %v644_v36 = vrot.slane %v541_v55, %v2585_v13  ;;  %v405_v56 = vadd.f32 %v2251_v20, %v2578_v5  ;;  %v2725_v29 = vmax.f32 %v494_v12, 0.0 }
 0x12f   :  { %v947_v50 = vmax.f32 %v945_v11, %v946_v58  ;;  %v2727_v30 = vmax.f32 %v952_v18, %v953_v7  ;;  %v2729_v45 = vmax.f32 %v959_v0, %v960_v21  ;;  %v671_v61 = vcombine.high %v543_v23, %v543_v23 }
 0x130   :  { %v678_v3 = vrot.slane %v543_v23, %v2585_v13  ;;  %v651_v40 = vrot.slane %v637_v35, %v2585_v13  ;;  %v652_v4 = vcombine.high %v644_v36, %v644_v36  ;;  %v1018_v41 = vsel %vm905_vm1, %v644_v36, -inf }
 0x131   :  { %v2735_v57 = vsel %vm1418_vm2, %v947_v50, %v940_v49  ;;  %v685_v38 = vrot.slane %v671_v61, %v2585_v13  ;;  %v1019_v2 = vrot.slane %v1018_v41, 4  ;;  %v502_v6 = vadd.f32 %v2631_v62, %v405_v56 }
 0x132   :  { %v686_v8 = vcombine.high %v678_v3, %v678_v3  ;;  %v1074_v53 = vsel %vm905_vm1, %v678_v3, -inf  ;;  %v653_v54 = vcombine.high %v651_v40, %v651_v40  ;;  %v1025_v9 = vsel %vm905_vm1, %v652_v4, -inf }
 0x133   :  { %v687_v39 = vcombine.high %v685_v38, %v685_v38  ;;  %v1075_v10 = vrot.slane %v1074_v53, 4  ;;  %v1088_v14 = vsel %vm905_vm1, %v685_v38, -inf  ;;  %v1020_v16 = vmax.f32 %v1018_v41, %v1019_v2 }
 0x134   :  { %v1081_v11 = vsel %vm905_vm1, %v686_v8, -inf  ;;  %v1089_v18 = vrot.slane %v1088_v14, 4  ;;  %v1026_v0 = vrot.slane %v1025_v9, 4  ;;  %v1032_v19 = vsel %vm905_vm1, %v651_v40, -inf }
 0x135   :  { %v1076_v49 = vmax.f32 %v1074_v53, %v1075_v10  ;;  %v1082_v55 = vrot.slane %v1081_v11, 4  ;;  %v1095_v62 = vsel %vm905_vm1, %v687_v39, -inf  ;;  %v1021_v20 = vrot.slane %v1020_v16, 2 }
 0x136   :  { %v1090_v12 = vmax.f32 %v1088_v14, %v1089_v18  ;;  %v1096_v58 = vrot.slane %v1095_v62, 4  ;;  %v1027_v7 = vmax.f32 %v1025_v9, %v1026_v0  ;;  %v1033_v21 = vrot.slane %v1032_v19, 4 }
 0x137   :  { %v1077_v23 = vrot.slane %v1076_v49, 2  ;;  %v1083_v35 = vmax.f32 %v1081_v11, %v1082_v55  ;;  %v1022_v36 = vmax.f32 %v1020_v16, %v1021_v20  ;;  %v1039_v56 = vsel %vm905_vm1, %v653_v54, -inf }
 0x138   :  { %v1091_v50 = vrot.slane %v1090_v12, 2  ;;  %v1097_v61 = vmax.f32 %v1095_v62, %v1096_v58  ;;  %v1028_v3 = vrot.slane %v1027_v7, 2  ;;  %v1034_v4 = vmax.f32 %v1032_v19, %v1033_v21 }
 0x139   :  { %v1078_v41 = vmax.f32 %v1076_v49, %v1077_v23  ;;  %v1084_v40 = vrot.slane %v1083_v35, 2  ;;  %v1023_v38 = vrot.slane %v1022_v36, 1  ;;  %v1040_v2 = vrot.slane %v1039_v56, 4 }
 0x13a   :  { %v1092_v8 = vmax.f32 %v1090_v12, %v1091_v50  ;;  %v1098_v53 = vrot.slane %v1097_v61, 2  ;;  %v1029_v39 = vmax.f32 %v1027_v7, %v1028_v3  ;;  %v1035_v10 = vrot.slane %v1034_v4, 2 }
 0x13b   :  { %v1079_v14 = vrot.slane %v1078_v41, 1  ;;  %v1085_v9 = vmax.f32 %v1083_v35, %v1084_v40  ;;  %v1024_v18 = vmax.f32 %v1022_v36, %v1023_v38  ;;  %v1041_v0 = vmax.f32 %v1039_v56, %v1040_v2 }
 0x13c   :  { %v1093_v11 = vrot.slane %v1092_v8, 1  ;;  %v2746_v16 = vmax.f32 %v1097_v61, %v1098_v53  ;;  %v1030_v54 = vrot.slane %v1029_v39, 1  ;;  %v1036_v55 = vmax.f32 %v1034_v4, %v1035_v10 }
 0x13d   :  { %v2748_v62 = vmax.f32 %v1078_v41, %v1079_v14  ;;  %v1086_v19 = vrot.slane %v1085_v9, 1  ;;  %v1042_v49 = vrot.slane %v1041_v0, 2  ;;  %v544_v20 = vmax.f32 %v502_v6, 0.0 }
 0x13e   :  { %v2750_v58 = vmax.f32 %v1092_v8, %v1093_v11  ;;  %v1031_v12 = vmax.f32 %v1029_v39, %v1030_v54  ;;  %v1037_v21 = vrot.slane %v1036_v55, 1  ;;  %v654_v7 = vcombine.high %v2725_v29, %v2725_v29 }
 0x13f   :  { %v2754_v23 = vmax.f32 %v1085_v9, %v1086_v19  ;;  %v1043_v35 = vmax.f32 %v1041_v0, %v1042_v49  ;;  %v688_v36 = vcombine.high %v544_v20, %v544_v20  ;;  %v695_v56 = vrot.slane %v544_v20, %v2585_v13 }
 0x140   :  { %v2757_v50 = vmax.f32 %v1036_v55, %v1037_v21  ;;  %v2760_v61 = vsel %vm1418_vm2, %v1031_v12, %v1024_v18  ;;  %v661_v6 = vrot.slane %v2725_v29, %v2585_v13  ;;  %v668_v3 = vrot.slane %v654_v7, %v2585_v13 }
 0x141   :  { %v1044_v4 = vrot.slane %v1043_v35, 1  ;;  %v702_v41 = vrot.slane %v688_v36, %v2585_v13  ;;  %v703_v40 = vcombine.high %v695_v56, %v695_v56  ;;  %v1102_v38 = vsel %vm905_vm1, %v695_v56, -inf }
 0x142   :  { %3309 = vst [vmem:[#allocation10_spill] sm:$0xff] %v2757_v50  ;;  %v1103_v2 = vrot.slane %v1102_v38, 4  ;;  %v669_v8 = vcombine.high %v661_v6, %v661_v6  ;;  %v670_v53 = vcombine.high %v668_v3, %v668_v3  ;;  %v1046_v39 = vsel %vm905_vm1, %v661_v6, -inf }
 0x143   :  { %v2768_v10 = vmax.f32 %v1043_v35, %v1044_v4  ;;  %v704_v14 = vcombine.high %v702_v41, %v702_v41  ;;  %v1109_v9 = vsel %vm905_vm1, %v703_v40, -inf  ;;  %v1116_v29 = vsel %vm905_vm1, %v702_v41, -inf }
 0x144   :  { %v1104_v18 = vmax.f32 %v1102_v38, %v1103_v2  ;;  %v1110_v0 = vrot.slane %v1109_v9, 4  ;;  %v1117_v11 = vrot.slane %v1116_v29, 4  ;;  %v1047_v54 = vrot.slane %v1046_v39, 4 }
 0x145   :  { %3310 = vst [vmem:[#allocation11_spill] sm:$0xff] %v2768_v10  ;;  %v1123_v55 = vsel %vm905_vm1, %v704_v14, -inf  ;;  %v1053_v19 = vsel %vm905_vm1, %v669_v8, -inf  ;;  %v1060_v49 = vsel %vm905_vm1, %v668_v3, -inf  ;;  %v1067_v20 = vsel %vm905_vm1, %v670_v53, -inf }
 0x146   :  { %v1105_v12 = vrot.slane %v1104_v18, 2  ;;  %v1111_v21 = vmax.f32 %v1109_v9, %v1110_v0  ;;  %v1118_v7 = vmax.f32 %v1116_v29, %v1117_v11  ;;  %v1124_v35 = vrot.slane %v1123_v55, 4 }
 0x147   :  { %v1048_v36 = vmax.f32 %v1046_v39, %v1047_v54  ;;  %v1054_v56 = vrot.slane %v1053_v19, 4  ;;  %v1061_v6 = vrot.slane %v1060_v49, 4  ;;  %v1068_v4 = vrot.slane %v1067_v20, 4 }
 0x148   :  { %v1106_v41 = vmax.f32 %v1104_v18, %v1105_v12  ;;  %v1112_v40 = vrot.slane %v1111_v21, 2  ;;  %v1119_v38 = vrot.slane %v1118_v7, 2  ;;  %v1125_v2 = vmax.f32 %v1123_v55, %v1124_v35 }
 0x149   :  { %v1049_v15 = vrot.slane %v1048_v36, 2  ;;  %v1055_v14 = vmax.f32 %v1053_v19, %v1054_v56  ;;  %v1062_v46 = vmax.f32 %v1060_v49, %v1061_v6  ;;  %v1069_v8 = vmax.f32 %v1067_v20, %v1068_v4 }
 0x14a   :  { %v1107_v25 = vrot.slane %v1106_v41, 1  ;;  %v1113_v3 = vmax.f32 %v1111_v21, %v1112_v40  ;;  %v1120_v10 = vmax.f32 %v1118_v7, %v1119_v38  ;;  %v1126_v53 = vrot.slane %v1125_v2, 2 }
 0x14b   :  { %v1050_v50 = vmax.f32 %v1048_v36, %v1049_v15  ;;  %v1056_v9 = vrot.slane %v1055_v14, 2  ;;  %v1063_v29 = vrot.slane %v1062_v46, 2  ;;  %v1070_v0 = vrot.slane %v1069_v8, 2 }
 0x14c   :  { %v2776_v39 = vmax.f32 %v1106_v41, %v1107_v25  ;;  %v1114_v11 = vrot.slane %v1113_v3, 1  ;;  %v1121_v54 = vrot.slane %v1120_v10, 1  ;;  %v2778_v18 = vmax.f32 %v1125_v2, %v1126_v53 }
 0x14d   :  { %v1051_v12 = vrot.slane %v1050_v50, 1  ;;  %v1057_v55 = vmax.f32 %v1055_v14, %v1056_v9  ;;  %v1064_v35 = vmax.f32 %v1062_v46, %v1063_v29  ;;  %v1071_v19 = vmax.f32 %v1069_v8, %v1070_v0 }
 0x14e   :  { %v2780_v49 = vmax.f32 %v1113_v3, %v1114_v11  ;;  %v2782_v20 = vmax.f32 %v1120_v10, %v1121_v54  ;;  %v2254_v15 = vadd.f32 %v2645_v42, %v2641_v31  ;;  %v2257_v21 = vadd.f32 %v2653_v59, %v2649_v51 }
 0x14f   :  { %v1052_v25 = vmax.f32 %v1050_v50, %v1051_v12  ;;  %v1058_v7 = vrot.slane %v1057_v55, 1  ;;  %v1065_v36 = vrot.slane %v1064_v35, 1  ;;  %v1072_v56 = vrot.slane %v1071_v19, 1 }
 0x150   :  { %v410_v6 = vadd.f32 %v2254_v15, %v2578_v5  ;;  %v413_v4 = vadd.f32 %v2257_v21, %v2578_v5  ;;  %v531_v46 = vadd.f32 %v2679_v24, %v2593_v27  ;;  %v2260_v10 = vadd.f32 %v2686_v34, %v2677_v44 }
 0x151   :  { %v1059_v41 = vmax.f32 %v1057_v55, %v1058_v7  ;;  %v2794_v40 = vmax.f32 %v1064_v35, %v1065_v36  ;;  %v2796_v31 = vmax.f32 %v1071_v19, %v1072_v56  ;;  %v523_v42 = vadd.f32 %v2688_v37, %v2590_v22 }
 0x152   :  { %v507_v51 = vadd.f32 %v2647_v43, %v410_v6  ;;  %v510_v59 = vadd.f32 %v2655_v60, %v413_v4  ;;  %v551_v50 = vmax.f32 %v531_v46, 0.0  ;;  %v418_v38 = vadd.f32 %v2260_v10, %v2578_v5 }
 0x153   :  { %v2804_v27 = vsel %vm1418_vm2, %v1059_v41, %v1052_v25  ;;  %v2806_v24 = vmax.f32 %v523_v42, 0.0  ;;  %v534_v44 = vadd.f32 %v2696_v48, %v2599_v32  ;;  %v2812_v34 = vadd.f32 %v2700_v63, %v2694_v47 }
 0x154   :  { %v545_v22 = vmax.f32 %v507_v51, 0.0  ;;  %v546_v37 = vmax.f32 %v510_v59, 0.0  ;;  %v807_v43 = vcombine.high %v551_v50, %v551_v50  ;;  %v2815_v60 = vrot.slane %v551_v50, %v2585_v13 }
 0x155   :  { %v515_v5 = vadd.f32 %v2643_v33, %v418_v38  ;;  %v2822_v14 = vrot.slane %v2806_v24, %v2585_v13  ;;  %v2824_v32 = vmax.f32 %v534_v44, 0.0 }
 0x156   :  { %v705_v48 = vcombine.high %v545_v22, %v545_v22  ;;  %v712_v47 = vrot.slane %v545_v22, %v2585_v13  ;;  %v722_v63 = vcombine.high %v546_v37, %v546_v37  ;;  %v729_v8 = vrot.slane %v546_v37, %v2585_v13 }
 0x157   :  { %v2829_v3 = vrot.slane %v807_v43, %v2585_v13  ;;  %v822_v33 = vcombine.high %v2815_v60, %v2815_v60  ;;  %v2835_v53 = vsel %vm905_vm1, %v2815_v60, -inf  ;;  %v2837_v9 = vmax.f32 %v515_v5, 0.0 }
 0x158   :  { %v719_v29 = vrot.slane %v705_v48, %v2585_v13  ;;  %v720_v0 = vcombine.high %v712_v47, %v712_v47  ;;  %v1130_v11 = vsel %vm905_vm1, %v712_v47, -inf  ;;  %v736_v54 = vrot.slane %v722_v63, %v2585_v13 }
 0x159   :  { %v1131_v12 = vrot.slane %v1130_v11, 4  ;;  %v737_v55 = vcombine.high %v729_v8, %v729_v8  ;;  %v1158_v35 = vsel %vm905_vm1, %v729_v8, -inf  ;;  %v739_v60 = vcombine.high %v2837_v9, %v2837_v9 }
 0x15a   :  { %v721_v15 = vcombine.high %v719_v29, %v719_v29  ;;  %v1137_v21 = vsel %vm905_vm1, %v720_v0, -inf  ;;  %v1144_v25 = vsel %vm905_vm1, %v719_v29, -inf  ;;  %v738_v7 = vcombine.high %v736_v54, %v736_v54 }
 0x15b   :  { %v1132_v36 = vmax.f32 %v1130_v11, %v1131_v12  ;;  %v1138_v56 = vrot.slane %v1137_v21, 4  ;;  %v1145_v6 = vrot.slane %v1144_v25, 4  ;;  %v1159_v4 = vrot.slane %v1158_v35, 4 }
 0x15c   :  { %v1151_v46 = vsel %vm905_vm1, %v721_v15, -inf  ;;  %v1165_v10 = vsel %vm905_vm1, %v737_v55, -inf  ;;  %v1172_v41 = vsel %vm905_vm1, %v736_v54, -inf  ;;  %v1179_v42 = vsel %vm905_vm1, %v738_v7, -inf }
 0x15d   :  { %v1133_v51 = vrot.slane %v1132_v36, 2  ;;  %v1139_v59 = vmax.f32 %v1137_v21, %v1138_v56  ;;  %v1146_v50 = vmax.f32 %v1144_v25, %v1145_v6  ;;  %v1152_v38 = vrot.slane %v1151_v46, 4 }
 0x15e   :  { %v1160_v44 = vmax.f32 %v1158_v35, %v1159_v4  ;;  %v1166_v22 = vrot.slane %v1165_v10, 4  ;;  %v1173_v37 = vrot.slane %v1172_v41, 4  ;;  %v1180_v43 = vrot.slane %v1179_v42, 4 }
 0x15f   :  { %v1134_v5 = vmax.f32 %v1132_v36, %v1133_v51  ;;  %v1140_v48 = vrot.slane %v1139_v59, 2  ;;  %v1147_v47 = vrot.slane %v1146_v50, 2  ;;  %v1153_v63 = vmax.f32 %v1151_v46, %v1152_v38 }
 0x160   :  { %v1161_v8 = vrot.slane %v1160_v44, 2  ;;  %v1167_v29 = vmax.f32 %v1165_v10, %v1166_v22  ;;  %v1174_v0 = vmax.f32 %v1172_v41, %v1173_v37  ;;  %v1181_v11 = vmax.f32 %v1179_v42, %v1180_v43 }
 0x161   :  { %v1135_v12 = vrot.slane %v1134_v5, 1  ;;  %v1141_v54 = vmax.f32 %v1139_v59, %v1140_v48  ;;  %v1148_v55 = vmax.f32 %v1146_v50, %v1147_v47  ;;  %v1154_v15 = vrot.slane %v1153_v63, 2 }
 0x162   :  { %v1162_v7 = vmax.f32 %v1160_v44, %v1161_v8  ;;  %v1168_v21 = vrot.slane %v1167_v29, 2  ;;  %v1175_v25 = vrot.slane %v1174_v0, 2  ;;  %v1182_v56 = vrot.slane %v1181_v11, 2 }
 0x163   :  { %v1136_v35 = vmax.f32 %v1134_v5, %v1135_v12  ;;  %v1142_v6 = vrot.slane %v1141_v54, 1  ;;  %v1149_v4 = vrot.slane %v1148_v55, 1  ;;  %v1155_v2 = vmax.f32 %v1153_v63, %v1154_v15 }
 0x164   :  { %v1163_v36 = vrot.slane %v1162_v7, 1  ;;  %v1169_v51 = vmax.f32 %v1167_v29, %v1168_v21  ;;  %v1176_v19 = vmax.f32 %v1174_v0, %v1175_v25  ;;  %v1183_v46 = vmax.f32 %v1181_v11, %v1182_v56 }
 0x165   :  { %v1143_v38 = vmax.f32 %v1141_v54, %v1142_v6  ;;  %v2851_v10 = vmax.f32 %v1148_v55, %v1149_v4  ;;  %v1156_v41 = vrot.slane %v1155_v2, 1  ;;  %v1299_v42 = vrot.slane %v2835_v53, 4 }
 0x166   :  { %v1164_v59 = vmax.f32 %v1162_v7, %v1163_v36  ;;  %v1170_v50 = vrot.slane %v1169_v51, 1  ;;  %v1177_v44 = vrot.slane %v1176_v19, 1  ;;  %v1184_v22 = vrot.slane %v1183_v46, 1 }
 0x167   :  { %v2854_v37 = vmax.f32 %v1155_v2, %v1156_v41  ;;  %v2857_v43 = vsel %vm1418_vm2, %v1143_v38, %v1136_v35  ;;  %v1300_v5 = vmax.f32 %v2835_v53, %v1299_v42  ;;  %v1305_v48 = vsel %vm905_vm1, %v822_v33, -inf }
 0x168   :  { %v1171_v47 = vmax.f32 %v1169_v51, %v1170_v50  ;;  %v2864_v63 = vmax.f32 %v1176_v19, %v1177_v44  ;;  %v2866_v8 = vmax.f32 %v1183_v46, %v1184_v22  ;;  %v1306_v29 = vrot.slane %v1305_v48, 4 }
 0x169   :  { %v1301_v0 = vrot.slane %v1300_v5, 2  ;;  %v1312_v2 = vsel %vm905_vm1, %v2829_v3, -inf  ;;  %v3311_v11 = vcombine.high %v2829_v3, %v2829_v3  ;;  %v746_v15 = vrot.slane %v2837_v9, %v2585_v13 }
 0x16a   :  { %v2877_v33 = vsel %vm1418_vm2, %v1171_v47, %v1164_v59  ;;  %v1307_v19 = vmax.f32 %v1305_v48, %v1306_v29  ;;  %v1313_v12 = vrot.slane %v1312_v2, 4  ;;  %v753_v7 = vrot.slane %v739_v60, %v2585_v13 }
 0x16b   :  { %v1319_v53 = vsel %vm905_vm1, %v3311_v11, -inf  ;;  %v1302_v55 = vmax.f32 %v1300_v5, %v1301_v0  ;;  %v3312_v3 = vcombine.high %v2806_v24, %v2806_v24  ;;  %v788_v6 = vcombine.high %v2822_v14, %v2822_v14 }
 0x16c   :  { %v1320_v54 = vrot.slane %v1319_v53, 4  ;;  %v1308_v25 = vrot.slane %v1307_v19, 2  ;;  %v1314_v56 = vmax.f32 %v1312_v2, %v1313_v12  ;;  %v754_v36 = vcombine.high %v746_v15, %v746_v15 }
 0x16d   :  { %v787_v21 = vrot.slane %v3312_v3, %v2585_v13  ;;  %v1303_v4 = vrot.slane %v1302_v55, 1  ;;  %v755_v51 = vcombine.high %v753_v7, %v753_v7  ;;  %v1186_v46 = vsel %vm905_vm1, %v746_v15, -inf }
 0x16e   :  { %v1321_v35 = vmax.f32 %v1319_v53, %v1320_v54  ;;  %v1309_v38 = vmax.f32 %v1307_v19, %v1308_v25  ;;  %v1315_v9 = vrot.slane %v1314_v56, 2  ;;  %v1187_v42 = vrot.slane %v1186_v46, 4 }
 0x16f   :  { %v1304_v59 = vmax.f32 %v1302_v55, %v1303_v4  ;;  %v1193_v50 = vsel %vm905_vm1, %v754_v36, -inf  ;;  %v1200_v24 = vsel %vm905_vm1, %v753_v7, -inf  ;;  %v1207_v44 = vsel %vm905_vm1, %v755_v51, -inf }
 0x170   :  { %v1322_v41 = vrot.slane %v1321_v35, 2  ;;  %v1310_v22 = vrot.slane %v1309_v38, 1  ;;  %v1316_v5 = vmax.f32 %v1314_v56, %v1315_v9  ;;  %v1188_v47 = vmax.f32 %v1186_v46, %v1187_v42 }
 0x171   :  { %v1194_v29 = vrot.slane %v1193_v50, 4  ;;  %v1201_v0 = vrot.slane %v1200_v24, 4  ;;  %v1208_v2 = vrot.slane %v1207_v44, 4  ;;  %v789_v11 = vcombine.high %v787_v21, %v787_v21 }
 0x172   :  { %v1323_v48 = vmax.f32 %v1321_v35, %v1322_v41  ;;  %v1311_v53 = vmax.f32 %v1309_v38, %v1310_v22  ;;  %v1317_v60 = vrot.slane %v1316_v5, 1  ;;  %v1189_v12 = vrot.slane %v1188_v47, 2 }
 0x173   :  { %v1195_v54 = vmax.f32 %v1193_v50, %v1194_v29  ;;  %v1202_v55 = vmax.f32 %v1200_v24, %v1201_v0  ;;  %v1209_v15 = vmax.f32 %v1207_v44, %v1208_v2  ;;  %v1242_v7 = vsel %vm905_vm1, %v2822_v14, -inf }
 0x174   :  { %v1324_v19 = vrot.slane %v1323_v48, 1  ;;  %v2894_v3 = vmax.f32 %v1316_v5, %v1317_v60  ;;  %v2899_v56 = vsel %vm1418_vm2, %v1311_v53, %v1304_v59  ;;  %v1190_v35 = vmax.f32 %v1188_v47, %v1189_v12 }
 0x175   :  { %v1196_v4 = vrot.slane %v1195_v54, 2  ;;  %v1203_v36 = vrot.slane %v1202_v55, 2  ;;  %v1210_v51 = vrot.slane %v1209_v15, 2  ;;  %v1243_v46 = vrot.slane %v1242_v7, 4 }
 0x176   :  { %v2896_v25 = vmax.f32 %v1323_v48, %v1324_v19  ;;  %v1191_v38 = vrot.slane %v1190_v35, 1  ;;  %v1249_v9 = vsel %vm905_vm1, %v788_v6, -inf  ;;  %v1256_v41 = vsel %vm905_vm1, %v787_v21, -inf }
 0x177   :  { %v1263_v42 = vsel %vm905_vm1, %v789_v11, -inf  ;;  %v1197_v14 = vmax.f32 %v1195_v54, %v1196_v4  ;;  %v1204_v50 = vmax.f32 %v1202_v55, %v1203_v36  ;;  %v2904_v24 = vmax.f32 %v1209_v15, %v1210_v51 }
 0x178   :  { %v1244_v44 = vmax.f32 %v1242_v7, %v1243_v46  ;;  %v2906_v22 = vmax.f32 %v1190_v35, %v1191_v38  ;;  %v1250_v59 = vrot.slane %v1249_v9, 4  ;;  %v1257_v5 = vrot.slane %v1256_v41, 4  ;;  %v2416_v46 = vld [vmem:[%s3298_s2] ss:$0 sm:$0xff]  ;;  %s2420_s2 = smov 64  }
 0x179   :  { %v1264_v48 = vrot.slane %v1263_v42, 4  ;;  %v1198_v47 = vrot.slane %v1197_v14, 1  ;;  %v1205_v29 = vrot.slane %v1204_v50, 1  ;;  %v824_v11 = vcombine.high %v2824_v32, %v2824_v32 }
 0x17a   :  { %v1245_v2 = vrot.slane %v1244_v44, 2  ;;  %v1251_v6 = vmax.f32 %v1249_v9, %v1250_v59  ;;  %v1258_v53 = vmax.f32 %v1256_v41, %v1257_v5  ;;  %v831_v54 = vrot.slane %v2824_v32, %v2585_v13 }
 0x17b   :  { %v1265_v21 = vmax.f32 %v1263_v42, %v1264_v48  ;;  %v2911_v60 = vmax.f32 %v1197_v14, %v1198_v47  ;;  %v2913_v19 = vmax.f32 %v1204_v50, %v1205_v29  ;;  %v838_v35 = vrot.slane %v824_v11, %v2585_v13 }
 0x17c   :  { %v1246_v12 = vmax.f32 %v1244_v44, %v1245_v2  ;;  %v1252_v55 = vrot.slane %v1251_v6, 2  ;;  %v1259_v15 = vrot.slane %v1258_v53, 2  ;;  %v839_v36 = vcombine.high %v831_v54, %v831_v54 }
 0x17d   :  { %3313 = vst [vmem:[#allocation12_spill] sm:$0xff] %v2913_v19  ;;  %v1266_v7 = vrot.slane %v1265_v21, 2  ;;  %v1326_v51 = vsel %vm905_vm1, %v831_v54, -inf  ;;  %v421_v38 = vadd.f32 %v2416_v46, %v2812_v34  ;;  %v840_v14 = vcombine.high %v838_v35, %v838_v35 }
 0x17e   :  { %v1247_v4 = vrot.slane %v1246_v12, 1  ;;  %v1253_v9 = vmax.f32 %v1251_v6, %v1252_v55  ;;  %v1260_v41 = vmax.f32 %v1258_v53, %v1259_v15  ;;  %v1327_v50 = vrot.slane %v1326_v51, 4 }
 0x17f   :  { %v1267_v42 = vmax.f32 %v1265_v21, %v1266_v7  ;;  %v1333_v44 = vsel %vm905_vm1, %v839_v36, -inf  ;;  %v1340_v59 = vsel %vm905_vm1, %v838_v35, -inf  ;;  %v1347_v54 = vsel %vm905_vm1, %v840_v14, -inf }
 0x180   :  { %v1248_v32 = vmax.f32 %v1246_v12, %v1247_v4  ;;  %v1254_v5 = vrot.slane %v1253_v9, 1  ;;  %v1261_v48 = vrot.slane %v1260_v41, 1  ;;  %v1334_v29 = vrot.slane %v1333_v44, 4 }
 0x181   :  { %v1268_v47 = vrot.slane %v1267_v42, 1  ;;  %v1328_v2 = vmax.f32 %v1326_v51, %v1327_v50  ;;  %v1341_v11 = vrot.slane %v1340_v59, 4  ;;  %v518_v34 = vadd.f32 %v2651_v52, %v421_v38 }
 0x182   :  { %v1255_v6 = vmax.f32 %v1253_v9, %v1254_v5  ;;  %v2927_v53 = vmax.f32 %v1260_v41, %v1261_v48  ;;  %v1335_v12 = vmax.f32 %v1333_v44, %v1334_v29  ;;  %v1348_v7 = vrot.slane %v1347_v54, 4 }
 0x183   :  { %v2929_v21 = vmax.f32 %v1267_v42, %v1268_v47  ;;  %v1329_v55 = vrot.slane %v1328_v2, 2  ;;  %v1342_v15 = vmax.f32 %v1340_v59, %v1341_v11  ;;  %v548_v35 = vmax.f32 %v518_v34, 0.0 }
 0x184   :  { %v2932_v4 = vsel %vm1418_vm2, %v1255_v6, %v1248_v32  ;;  %v1336_v36 = vrot.slane %v1335_v12, 2  ;;  %v526_v51 = vadd.f32 %v2702_v1, %v2596_v28  ;;  %v1100_v46 = vrot.slane %v2746_v16, 1 }
 0x185   :  { %v1330_v52 = vmax.f32 %v1328_v2, %v1329_v55  ;;  %v1343_v38 = vrot.slane %v1342_v15, 2  ;;  %v1349_v9 = vmax.f32 %v1347_v54, %v1348_v7  ;;  %v756_v41 = vcombine.high %v548_v35, %v548_v35 }
 0x186   :  { %v1337_v42 = vmax.f32 %v1335_v12, %v1336_v36  ;;  %v763_v14 = vrot.slane %v548_v35, %v2585_v13  ;;  %v550_v50 = vmax.f32 %v526_v51, 0.0  ;;  %v2939_v44 = vmax.f32 %v2746_v16, %v1100_v46 }
 0x187   :  { %v1331_v59 = vrot.slane %v1330_v52, 1  ;;  %v1344_v32 = vmax.f32 %v1342_v15, %v1343_v38  ;;  %v1350_v5 = vrot.slane %v1349_v9, 2  ;;  %v770_v48 = vrot.slane %v756_v41, %v2585_v13 }
 0x188   :  { %v1338_v47 = vrot.slane %v1337_v42, 1  ;;  %v771_v28 = vcombine.high %v763_v14, %v763_v14  ;;  %v1214_v1 = vsel %vm905_vm1, %v763_v14, -inf  ;;  %v790_v29 = vcombine.high %v550_v50, %v550_v50 }
 0x189   :  { %v1332_v2 = vmax.f32 %v1330_v52, %v1331_v59  ;;  %v1345_v11 = vrot.slane %v1344_v32, 1  ;;  %v1351_v54 = vmax.f32 %v1349_v9, %v1350_v5  ;;  %v772_v34 = vcombine.high %v770_v48, %v770_v48 }
 0x18a   :  { %v1339_v6 = vmax.f32 %v1337_v42, %v1338_v47  ;;  %v1215_v12 = vrot.slane %v1214_v1, 4  ;;  %v1221_v55 = vsel %vm905_vm1, %v771_v28, -inf  ;;  %v1228_v16 = vsel %vm905_vm1, %v770_v48, -inf }
 0x18b   :  { %v2945_v7 = vmax.f32 %v1344_v32, %v1345_v11  ;;  %v1352_v15 = vrot.slane %v1351_v54, 1  ;;  %v1222_v35 = vrot.slane %v1221_v55, 4  ;;  %v1229_v36 = vrot.slane %v1228_v16, 4 }
 0x18c   :  { %v2948_v51 = vsel %vm1418_vm2, %v1339_v6, %v1332_v2  ;;  %v1216_v46 = vmax.f32 %v1214_v1, %v1215_v12  ;;  %v1235_v52 = vsel %vm905_vm1, %v772_v34, -inf  ;;  %v797_v38 = vrot.slane %v550_v50, %v2585_v13 }
 0x18d   :  { %v2952_v9 = vmax.f32 %v1351_v54, %v1352_v15  ;;  %v1223_v41 = vmax.f32 %v1221_v55, %v1222_v35  ;;  %v1230_v42 = vmax.f32 %v1228_v16, %v1229_v36  ;;  %v1236_v14 = vrot.slane %v1235_v52, 4 }
 0x18e   :  { %v1217_v59 = vrot.slane %v1216_v46, 2  ;;  %v804_v32 = vrot.slane %v790_v29, %v2585_v13  ;;  %v805_v5 = vcombine.high %v797_v38, %v797_v38  ;;  %v1270_v48 = vsel %vm905_vm1, %v797_v38, -inf }
 0x18f   :  { %v1224_v47 = vrot.slane %v1223_v41, 2  ;;  %v1231_v28 = vrot.slane %v1230_v42, 2  ;;  %v1237_v2 = vmax.f32 %v1235_v52, %v1236_v14  ;;  %v1271_v1 = vrot.slane %v1270_v48, 4 }
 0x190   :  { %v1218_v11 = vmax.f32 %v1216_v46, %v1217_v59  ;;  %v806_v34 = vcombine.high %v804_v32, %v804_v32  ;;  %v1277_v50 = vsel %vm905_vm1, %v805_v5, -inf  ;;  %v1284_v54 = vsel %vm905_vm1, %v804_v32, -inf }
 0x191   :  { %v1225_v6 = vmax.f32 %v1223_v41, %v1224_v47  ;;  %v1232_v12 = vmax.f32 %v1230_v42, %v1231_v28  ;;  %v1238_v55 = vrot.slane %v1237_v2, 2  ;;  %v1272_v16 = vmax.f32 %v1270_v48, %v1271_v1 }
 0x192   :  { %v1219_v15 = vrot.slane %v1218_v11, 1  ;;  %v1278_v35 = vrot.slane %v1277_v50, 4  ;;  %v1285_v29 = vrot.slane %v1284_v54, 4  ;;  %v1291_v36 = vsel %vm905_vm1, %v806_v34, -inf }
 0x193   :  { %v1226_v38 = vrot.slane %v1225_v6, 1  ;;  %v1233_v0 = vrot.slane %v1232_v12, 1  ;;  %v2959_v19 = vmax.f32 %v1237_v2, %v1238_v55  ;;  %v1273_v52 = vrot.slane %v1272_v16, 2 }
 0x194   :  { %v2961_v46 = vmax.f32 %v1218_v11, %v1219_v15  ;;  %v1279_v14 = vmax.f32 %v1277_v50, %v1278_v35  ;;  %v1286_v59 = vmax.f32 %v1284_v54, %v1285_v29  ;;  %v1292_v5 = vrot.slane %v1291_v36, 4 }
 0x195   :  { %v2963_v32 = vmax.f32 %v1225_v6, %v1226_v38  ;;  %v2965_v41 = vmax.f32 %v1232_v12, %v1233_v0  ;;  %v1240_v42 = vrot.slane %v2959_v19, 1  ;;  %v1274_v48 = vmax.f32 %v1272_v16, %v1273_v52  ;;  %v3314_v16 = vld [vmem:[#allocation6_spill] sm:$0xff] }
 0x196   :  { %v1280_v47 = vrot.slane %v1279_v14, 2  ;;  %v1287_v28 = vrot.slane %v1286_v59, 2  ;;  %v1293_v1 = vmax.f32 %v1291_v36, %v1292_v5  ;;  %v1128_v34 = vrot.slane %v2778_v18, 1 }
 0x197   :  { %v1275_v2 = vrot.slane %v1274_v48, 1  ;;  %v1421_v11 = vsel %vm1420_vm3, %v2671_v17, %v2684_v26  ;;  %v1425_v50 = vsel %vm1420_vm3, %v2727_v30, %v2735_v57  ;;  %v1439_v17 = vsel %vm1418_vm2, %v2754_v23, %v2748_v62 }
 0x198   :  { %v1281_v0 = vmax.f32 %v1279_v14, %v1280_v47  ;;  %v1288_v54 = vmax.f32 %v1286_v59, %v1287_v28  ;;  %v1294_v6 = vrot.slane %v1293_v1, 2  ;;  %v1129_v12 = vmax.f32 %v2778_v18, %v1128_v34 }
 0x199   :  { %v1276_v55 = vmax.f32 %v1274_v48, %v1275_v2  ;;  %v1423_v15 = vsel %vm1422_vm4, %v3314_v16, %v1421_v11  ;;  %v1426_v35 = vsel %vm1422_vm4, %v2729_v45, %v1425_v50  ;;  %v1440_v30 = vsel %vm1420_vm3, %v2750_v58, %v1439_v17 }
 0x19a   :  { %v1282_v26 = vrot.slane %v1281_v0, 1  ;;  %v1289_v29 = vrot.slane %v1288_v54, 1  ;;  %v1295_v36 = vmax.f32 %v1293_v1, %v1294_v6  ;;  %v1441_v57 = vsel %vm1422_vm4, %v2939_v44, %v1440_v30 }
 0x19b   :  { %v1442_v18 = vsel %vm1418_vm2, %v2780_v49, %v2776_v39  ;;  %v2991_v38 = vrot.slane %v1423_v15, %v2585_v13  ;;  %v2994_v45 = vrot.slane %v1426_v35, %v2585_v13  ;;  %v2418_v49 = vmov 1934713408  }
 0x19c   :  { %v1283_v62 = vmax.f32 %v1281_v0, %v1282_v26  ;;  %v1290_v23 = vmax.f32 %v1288_v54, %v1289_v29  ;;  %v1296_v52 = vrot.slane %v1295_v36, 1  ;;  %v1443_v14 = vsel %vm1420_vm3, %v2782_v20, %v1442_v18  ;;  %v3317_v54 = vld [vmem:[#allocation11_spill] sm:$0xff] }
 0x19d   :  { %v1444_v58 = vsel %vm1422_vm4, %v1129_v12, %v1443_v14  ;;  %v1485_v44 = vcombine.low %v2991_v38, %v2994_v45  ;;  %v1488_v5 = vunpack.c.l.s4 %v2418_v49  ;;  %v3003_v48 = vrot.slane %v1441_v57, %v2585_v13  ;;  %v3321_v49 = vld [vmem:[#allocation9_spill] sm:$0xff] }
 0x19e   :  { %v1297_v59 = vmax.f32 %v1295_v36, %v1296_v52  ;;  %v1460_v39 = vsel %vm1418_vm2, %v1283_v62, %v1276_v55  ;;  %v3006_v47 = vrot.slane %v1444_v58, %v2585_v13  ;;  %v1446_v20 = vsel %vm1420_vm3, %v2851_v10, %v2857_v43 }
 0x19f   :  { %v1449_v28 = vsel %vm1420_vm3, %v2864_v63, %v2877_v33  ;;  %v1464_v1 = vsel %vm1420_vm3, %v2894_v3, %v2899_v56  ;;  %v1489_v34 = vunpack.c.0.s8 %v1488_v5  ;;  %v1447_v2 = vsel %vm1422_vm4, %v2854_v37, %v1446_v20  ;;  %v3315_v37 = vld [vmem:[#allocation2_spill] sm:$0xff]  ;;  %v3322_v5 = vld [vmem:[#allocation7_spill] sm:$0xff] }
 0x1a0   :  { %v1450_v11 = vsel %vm1422_vm4, %v2866_v8, %v1449_v28  ;;  %v1465_v50 = vsel %vm1422_vm4, %v2896_v25, %v1464_v1  ;;  %v1587_v10 = vcombine.low %v3003_v48, %v3006_v47  ;;  %v1467_v43 = vsel %vm1420_vm3, %v2945_v7, %v2948_v51  ;;  %v3316_v56 = vld [vmem:[#allocation10_spill] sm:$0xff]  ;;  %v3323_v28 = vld [vmem:[#allocation4_spill] sm:$0xff] }
 0x1a1   :  { %v3029_v63 = vrot.slane %v1447_v2, %v2585_v13  ;;  %v3032_v33 = vrot.slane %v1450_v11, %v2585_v13  ;;  %v3035_v3 = vsub.s32 %v1489_v34, %v3315_v37  ;;  %v1468_v8 = vsel %vm1422_vm4, %v2952_v9, %v1467_v43 }
 0x1a2   :  { %v3040_v25 = vrot.slane %v1465_v50, %v2585_v13  ;;  %v1434_v0 = vsel %vm1420_vm3, %v3316_v56, %v2760_v61  ;;  %v3048_v51 = vrot.slane %v1468_v8, %v2585_v13  ;;  %v1437_v9 = vsel %vm1420_vm3, %v2794_v40, %v2804_v27  ;;  %v3325_v50 = vld [vmem:[#allocation12_spill] sm:$0xff] }
 0x1a3   :  { %v1621_v7 = vcombine.low %v3029_v63, %v3032_v33  ;;  %v1435_v6 = vsel %vm1422_vm4, %v3317_v54, %v1434_v0  ;;  %v3056_v12 = vrot.slane %v1485_v44, %v3035_v3  ;;  %v3059_v55 = vrot.slane %v1587_v10, %v3035_v3  ;;  %v3319_v44 = vld [vmem:[#allocation5_spill] sm:$0xff] }
 0x1a4   :  { %v1438_v61 = vsel %vm1422_vm4, %v2796_v31, %v1437_v9  ;;  %v1458_v16 = vsel %vm1420_vm3, %v2927_v53, %v2932_v4  ;;  %v1723_v35 = vcombine.low %v3040_v25, %v3048_v51  ;;  %v1461_v27 = vsel %vm1420_vm3, %v1290_v23, %v1460_v39 }
 0x1a5   :  { %v3067_v15 = vrot.slane %v1621_v7, %v3035_v3  ;;  %v1459_v40 = vsel %vm1422_vm4, %v2929_v21, %v1458_v16  ;;  %v2419_v17 = vmov 0.0   ;;  %v1462_v53 = vsel %vm1422_vm4, %v1297_v59, %v1461_v27  ;;  %v3320_v59 = vld [vmem:[#allocation3_spill] sm:$0xff] }
 0x1a6   :  { %v1501_v26 = vcombine.high %v3056_v12, %v2419_v17  ;;  %v1603_v31 = vcombine.high %v3059_v55, %v2419_v17  ;;  %v1544_v4 = vrot.slane %v1435_v6, %v2585_v13  ;;  %v3083_v36 = vrot.slane %v1723_v35, %v3035_v3 }
 0x1a7   :  { %v1637_v29 = vcombine.high %v3067_v15, %v2419_v17  ;;  %v1552_v21 = vrot.slane %v1438_v61, %v2585_v13  ;;  %v1680_v30 = vrot.slane %v1459_v40, %v2585_v13  ;;  %v1688_v18 = vrot.slane %v1462_v53, %v2585_v13 }
 0x1a8   :  { %v2326_v57 = vpack.i.bf16 %v1603_v31, %v1501_v26  ;;  %v3318_v62 = vrot.slane %v2904_v24, 1  ;;  %v1241_v52 = vmax.f32 %v2959_v19, %v1240_v42  ;;  %v1739_v14 = vcombine.high %v3083_v36, %v2419_v17  ;;  %v3324_v19 = vld [vmem:[#allocation8_spill] sm:$0xff] }
 0x1a9   :  { %v1553_v58 = vcombine.low %v1544_v4, %v1552_v21  ;;  %v1428_v39 = vsel %vm1420_vm3, %v3320_v59, %v3319_v44  ;;  %v1431_v20 = vsel %vm1420_vm3, %v3322_v5, %v3321_v49  ;;  %v1451_v34 = vsel %vm1418_vm2, %v2911_v60, %v2906_v22 }
 0x1aa   :  { %v1213_v23 = vmax.f32 %v2904_v24, %v3318_v62  ;;  %2327 = vrot.lane.b32.xlu0 %v2326_v57, %s2420_s2  ;;  %v1689_v24 = vcombine.low %v1680_v30, %v1688_v18  ;;  %v1429_v1 = vsel %vm1422_vm4, %v3323_v28, %v1428_v39  ;;  %v1432_v42 = vsel %vm1422_vm4, %v3324_v19, %v1431_v20 }
 0x1ab   :  { %v2331_v2 = vpack.i.bf16 %v1739_v14, %v1637_v29  ;;  %v3111_v11 = vrot.slane %v1553_v58, %v3035_v3  ;;  %v1452_v10 = vsel %vm1420_vm3, %v3325_v50, %v1451_v34  ;;  %v1454_v43 = vsel %vm1418_vm2, %v2963_v32, %v2961_v46 }
 0x1ac   :  { %v3119_v37 = vrot.slane %v1689_v24, %v3035_v3  ;;  %v1453_v8 = vsel %vm1422_vm4, %v1213_v23, %v1452_v10  ;;  %v1455_v56 = vsel %vm1420_vm3, %v2965_v41, %v1454_v43  ;;  %v1510_v22 = vrot.slane %v1429_v1, %v2585_v13 }
 0x1ad   :  { %2332 = vrot.lane.b32.xlu1 %v2331_v2, %s2420_s2  ;;  %v1569_v60 = vcombine.high %v3111_v11, %v2419_v17  ;;  %v1456_v0 = vsel %vm1422_vm4, %v1241_v52, %v1455_v56  ;;  %v1518_v7 = vrot.slane %v1432_v42, %v2585_v13  ;;  %v1646_v46 = vrot.slane %v1453_v8, %v2585_v13 }
 0x1ae   :  { %v1705_v32 = vcombine.high %v3119_v37, %v2419_v17  ;;  %v1654_v54 = vrot.slane %v1456_v0, %v2585_v13  ;;  %v1554_v6 = vcombine.high %v1544_v4, %v1552_v21  ;;  %v1690_v41 = vcombine.high %v1680_v30, %v1688_v18 }
 0x1af   :  { %v1519_v9 = vcombine.low %v1510_v22, %v1518_v7  ;;  %v1520_v61 = vcombine.high %v1510_v22, %v1518_v7  ;;  %v1622_v16 = vcombine.high %v3029_v63, %v3032_v33  ;;  %v1724_v35 = vcombine.high %v3040_v25, %v3048_v51 }
 0x1b0   :  { %v2336_v40 = vpack.i.bf16 %v1705_v32, %v1569_v60  ;;  %v1655_v27 = vcombine.low %v1646_v46, %v1654_v54  ;;  %v3139_v26 = vrot.slane %v1554_v6, %v3035_v3  ;;  %v3142_v31 = vrot.slane %v1690_v41, %v3035_v3 }
 0x1b1   :  { %v3145_v53 = vrot.slane %v1519_v9, %v3035_v3  ;;  %v1656_v4 = vcombine.high %v1646_v46, %v1654_v54  ;;  %v3148_v29 = vrot.slane %v1622_v16, %v3035_v3  ;;  %v3159_v51 = vrot.slane %v1724_v35, %v3035_v3 }
 0x1b2   :  { %2337 = vrot.lane.b32.xlu1 %v2336_v40, %s2420_s2  ;;  %v3152_v63 = vrot.slane %v1655_v27, %v3035_v3  ;;  %v1570_v33 = vcombine.high %v3139_v26, %v2419_v17  ;;  %v1706_v25 = vcombine.high %v3142_v31, %v2419_v17  ;;  %v3164_v30 = vrot.slane %v1520_v61, %v3035_v3 }
 0x1b3   :  { %v1535_v21 = vcombine.high %v3145_v53, %v2419_v17  ;;  %v3167_v57 = vrot.slane %v1656_v4, %v3035_v3  ;;  %v1740_v23 = vcombine.high %v3159_v51, %v2419_v17  ;;  %v1486_v52 = vcombine.high %v2991_v38, %v2994_v45 }
 0x1b4   :  { %v1671_v18 = vcombine.high %v3152_v63, %v2419_v17  ;;  %v2341_v62 = vpack.i.bf16 %v1706_v25, %v1570_v33  ;;  %v1588_v14 = vcombine.high %v3003_v48, %v3006_v47  ;;  %v1638_v59 = vcombine.high %v3148_v29, %v2419_v17 }
 0x1b5   :  { %v1672_v44 = vcombine.high %v3167_v57, %v2419_v17  ;;  %v1536_v38 = vcombine.high %v3164_v30, %v2419_v17  ;;  %v3189_v48 = vrot.slane %v1486_v52, %v3035_v3 }
 0x1b6   :  { %v2346_v58 = vpack.i.bf16 %v1671_v18, %v1535_v21  ;;  %2342 = vrot.lane.b32.xlu1 %v2341_v62, %s2420_s2  ;;  %v3183_v39 = vrot.slane %v1588_v14, %v3035_v3  ;;  %v2361_v45 = vpack.i.bf16 %v1740_v23, %v1638_v59 }
 0x1b7   :  { %v2351_v47 = vpack.i.bf16 %v1672_v44, %v1536_v38  ;;  %v1502_v5 = vcombine.high %v3189_v48, %v2419_v17 }
 0x1b8   :  { %2347 = vrot.lane.b32.xlu0 %v2346_v58, %s2420_s2  ;;  %v1604_v49 = vcombine.high %v3183_v39, %v2419_v17 }
 0x1ba   :  { %2362 = vrot.lane.b32.xlu1 %v2361_v45, %s2420_s2  ;;  %v2356_v20 = vpack.i.bf16 %v1604_v49, %v1502_v5 }
 0x1bc   :  { %2352 = vrot.lane.b32.xlu0 %v2351_v47, %s2420_s2 }
 0x1c0   :  { %2357 = vrot.lane.b32.xlu0 %v2356_v20, %s2420_s2 }
 0x21c   :  { %v2328_v24 = vpop.permute.xlu0 %2327 }
 0x21d   :  { %v2330_v28 = vunpack.i.h.bf16 %v2328_v24  ;;  %v2329_v1 = vunpack.i.l.bf16 %v2328_v24 }
 0x21f   :  { %v2333_v19 = vpop.permute.xlu1 %2332  ;;  %v1809_v34 = vsel %vm1805_vm5, %v3059_v55, %v2330_v28  ;;  %v1806_v2 = vsel %vm1805_vm5, %v3056_v12, %v2329_v1 }
 0x220   :  { %v2335_v3 = vunpack.i.h.bf16 %v2333_v19  ;;  %v2334_v42 = vunpack.i.l.bf16 %v2333_v19  ;;  %v1865_v8 = vsel %vm1822_vm6, %v1809_v34, -inf  ;;  %v1823_v56 = vsel %vm1822_vm6, %v1806_v2, -inf }
 0x221   :  { %v1824_v46 = vrot.slane %v1823_v56, 4 }
 0x222   :  { %v1813_v17 = vsel %vm1805_vm5, %v3083_v36, %v2335_v3  ;;  %v1810_v10 = vsel %vm1805_vm5, %v3067_v15, %v2334_v42  ;;  %v1866_v36 = vrot.slane %v1865_v8, 4 }
 0x223   :  { %v1921_v55 = vsel %vm1822_vm6, %v1813_v17, -inf  ;;  %v1879_v12 = vsel %vm1822_vm6, %v1810_v10, -inf  ;;  %v3217_v27 = vmax.f32 %v1823_v56, %v1824_v46 }
 0x224   :  { %v2338_v50 = vpop.permute.xlu1 %2337  ;;  %v1922_v41 = vrot.slane %v1921_v55, 4  ;;  %v1880_v9 = vrot.slane %v1879_v12, 4  ;;  %v3215_v40 = vmax.f32 %v1865_v8, %v1866_v36 }
 0x225   :  { %v2340_v43 = vunpack.i.h.bf16 %v2338_v50  ;;  %v2339_v60 = vunpack.i.l.bf16 %v2338_v50  ;;  %v1826_v24 = vrot.slane %v3217_v27, 2 }
 0x226   :  { %v1923_v62 = vmax.f32 %v1921_v55, %v1922_v41  ;;  %v3228_v23 = vmax.f32 %v1879_v12, %v1880_v9  ;;  %v1868_v38 = vrot.slane %v3215_v40, 2 }
 0x227   :  { %v1812_v22 = vsel %vm1805_vm5, %v3119_v37, %v2340_v43  ;;  %v1808_v37 = vsel %vm1805_vm5, %v3111_v11, %v2339_v60 }
 0x228   :  { %v1907_v0 = vsel %vm1822_vm6, %v1812_v22, -inf  ;;  %v2343_v7 = vpop.permute.xlu1 %2342  ;;  %v1851_v21 = vsel %vm1822_vm6, %v1808_v37, -inf  ;;  %v1924_v28 = vrot.slane %v1923_v62, 2  ;;  %v1882_v1 = vrot.slane %v3228_v23, 2 }
 0x229   :  { %v1908_v32 = vrot.slane %v1907_v0, 4  ;;  %v2345_v54 = vunpack.i.h.bf16 %v2343_v7  ;;  %v2344_v6 = vunpack.i.l.bf16 %v2343_v7 }
 0x22a   :  { %v2348_v15 = vpop.permute.xlu0 %2347  ;;  %v1925_v46 = vmax.f32 %v1923_v62, %v1924_v28 }
 0x22b   :  { %v1909_v61 = vmax.f32 %v1907_v0, %v1908_v32  ;;  %v2350_v16 = vunpack.i.h.bf16 %v2348_v15  ;;  %v2349_v35 = vunpack.i.l.bf16 %v2348_v15  ;;  %v1820_v4 = vsel %vm1805_vm5, %v3142_v31, %v2345_v54 }
 0x22c   :  { %v1816_v33 = vsel %vm1805_vm5, %v3139_v26, %v2344_v6  ;;  %v1914_v26 = vsel %vm1822_vm6, %v1820_v4, -inf  ;;  %v2363_v50 = vpop.permute.xlu1 %2362 }
 0x22d   :  { %v1910_v25 = vrot.slane %v1909_v61, 2  ;;  %v1811_v18 = vsel %vm1805_vm5, %v3152_v63, %v2350_v16  ;;  %v1807_v11 = vsel %vm1805_vm5, %v3145_v53, %v2349_v35  ;;  %v1858_v59 = vsel %vm1822_vm6, %v1816_v33, -inf }
 0x22e   :  { %v1893_v52 = vsel %vm1822_vm6, %v1811_v18, -inf  ;;  %v1837_v14 = vsel %vm1822_vm6, %v1807_v11, -inf  ;;  %v2353_v31 = vpop.permute.xlu0 %2352  ;;  %v1852_v63 = vrot.slane %v1851_v21, 4  ;;  %v1915_v45 = vrot.slane %v1914_v26, 4 }
 0x22f   :  { %v1894_v58 = vrot.slane %v1893_v52, 4  ;;  %v1838_v44 = vrot.slane %v1837_v14, 4  ;;  %v1859_v47 = vrot.slane %v1858_v59, 4  ;;  %v1911_v53 = vmax.f32 %v1909_v61, %v1910_v25 }
 0x230   :  { %v2355_v5 = vunpack.i.h.bf16 %v2353_v31  ;;  %v2354_v20 = vunpack.i.l.bf16 %v2353_v31  ;;  %v1916_v19 = vmax.f32 %v1914_v26, %v1915_v45  ;;  %v1853_v22 = vmax.f32 %v1851_v21, %v1852_v63 }
 0x231   :  { %v1895_v49 = vmax.f32 %v1893_v52, %v1894_v58  ;;  %v1839_v42 = vmax.f32 %v1837_v14, %v1838_v44  ;;  %v1860_v10 = vmax.f32 %v1858_v59, %v1859_v47  ;;  %v1912_v56 = vrot.slane %v1911_v53, 1 }
 0x232   :  { %v1819_v34 = vsel %vm1805_vm5, %v3167_v57, %v2355_v5  ;;  %v1815_v2 = vsel %vm1805_vm5, %v3164_v30, %v2354_v20  ;;  %v1917_v17 = vrot.slane %v1916_v19, 2  ;;  %v2365_v7 = vunpack.i.h.bf16 %v2363_v50  ;;  %v2358_v35 = vpop.permute.xlu0 %2357 }
 0x233   :  { %v1896_v3 = vrot.slane %v1895_v49, 2  ;;  %v1900_v43 = vsel %vm1822_vm6, %v1819_v34, -inf  ;;  %v1844_v8 = vsel %vm1822_vm6, %v1815_v2, -inf  ;;  %v2364_v36 = vunpack.i.l.bf16 %v2363_v50 }
 0x234   :  { %v1901_v60 = vrot.slane %v1900_v43, 4  ;;  %v1845_v55 = vrot.slane %v1844_v8, 4  ;;  %v1918_v0 = vmax.f32 %v1916_v19, %v1917_v17  ;;  %v1840_v57 = vrot.slane %v1839_v42, 2 }
 0x235   :  { %v1897_v12 = vmax.f32 %v1895_v49, %v1896_v3  ;;  %v1861_v54 = vrot.slane %v1860_v10, 2  ;;  %v1821_v6 = vsel %vm1805_vm5, %v3159_v51, %v2365_v7  ;;  %v1818_v41 = vsel %vm1805_vm5, %v3148_v29, %v2364_v36 }
 0x236   :  { %v1902_v32 = vmax.f32 %v1900_v43, %v1901_v60  ;;  %v1846_v15 = vmax.f32 %v1844_v8, %v1845_v55  ;;  %v1919_v30 = vrot.slane %v1918_v0, 1  ;;  %v1913_v9 = vmax.f32 %v1911_v53, %v1912_v56 }
 0x237   :  { %v1854_v61 = vrot.slane %v1853_v22, 2  ;;  %v1898_v4 = vrot.slane %v1897_v12, 1  ;;  %v1928_v25 = vsel %vm1822_vm6, %v1821_v6, -inf  ;;  %v1886_v21 = vsel %vm1822_vm6, %v1818_v41, -inf }
 0x238   :  { %v1903_v37 = vrot.slane %v1902_v32, 2  ;;  %v1847_v16 = vrot.slane %v1846_v15, 2  ;;  %v1920_v33 = vmax.f32 %v1918_v0, %v1919_v30  ;;  %v1929_v62 = vrot.slane %v1928_v25, 4 }
 0x239   :  { %v1887_v52 = vrot.slane %v1886_v21, 4  ;;  %v1841_v14 = vmax.f32 %v1839_v42, %v1840_v57  ;;  %v1862_v51 = vmax.f32 %v1860_v10, %v1861_v54  ;;  %v2360_v31 = vunpack.i.h.bf16 %v2358_v35 }
 0x23a   :  { %v1904_v18 = vmax.f32 %v1902_v32, %v1903_v37  ;;  %v1848_v11 = vmax.f32 %v1846_v15, %v1847_v16  ;;  %v2359_v58 = vunpack.i.l.bf16 %v2358_v35  ;;  %v2208_v29 = vpack.c.bf16 %v1920_v33, %v1913_v9 }
 0x23b   :  { %v1930_v26 = vmax.f32 %v1928_v25, %v1929_v62  ;;  %v1888_v59 = vmax.f32 %v1886_v21, %v1887_v52  ;;  %v1883_v63 = vmax.f32 %v3228_v23, %v1882_v1  ;;  %v1855_v45 = vmax.f32 %v1853_v22, %v1854_v61 }
 0x23c   :  { %v1905_v44 = vrot.slane %v1904_v18, 1  ;;  %v1899_v47 = vmax.f32 %v1897_v12, %v1898_v4  ;;  %v1849_v53 = vrot.slane %v1848_v11, 1  ;;  %v1817_v28 = vsel %vm1805_vm5, %v3183_v39, %v2360_v31 }
 0x23d   :  { %v1931_v5 = vrot.slane %v1930_v26, 2  ;;  %v1889_v20 = vrot.slane %v1888_v59, 2  ;;  %v1926_v19 = vrot.slane %v1925_v46, 1  ;;  %v1842_v3 = vrot.slane %v1841_v14, 1 }
 0x23e   :  { %v1906_v49 = vmax.f32 %v1904_v18, %v1905_v44  ;;  %v1863_v42 = vrot.slane %v1862_v51, 1  ;;  %v1814_v34 = vsel %vm1805_vm5, %v3189_v48, %v2359_v58  ;;  %v2022_v2 = vrot.slane %v2208_v29, %v2585_v13 }
 0x23f   :  { %v1932_v17 = vmax.f32 %v1930_v26, %v1931_v5  ;;  %v1890_v23 = vmax.f32 %v1888_v59, %v1889_v20  ;;  %v1884_v1 = vrot.slane %v1883_v63, 1  ;;  %v1856_v10 = vrot.slane %v1855_v45, 1 }
 0x240   :  { %v2207_v50 = vpack.c.bf16 %v1906_v49, %v1899_v47  ;;  %v1850_v43 = vmax.f32 %v1848_v11, %v1849_v53  ;;  %v1872_v8 = vsel %vm1822_vm6, %v1817_v28, -inf  ;;  %v1830_v60 = vsel %vm1822_vm6, %v1814_v34, -inf }
 0x241   :  { %v1933_v22 = vrot.slane %v1932_v17, 1  ;;  %v1891_v39 = vrot.slane %v1890_v23, 1  ;;  %v1869_v48 = vmax.f32 %v3215_v40, %v1868_v38  ;;  %v1827_v55 = vmax.f32 %v3217_v27, %v1826_v24 }
 0x242   :  { %v2014_v56 = vrot.slane %v2207_v50, %v2585_v13  ;;  %v1843_v12 = vmax.f32 %v1841_v14, %v1842_v3  ;;  %v1864_v0 = vmax.f32 %v1862_v51, %v1863_v42  ;;  %v2079_v7 = vrot.slane %v2022_v2, %v2585_v13 }
 0x243   :  { %v1934_v57 = vmax.f32 %v1932_v17, %v1933_v22  ;;  %v1892_v32 = vmax.f32 %v1890_v23, %v1891_v39  ;;  %v1927_v15 = vmax.f32 %v1925_v46, %v1926_v19  ;;  %v1885_v30 = vmax.f32 %v1883_v63, %v1884_v1 }
 0x244   :  { %v2072_v36 = vrot.slane %v2014_v56, %v2585_v13  ;;  %v1873_v54 = vrot.slane %v1872_v8, 4  ;;  %v1831_v6 = vrot.slane %v1830_v60, 4  ;;  %v1857_v41 = vmax.f32 %v1855_v45, %v1856_v10 }
 0x245   :  { %v2203_v9 = vpack.c.bf16 %v1850_v43, %v1843_v12  ;;  %v2209_v38 = vpack.c.bf16 %v1934_v57, %v1927_v15  ;;  %v2206_v37 = vpack.c.bf16 %v1892_v32, %v1885_v30  ;;  %v1870_v24 = vrot.slane %v1869_v48, 1 }
 0x246   :  { %v2097_v61 = vunpack.c.l.b16 %v2072_v36  ;;  %v2098_v40 = vunpack.c.h.b16 %v2072_v36  ;;  %v1874_v16 = vmax.f32 %v1872_v8, %v1873_v54  ;;  %v1832_v27 = vmax.f32 %v1830_v60, %v1831_v6 }
 0x247   :  { %v1828_v35 = vrot.slane %v1827_v55, 1  ;;  %v2204_v4 = vpack.c.bf16 %v1864_v0, %v1857_v41  ;;  %v2099_v33 = vunpack.c.l.b16 %v2079_v7  ;;  %v2030_v25 = vrot.slane %v2209_v38, %v2585_v13 }
 0x248   :  { %v2006_v21 = vrot.slane %v2206_v37, %v2585_v13  ;;  %v1875_v46 = vrot.slane %v1874_v16, 2  ;;  %v1833_v18 = vrot.slane %v1832_v27, 2  ;;  %v2100_v11 = vunpack.c.h.b16 %v2079_v7 }
 0x249   :  { %v1982_v62 = vrot.slane %v2203_v9, %v2585_v13  ;;  %v2115_v52 = vrot.slane %v2097_v61, 7  ;;  %v2121_v14 = vrot.slane %v2098_v40, 7  ;;  %v2086_v51 = vrot.slane %v2030_v25, %v2585_v13 }
 0x24a   :  { %v2065_v31 = vrot.slane %v2006_v21, %v2585_v13  ;;  %v1876_v58 = vmax.f32 %v1874_v16, %v1875_v46  ;;  %v1834_v29 = vmax.f32 %v1832_v27, %v1833_v18  ;;  %v1871_v44 = vmax.f32 %v1869_v48, %v1870_v24 }
 0x24b   :  { %v1829_v26 = vmax.f32 %v1827_v55, %v1828_v35  ;;  %v1990_v59 = vrot.slane %v2204_v4, %v2585_v13  ;;  %v2117_v63 = vrot.slane %v2099_v33, 6  ;;  %v2101_v45 = vunpack.c.l.b16 %v2086_v51 }
 0x24c   :  { %v2102_v47 = vunpack.c.h.b16 %v2086_v51  ;;  %v2095_v53 = vunpack.c.l.b16 %v2065_v31  ;;  %v2096_v49 = vunpack.c.h.b16 %v2065_v31  ;;  %v2123_v5 = vrot.slane %v2100_v11, 6 }
 0x24d   :  { %v2044_v20 = vrot.slane %v1982_v62, %v2585_v13  ;;  %v1877_v28 = vrot.slane %v1876_v58, 1  ;;  %v1835_v19 = vrot.slane %v1834_v29, 1  ;;  %v2119_v3 = vrot.slane %v2101_v45, 5 }
 0x24e   :  { %v2125_v42 = vrot.slane %v2102_v47, 5  ;;  %v2116_v34 = vsel %vm1418_vm2, %v2115_v52, %v2095_v53  ;;  %v2122_v2 = vsel %vm1418_vm2, %v2121_v14, %v2096_v49  ;;  %v2051_v10 = vrot.slane %v1990_v59, %v2585_v13 }
 0x24f   :  { %v2118_v50 = vsel %vm1420_vm3, %v2117_v63, %v2116_v34  ;;  %v2124_v17 = vsel %vm1420_vm3, %v2123_v5, %v2122_v2  ;;  %v1878_v23 = vmax.f32 %v1876_v58, %v1877_v28  ;;  %v1836_v1 = vmax.f32 %v1834_v29, %v1835_v19 }
 0x250   :  { %v2120_v43 = vsel %vm1422_vm4, %v2119_v3, %v2118_v50  ;;  %v2126_v8 = vsel %vm1422_vm4, %v2125_v42, %v2124_v17  ;;  %v2089_v60 = vunpack.c.l.b16 %v2044_v20  ;;  %v2090_v48 = vunpack.c.h.b16 %v2044_v20 }
 0x251   :  { %v2128_v56 = vpack.c.b16 %v2126_v8, %v2120_v43  ;;  %v2202_v22 = vpack.c.bf16 %v1836_v1, %v1829_v26  ;;  %v2205_v39 = vpack.c.bf16 %v1878_v23, %v1871_v44  ;;  %v2091_v0 = vunpack.c.l.b16 %v2051_v10 }
 0x252   :  { %v2092_v7 = vunpack.c.h.b16 %v2051_v10  ;;  %v2103_v32 = vrot.slane %v2089_v60, 7  ;;  %v2109_v15 = vrot.slane %v2090_v48, 7 }
 0x253   :  { %2211 = vst.sshfl [vmem:[%s3299_s3 + $0x4] sm:$0x33 pattern:$0x76325410] %v2128_v56  ;;  %v1974_v55 = vrot.slane %v2202_v22, %v2585_v13  ;;  %v1998_v12 = vrot.slane %v2205_v39, %v2585_v13  ;;  %v2105_v9 = vrot.slane %v2091_v0, 6 }
 0x254   :  { %v2111_v61 = vrot.slane %v2092_v7, 6 }
 0x255   :  { %v2037_v36 = vrot.slane %v1974_v55, %v2585_v13  ;;  %v2058_v57 = vrot.slane %v1998_v12, %v2585_v13 }
 0x257   :  { %v2087_v30 = vunpack.c.l.b16 %v2037_v36  ;;  %v2088_v54 = vunpack.c.h.b16 %v2037_v36  ;;  %v2093_v6 = vunpack.c.l.b16 %v2058_v57  ;;  %v2094_v41 = vunpack.c.h.b16 %v2058_v57 }
 0x259   :  { %v2104_v40 = vsel %vm1418_vm2, %v2103_v32, %v2087_v30  ;;  %v2107_v38 = vrot.slane %v2093_v6, 5  ;;  %v2110_v37 = vsel %vm1418_vm2, %v2109_v15, %v2088_v54  ;;  %v2113_v16 = vrot.slane %v2094_v41, 5 }
 0x25a   :  { %v2106_v27 = vsel %vm1420_vm3, %v2105_v9, %v2104_v40  ;;  %v2112_v24 = vsel %vm1420_vm3, %v2111_v61, %v2110_v37 }
 0x25b   :  { %v2108_v13 = vsel %vm1422_vm4, %v2107_v38, %v2106_v27  ;;  %v2114_v35 = vsel %vm1422_vm4, %v2113_v16, %v2112_v24 }
 0x25c   :  { %v2127_v4 = vpack.c.b16 %v2114_v35, %v2108_v13 }
 0x25e   :  { %2210 = vst.sshfl [vmem:[%s3299_s3] sm:$0x33 pattern:$0x76325410] %v2127_v4 }

// kernel: gaze_cnn_forward.3
= control target key start
LH: loop header
LB: loop body
LE: loop exit
PB: predicated region body
PF: predicated region fallthrough
CT: control target
= control target key end

     0   :  { %vm358_vm0 = vcmask 1044480   ;;  %vm359_vm1 = vcmask 1045504   ;;  %vm261_vm2 = vcmask 220160   ;;  %v6874_v1 = vmov 65535   ;;  %s6878_s30 = smov 64   ;;  %s6879_s4 = smov 96   ;;  %s9498_s1 = inlined_call_operand.vmem [shape: bf16[27,32], index: 1, kind: input, shape index: {}]   ;;  %s9499_s0 = inlined_call_operand.vmem [shape: bf16[2,16,16,27], index: 0, kind: input, shape index: {}]   ;;  %s9500_s2 = inlined_call_operand.vmem [shape: f32[1,32], index: 2, kind: input, shape index: {}]   ;;  %s9501_s3 = inlined_call_operand.vmem [shape: bf16[2,8,256], index: 3, kind: output, shape index: {}]  }
   0x1   :  { %v6836_v0 = vld [vmem:[%s9498_s1] sm:$0xff]   ;;  %v360_v2 = vsel %vm358_vm0, 4294967295, %v6874_v1  ;;  %v6837_v3 = vld [vmem:[%s9498_s1 + $0x8] sm:$0x3f]   ;;  %v6842_v10 = vld [vmem:[%s9499_s0 + $0x10] sm:$0xff]   ;;  %v786_v40 = vlaneseq  ;;  %vm2126_vm3 = vcmask 254976  }
   0x2   :  { %6517 = vmatprep.subr.bf16.mxu0 %v6836_v0  ;;  %6585 = vmatprep.subr.bf16.mxu1 %v6836_v0  ;;  %v361_v4 = vsel %vm359_vm1, %v360_v2, 0  ;;  %v6838_v5 = vld [vmem:[%s9499_s0] sm:$0xff]   ;;  %v6840_v8 = vld [vmem:[%s9499_s0 + $0x8] sm:$0xff]   ;;  %v6843_v11 = vld [vmem:[%s9499_s0 + $0x90] sm:$0xff]   ;;  %v6875_v38 = vmov 1983009808  }
   0x3   :  { %6518 = vmatpush3.bf16.msra.mxu0 %v6836_v0  ;;  %6587 = vmatpush3.bf16.msra.mxu1 %v6836_v0  ;;  %v363_v6 = vand.u32 %v6837_v3, %v361_v4  ;;  %v6839_v7 = vld [vmem:[%s9499_s0 + $0x80] sm:$0xff]   ;;  %v6841_v9 = vld [vmem:[%s9499_s0 + $0x88] sm:$0xff]   ;;  %v6844_v12 = vld [vmem:[%s9499_s0 + $0x18] sm:$0xff]   ;;  %v784_v39 = vunpack.c.l.s4 %v6875_v38  ;;  %v7035_v42 = vshrl.u32 %v786_v40, 7  ;;  %vm4175_vm4 = vcmask 1041409   ;;  %s6880_s5 = smov 32  }
   0x4   :  { %6521 = vmatprep.mubr.msk.bf16.mxu0 %vm261_vm2, %v6838_v5  ;;  %6553 = vmatprep.mubr.msk.bf16.mxu1 %vm261_vm2, %v6839_v7  ;;  %v6845_v13 = vld [vmem:[%s9499_s0 + $0x98] sm:$0xff]   ;;  %v6846_v14 = vld [vmem:[%s9499_s0 + $0x20] sm:$0xff]   ;;  %v6848_v16 = vld [vmem:[%s9499_s0 + $0x28] sm:$0xff]   ;;  %vm4177_vm5 = vcmask 1042434   ;;  %vm4179_vm6 = vcmask 1043459   ;;  %vm4181_vm7 = vcmask 1044484  }
   0x5   :  { %6519 = vmatprep.subr.bf16.mxu0 %v363_v6  ;;  %6586 = vmatprep.subr.bf16.mxu1 %v363_v6  ;;  %v6847_v15 = vld [vmem:[%s9499_s0 + $0xa0] sm:$0xff]   ;;  %v6849_v17 = vld [vmem:[%s9499_s0 + $0xa8] sm:$0xff]   ;;  %v6850_v18 = vld [vmem:[%s9499_s0 + $0x30] sm:$0xff]   ;;  %v785_v41 = vunpack.c.0.s8 %v784_v39  ;;  %9515 = vst [vmem:[#allocation2_spill] sm:$0xff] %v7035_v42  ;;  %vm4183_vm8 = vcmask 1045509   ;;  %vm4185_vm9 = vcmask 1046534  }
   0x6   :  { %v6851_v19 = vld [vmem:[%s9499_s0 + $0xb0] sm:$0xff]   ;;  %v6852_v20 = vld [vmem:[%s9499_s0 + $0x38] sm:$0xff]   ;;  %v6854_v22 = vld [vmem:[%s9499_s0 + $0x40] sm:$0xff]   ;;  %vm4187_vm10 = vcmask 1047559   ;;  %vm5878_vm11 = vcmask 261120   ;;  %vm5912_vm12 = vcmask 785408  }
   0x7   :  { %6520 = vmatpush3.bf16.msra.mxu0 %v363_v6  ;;  %6588 = vmatpush3.bf16.msra.mxu1 %v363_v6  ;;  %v6853_v21 = vld [vmem:[%s9499_s0 + $0xb8] sm:$0xff]   ;;  %v6855_v23 = vld [vmem:[%s9499_s0 + $0xc0] sm:$0xff]   ;;  %v6856_v24 = vld [vmem:[%s9499_s0 + $0x48] sm:$0xff]   ;;  %v7044_v47 = vsub.s32 %v785_v41, %v7035_v42  ;;  %vm5895_vm13 = vcmask 523264   ;;  %vm5977_vm14 = vcmask 1041408  }
   0x8   :  { %v6857_v25 = vld [vmem:[%s9499_s0 + $0xc8] sm:$0xff]   ;;  %v6858_v26 = vld [vmem:[%s9499_s0 + $0x50] sm:$0xff]   ;;  %v6860_v28 = vld [vmem:[%s9499_s0 + $0x58] sm:$0xff]  }
   0x9   :  { %v6859_v27 = vld [vmem:[%s9499_s0 + $0xd0] sm:$0xff]   ;;  %v6861_v29 = vld [vmem:[%s9499_s0 + $0xd8] sm:$0xff]   ;;  %v6862_v30 = vld [vmem:[%s9499_s0 + $0x60] sm:$0xff]  }
   0xa   :  { %6522 = vmatmul.mubr.msk.bf16.vlgmr.msra.gmra.mrb[0].mxu0 %vm261_vm2, %v6840_v8  ;;  %6554 = vmatmul.mubr.msk.bf16.vlgmr.msra.gmra.mrb[0].mxu1 %vm261_vm2, %v6841_v9  ;;  %v6863_v31 = vld [vmem:[%s9499_s0 + $0xe0] sm:$0xff]   ;;  %v6864_v32 = vld [vmem:[%s9499_s0 + $0x68] sm:$0xff]   ;;  %v6866_v34 = vld [vmem:[%s9499_s0 + $0x70] sm:$0xff]  }
   0xb   :  { %6525 = vmatprep.mubr.msk.bf16.mxu0 %vm261_vm2, %v6842_v10  ;;  %6557 = vmatprep.mubr.msk.bf16.mxu1 %vm261_vm2, %v6843_v11  ;;  %v6865_v33 = vld [vmem:[%s9499_s0 + $0xe8] sm:$0xff]   ;;  %v6867_v35 = vld [vmem:[%s9499_s0 + $0xf0] sm:$0xff]   ;;  %v6868_v36 = vld [vmem:[%s9499_s0 + $0x78] sm:$0xff]  }
   0xc   :  { %v6869_v37 = vld [vmem:[%s9499_s0 + $0xf8] sm:$0xff]   ;;  %v7040_v43 = vld [vmem:[%s9500_s2] ss:$0 sm:$0xff] }
  0x12   :  { %6526 = vmatmul.mubr.msk.bf16.gmra.mrb[4].mxu0 %vm261_vm2, %v6844_v12  ;;  %6558 = vmatmul.mubr.msk.bf16.gmra.mrb[4].mxu1 %vm261_vm2, %v6845_v13 }
  0x13   :  { %6529 = vmatprep.mubr.msk.bf16.mxu0 %vm261_vm2, %v6846_v14  ;;  %6561 = vmatprep.mubr.msk.bf16.mxu1 %vm261_vm2, %v6847_v15 }
  0x1a   :  { %6530 = vmatmul.mubr.msk.bf16.gmra.mrb[8].mxu0 %vm261_vm2, %v6848_v16  ;;  %6562 = vmatmul.mubr.msk.bf16.gmra.mrb[8].mxu1 %vm261_vm2, %v6849_v17 }
  0x1b   :  { %6533 = vmatprep.mubr.msk.bf16.mxu0 %vm261_vm2, %v6850_v18  ;;  %6565 = vmatprep.mubr.msk.bf16.mxu1 %vm261_vm2, %v6851_v19 }
  0x22   :  { %6534 = vmatmul.mubr.msk.bf16.gmra.mrb[12].mxu0 %vm261_vm2, %v6852_v20  ;;  %6566 = vmatmul.mubr.msk.bf16.gmra.mrb[12].mxu1 %vm261_vm2, %v6853_v21 }
  0x23   :  { %6537 = vmatprep.mubr.msk.bf16.mxu0 %vm261_vm2, %v6854_v22  ;;  %6569 = vmatprep.mubr.msk.bf16.mxu1 %vm261_vm2, %v6855_v23 }
  0x2a   :  { %6538 = vmatmul.mubr.msk.bf16.gmra.mrb[16].mxu0 %vm261_vm2, %v6856_v24  ;;  %6570 = vmatmul.mubr.msk.bf16.gmra.mrb[16].mxu1 %vm261_vm2, %v6857_v25 }
  0x2b   :  { %6541 = vmatprep.mubr.msk.bf16.mxu0 %vm261_vm2, %v6858_v26  ;;  %6573 = vmatprep.mubr.msk.bf16.mxu1 %vm261_vm2, %v6859_v27 }
  0x32   :  { %6542 = vmatmul.mubr.msk.bf16.gmra.mrb[20].mxu0 %vm261_vm2, %v6860_v28  ;;  %6574 = vmatmul.mubr.msk.bf16.gmra.mrb[20].mxu1 %vm261_vm2, %v6861_v29 }
  0x33   :  { %6545 = vmatprep.mubr.msk.bf16.mxu0 %vm261_vm2, %v6862_v30  ;;  %6577 = vmatprep.mubr.msk.bf16.mxu1 %vm261_vm2, %v6863_v31 }
  0x3a   :  { %6546 = vmatmul.mubr.msk.bf16.gmra.mrb[24].mxu0 %vm261_vm2, %v6864_v32  ;;  %6578 = vmatmul.mubr.msk.bf16.gmra.mrb[24].mxu1 %vm261_vm2, %v6865_v33 }
  0x3b   :  { %6549 = vmatprep.mubr.msk.bf16.mxu0 %vm261_vm2, %v6866_v34  ;;  %6581 = vmatprep.mubr.msk.bf16.mxu1 %vm261_vm2, %v6867_v35 }
  0x42   :  { %6550 = vmatmul.mubr.msk.bf16.gmra.mrb[28].mxu0 %vm261_vm2, %v6868_v36  ;;  %6582 = vmatmul.mubr.msk.bf16.gmra.mrb[28].mxu1 %vm261_vm2, %v6869_v37 }
  0xdd   :  { %v6523_v44 = vpop.f32.mrb[0].mxu0  ;;  %v6555_v45 = vpop.f32.mrb[0].mxu1 }
  0xde   :  { %v408_v46 = vadd.f32 %v6523_v44, %v7040_v43  ;;  %v536_v48 = vadd.f32 %v6555_v45, %v7040_v43  ;;  %v399_v49 = vpop.f32.mrb[1].mxu0  ;;  %v527_v50 = vpop.f32.mrb[1].mxu1 }
  0xdf   :  { %v400_v51 = vadd.f32 %v7040_v43, %v399_v49  ;;  %v528_v52 = vadd.f32 %v7040_v43, %v527_v50  ;;  %v6524_v53 = vpop.f32.mrb[2].mxu0  ;;  %v6556_v54 = vpop.f32.mrb[2].mxu1 }
  0xe0   :  { %v656_v55 = vmax.f32 %v408_v46, 0.0  ;;  %v688_v56 = vmax.f32 %v536_v48, 0.0  ;;  %v7050_v57 = vadd.f32 %v6524_v53, %v7040_v43  ;;  %v402_v58 = vpop.f32.mrb[3].mxu0  ;;  %v530_v59 = vpop.f32.mrb[3].mxu1  ;;  %v7055_v62 = vadd.f32 %v6556_v54, %v7040_v43 }
  0xe1   :  { %v654_v60 = vmax.f32 %v400_v51, 0.0  ;;  %v7052_v61 = vmax.f32 %v528_v52, 0.0  ;;  %v7058_v63 = vadd.f32 %v7040_v43, %v402_v58  ;;  %v7068_v7 = vadd.f32 %v7040_v43, %v530_v59 }
  0xe2   :  { %v816_v0 = vcombine.high %v656_v55, %v656_v55  ;;  %v823_v1 = vrot.slane %v656_v55, %v7044_v47  ;;  %v1360_v2 = vcombine.high %v688_v56, %v688_v56  ;;  %v1367_v3 = vrot.slane %v688_v56, %v7044_v47 }
  0xe3   :  { %v782_v4 = vcombine.high %v654_v60, %v654_v60  ;;  %v7063_v5 = vrot.slane %v654_v60, %v7044_v47  ;;  %v1326_v6 = vcombine.high %v7052_v61, %v7052_v61 }
  0xe4   :  { %v830_v8 = vrot.slane %v816_v0, %v7044_v47  ;;  %v831_v9 = vcombine.high %v823_v1, %v823_v1  ;;  %v2183_v10 = vsel %vm2126_vm3, %v823_v1, -inf  ;;  %v1374_v11 = vrot.slane %v1360_v2, %v7044_v47 }
  0xe5   :  { %v2184_v12 = vrot.slane %v2183_v10, 4  ;;  %v1375_v13 = vcombine.high %v1367_v3, %v1367_v3  ;;  %v3079_v14 = vsel %vm2126_vm3, %v1367_v3, -inf  ;;  %v7075_v15 = vrot.slane %v782_v4, %v7044_v47  ;;  %v7077_v16 = vpop.f32.mrb[4].mxu0  ;;  %v7079_v17 = vpop.f32.mrb[4].mxu1 }
  0xe6   :  { %v832_v18 = vcombine.high %v830_v8, %v830_v8  ;;  %v2190_v19 = vsel %vm2126_vm3, %v831_v9, -inf  ;;  %v2197_v20 = vsel %vm2126_vm3, %v830_v8, -inf  ;;  %v1376_v21 = vcombine.high %v1374_v11, %v1374_v11  ;;  %v7083_v22 = vpop.f32.mrb[5].mxu0  ;;  %v7085_v23 = vpop.f32.mrb[5].mxu1 }
  0xe7   :  { %v2185_v24 = vmax.f32 %v2183_v10, %v2184_v12  ;;  %v2191_v25 = vrot.slane %v2190_v19, 4  ;;  %v2198_v26 = vrot.slane %v2197_v20, 4  ;;  %v3080_v27 = vrot.slane %v3079_v14, 4  ;;  %v7087_v28 = vpop.f32.mrb[6].mxu0  ;;  %v7089_v29 = vpop.f32.mrb[6].mxu1 }
  0xe8   :  { %v2204_v30 = vsel %vm2126_vm3, %v832_v18, -inf  ;;  %v3086_v31 = vsel %vm2126_vm3, %v1375_v13, -inf  ;;  %v3093_v32 = vsel %vm2126_vm3, %v1374_v11, -inf  ;;  %v3100_v33 = vsel %vm2126_vm3, %v1376_v21, -inf  ;;  %v7095_v34 = vpop.f32.mrb[7].mxu0  ;;  %v7097_v35 = vpop.f32.mrb[7].mxu1 }
  0xe9   :  { %v2186_v36 = vrot.slane %v2185_v24, 2  ;;  %v2192_v37 = vmax.f32 %v2190_v19, %v2191_v25  ;;  %v2199_v38 = vmax.f32 %v2197_v20, %v2198_v26  ;;  %v2205_v39 = vrot.slane %v2204_v30, 4 }
  0xea   :  { %v3081_v40 = vmax.f32 %v3079_v14, %v3080_v27  ;;  %v3087_v41 = vrot.slane %v3086_v31, 4  ;;  %v3094_v44 = vrot.slane %v3093_v32, 4  ;;  %v3101_v45 = vrot.slane %v3100_v33, 4 }
  0xeb   :  { %v2187_v46 = vmax.f32 %v2185_v24, %v2186_v36  ;;  %v2193_v48 = vrot.slane %v2192_v37, 2  ;;  %v2200_v49 = vrot.slane %v2199_v38, 2  ;;  %v2206_v50 = vmax.f32 %v2204_v30, %v2205_v39 }
  0xec   :  { %v3082_v51 = vrot.slane %v3081_v40, 2  ;;  %v3088_v52 = vmax.f32 %v3086_v31, %v3087_v41  ;;  %v3095_v53 = vmax.f32 %v3093_v32, %v3094_v44  ;;  %v3102_v54 = vmax.f32 %v3100_v33, %v3101_v45 }
  0xed   :  { %v2188_v55 = vrot.slane %v2187_v46, 1  ;;  %v2194_v56 = vmax.f32 %v2192_v37, %v2193_v48  ;;  %v2201_v58 = vmax.f32 %v2199_v38, %v2200_v49  ;;  %v2207_v59 = vrot.slane %v2206_v50, 2  ;;  %v7099_v60 = vpop.f32.mrb[8].mxu0  ;;  %v7101_v0 = vpop.f32.mrb[8].mxu1 }
  0xee   :  { %v3083_v1 = vmax.f32 %v3081_v40, %v3082_v51  ;;  %v3089_v2 = vrot.slane %v3088_v52, 2  ;;  %v3096_v3 = vrot.slane %v3095_v53, 2  ;;  %v3103_v4 = vrot.slane %v3102_v54, 2  ;;  %v7121_v48 = vpop.f32.mrb[9].mxu0 }
  0xef   :  { %v2189_v8 = vmax.f32 %v2187_v46, %v2188_v55  ;;  %v2195_v9 = vrot.slane %v2194_v56, 1  ;;  %v2202_v10 = vrot.slane %v2201_v58, 1  ;;  %v2208_v11 = vmax.f32 %v2206_v50, %v2207_v59 }
  0xf0   :  { %v3084_v12 = vrot.slane %v3083_v1, 1  ;;  %v3090_v13 = vmax.f32 %v3088_v52, %v3089_v2  ;;  %v3097_v14 = vmax.f32 %v3095_v53, %v3096_v3  ;;  %v3104_v18 = vmax.f32 %v3102_v54, %v3103_v4 }
  0xf1   :  { %v2196_v19 = vmax.f32 %v2194_v56, %v2195_v9  ;;  %v2203_v20 = vmax.f32 %v2201_v58, %v2202_v10  ;;  %v2209_v21 = vrot.slane %v2208_v11, 1  ;;  %v797_v24 = vcombine.high %v7063_v5, %v7063_v5 }
  0xf2   :  { %v3091_v25 = vrot.slane %v3090_v13, 1  ;;  %v3098_v26 = vrot.slane %v3097_v14, 1  ;;  %v3105_v27 = vrot.slane %v3104_v18, 1  ;;  %v1333_v30 = vrot.slane %v7052_v61, %v7044_v47 }
  0xf3   :  { %v4189_v31 = vsel %vm4175_vm4, %v2196_v19, %v2189_v8  ;;  %v3085_v32 = vmax.f32 %v3083_v1, %v3084_v12  ;;  %v798_v33 = vcombine.high %v7075_v15, %v7075_v15  ;;  %v2127_v36 = vsel %vm2126_vm3, %v7063_v5, -inf }
  0xf4   :  { %v7112_v37 = vmax.f32 %v2208_v11, %v2209_v21  ;;  %v7115_v38 = vsel %vm4177_vm5, %v2203_v20, %v4189_v31  ;;  %v3092_v39 = vmax.f32 %v3090_v13, %v3091_v25  ;;  %v3099_v40 = vmax.f32 %v3097_v14, %v3098_v26 }
  0xf5   :  { %v2128_v41 = vrot.slane %v2127_v36, 4  ;;  %v2134_v44 = vsel %vm2126_vm3, %v797_v24, -inf  ;;  %v2141_v45 = vsel %vm2126_vm3, %v7075_v15, -inf  ;;  %v2148_v46 = vsel %vm2126_vm3, %v798_v33, -inf }
  0xf6   :  { %v7123_v49 = vmax.f32 %v3104_v18, %v3105_v27  ;;  %v2135_v5 = vrot.slane %v2134_v44, 4  ;;  %v2142_v50 = vrot.slane %v2141_v45, 4  ;;  %v2149_v51 = vrot.slane %v2148_v46, 4  ;;  %v7134_v27 = vpop.f32.mrb[9].mxu1 }
  0xf7   :  { %v4301_v52 = vsel %vm4175_vm4, %v3092_v39, %v3085_v32  ;;  %v2129_v53 = vmax.f32 %v2127_v36, %v2128_v41  ;;  %v1340_v54 = vrot.slane %v1326_v6, %v7044_v47  ;;  %v1341_v55 = vcombine.high %v1333_v30, %v1333_v30 }
  0xf8   :  { %v2136_v56 = vmax.f32 %v2134_v44, %v2135_v5  ;;  %v2143_v15 = vmax.f32 %v2141_v45, %v2142_v50  ;;  %v2150_v58 = vmax.f32 %v2148_v46, %v2149_v51  ;;  %v3023_v59 = vsel %vm2126_vm3, %v1333_v30, -inf }
  0xf9   :  { %v2130_v1 = vrot.slane %v2129_v53, 2  ;;  %v1342_v2 = vcombine.high %v1340_v54, %v1340_v54  ;;  %v3024_v3 = vrot.slane %v3023_v59, 4  ;;  %v3030_v4 = vsel %vm2126_vm3, %v1341_v55, -inf }
  0xfa   :  { %v2137_v8 = vrot.slane %v2136_v56, 2  ;;  %v2144_v9 = vrot.slane %v2143_v15, 2  ;;  %v2151_v10 = vrot.slane %v2150_v58, 2  ;;  %v3031_v11 = vrot.slane %v3030_v4, 4 }
  0xfb   :  { %v2131_v12 = vmax.f32 %v2129_v53, %v2130_v1  ;;  %v3025_v13 = vmax.f32 %v3023_v59, %v3024_v3  ;;  %v3037_v61 = vsel %vm2126_vm3, %v1340_v54, -inf  ;;  %v3044_v6 = vsel %vm2126_vm3, %v1342_v2, -inf }
  0xfc   :  { %v2138_v14 = vmax.f32 %v2136_v56, %v2137_v8  ;;  %v2145_v18 = vmax.f32 %v2143_v15, %v2144_v9  ;;  %v2152_v19 = vmax.f32 %v2150_v58, %v2151_v10  ;;  %v3032_v20 = vmax.f32 %v3030_v4, %v3031_v11 }
  0xfd   :  { %v2132_v21 = vrot.slane %v2131_v12, 1  ;;  %v3026_v24 = vrot.slane %v3025_v13, 2  ;;  %v3038_v25 = vrot.slane %v3037_v61, 4  ;;  %v3045_v26 = vrot.slane %v3044_v6, 4 }
  0xfe   :  { %v2139_v30 = vrot.slane %v2138_v14, 1  ;;  %v2146_v31 = vrot.slane %v2145_v18, 1  ;;  %v2153_v32 = vrot.slane %v2152_v19, 1  ;;  %v3033_v33 = vrot.slane %v3032_v20, 2 }
  0xff   :  { %v4302_v36 = vsel %vm4177_vm5, %v3099_v40, %v4301_v52  ;;  %v3027_v39 = vmax.f32 %v3025_v13, %v3026_v24  ;;  %v3039_v41 = vmax.f32 %v3037_v61, %v3038_v25  ;;  %v3046_v44 = vmax.f32 %v3044_v6, %v3045_v26 }
 0x100   :  { %v2133_v45 = vmax.f32 %v2131_v12, %v2132_v21  ;;  %v2140_v46 = vmax.f32 %v2138_v14, %v2139_v30  ;;  %v2147_v5 = vmax.f32 %v2145_v18, %v2146_v31  ;;  %v3034_v50 = vmax.f32 %v3032_v20, %v3033_v33 }
 0x101   :  { %v3028_v51 = vrot.slane %v3027_v39, 1  ;;  %v3040_v53 = vrot.slane %v3039_v41, 2  ;;  %v3047_v54 = vrot.slane %v3046_v44, 2  ;;  %v657_v55 = vmax.f32 %v7050_v57, 0.0 }
 0x102   :  { %v7138_v56 = vmax.f32 %v2152_v19, %v2153_v32  ;;  %v4176_v15 = vsel %vm4175_vm4, %v2140_v46, %v2133_v45  ;;  %v3035_v58 = vrot.slane %v3034_v50, 1  ;;  %v689_v59 = vmax.f32 %v7055_v62, 0.0  ;;  %v7160_v19 = vpop.f32.mrb[10].mxu0 }
 0x103   :  { %v7143_v40 = vsel %vm4177_vm5, %v2147_v5, %v4176_v15  ;;  %v3041_v52 = vmax.f32 %v3039_v41, %v3040_v53  ;;  %v3048_v1 = vmax.f32 %v3046_v44, %v3047_v54  ;;  %v7148_v2 = vsel %vm4179_vm6, %v7112_v37, %v7115_v38 }
 0x104   :  { %v3036_v3 = vmax.f32 %v3034_v50, %v3035_v58  ;;  %v833_v4 = vcombine.high %v657_v55, %v657_v55  ;;  %v840_v57 = vrot.slane %v657_v55, %v7044_v47  ;;  %v1377_v8 = vcombine.high %v689_v59, %v689_v59 }
 0x105   :  { %v3029_v9 = vmax.f32 %v3027_v39, %v3028_v51  ;;  %v3042_v10 = vrot.slane %v3041_v52, 1  ;;  %v3049_v11 = vrot.slane %v3048_v1, 1  ;;  %v1384_v62 = vrot.slane %v689_v59, %v7044_v47 }
 0x106   :  { %v847_v12 = vrot.slane %v833_v4, %v7044_v47  ;;  %v848_v13 = vcombine.high %v840_v57, %v840_v57  ;;  %v2211_v61 = vsel %vm2126_vm3, %v840_v57, -inf  ;;  %v7156_v6 = vsel %vm4179_vm6, %v7123_v49, %v4302_v36 }
 0x107   :  { %v3043_v37 = vmax.f32 %v3041_v52, %v3042_v10  ;;  %v4294_v38 = vsel %vm4175_vm4, %v3036_v3, %v3029_v9  ;;  %v2212_v14 = vrot.slane %v2211_v61, 4  ;;  %v1391_v18 = vrot.slane %v1377_v8, %v7044_v47  ;;  %v7169_v10 = vpop.f32.mrb[10].mxu1 }
 0x108   :  { %v849_v20 = vcombine.high %v847_v12, %v847_v12  ;;  %v2218_v21 = vsel %vm2126_vm3, %v848_v13, -inf  ;;  %v2225_v24 = vsel %vm2126_vm3, %v847_v12, -inf  ;;  %v1392_v25 = vcombine.high %v1384_v62, %v1384_v62 }
 0x109   :  { %v3050_v26 = vmax.f32 %v3048_v1, %v3049_v11  ;;  %v2213_v30 = vmax.f32 %v2211_v61, %v2212_v14  ;;  %v2219_v31 = vrot.slane %v2218_v21, 4  ;;  %v2226_v49 = vrot.slane %v2225_v24, 4 }
 0x10a   :  { %v2232_v32 = vsel %vm2126_vm3, %v849_v20, -inf  ;;  %v1393_v33 = vcombine.high %v1391_v18, %v1391_v18  ;;  %v3107_v36 = vsel %vm2126_vm3, %v1384_v62, -inf  ;;  %v3114_v39 = vsel %vm2126_vm3, %v1392_v25, -inf }
 0x10b   :  { %v2214_v41 = vrot.slane %v2213_v30, 2  ;;  %v2220_v44 = vmax.f32 %v2218_v21, %v2219_v31  ;;  %v2227_v45 = vmax.f32 %v2225_v24, %v2226_v49  ;;  %v2233_v46 = vrot.slane %v2232_v32, 4 }
 0x10c   :  { %v3108_v5 = vrot.slane %v3107_v36, 4  ;;  %v3115_v50 = vrot.slane %v3114_v39, 4  ;;  %v3121_v51 = vsel %vm2126_vm3, %v1391_v18, -inf  ;;  %v3128_v53 = vsel %vm2126_vm3, %v1393_v33, -inf }
 0x10d   :  { %v2215_v54 = vmax.f32 %v2213_v30, %v2214_v41  ;;  %v2221_v55 = vrot.slane %v2220_v44, 2  ;;  %v2228_v15 = vrot.slane %v2227_v45, 2  ;;  %v2234_v58 = vmax.f32 %v2232_v32, %v2233_v46 }
 0x10e   :  { %v3109_v59 = vmax.f32 %v3107_v36, %v3108_v5  ;;  %v3116_v52 = vmax.f32 %v3114_v39, %v3115_v50  ;;  %v3122_v1 = vrot.slane %v3121_v51, 4  ;;  %v3129_v3 = vrot.slane %v3128_v53, 4 }
 0x10f   :  { %v2216_v4 = vrot.slane %v2215_v54, 1  ;;  %v2222_v57 = vmax.f32 %v2220_v44, %v2221_v55  ;;  %v2229_v8 = vmax.f32 %v2227_v45, %v2228_v15  ;;  %v2235_v9 = vrot.slane %v2234_v58, 2 }
 0x110   :  { %v3110_v11 = vrot.slane %v3109_v59, 2  ;;  %v3117_v62 = vrot.slane %v3116_v52, 2  ;;  %v3123_v12 = vmax.f32 %v3121_v51, %v3122_v1  ;;  %v3130_v13 = vmax.f32 %v3128_v53, %v3129_v3 }
 0x111   :  { %v2217_v61 = vmax.f32 %v2215_v54, %v2216_v4  ;;  %v2223_v14 = vrot.slane %v2222_v57, 1  ;;  %v2230_v18 = vrot.slane %v2229_v8, 1  ;;  %v7171_v20 = vmax.f32 %v2234_v58, %v2235_v9 }
 0x112   :  { %v3111_v21 = vmax.f32 %v3109_v59, %v3110_v11  ;;  %v3118_v24 = vmax.f32 %v3116_v52, %v3117_v62  ;;  %v3124_v25 = vrot.slane %v3123_v12, 2  ;;  %v3131_v30 = vrot.slane %v3130_v13, 2 }
 0x113   :  { %v4295_v31 = vsel %vm4177_vm5, %v3043_v37, %v4294_v38  ;;  %v7174_v49 = vmax.f32 %v2222_v57, %v2223_v14  ;;  %v7176_v32 = vmax.f32 %v2229_v8, %v2230_v18  ;;  %v7180_v33 = vsel %vm4181_vm7, %v2217_v61, %v7148_v2  ;;  %v7216_v61 = vpop.f32.mrb[11].mxu0 }
 0x114   :  { %v3112_v36 = vrot.slane %v3111_v21, 1  ;;  %v3119_v39 = vrot.slane %v3118_v24, 1  ;;  %v3125_v41 = vmax.f32 %v3123_v12, %v3124_v25  ;;  %v7182_v44 = vmax.f32 %v3130_v13, %v3131_v30 }
 0x115   :  { %9516 = vst [vmem:[#allocation3_spill] sm:$0xff] %v7176_v32  ;;  %v655_v46 = vmax.f32 %v7058_v63, 0.0  ;;  %v7189_v37 = vsel %vm4179_vm6, %v7138_v56, %v7143_v40  ;;  %v687_v38 = vmax.f32 %v7068_v7, 0.0  ;;  %v7195_v51 = vsel %vm4179_vm6, %v3050_v26, %v4295_v31 }
 0x116   :  { %v3113_v5 = vmax.f32 %v3111_v21, %v3112_v36  ;;  %v7192_v50 = vmax.f32 %v3118_v24, %v3119_v39  ;;  %v3126_v2 = vrot.slane %v3125_v41, 1  ;;  %v3133_v56 = vrot.slane %v7182_v44, 1 }
 0x117   :  { %v799_v53 = vcombine.high %v655_v46, %v655_v46  ;;  %v806_v54 = vrot.slane %v655_v46, %v7044_v47  ;;  %v1343_v55 = vcombine.high %v687_v38, %v687_v38  ;;  %v1350_v63 = vrot.slane %v687_v38, %v7044_v47 }
 0x118   :  { %9517 = vst [vmem:[#allocation4_spill] sm:$0xff] %v7192_v50  ;;  %v7199_v15 = vmax.f32 %v3125_v41, %v3126_v2  ;;  %v7204_v7 = vsel %vm4181_vm7, %v3113_v5, %v7156_v6  ;;  %v424_v40 = vadd.f32 %v7077_v16, %v7040_v43 }
 0x119   :  { %9519 = vst [vmem:[#allocation6_spill] sm:$0xff] %v7204_v7  ;;  %v813_v26 = vrot.slane %v799_v53, %v7044_v47  ;;  %v814_v58 = vcombine.high %v806_v54, %v806_v54  ;;  %v2155_v59 = vsel %vm2126_vm3, %v806_v54, -inf  ;;  %v1357_v52 = vrot.slane %v1343_v55, %v7044_v47  ;;  %v7222_v55 = vpop.f32.mrb[11].mxu1 }
 0x11a   :  { %9518 = vst [vmem:[#allocation5_spill] sm:$0xff] %v7199_v15  ;;  %v2156_v1 = vrot.slane %v2155_v59, 4  ;;  %v1358_v3 = vcombine.high %v1350_v63, %v1350_v63  ;;  %v3051_v4 = vsel %vm2126_vm3, %v1350_v63, -inf  ;;  %v7212_v57 = vmax.f32 %v424_v40, 0.0 }
 0x11b   :  { %v815_v8 = vcombine.high %v813_v26, %v813_v26  ;;  %v2162_v6 = vsel %vm2126_vm3, %v814_v58, -inf  ;;  %v2169_v9 = vsel %vm2126_vm3, %v813_v26, -inf  ;;  %v1359_v11 = vcombine.high %v1357_v52, %v1357_v52 }
 0x11c   :  { %v2157_v16 = vmax.f32 %v2155_v59, %v2156_v1  ;;  %v2163_v62 = vrot.slane %v2162_v6, 4  ;;  %v2170_v12 = vrot.slane %v2169_v9, 4  ;;  %v3052_v13 = vrot.slane %v3051_v4, 4 }
 0x11d   :  { %v2176_v14 = vsel %vm2126_vm3, %v815_v8, -inf  ;;  %v3058_v18 = vsel %vm2126_vm3, %v1358_v3, -inf  ;;  %v3065_v21 = vsel %vm2126_vm3, %v1357_v52, -inf  ;;  %v3072_v24 = vsel %vm2126_vm3, %v1359_v11, -inf }
 0x11e   :  { %v2158_v25 = vrot.slane %v2157_v16, 2  ;;  %v2164_v30 = vmax.f32 %v2162_v6, %v2163_v62  ;;  %v2171_v31 = vmax.f32 %v2169_v9, %v2170_v12  ;;  %v2177_v36 = vrot.slane %v2176_v14, 4 }
 0x11f   :  { %v3053_v39 = vmax.f32 %v3051_v4, %v3052_v13  ;;  %v3059_v41 = vrot.slane %v3058_v18, 4  ;;  %v3066_v46 = vrot.slane %v3065_v21, 4  ;;  %v3073_v38 = vrot.slane %v3072_v24, 4 }
 0x120   :  { %v2159_v5 = vmax.f32 %v2157_v16, %v2158_v25  ;;  %v2165_v2 = vrot.slane %v2164_v30, 2  ;;  %v2172_v53 = vrot.slane %v2171_v31, 2  ;;  %v2178_v54 = vmax.f32 %v2176_v14, %v2177_v36 }
 0x121   :  { %v3054_v63 = vrot.slane %v3053_v39, 2  ;;  %v3060_v40 = vmax.f32 %v3058_v18, %v3059_v41  ;;  %v3067_v26 = vmax.f32 %v3065_v21, %v3066_v46  ;;  %v3074_v58 = vmax.f32 %v3072_v24, %v3073_v38 }
 0x122   :  { %v2160_v59 = vrot.slane %v2159_v5, 1  ;;  %v2166_v52 = vmax.f32 %v2164_v30, %v2165_v2  ;;  %v2173_v1 = vmax.f32 %v2171_v31, %v2172_v53  ;;  %v2179_v3 = vrot.slane %v2178_v54, 2 }
 0x123   :  { %v3055_v8 = vmax.f32 %v3053_v39, %v3054_v63  ;;  %v3061_v6 = vrot.slane %v3060_v40, 2  ;;  %v3068_v4 = vrot.slane %v3067_v26, 2  ;;  %v3075_v9 = vrot.slane %v3074_v58, 2 }
 0x124   :  { %v2161_v11 = vmax.f32 %v2159_v5, %v2160_v59  ;;  %v2167_v62 = vrot.slane %v2166_v52, 1  ;;  %v2174_v16 = vrot.slane %v2173_v1, 1  ;;  %v7224_v12 = vmax.f32 %v2178_v54, %v2179_v3 }
 0x125   :  { %v3056_v13 = vrot.slane %v3055_v8, 1  ;;  %v3062_v14 = vmax.f32 %v3060_v40, %v3061_v6  ;;  %v3069_v25 = vmax.f32 %v3067_v26, %v3068_v4  ;;  %v3076_v36 = vmax.f32 %v3074_v58, %v3075_v9 }
 0x126   :  { %v7227_v18 = vmax.f32 %v7182_v44, %v3133_v56  ;;  %v7229_v21 = vmax.f32 %v2166_v52, %v2167_v62  ;;  %v7231_v24 = vmax.f32 %v2173_v1, %v2174_v16  ;;  %v7235_v30 = vsel %vm4181_vm7, %v2161_v11, %v7189_v37 }
 0x127   :  { %v3057_v31 = vmax.f32 %v3055_v8, %v3056_v13  ;;  %v3063_v39 = vrot.slane %v3062_v14, 1  ;;  %v3070_v41 = vrot.slane %v3069_v25, 1  ;;  %v3077_v46 = vrot.slane %v3076_v36, 1 }
 0x128   :  { %9520 = vst [vmem:[#allocation7_spill] sm:$0xff] %v7227_v18  ;;  %v884_v38 = vcombine.high %v7212_v57, %v7212_v57  ;;  %v891_v5 = vrot.slane %v7212_v57, %v7044_v47  ;;  %v552_v44 = vadd.f32 %v7079_v17, %v7040_v43  ;;  %v416_v56 = vadd.f32 %v7040_v43, %v7083_v22 }
 0x129   :  { %v7246_v37 = vmax.f32 %v3062_v14, %v3063_v39  ;;  %v7248_v53 = vmax.f32 %v3069_v25, %v3070_v41  ;;  %v7252_v54 = vsel %vm4181_vm7, %v3057_v31, %v7195_v51  ;;  %v7256_v17 = vmax.f32 %v3076_v36, %v3077_v46 }
 0x12a   :  { %9523 = vst [vmem:[#allocation10_spill] sm:$0xff] %v7252_v54  ;;  %v898_v63 = vrot.slane %v884_v38, %v7044_v47  ;;  %v899_v40 = vcombine.high %v891_v5, %v891_v5  ;;  %v2295_v57 = vsel %vm2126_vm3, %v891_v5, -inf  ;;  %v692_v26 = vmax.f32 %v552_v44, 0.0 }
 0x12b   :  { %9521 = vst [vmem:[#allocation8_spill] sm:$0xff] %v7246_v37  ;;  %9522 = vst [vmem:[#allocation9_spill] sm:$0xff] %v7248_v53  ;;  %v2296_v58 = vrot.slane %v2295_v57, 4  ;;  %v658_v22 = vmax.f32 %v416_v56, 0.0  ;;  %v7260_v59 = vadd.f32 %v7040_v43, %v7085_v23 }
 0x12c   :  { %9524 = vst [vmem:[#allocation11_spill] sm:$0xff] %v7256_v17  ;;  %v900_v52 = vcombine.high %v898_v63, %v898_v63  ;;  %v2302_v1 = vsel %vm2126_vm3, %v899_v40, -inf  ;;  %v2309_v51 = vsel %vm2126_vm3, %v898_v63, -inf  ;;  %v1428_v3 = vcombine.high %v692_v26, %v692_v26 }
 0x12d   :  { %v2297_v8 = vmax.f32 %v2295_v57, %v2296_v58  ;;  %v2303_v6 = vrot.slane %v2302_v1, 4  ;;  %v2310_v4 = vrot.slane %v2309_v51, 4  ;;  %v1435_v9 = vrot.slane %v692_v26, %v7044_v47 }
 0x12e   :  { %v2316_v11 = vsel %vm2126_vm3, %v900_v52, -inf  ;;  %v1442_v62 = vrot.slane %v1428_v3, %v7044_v47  ;;  %v850_v16 = vcombine.high %v658_v22, %v658_v22  ;;  %v857_v13 = vrot.slane %v658_v22, %v7044_v47 }
 0x12f   :  { %v2298_v23 = vrot.slane %v2297_v8, 2  ;;  %v2304_v14 = vmax.f32 %v2302_v1, %v2303_v6  ;;  %v2311_v25 = vmax.f32 %v2309_v51, %v2310_v4  ;;  %v2317_v36 = vrot.slane %v2316_v11, 4  ;;  %v7272_v51 = vpop.f32.mrb[12].mxu0 }
 0x130   :  { %v1443_v31 = vcombine.high %v1435_v9, %v1435_v9  ;;  %v1444_v39 = vcombine.high %v1442_v62, %v1442_v62  ;;  %v3191_v41 = vsel %vm2126_vm3, %v1435_v9, -inf  ;;  %v3205_v46 = vsel %vm2126_vm3, %v1442_v62, -inf }
 0x131   :  { %v2299_v38 = vmax.f32 %v2297_v8, %v2298_v23  ;;  %v2305_v5 = vrot.slane %v2304_v14, 2  ;;  %v2312_v44 = vrot.slane %v2311_v25, 2  ;;  %v2318_v56 = vmax.f32 %v2316_v11, %v2317_v36  ;;  %v7274_v36 = vpop.f32.mrb[12].mxu1 }
 0x132   :  { %v3192_v63 = vrot.slane %v3191_v41, 4  ;;  %v3198_v40 = vsel %vm2126_vm3, %v1443_v31, -inf  ;;  %v3206_v57 = vrot.slane %v3205_v46, 4  ;;  %v3212_v26 = vsel %vm2126_vm3, %v1444_v39, -inf }
 0x133   :  { %v2300_v58 = vrot.slane %v2299_v38, 1  ;;  %v2306_v22 = vmax.f32 %v2304_v14, %v2305_v5  ;;  %v2313_v52 = vmax.f32 %v2311_v25, %v2312_v44  ;;  %v2319_v1 = vrot.slane %v2318_v56, 2 }
 0x134   :  { %v3193_v3 = vmax.f32 %v3191_v41, %v3192_v63  ;;  %v3199_v6 = vrot.slane %v3198_v40, 4  ;;  %v3207_v4 = vmax.f32 %v3205_v46, %v3206_v57  ;;  %v3213_v9 = vrot.slane %v3212_v26, 4 }
 0x135   :  { %v2301_v8 = vmax.f32 %v2299_v38, %v2300_v58  ;;  %v2307_v62 = vrot.slane %v2306_v22, 1  ;;  %v2314_v23 = vrot.slane %v2313_v52, 1  ;;  %v2320_v11 = vmax.f32 %v2318_v56, %v2319_v1 }
 0x136   :  { %v3194_v31 = vrot.slane %v3193_v3, 2  ;;  %v3200_v45 = vmax.f32 %v3198_v40, %v3199_v6  ;;  %v3208_v2 = vrot.slane %v3207_v4, 2  ;;  %v3214_v39 = vmax.f32 %v3212_v26, %v3213_v9 }
 0x137   :  { %v2308_v18 = vmax.f32 %v2306_v22, %v2307_v62  ;;  %v2315_v14 = vmax.f32 %v2313_v52, %v2314_v23  ;;  %v2321_v25 = vrot.slane %v2320_v11, 1  ;;  %v864_v5 = vrot.slane %v850_v16, %v7044_v47 }
 0x138   :  { %v3195_v44 = vmax.f32 %v3193_v3, %v3194_v31  ;;  %v3201_v41 = vrot.slane %v3200_v45, 2  ;;  %v3209_v63 = vmax.f32 %v3207_v4, %v3208_v2  ;;  %v3215_v46 = vrot.slane %v3214_v39, 2 }
 0x139   :  { %v4203_v38 = vsel %vm4175_vm4, %v2308_v18, %v2301_v8  ;;  %v865_v57 = vcombine.high %v857_v13, %v857_v13  ;;  %v866_v58 = vcombine.high %v864_v5, %v864_v5  ;;  %v427_v56 = vadd.f32 %v7087_v28, %v7040_v43 }
 0x13a   :  { %v7280_v1 = vmax.f32 %v2320_v11, %v2321_v25  ;;  %v3196_v40 = vrot.slane %v3195_v44, 1  ;;  %v3202_v26 = vmax.f32 %v3200_v45, %v3201_v41  ;;  %v3210_v22 = vrot.slane %v3209_v63, 1 }
 0x13b   :  { %v3216_v52 = vmax.f32 %v3214_v39, %v3215_v46  ;;  %v2239_v6 = vsel %vm2126_vm3, %v857_v13, -inf  ;;  %v2246_v16 = vsel %vm2126_vm3, %v865_v57, -inf  ;;  %v2253_v2 = vsel %vm2126_vm3, %v864_v5, -inf  ;;  %v7290_v46 = vpop.f32.mrb[13].mxu0 }
 0x13c   :  { %v7286_v3 = vsel %vm4177_vm5, %v2315_v14, %v4203_v38  ;;  %v3197_v18 = vmax.f32 %v3195_v44, %v3196_v40  ;;  %v3203_v4 = vrot.slane %v3202_v26, 1  ;;  %v2240_v9 = vrot.slane %v2239_v6, 4 }
 0x13d   :  { %v3217_v8 = vrot.slane %v3216_v52, 1  ;;  %v2247_v28 = vrot.slane %v2246_v16, 4  ;;  %v2254_v62 = vrot.slane %v2253_v2, 4  ;;  %v2260_v23 = vsel %vm2126_vm3, %v866_v58, -inf }
 0x13e   :  { %v3204_v45 = vmax.f32 %v3202_v26, %v3203_v4  ;;  %v2241_v11 = vmax.f32 %v2239_v6, %v2240_v9  ;;  %v2261_v31 = vrot.slane %v2260_v23, 4  ;;  %v690_v13 = vmax.f32 %v7260_v59, 0.0 }
 0x13f   :  { %v3211_v39 = vmax.f32 %v3209_v63, %v3210_v22  ;;  %v2248_v25 = vmax.f32 %v2246_v16, %v2247_v28  ;;  %v2255_v41 = vmax.f32 %v2253_v2, %v2254_v62  ;;  %v661_v5 = vmax.f32 %v427_v56, 0.0 }
 0x140   :  { %v7292_v14 = vmax.f32 %v3216_v52, %v3217_v8  ;;  %v2242_v44 = vrot.slane %v2241_v11, 2  ;;  %v2262_v38 = vmax.f32 %v2260_v23, %v2261_v31  ;;  %v1394_v57 = vcombine.high %v690_v13, %v690_v13 }
 0x141   :  { %v4315_v40 = vsel %vm4175_vm4, %v3204_v45, %v3197_v18  ;;  %v2249_v42 = vrot.slane %v2248_v25, 2  ;;  %v2256_v58 = vrot.slane %v2255_v41, 2  ;;  %v1401_v26 = vrot.slane %v690_v13, %v7044_v47 }
 0x142   :  { %v2243_v6 = vmax.f32 %v2241_v11, %v2242_v44  ;;  %v2263_v4 = vrot.slane %v2262_v38, 2  ;;  %v1408_v59 = vrot.slane %v1394_v57, %v7044_v47  ;;  %v901_v63 = vcombine.high %v661_v5, %v661_v5 }
 0x143   :  { %v2250_v22 = vmax.f32 %v2248_v25, %v2249_v42  ;;  %v2257_v56 = vmax.f32 %v2255_v41, %v2256_v58  ;;  %v1409_v16 = vcombine.high %v1401_v26, %v1401_v26  ;;  %v3135_v52 = vsel %vm2126_vm3, %v1401_v26, -inf }
 0x144   :  { %v2244_v2 = vrot.slane %v2243_v6, 1  ;;  %v2264_v9 = vmax.f32 %v2262_v38, %v2263_v4  ;;  %v1410_v8 = vcombine.high %v1408_v59, %v1408_v59  ;;  %v3136_v28 = vrot.slane %v3135_v52, 4 }
 0x145   :  { %v2251_v62 = vrot.slane %v2250_v22, 1  ;;  %v2258_v18 = vrot.slane %v2257_v56, 1  ;;  %v3142_v23 = vsel %vm2126_vm3, %v1409_v16, -inf  ;;  %v3149_v45 = vsel %vm2126_vm3, %v1408_v59, -inf }
 0x146   :  { %v7301_v11 = vsel %vm4177_vm5, %v3211_v39, %v4315_v40  ;;  %v2265_v31 = vrot.slane %v2264_v9, 1  ;;  %v3137_v13 = vmax.f32 %v3135_v52, %v3136_v28  ;;  %v3143_v42 = vrot.slane %v3142_v23, 4  ;;  %v7306_v39 = vpop.f32.mrb[13].mxu1 }
 0x147   :  { %v2245_v25 = vmax.f32 %v2243_v6, %v2244_v2  ;;  %v2252_v41 = vmax.f32 %v2250_v22, %v2251_v62  ;;  %v3150_v44 = vrot.slane %v3149_v45, 4  ;;  %v3156_v57 = vsel %vm2126_vm3, %v1410_v8, -inf }
 0x148   :  { %v2259_v38 = vmax.f32 %v2257_v56, %v2258_v18  ;;  %v3138_v58 = vrot.slane %v3137_v13, 2  ;;  %v3144_v26 = vmax.f32 %v3142_v23, %v3143_v42  ;;  %v3157_v4 = vrot.slane %v3156_v57, 4 }
 0x149   :  { %v2266_v15 = vmax.f32 %v2264_v9, %v2265_v31  ;;  %v3151_v17 = vmax.f32 %v3149_v45, %v3150_v44  ;;  %v908_v16 = vrot.slane %v661_v5, %v7044_v47  ;;  %v915_v59 = vrot.slane %v901_v63, %v7044_v47 }
 0x14a   :  { %v4196_v40 = vsel %vm4175_vm4, %v2252_v41, %v2245_v25  ;;  %v3139_v52 = vmax.f32 %v3137_v13, %v3138_v58  ;;  %v3145_v6 = vrot.slane %v3144_v26, 2  ;;  %v3158_v22 = vmax.f32 %v3156_v57, %v3157_v4 }
 0x14b   :  { %v3152_v2 = vrot.slane %v3151_v17, 2  ;;  %v916_v28 = vcombine.high %v908_v16, %v908_v16  ;;  %v917_v8 = vcombine.high %v915_v59, %v915_v59  ;;  %v2323_v56 = vsel %vm2126_vm3, %v908_v16, -inf }
 0x14c   :  { %v3140_v62 = vrot.slane %v3139_v52, 1  ;;  %v3146_v18 = vmax.f32 %v3144_v26, %v3145_v6  ;;  %v3159_v9 = vrot.slane %v3158_v22, 2  ;;  %v2324_v23 = vrot.slane %v2323_v56, 4 }
 0x14d   :  { %v3153_v45 = vmax.f32 %v3151_v17, %v3152_v2  ;;  %v2330_v5 = vsel %vm2126_vm3, %v916_v28, -inf  ;;  %v2337_v63 = vsel %vm2126_vm3, %v915_v59, -inf  ;;  %v2344_v31 = vsel %vm2126_vm3, %v917_v8, -inf  ;;  %v7314_v59 = vpop.f32.mrb[14].mxu0 }
 0x14e   :  { %v4197_v13 = vsel %vm4177_vm5, %v2259_v38, %v4196_v40  ;;  %v3147_v42 = vrot.slane %v3146_v18, 1  ;;  %v3160_v25 = vmax.f32 %v3158_v22, %v3159_v9  ;;  %v2325_v41 = vmax.f32 %v2323_v56, %v2324_v23 }
 0x14f   :  { %v3154_v44 = vrot.slane %v3153_v45, 1  ;;  %v2331_v57 = vrot.slane %v2330_v5, 4  ;;  %v2338_v58 = vrot.slane %v2337_v63, 4  ;;  %v2345_v4 = vrot.slane %v2344_v31, 4 }
 0x150   :  { %v3141_v16 = vmax.f32 %v3139_v52, %v3140_v62  ;;  %v3148_v26 = vmax.f32 %v3146_v18, %v3147_v42  ;;  %v3161_v6 = vrot.slane %v3160_v25, 1  ;;  %v2326_v53 = vrot.slane %v2325_v41, 2 }
 0x151   :  { %v3155_v17 = vmax.f32 %v3153_v45, %v3154_v44  ;;  %v2332_v2 = vmax.f32 %v2330_v5, %v2331_v57  ;;  %v2339_v28 = vmax.f32 %v2337_v63, %v2338_v58  ;;  %v2346_v50 = vmax.f32 %v2344_v31, %v2345_v4 }
 0x152   :  { %v4308_v8 = vsel %vm4175_vm4, %v3148_v26, %v3141_v16  ;;  %v2327_v38 = vmax.f32 %v2325_v41, %v2326_v53  ;;  %v4205_v40 = vsel %vm4179_vm6, %v7280_v1, %v7286_v3  ;;  %v555_v22 = vadd.f32 %v7089_v29, %v7040_v43 }
 0x153   :  { %v7322_v52 = vmax.f32 %v3160_v25, %v3161_v6  ;;  %v2333_v56 = vrot.slane %v2332_v2, 2  ;;  %v2340_v62 = vrot.slane %v2339_v28, 2  ;;  %v2347_v18 = vrot.slane %v2346_v50, 2 }
 0x154   :  { %v7325_v9 = vsel %vm4177_vm5, %v3155_v17, %v4308_v8  ;;  %v2328_v23 = vrot.slane %v2327_v38, 1  ;;  %v693_v45 = vmax.f32 %v555_v22, 0.0  ;;  %v419_v53 = vadd.f32 %v7040_v43, %v7095_v34  ;;  %v7346_v34 = vld [vmem:[%s9500_s2] ss:$0 sm:$0xff] }
 0x155   :  { %v2334_v5 = vmax.f32 %v2332_v2, %v2333_v56  ;;  %v7329_v63 = vmax.f32 %v2339_v28, %v2340_v62  ;;  %v7331_v1 = vmax.f32 %v2346_v50, %v2347_v18  ;;  %v7336_v29 = vsel %vm4179_vm6, %v7292_v14, %v7301_v11 }
 0x156   :  { %v2329_v3 = vmax.f32 %v2327_v38, %v2328_v23  ;;  %v1445_v31 = vcombine.high %v693_v45, %v693_v45  ;;  %v1452_v42 = vrot.slane %v693_v45, %v7044_v47  ;;  %v659_v25 = vmax.f32 %v419_v53, 0.0 }
 0x157   :  { %v2335_v41 = vrot.slane %v2334_v5, 1  ;;  %v2342_v44 = vrot.slane %v7329_v63, 1  ;;  %v7341_v43 = vsel %vm4179_vm6, %v2266_v15, %v4197_v13  ;;  %v547_v50 = vadd.f32 %v7346_v34, %v7097_v35 }
 0x158   :  { %v7351_v14 = vsel %vm4181_vm7, %v2329_v3, %v4205_v40  ;;  %v1459_v11 = vrot.slane %v1445_v31, %v7044_v47  ;;  %v1460_v57 = vcombine.high %v1452_v42, %v1452_v42  ;;  %v3219_v58 = vsel %vm2126_vm3, %v1452_v42, -inf  ;;  %v7362_v40 = vpop.f32.mrb[15].mxu0 }
 0x159   :  { %9525 = vst [vmem:[#allocation12_spill] sm:$0xff] %v7351_v14  ;;  %v7355_v4 = vmax.f32 %v2334_v5, %v2335_v41  ;;  %v3220_v13 = vrot.slane %v3219_v58, 4  ;;  %v867_v16 = vcombine.high %v659_v25, %v659_v25  ;;  %v874_v35 = vrot.slane %v659_v25, %v7044_v47 }
 0x15a   :  { %v1461_v26 = vcombine.high %v1459_v11, %v1459_v11  ;;  %v3226_v6 = vsel %vm2126_vm3, %v1460_v57, -inf  ;;  %v3233_v17 = vsel %vm2126_vm3, %v1459_v11, -inf  ;;  %v691_v18 = vmax.f32 %v547_v50, 0.0 }
 0x15b   :  { %9526 = vst [vmem:[#allocation13_spill] sm:$0xff] %v7355_v4  ;;  %v3221_v2 = vmax.f32 %v3219_v58, %v3220_v13  ;;  %v3227_v28 = vrot.slane %v3226_v6, 4  ;;  %v3234_v8 = vrot.slane %v3233_v17, 4  ;;  %v881_v38 = vrot.slane %v867_v16, %v7044_v47 }
 0x15c   :  { %v3240_v22 = vsel %vm2126_vm3, %v1461_v26, -inf  ;;  %v882_v56 = vcombine.high %v874_v35, %v874_v35  ;;  %v2267_v62 = vsel %vm2126_vm3, %v874_v35, -inf }
 0x15d   :  { %v3222_v23 = vrot.slane %v3221_v2, 2  ;;  %v3228_v45 = vmax.f32 %v3226_v6, %v3227_v28  ;;  %v3235_v53 = vmax.f32 %v3233_v17, %v3234_v8  ;;  %v3241_v5 = vrot.slane %v3240_v22, 4 }
 0x15e   :  { %v883_v3 = vcombine.high %v881_v38, %v881_v38  ;;  %v2268_v31 = vrot.slane %v2267_v62, 4  ;;  %v2274_v42 = vsel %vm2126_vm3, %v882_v56, -inf  ;;  %v2281_v25 = vsel %vm2126_vm3, %v881_v38, -inf }
 0x15f   :  { %v3223_v41 = vmax.f32 %v3221_v2, %v3222_v23  ;;  %v3229_v11 = vrot.slane %v3228_v45, 2  ;;  %v3236_v57 = vrot.slane %v3235_v53, 2  ;;  %v3242_v58 = vmax.f32 %v3240_v22, %v3241_v5 }
 0x160   :  { %v2269_v13 = vmax.f32 %v2267_v62, %v2268_v31  ;;  %v2275_v16 = vrot.slane %v2274_v42, 4  ;;  %v2282_v26 = vrot.slane %v2281_v25, 4  ;;  %v2288_v35 = vsel %vm2126_vm3, %v883_v3, -inf }
 0x161   :  { %v3224_v50 = vrot.slane %v3223_v41, 1  ;;  %v3230_v15 = vmax.f32 %v3228_v45, %v3229_v11  ;;  %v3237_v6 = vmax.f32 %v3235_v53, %v3236_v57  ;;  %v3243_v17 = vrot.slane %v3242_v58, 2 }
 0x162   :  { %v2270_v28 = vrot.slane %v2269_v13, 2  ;;  %v2276_v8 = vmax.f32 %v2274_v42, %v2275_v16  ;;  %v2283_v7 = vmax.f32 %v2281_v25, %v2282_v26  ;;  %v2289_v37 = vrot.slane %v2288_v35, 4 }
 0x163   :  { %v3225_v56 = vmax.f32 %v3223_v41, %v3224_v50  ;;  %v3231_v54 = vrot.slane %v3230_v15, 1  ;;  %v3238_v38 = vrot.slane %v3237_v6, 1  ;;  %v3244_v2 = vmax.f32 %v3242_v58, %v3243_v17 }
 0x164   :  { %v2271_v23 = vmax.f32 %v2269_v13, %v2270_v28  ;;  %v2277_v4 = vrot.slane %v2276_v8, 2  ;;  %v2284_v22 = vrot.slane %v2283_v7, 2  ;;  %v2290_v62 = vmax.f32 %v2288_v35, %v2289_v37 }
 0x165   :  { %v7370_v5 = vmax.f32 %v7329_v63, %v2342_v44  ;;  %v7372_v3 = vmax.f32 %v3230_v15, %v3231_v54  ;;  %v3245_v45 = vrot.slane %v3244_v2, 1  ;;  %v7376_v53 = vsel %vm4181_vm7, %v3225_v56, %v7336_v29  ;;  %v7383_v63 = vpop.f32.mrb[14].mxu1 }
 0x166   :  { %9529 = vst [vmem:[#allocation16_spill] sm:$0xff] %v7376_v53  ;;  %v2272_v31 = vrot.slane %v2271_v23, 1  ;;  %v2278_v42 = vmax.f32 %v2276_v8, %v2277_v4  ;;  %v2285_v25 = vmax.f32 %v2283_v7, %v2284_v22  ;;  %v2291_v41 = vrot.slane %v2290_v62, 2  ;;  %v7404_v56 = vpop.f32.mrb[15].mxu1 }
 0x167   :  { %9527 = vst [vmem:[#allocation14_spill] sm:$0xff] %v7370_v5  ;;  %9528 = vst [vmem:[#allocation15_spill] sm:$0xff] %v7372_v3  ;;  %v7378_v11 = vmax.f32 %v3237_v6, %v3238_v38  ;;  %v7380_v57 = vmax.f32 %v3244_v2, %v3245_v45  ;;  %v1411_v58 = vcombine.high %v691_v18, %v691_v18 }
 0x168   :  { %v1418_v37 = vrot.slane %v691_v18, %v7044_v47  ;;  %v2273_v54 = vmax.f32 %v2271_v23, %v2272_v31  ;;  %v2279_v44 = vrot.slane %v2278_v42, 1  ;;  %v2286_v15 = vrot.slane %v2285_v25, 1 }
 0x169   :  { %9530 = vst [vmem:[#allocation17_spill] sm:$0xff] %v7378_v11  ;;  %9531 = vst [vmem:[#allocation18_spill] sm:$0xff] %v7380_v57  ;;  %v7385_v13 = vmax.f32 %v2290_v62, %v2291_v41  ;;  %v1425_v29 = vrot.slane %v1411_v58, %v7044_v47  ;;  %v440_v4 = vadd.f32 %v7346_v34, %v7099_v60 }
 0x16a   :  { %v1426_v16 = vcombine.high %v1418_v37, %v1418_v37  ;;  %v3163_v7 = vsel %vm2126_vm3, %v1418_v37, -inf  ;;  %v7391_v26 = vmax.f32 %v2278_v42, %v2279_v44  ;;  %v7393_v35 = vmax.f32 %v2285_v25, %v2286_v15 }
 0x16b   :  { %v7397_v18 = vsel %vm4181_vm7, %v2273_v54, %v7341_v43  ;;  %v4310_v50 = vsel %vm4179_vm6, %v7322_v52, %v7325_v9  ;;  %v1427_v6 = vcombine.high %v1425_v29, %v1425_v29  ;;  %v3164_v17 = vrot.slane %v3163_v7, 4 }
 0x16c   :  { %9532 = vst [vmem:[#allocation19_spill] sm:$0xff] %v7393_v35  ;;  %v3170_v28 = vsel %vm2126_vm3, %v1426_v16, -inf  ;;  %v3177_v8 = vsel %vm2126_vm3, %v1425_v29, -inf  ;;  %v664_v2 = vmax.f32 %v440_v4, 0.0  ;;  %v568_v23 = vadd.f32 %v7346_v34, %v7101_v0 }
 0x16d   :  { %v3171_v60 = vrot.slane %v3170_v28, 4  ;;  %v3178_v38 = vrot.slane %v3177_v8, 4  ;;  %v3165_v22 = vmax.f32 %v3163_v7, %v3164_v17  ;;  %v3184_v62 = vsel %vm2126_vm3, %v1427_v6, -inf }
 0x16e   :  { %v432_v52 = vadd.f32 %v7346_v34, %v7121_v48  ;;  %v3185_v31 = vrot.slane %v3184_v62, 4  ;;  %v952_v42 = vcombine.high %v664_v2, %v664_v2  ;;  %v959_v41 = vrot.slane %v664_v2, %v7044_v47 }
 0x16f   :  { %v3172_v9 = vmax.f32 %v3170_v28, %v3171_v60  ;;  %v3179_v45 = vmax.f32 %v3177_v8, %v3178_v38  ;;  %v3166_v25 = vrot.slane %v3165_v22, 2  ;;  %v696_v58 = vmax.f32 %v568_v23, 0.0 }
 0x170   :  { %v7415_v37 = vadd.f32 %v7346_v34, %v7134_v27  ;;  %v3186_v44 = vmax.f32 %v3184_v62, %v3185_v31  ;;  %v966_v15 = vrot.slane %v952_v42, %v7044_v47  ;;  %v967_v16 = vcombine.high %v959_v41, %v959_v41 }
 0x171   :  { %v3173_v0 = vrot.slane %v3172_v9, 2  ;;  %v3180_v54 = vrot.slane %v3179_v45, 2  ;;  %v3167_v29 = vmax.f32 %v3165_v22, %v3166_v25  ;;  %v2407_v48 = vsel %vm2126_vm3, %v959_v41, -inf }
 0x172   :  { %v1496_v7 = vcombine.high %v696_v58, %v696_v58  ;;  %v3187_v17 = vrot.slane %v3186_v44, 2  ;;  %v968_v28 = vcombine.high %v966_v15, %v966_v15  ;;  %v2408_v60 = vrot.slane %v2407_v48, 4 }
 0x173   :  { %v3174_v4 = vmax.f32 %v3172_v9, %v3173_v0  ;;  %v3181_v6 = vmax.f32 %v3179_v45, %v3180_v54  ;;  %v3168_v8 = vrot.slane %v3167_v29, 1  ;;  %v2414_v38 = vsel %vm2126_vm3, %v967_v16, -inf }
 0x174   :  { %v2421_v27 = vsel %vm2126_vm3, %v966_v15, -inf  ;;  %v3188_v62 = vmax.f32 %v3186_v44, %v3187_v17  ;;  %v2415_v31 = vrot.slane %v2414_v38, 4  ;;  %v2409_v22 = vmax.f32 %v2407_v48, %v2408_v60 }
 0x175   :  { %v3175_v2 = vrot.slane %v3174_v4, 1  ;;  %v3182_v23 = vrot.slane %v3181_v6, 1  ;;  %v3169_v42 = vmax.f32 %v3167_v29, %v3168_v8  ;;  %v2422_v25 = vrot.slane %v2421_v27, 4 }
 0x176   :  { %v2428_v41 = vsel %vm2126_vm3, %v968_v28, -inf  ;;  %v3189_v9 = vrot.slane %v3188_v62, 1  ;;  %v2416_v45 = vmax.f32 %v2414_v38, %v2415_v31  ;;  %v662_v0 = vmax.f32 %v432_v52, 0.0 }
 0x177   :  { %v7422_v43 = vmax.f32 %v3174_v4, %v3175_v2  ;;  %v7425_v54 = vsel %vm4181_vm7, %v3169_v42, %v4310_v50  ;;  %v2410_v16 = vrot.slane %v2409_v22, 2  ;;  %v2423_v57 = vmax.f32 %v2421_v27, %v2422_v25 }
 0x178   :  { %9534 = vst [vmem:[#allocation21_spill] sm:$0xff] %v7425_v54  ;;  %v2429_v15 = vrot.slane %v2428_v41, 4  ;;  %v7427_v11 = vmax.f32 %v3181_v6, %v3182_v23  ;;  %v2417_v44 = vrot.slane %v2416_v45, 2  ;;  %v1503_v29 = vrot.slane %v696_v58, %v7044_v47 }
 0x179   :  { %9533 = vst [vmem:[#allocation20_spill] sm:$0xff] %v7422_v43  ;;  %v1510_v48 = vrot.slane %v1496_v7, %v7044_v47  ;;  %v7431_v17 = vmax.f32 %v3188_v62, %v3189_v9  ;;  %v2411_v4 = vmax.f32 %v2409_v22, %v2410_v16  ;;  %v2424_v28 = vrot.slane %v2423_v57, 2  ;;  %v7437_v9 = vpop.f32.mrb[16].mxu0 }
 0x17a   :  { %9535 = vst [vmem:[#allocation22_spill] sm:$0xff] %v7427_v11  ;;  %v2430_v8 = vmax.f32 %v2428_v41, %v2429_v15  ;;  %v2418_v60 = vmax.f32 %v2416_v45, %v2417_v44  ;;  %v1511_v52 = vcombine.high %v1503_v29, %v1503_v29  ;;  %v3303_v50 = vsel %vm2126_vm3, %v1503_v29, -inf  ;;  %v7439_v45 = vpop.f32.mrb[16].mxu1 }
 0x17b   :  { %9536 = vst [vmem:[#allocation23_spill] sm:$0xff] %v7431_v17  ;;  %v1512_v38 = vcombine.high %v1510_v48, %v1510_v48  ;;  %v2412_v2 = vrot.slane %v2411_v4, 1  ;;  %v2425_v27 = vmax.f32 %v2423_v57, %v2424_v28  ;;  %v3304_v6 = vrot.slane %v3303_v50, 4 }
 0x17c   :  { %v2431_v31 = vrot.slane %v2430_v8, 2  ;;  %v2419_v23 = vrot.slane %v2418_v60, 1  ;;  %v3310_v42 = vsel %vm2126_vm3, %v1511_v52, -inf  ;;  %v3317_v58 = vsel %vm2126_vm3, %v1510_v48, -inf }
 0x17d   :  { %v3324_v7 = vsel %vm2126_vm3, %v1512_v38, -inf  ;;  %v2426_v62 = vrot.slane %v2425_v27, 1  ;;  %v3305_v25 = vmax.f32 %v3303_v50, %v3304_v6  ;;  %v918_v41 = vcombine.high %v662_v0, %v662_v0 }
 0x17e   :  { %v2432_v22 = vmax.f32 %v2430_v8, %v2431_v31  ;;  %v2420_v16 = vmax.f32 %v2418_v60, %v2419_v23  ;;  %v3311_v15 = vrot.slane %v3310_v42, 4  ;;  %v3318_v57 = vrot.slane %v3317_v58, 4 }
 0x17f   :  { %v3325_v44 = vrot.slane %v3324_v7, 4  ;;  %v2413_v29 = vmax.f32 %v2411_v4, %v2412_v2  ;;  %v3306_v17 = vrot.slane %v3305_v25, 2  ;;  %v925_v52 = vrot.slane %v662_v0, %v7044_v47 }
 0x180   :  { %v2433_v28 = vrot.slane %v2432_v22, 1  ;;  %v2427_v48 = vmax.f32 %v2425_v27, %v2426_v62  ;;  %v3312_v11 = vmax.f32 %v3310_v42, %v3311_v15  ;;  %v3319_v38 = vmax.f32 %v3317_v58, %v3318_v57 }
 0x181   :  { %v3326_v3 = vmax.f32 %v3324_v7, %v3325_v44  ;;  %v4217_v50 = vsel %vm4175_vm4, %v2420_v16, %v2413_v29  ;;  %v3307_v31 = vmax.f32 %v3305_v25, %v3306_v17  ;;  %v932_v6 = vrot.slane %v918_v41, %v7044_v47 }
 0x182   :  { %v7442_v8 = vmax.f32 %v2432_v22, %v2433_v28  ;;  %v3313_v60 = vrot.slane %v3312_v11, 2  ;;  %v3320_v23 = vrot.slane %v3319_v38, 2  ;;  %v933_v43 = vcombine.high %v925_v52, %v925_v52 }
 0x183   :  { %v3327_v53 = vrot.slane %v3326_v3, 2  ;;  %v3308_v4 = vrot.slane %v3307_v31, 1  ;;  %v934_v2 = vcombine.high %v932_v6, %v932_v6  ;;  %v2351_v54 = vsel %vm2126_vm3, %v925_v52, -inf }
 0x184   :  { %v2365_v0 = vsel %vm2126_vm3, %v932_v6, -inf  ;;  %v3314_v27 = vmax.f32 %v3312_v11, %v3313_v60  ;;  %v3321_v42 = vmax.f32 %v3319_v38, %v3320_v23  ;;  %v2352_v7 = vrot.slane %v2351_v54, 4 }
 0x185   :  { %v3328_v58 = vmax.f32 %v3326_v3, %v3327_v53  ;;  %v7449_v62 = vsel %vm4177_vm5, %v2427_v48, %v4217_v50  ;;  %v2358_v17 = vsel %vm2126_vm3, %v933_v43, -inf  ;;  %v2366_v22 = vrot.slane %v2365_v0, 4 }
 0x186   :  { %v2372_v25 = vsel %vm2126_vm3, %v934_v2, -inf  ;;  %v3315_v41 = vrot.slane %v3314_v27, 1  ;;  %v3322_v16 = vrot.slane %v3321_v42, 1  ;;  %v2353_v57 = vmax.f32 %v2351_v54, %v2352_v7  ;;  %v7458_v7 = vpop.f32.mrb[17].mxu0 }
 0x187   :  { %v3329_v15 = vrot.slane %v3328_v58, 1  ;;  %v2359_v44 = vrot.slane %v2358_v17, 4  ;;  %v2367_v29 = vmax.f32 %v2365_v0, %v2366_v22  ;;  %v2373_v28 = vrot.slane %v2372_v25, 4 }
 0x188   :  { %v694_v11 = vmax.f32 %v7415_v37, 0.0  ;;  %v3309_v52 = vmax.f32 %v3307_v31, %v3308_v4  ;;  %v3316_v3 = vmax.f32 %v3314_v27, %v3315_v41  ;;  %v3323_v53 = vmax.f32 %v3321_v42, %v3322_v16 }
 0x189   :  { %v2354_v38 = vrot.slane %v2353_v57, 2  ;;  %v2360_v48 = vmax.f32 %v2358_v17, %v2359_v44  ;;  %v2368_v50 = vrot.slane %v2367_v29, 2  ;;  %v2374_v6 = vmax.f32 %v2372_v25, %v2373_v28 }
 0x18a   :  { %v1462_v43 = vcombine.high %v694_v11, %v694_v11  ;;  %v7454_v60 = vmax.f32 %v3328_v58, %v3329_v15  ;;  %v4329_v23 = vsel %vm4175_vm4, %v3316_v3, %v3309_v52  ;;  %v1469_v54 = vrot.slane %v694_v11, %v7044_v47 }
 0x18b   :  { %v2355_v2 = vmax.f32 %v2353_v57, %v2354_v38  ;;  %v2361_v0 = vrot.slane %v2360_v48, 2  ;;  %v2369_v22 = vmax.f32 %v2367_v29, %v2368_v50  ;;  %v2375_v37 = vrot.slane %v2374_v6, 2 }
 0x18c   :  { %v443_v31 = vadd.f32 %v7346_v34, %v7160_v19  ;;  %v1476_v27 = vrot.slane %v1462_v43, %v7044_v47  ;;  %v1477_v42 = vcombine.high %v1469_v54, %v1469_v54  ;;  %v3247_v58 = vsel %vm2126_vm3, %v1469_v54, -inf }
 0x18d   :  { %v2356_v4 = vrot.slane %v2355_v2, 1  ;;  %v2362_v17 = vmax.f32 %v2360_v48, %v2361_v0  ;;  %v2370_v25 = vrot.slane %v2369_v22, 1  ;;  %v2376_v41 = vmax.f32 %v2374_v6, %v2375_v37  ;;  %v7468_v37 = vpop.f32.mrb[17].mxu1 }
 0x18e   :  { %v3248_v16 = vrot.slane %v3247_v58, 4  ;;  %v4330_v15 = vsel %vm4177_vm5, %v3323_v53, %v4329_v23  ;;  %v1478_v57 = vcombine.high %v1476_v27, %v1476_v27  ;;  %v3254_v44 = vsel %vm2126_vm3, %v1477_v42, -inf }
 0x18f   :  { %v3261_v29 = vsel %vm2126_vm3, %v1476_v27, -inf  ;;  %v2363_v28 = vrot.slane %v2362_v17, 1  ;;  %v2371_v11 = vmax.f32 %v2369_v22, %v2370_v25  ;;  %v2377_v19 = vrot.slane %v2376_v41, 1 }
 0x190   :  { %v3249_v52 = vmax.f32 %v3247_v58, %v3248_v16  ;;  %v3255_v3 = vrot.slane %v3254_v44, 4  ;;  %v3262_v38 = vrot.slane %v3261_v29, 4  ;;  %v3268_v50 = vsel %vm2126_vm3, %v1478_v57, -inf }
 0x191   :  { %v665_v43 = vmax.f32 %v443_v31, 0.0  ;;  %v2357_v48 = vmax.f32 %v2355_v2, %v2356_v4  ;;  %v2364_v54 = vmax.f32 %v2362_v17, %v2363_v28  ;;  %v3269_v0 = vrot.slane %v3268_v50, 4 }
 0x192   :  { %v3250_v6 = vrot.slane %v3249_v52, 2  ;;  %v3256_v53 = vmax.f32 %v3254_v44, %v3255_v3  ;;  %v3263_v23 = vmax.f32 %v3261_v29, %v3262_v38  ;;  %v2378_v5 = vmax.f32 %v2376_v41, %v2377_v19 }
 0x193   :  { %v969_v42 = vcombine.high %v665_v43, %v665_v43  ;;  %v976_v27 = vrot.slane %v665_v43, %v7044_v47  ;;  %v4210_v22 = vsel %vm4175_vm4, %v2364_v54, %v2357_v48  ;;  %v3270_v25 = vmax.f32 %v3268_v50, %v3269_v0 }
 0x194   :  { %v3251_v58 = vmax.f32 %v3249_v52, %v3250_v6  ;;  %v4211_v16 = vsel %vm4177_vm5, %v2371_v11, %v4210_v22  ;;  %v3257_v57 = vrot.slane %v3256_v53, 2  ;;  %v3264_v31 = vrot.slane %v3263_v23, 2 }
 0x195   :  { %v983_v2 = vrot.slane %v969_v42, %v7044_v47  ;;  %v3271_v17 = vrot.slane %v3270_v25, 2  ;;  %v984_v28 = vcombine.high %v976_v27, %v976_v27  ;;  %v2435_v44 = vsel %vm2126_vm3, %v976_v27, -inf }
 0x196   :  { %v3252_v4 = vrot.slane %v3251_v58, 1  ;;  %v3258_v29 = vmax.f32 %v3256_v53, %v3257_v57  ;;  %v3265_v3 = vmax.f32 %v3263_v23, %v3264_v31  ;;  %v2436_v43 = vrot.slane %v2435_v44, 4 }
 0x197   :  { %v985_v38 = vcombine.high %v983_v2, %v983_v2  ;;  %v3272_v19 = vmax.f32 %v3270_v25, %v3271_v17  ;;  %v2442_v52 = vsel %vm2126_vm3, %v984_v28, -inf  ;;  %v2449_v50 = vsel %vm2126_vm3, %v983_v2, -inf }
 0x198   :  { %v3253_v41 = vmax.f32 %v3251_v58, %v3252_v4  ;;  %v3259_v11 = vrot.slane %v3258_v29, 1  ;;  %v3266_v48 = vrot.slane %v3265_v3, 1  ;;  %v2437_v54 = vmax.f32 %v2435_v44, %v2436_v43  ;;  %v7493_v43 = vpop.f32.mrb[18].mxu0 }
 0x199   :  { %v2443_v6 = vrot.slane %v2442_v52, 4  ;;  %v3273_v0 = vrot.slane %v3272_v19, 1  ;;  %v2450_v42 = vrot.slane %v2449_v50, 4  ;;  %v2456_v22 = vsel %vm2126_vm3, %v985_v38, -inf }
 0x19a   :  { %v4219_v53 = vsel %vm4179_vm6, %v7442_v8, %v7449_v62  ;;  %v3260_v23 = vmax.f32 %v3258_v29, %v3259_v11  ;;  %v3267_v27 = vmax.f32 %v3265_v3, %v3266_v48  ;;  %v2438_v58 = vrot.slane %v2437_v54, 2 }
 0x19b   :  { %v2444_v25 = vmax.f32 %v2442_v52, %v2443_v6  ;;  %v7481_v57 = vmax.f32 %v3272_v19, %v3273_v0  ;;  %v2451_v31 = vmax.f32 %v2449_v50, %v2450_v42  ;;  %v2457_v2 = vrot.slane %v2456_v22, 4 }
 0x19c   :  { %v571_v4 = vadd.f32 %v7346_v34, %v7169_v10  ;;  %v4322_v17 = vsel %vm4175_vm4, %v3260_v23, %v3253_v41  ;;  %v2439_v28 = vmax.f32 %v2437_v54, %v2438_v58  ;;  %v7488_v38 = vsel %vm4179_vm6, %v7454_v60, %v4330_v15 }
 0x19d   :  { %v2445_v44 = vrot.slane %v2444_v25, 2  ;;  %v7491_v8 = vsel %vm4177_vm5, %v3267_v27, %v4322_v17  ;;  %v2452_v62 = vrot.slane %v2451_v31, 2  ;;  %v2458_v29 = vmax.f32 %v2456_v22, %v2457_v2 }
 0x19e   :  { %v697_v3 = vmax.f32 %v571_v4, 0.0  ;;  %v2440_v19 = vrot.slane %v2439_v28, 1  ;;  %v435_v10 = vadd.f32 %v7346_v34, %v7216_v61  ;;  %v7498_v41 = vsel %vm4179_vm6, %v2378_v5, %v4211_v16 }
 0x19f   :  { %v2446_v52 = vmax.f32 %v2444_v25, %v2445_v44  ;;  %v2453_v50 = vmax.f32 %v2451_v31, %v2452_v62  ;;  %v2459_v11 = vrot.slane %v2458_v29, 2  ;;  %v7503_v0 = vadd.f32 %v7346_v34, %v7222_v55 }
 0x1a0   :  { %v1513_v60 = vcombine.high %v697_v3, %v697_v3  ;;  %v1520_v15 = vrot.slane %v697_v3, %v7044_v47  ;;  %v2441_v48 = vmax.f32 %v2439_v28, %v2440_v19  ;;  %v663_v6 = vmax.f32 %v435_v10, 0.0  ;;  %v7518_v19 = vpop.f32.mrb[18].mxu1 }
 0x1a1   :  { %v2447_v54 = vrot.slane %v2446_v52, 1  ;;  %v2454_v42 = vrot.slane %v2453_v50, 1  ;;  %v2460_v22 = vmax.f32 %v2458_v29, %v2459_v11 }
 0x1a2   :  { %v1527_v23 = vrot.slane %v1513_v60, %v7044_v47  ;;  %v1528_v61 = vcombine.high %v1520_v15, %v1520_v15  ;;  %v4220_v5 = vsel %vm4181_vm7, %v2441_v48, %v4219_v53  ;;  %v3331_v16 = vsel %vm2126_vm3, %v1520_v15, -inf }
 0x1a3   :  { %v2448_v27 = vmax.f32 %v2446_v52, %v2447_v54  ;;  %v935_v58 = vcombine.high %v663_v6, %v663_v6  ;;  %v7508_v25 = vmax.f32 %v2453_v50, %v2454_v42  ;;  %v2461_v31 = vrot.slane %v2460_v22, 1 }
 0x1a4   :  { %v1529_v2 = vcombine.high %v1527_v23, %v1527_v23  ;;  %v3332_v4 = vrot.slane %v3331_v16, 4  ;;  %v3338_v55 = vsel %vm2126_vm3, %v1528_v61, -inf  ;;  %v3345_v28 = vsel %vm2126_vm3, %v1527_v23, -inf }
 0x1a5   :  { %9537 = vst [vmem:[#allocation24_spill] sm:$0xff] %v7508_v25  ;;  %v7511_v17 = vsel %vm4183_vm8, %v2448_v27, %v4220_v5  ;;  %v942_v44 = vrot.slane %v663_v6, %v7044_v47  ;;  %v7516_v62 = vmax.f32 %v2460_v22, %v2461_v31  ;;  %v3339_v29 = vrot.slane %v3338_v55, 4 }
 0x1a6   :  { %9538 = vst [vmem:[#allocation25_spill] sm:$0xff] %v7511_v17  ;;  %v3333_v53 = vmax.f32 %v3331_v16, %v3332_v4  ;;  %v3346_v3 = vrot.slane %v3345_v28, 4  ;;  %v3352_v52 = vsel %vm2126_vm3, %v1529_v2, -inf  ;;  %v949_v10 = vrot.slane %v935_v58, %v7044_v47 }
 0x1a7   :  { %9539 = vst [vmem:[#allocation26_spill] sm:$0xff] %v7516_v62  ;;  %v950_v50 = vcombine.high %v942_v44, %v942_v44  ;;  %v2379_v11 = vsel %vm2126_vm3, %v942_v44, -inf  ;;  %v3340_v15 = vmax.f32 %v3338_v55, %v3339_v29  ;;  %v3353_v54 = vrot.slane %v3352_v52, 4 }
 0x1a8   :  { %v3334_v60 = vrot.slane %v3333_v53, 2  ;;  %v3347_v48 = vmax.f32 %v3345_v28, %v3346_v3  ;;  %v951_v42 = vcombine.high %v949_v10, %v949_v10  ;;  %v2380_v6 = vrot.slane %v2379_v11, 4 }
 0x1a9   :  { %v2386_v22 = vsel %vm2126_vm3, %v950_v50, -inf  ;;  %v2393_v23 = vsel %vm2126_vm3, %v949_v10, -inf  ;;  %v3341_v27 = vrot.slane %v3340_v15, 2  ;;  %v3354_v16 = vmax.f32 %v3352_v52, %v3353_v54 }
 0x1aa   :  { %v3335_v61 = vmax.f32 %v3333_v53, %v3334_v60  ;;  %v3348_v5 = vrot.slane %v3347_v48, 2  ;;  %v2381_v31 = vmax.f32 %v2379_v11, %v2380_v6  ;;  %v2387_v2 = vrot.slane %v2386_v22, 4  ;;  %v7526_v60 = vpop.f32.mrb[19].mxu0 }
 0x1ab   :  { %v2394_v58 = vrot.slane %v2393_v23, 4  ;;  %v2400_v4 = vsel %vm2126_vm3, %v951_v42, -inf  ;;  %v3342_v62 = vmax.f32 %v3340_v15, %v3341_v27  ;;  %v3355_v28 = vrot.slane %v3354_v16, 2 }
 0x1ac   :  { %v3336_v44 = vrot.slane %v3335_v61, 1  ;;  %v3349_v55 = vmax.f32 %v3347_v48, %v3348_v5  ;;  %v2382_v29 = vrot.slane %v2381_v31, 2  ;;  %v2388_v3 = vmax.f32 %v2386_v22, %v2387_v2 }
 0x1ad   :  { %v2395_v25 = vmax.f32 %v2393_v23, %v2394_v58  ;;  %v2401_v17 = vrot.slane %v2400_v4, 4  ;;  %v3343_v14 = vrot.slane %v3342_v62, 1  ;;  %v3356_v53 = vmax.f32 %v3354_v16, %v3355_v28 }
 0x1ae   :  { %v3337_v50 = vmax.f32 %v3335_v61, %v3336_v44  ;;  %v3350_v10 = vrot.slane %v3349_v55, 1  ;;  %v2383_v52 = vmax.f32 %v2381_v31, %v2382_v29  ;;  %v2389_v11 = vrot.slane %v2388_v3, 2 }
 0x1af   :  { %v2396_v54 = vrot.slane %v2395_v25, 2  ;;  %v2402_v6 = vmax.f32 %v2400_v4, %v2401_v17  ;;  %v3344_v35 = vmax.f32 %v3342_v62, %v3343_v14  ;;  %v3357_v15 = vrot.slane %v3356_v53, 1 }
 0x1b0   :  { %v7528_v42 = vmax.f32 %v3349_v55, %v3350_v10  ;;  %v4332_v48 = vsel %vm4181_vm7, %v3337_v50, %v7488_v38  ;;  %v2384_v22 = vrot.slane %v2383_v52, 1  ;;  %v2390_v23 = vmax.f32 %v2388_v3, %v2389_v11 }
 0x1b1   :  { %v2397_v27 = vmax.f32 %v2395_v25, %v2396_v54  ;;  %v2403_v61 = vrot.slane %v2402_v6, 2  ;;  %v7532_v5 = vmax.f32 %v3356_v53, %v3357_v15  ;;  %v7535_v16 = vsel %vm4183_vm8, %v3344_v35, %v4332_v48 }
 0x1b2   :  { %9540 = vst [vmem:[#allocation27_spill] sm:$0xff] %v7528_v42  ;;  %9542 = vst [vmem:[#allocation29_spill] sm:$0xff] %v7535_v16  ;;  %v695_v31 = vmax.f32 %v7503_v0, 0.0  ;;  %v7541_v14 = vsel %vm4179_vm6, %v7481_v57, %v7491_v8  ;;  %v2385_v17 = vmax.f32 %v2383_v52, %v2384_v22  ;;  %v2391_v62 = vrot.slane %v2390_v23, 1 }
 0x1b3   :  { %9541 = vst [vmem:[#allocation28_spill] sm:$0xff] %v7532_v5  ;;  %v2398_v2 = vrot.slane %v2397_v27, 1  ;;  %v2404_v38 = vmax.f32 %v2402_v6, %v2403_v61  ;;  %v456_v4 = vadd.f32 %v7346_v34, %v7272_v51  ;;  %v584_v35 = vadd.f32 %v7346_v34, %v7274_v36 }
 0x1b4   :  { %v1479_v58 = vcombine.high %v695_v31, %v695_v31  ;;  %v1486_v25 = vrot.slane %v695_v31, %v7044_v47  ;;  %v2392_v44 = vmax.f32 %v2390_v23, %v2391_v62  ;;  %v4213_v57 = vsel %vm4181_vm7, %v2385_v17, %v7498_v41  ;;  %v7565_v31 = vpop.f32.mrb[19].mxu1 }
 0x1b5   :  { %v7548_v0 = vmax.f32 %v2397_v27, %v2398_v2  ;;  %v2405_v55 = vrot.slane %v2404_v38, 1  ;;  %v668_v3 = vmax.f32 %v456_v4, 0.0  ;;  %v700_v36 = vmax.f32 %v584_v35, 0.0 }
 0x1b6   :  { %v1493_v8 = vrot.slane %v1479_v58, %v7044_v47  ;;  %v1494_v28 = vcombine.high %v1486_v25, %v1486_v25  ;;  %v3275_v29 = vsel %vm2126_vm3, %v1486_v25, -inf  ;;  %v7557_v51 = vsel %vm4183_vm8, %v2392_v44, %v4213_v57 }
 0x1b7   :  { %9543 = vst [vmem:[#allocation30_spill] sm:$0xff] %v7548_v0  ;;  %v7554_v50 = vmax.f32 %v2404_v38, %v2405_v55  ;;  %9545 = vst [vmem:[#allocation32_spill] sm:$0xff] %v7557_v51  ;;  %v3276_v10 = vrot.slane %v3275_v29, 4  ;;  %v1020_v54 = vcombine.high %v668_v3, %v668_v3  ;;  %v1027_v48 = vrot.slane %v668_v3, %v7044_v47 }
 0x1b8   :  { %v1495_v53 = vcombine.high %v1493_v8, %v1493_v8  ;;  %v3282_v52 = vsel %vm2126_vm3, %v1494_v28, -inf  ;;  %v3289_v11 = vsel %vm2126_vm3, %v1493_v8, -inf  ;;  %v1564_v27 = vcombine.high %v700_v36, %v700_v36 }
 0x1b9   :  { %9544 = vst [vmem:[#allocation31_spill] sm:$0xff] %v7554_v50  ;;  %v3277_v41 = vmax.f32 %v3275_v29, %v3276_v10  ;;  %v3283_v6 = vrot.slane %v3282_v52, 4  ;;  %v3290_v15 = vrot.slane %v3289_v11, 4  ;;  %v1034_v23 = vrot.slane %v1020_v54, %v7044_v47 }
 0x1ba   :  { %v3296_v22 = vsel %vm2126_vm3, %v1495_v53, -inf  ;;  %v1571_v61 = vrot.slane %v700_v36, %v7044_v47  ;;  %v1035_v58 = vcombine.high %v1027_v48, %v1027_v48  ;;  %v2519_v4 = vsel %vm2126_vm3, %v1027_v48, -inf }
 0x1bb   :  { %v3278_v17 = vrot.slane %v3277_v41, 2  ;;  %v3284_v62 = vmax.f32 %v3282_v52, %v3283_v6  ;;  %v3291_v2 = vmax.f32 %v3289_v11, %v3290_v15  ;;  %v3297_v38 = vrot.slane %v3296_v22, 4 }
 0x1bc   :  { %v1036_v25 = vcombine.high %v1034_v23, %v1034_v23  ;;  %v2533_v35 = vsel %vm2126_vm3, %v1034_v23, -inf  ;;  %v2520_v28 = vrot.slane %v2519_v4, 4  ;;  %v2526_v29 = vsel %vm2126_vm3, %v1035_v58, -inf }
 0x1bd   :  { %v3279_v44 = vmax.f32 %v3277_v41, %v3278_v17  ;;  %v3285_v55 = vrot.slane %v3284_v62, 2  ;;  %v3292_v57 = vrot.slane %v3291_v2, 2  ;;  %v3298_v8 = vmax.f32 %v3296_v22, %v3297_v38 }
 0x1be   :  { %v2534_v3 = vrot.slane %v2533_v35, 4  ;;  %v2540_v10 = vsel %vm2126_vm3, %v1036_v25, -inf  ;;  %v2521_v54 = vmax.f32 %v2519_v4, %v2520_v28  ;;  %v2527_v6 = vrot.slane %v2526_v29, 4 }
 0x1bf   :  { %v3280_v36 = vrot.slane %v3279_v44, 1  ;;  %v3286_v53 = vmax.f32 %v3284_v62, %v3285_v55  ;;  %v3293_v52 = vmax.f32 %v3291_v2, %v3292_v57  ;;  %v3299_v11 = vrot.slane %v3298_v8, 2  ;;  %v7575_v57 = vpop.f32.mrb[20].mxu0 }
 0x1c0   :  { %v2535_v15 = vmax.f32 %v2533_v35, %v2534_v3  ;;  %v2541_v48 = vrot.slane %v2540_v10, 4  ;;  %v2522_v42 = vrot.slane %v2521_v54, 2  ;;  %v2528_v22 = vmax.f32 %v2526_v29, %v2527_v6 }
 0x1c1   :  { %v3281_v5 = vmax.f32 %v3279_v44, %v3280_v36  ;;  %v3287_v23 = vrot.slane %v3286_v53, 1  ;;  %v3294_v41 = vrot.slane %v3293_v52, 1  ;;  %v3300_v17 = vmax.f32 %v3298_v8, %v3299_v11 }
 0x1c2   :  { %v2536_v38 = vrot.slane %v2535_v15, 2  ;;  %v2542_v16 = vmax.f32 %v2540_v10, %v2541_v48  ;;  %v2523_v2 = vmax.f32 %v2521_v54, %v2522_v42  ;;  %v2529_v4 = vrot.slane %v2528_v22, 2 }
 0x1c3   :  { %v3288_v58 = vmax.f32 %v3286_v53, %v3287_v23  ;;  %v7571_v50 = vmax.f32 %v3293_v52, %v3294_v41  ;;  %v3301_v25 = vrot.slane %v3300_v17, 1  ;;  %v4325_v62 = vsel %vm4181_vm7, %v3281_v5, %v7541_v14 }
 0x1c4   :  { %v2537_v55 = vmax.f32 %v2535_v15, %v2536_v38  ;;  %v2543_v35 = vrot.slane %v2542_v16, 2  ;;  %v1578_v28 = vrot.slane %v1564_v27, %v7044_v47  ;;  %v1579_v29 = vcombine.high %v1571_v61, %v1571_v61 }
 0x1c5   :  { %9546 = vst [vmem:[#allocation33_spill] sm:$0xff] %v7571_v50  ;;  %v7577_v44 = vmax.f32 %v3300_v17, %v3301_v25  ;;  %v7580_v8 = vsel %vm4183_vm8, %v3288_v58, %v4325_v62  ;;  %v2524_v3 = vrot.slane %v2523_v2, 1  ;;  %v2530_v10 = vmax.f32 %v2528_v22, %v2529_v4 }
 0x1c6   :  { %9548 = vst [vmem:[#allocation35_spill] sm:$0xff] %v7580_v8  ;;  %v2538_v36 = vrot.slane %v2537_v55, 1  ;;  %v2544_v53 = vmax.f32 %v2542_v16, %v2543_v35  ;;  %v1580_v52 = vcombine.high %v1578_v28, %v1578_v28  ;;  %v3415_v42 = vsel %vm2126_vm3, %v1571_v61, -inf }
 0x1c7   :  { %9547 = vst [vmem:[#allocation34_spill] sm:$0xff] %v7577_v44  ;;  %v3422_v5 = vsel %vm2126_vm3, %v1579_v29, -inf  ;;  %v3429_v14 = vsel %vm2126_vm3, %v1578_v28, -inf  ;;  %v2525_v11 = vmax.f32 %v2523_v2, %v2524_v3  ;;  %v2531_v54 = vrot.slane %v2530_v10, 1  ;;  %v7593_v2 = vpop.f32.mrb[20].mxu1 }
 0x1c8   :  { %v2539_v6 = vmax.f32 %v2537_v55, %v2538_v36  ;;  %v2545_v15 = vrot.slane %v2544_v53, 1  ;;  %v3416_v48 = vrot.slane %v3415_v42, 4  ;;  %v3423_v23 = vrot.slane %v3422_v5, 4 }
 0x1c9   :  { %v3430_v41 = vrot.slane %v3429_v14, 4  ;;  %v3436_v27 = vsel %vm2126_vm3, %v1580_v52, -inf  ;;  %v2532_v17 = vmax.f32 %v2530_v10, %v2531_v54  ;;  %v448_v61 = vadd.f32 %v7346_v34, %v7290_v46 }
 0x1ca   :  { %v7587_v22 = vmax.f32 %v2544_v53, %v2545_v15  ;;  %v3437_v16 = vrot.slane %v3436_v27, 4  ;;  %v3417_v38 = vmax.f32 %v3415_v42, %v3416_v48  ;;  %v3424_v58 = vmax.f32 %v3422_v5, %v3423_v23 }
 0x1cb   :  { %v3431_v25 = vmax.f32 %v3429_v14, %v3430_v41  ;;  %v576_v62 = vadd.f32 %v7346_v34, %v7306_v39  ;;  %v4231_v4 = vsel %vm4175_vm4, %v2532_v17, %v2525_v11  ;;  %v666_v35 = vmax.f32 %v448_v61, 0.0 }
 0x1cc   :  { %v3438_v55 = vmax.f32 %v3436_v27, %v3437_v16  ;;  %v459_v28 = vadd.f32 %v7346_v34, %v7314_v59  ;;  %v7599_v29 = vsel %vm4177_vm5, %v2539_v6, %v4231_v4  ;;  %v3418_v3 = vrot.slane %v3417_v38, 2 }
 0x1cd   :  { %v3425_v46 = vrot.slane %v3424_v58, 2  ;;  %v3432_v10 = vrot.slane %v3431_v25, 2  ;;  %v986_v53 = vcombine.high %v666_v35, %v666_v35  ;;  %v993_v52 = vrot.slane %v666_v35, %v7044_v47 }
 0x1ce   :  { %v3439_v36 = vrot.slane %v3438_v55, 2  ;;  %v698_v39 = vmax.f32 %v576_v62, 0.0  ;;  %v3419_v42 = vmax.f32 %v3417_v38, %v3418_v3  ;;  %v7602_v11 = vmax.f32 %v459_v28, 0.0 }
 0x1cf   :  { %v3426_v5 = vmax.f32 %v3424_v58, %v3425_v46  ;;  %v3433_v14 = vmax.f32 %v3431_v25, %v3432_v10  ;;  %v1000_v15 = vrot.slane %v986_v53, %v7044_v47  ;;  %v1001_v59 = vcombine.high %v993_v52, %v993_v52 }
 0x1d0   :  { %v3440_v54 = vmax.f32 %v3438_v55, %v3439_v36  ;;  %v2463_v34 = vsel %vm2126_vm3, %v993_v52, -inf  ;;  %v3420_v6 = vrot.slane %v3419_v42, 1  ;;  %v1530_v36 = vcombine.high %v698_v39, %v698_v39 }
 0x1d1   :  { %v3427_v48 = vrot.slane %v3426_v5, 1  ;;  %v3434_v23 = vrot.slane %v3433_v14, 1  ;;  %v2464_v41 = vrot.slane %v2463_v34, 4  ;;  %v1002_v17 = vcombine.high %v1000_v15, %v1000_v15 }
 0x1d2   :  { %v3441_v27 = vrot.slane %v3440_v54, 1  ;;  %v2470_v16 = vsel %vm2126_vm3, %v1001_v59, -inf  ;;  %v2477_v61 = vsel %vm2126_vm3, %v1000_v15, -inf  ;;  %v3421_v38 = vmax.f32 %v3419_v42, %v3420_v6 }
 0x1d3   :  { %v3428_v58 = vmax.f32 %v3426_v5, %v3427_v48  ;;  %v3435_v25 = vmax.f32 %v3433_v14, %v3434_v23  ;;  %v2465_v62 = vmax.f32 %v2463_v34, %v2464_v41  ;;  %v2471_v55 = vrot.slane %v2470_v16, 4  ;;  %v7616_v5 = vpop.f32.mrb[21].mxu0 }
 0x1d4   :  { %v7608_v4 = vmax.f32 %v3440_v54, %v3441_v27  ;;  %v2478_v35 = vrot.slane %v2477_v61, 4  ;;  %v2484_v28 = vsel %vm2126_vm3, %v1002_v17, -inf  ;;  %v1537_v42 = vrot.slane %v698_v39, %v7044_v47 }
 0x1d5   :  { %v4343_v3 = vsel %vm4175_vm4, %v3428_v58, %v3421_v38  ;;  %v2466_v46 = vrot.slane %v2465_v62, 2  ;;  %v2485_v10 = vrot.slane %v2484_v28, 4  ;;  %v2472_v52 = vmax.f32 %v2470_v16, %v2471_v55 }
 0x1d6   :  { %v7613_v53 = vsel %vm4177_vm5, %v3435_v25, %v4343_v3  ;;  %v2479_v15 = vmax.f32 %v2477_v61, %v2478_v35  ;;  %v1544_v59 = vrot.slane %v1530_v36, %v7044_v47  ;;  %v1037_v34 = vcombine.high %v7602_v11, %v7602_v11 }
 0x1d7   :  { %v2467_v14 = vmax.f32 %v2465_v62, %v2466_v46  ;;  %v2486_v54 = vmax.f32 %v2484_v28, %v2485_v10  ;;  %v2473_v6 = vrot.slane %v2472_v52, 2  ;;  %v1545_v23 = vcombine.high %v1537_v42, %v1537_v42 }
 0x1d8   :  { %v2480_v48 = vrot.slane %v2479_v15, 2  ;;  %v3359_v41 = vsel %vm2126_vm3, %v1537_v42, -inf  ;;  %v1546_v16 = vcombine.high %v1544_v59, %v1544_v59  ;;  %v3373_v25 = vsel %vm2126_vm3, %v1544_v59, -inf  ;;  %v7625_v42 = vpop.f32.mrb[21].mxu1 }
 0x1d9   :  { %v2468_v27 = vrot.slane %v2467_v14, 1  ;;  %v2487_v17 = vrot.slane %v2486_v54, 2  ;;  %v3360_v61 = vrot.slane %v3359_v41, 4  ;;  %v2474_v38 = vmax.f32 %v2472_v52, %v2473_v6 }
 0x1da   :  { %v2481_v39 = vmax.f32 %v2479_v15, %v2480_v48  ;;  %v3366_v58 = vsel %vm2126_vm3, %v1545_v23, -inf  ;;  %v3374_v10 = vrot.slane %v3373_v25, 4  ;;  %v3380_v36 = vsel %vm2126_vm3, %v1546_v16, -inf }
 0x1db   :  { %v2469_v62 = vmax.f32 %v2467_v14, %v2468_v27  ;;  %v2488_v55 = vmax.f32 %v2486_v54, %v2487_v17  ;;  %v3361_v35 = vmax.f32 %v3359_v41, %v3360_v61  ;;  %v3367_v28 = vrot.slane %v3366_v58, 4 }
 0x1dc   :  { %v2475_v3 = vrot.slane %v2474_v38, 1  ;;  %v2482_v46 = vrot.slane %v2481_v39, 1  ;;  %v3381_v52 = vrot.slane %v3380_v36, 4  ;;  %v3375_v48 = vmax.f32 %v3373_v25, %v3374_v10 }
 0x1dd   :  { %v2489_v44 = vrot.slane %v2488_v55, 1  ;;  %v3362_v50 = vrot.slane %v3361_v35, 2  ;;  %v3368_v8 = vmax.f32 %v3366_v58, %v3367_v28  ;;  %v1044_v14 = vrot.slane %v7602_v11, %v7044_v47 }
 0x1de   :  { %v2476_v15 = vmax.f32 %v2474_v38, %v2475_v3  ;;  %v2483_v6 = vmax.f32 %v2481_v39, %v2482_v46  ;;  %v3382_v41 = vmax.f32 %v3380_v36, %v3381_v52  ;;  %v3376_v17 = vrot.slane %v3375_v48, 2 }
 0x1df   :  { %v2490_v54 = vmax.f32 %v2488_v55, %v2489_v44  ;;  %v3363_v59 = vmax.f32 %v3361_v35, %v3362_v50  ;;  %v3369_v23 = vrot.slane %v3368_v8, 2  ;;  %v1051_v16 = vrot.slane %v1037_v34, %v7044_v47 }
 0x1e0   :  { %v4224_v27 = vsel %vm4175_vm4, %v2476_v15, %v2469_v62  ;;  %v1052_v61 = vcombine.high %v1044_v14, %v1044_v14  ;;  %v3383_v38 = vrot.slane %v3382_v41, 2  ;;  %v3377_v39 = vmax.f32 %v3375_v48, %v3376_v17 }
 0x1e1   :  { %v4225_v0 = vsel %vm4177_vm5, %v2483_v6, %v4224_v27  ;;  %v3364_v58 = vrot.slane %v3363_v59, 1  ;;  %v3370_v28 = vmax.f32 %v3368_v8, %v3369_v23  ;;  %v1053_v25 = vcombine.high %v1051_v16, %v1051_v16 }
 0x1e2   :  { %v2547_v3 = vsel %vm2126_vm3, %v1044_v14, -inf  ;;  %v2554_v44 = vsel %vm2126_vm3, %v1052_v61, -inf  ;;  %v3384_v55 = vmax.f32 %v3382_v41, %v3383_v38  ;;  %v3378_v62 = vrot.slane %v3377_v39, 1 }
 0x1e3   :  { %v3365_v50 = vmax.f32 %v3363_v59, %v3364_v58  ;;  %v3371_v11 = vrot.slane %v3370_v28, 1  ;;  %v2548_v35 = vrot.slane %v2547_v3, 4  ;;  %v2555_v46 = vrot.slane %v2554_v44, 4 }
 0x1e4   :  { %v2561_v34 = vsel %vm2126_vm3, %v1051_v16, -inf  ;;  %v2568_v10 = vsel %vm2126_vm3, %v1053_v25, -inf  ;;  %v3385_v52 = vrot.slane %v3384_v55, 1  ;;  %v3379_v6 = vmax.f32 %v3377_v39, %v3378_v62 }
 0x1e5   :  { %v3372_v36 = vmax.f32 %v3370_v28, %v3371_v11  ;;  %v2549_v8 = vmax.f32 %v2547_v3, %v2548_v35  ;;  %v2562_v15 = vrot.slane %v2561_v34, 4  ;;  %v2556_v48 = vmax.f32 %v2554_v44, %v2555_v46  ;;  %v7648_v28 = vld [vmem:[%s9500_s2] ss:$0 sm:$0xff] }
 0x1e6   :  { %v2569_v23 = vrot.slane %v2568_v10, 4  ;;  %v4233_v14 = vsel %vm4179_vm6, %v7587_v22, %v7599_v29  ;;  %v7639_v59 = vmax.f32 %v3384_v55, %v3385_v52  ;;  %v451_v38 = vadd.f32 %v7648_v28, %v7362_v40 }
 0x1e7   :  { %v4336_v41 = vsel %vm4175_vm4, %v3372_v36, %v3365_v50  ;;  %v2550_v27 = vrot.slane %v2549_v8, 2  ;;  %v2563_v17 = vmax.f32 %v2561_v34, %v2562_v15  ;;  %v2557_v61 = vrot.slane %v2556_v48, 2  ;;  %v7667_v34 = vpop.f32.mrb[22].mxu0 }
 0x1e8   :  { %v7643_v16 = vsel %vm4177_vm5, %v3379_v6, %v4336_v41  ;;  %v2570_v58 = vmax.f32 %v2568_v10, %v2569_v23  ;;  %v7653_v39 = vsel %vm4179_vm6, %v2490_v54, %v4225_v0  ;;  %v587_v25 = vadd.f32 %v7648_v28, %v7383_v63  ;;  %v7669_v10 = vpop.f32.mrb[22].mxu1 }
 0x1e9   :  { %v2551_v22 = vmax.f32 %v2549_v8, %v2550_v27  ;;  %v2564_v29 = vrot.slane %v2563_v17, 2  ;;  %v2558_v3 = vmax.f32 %v2556_v48, %v2557_v61  ;;  %v667_v50 = vmax.f32 %v451_v38, 0.0 }
 0x1ea   :  { %v2571_v44 = vrot.slane %v2570_v58, 2  ;;  %v7660_v11 = vsel %vm4179_vm6, %v7608_v4, %v7613_v53  ;;  %v701_v62 = vmax.f32 %v587_v25, 0.0  ;;  %v7664_v40 = vadd.f32 %v7648_v28, %v7404_v56 }
 0x1eb   :  { %v2552_v55 = vrot.slane %v2551_v22, 1  ;;  %v2565_v35 = vmax.f32 %v2563_v17, %v2564_v29  ;;  %v2559_v0 = vrot.slane %v2558_v3, 1  ;;  %v1003_v46 = vcombine.high %v667_v50, %v667_v50 }
 0x1ec   :  { %v2572_v54 = vmax.f32 %v2570_v58, %v2571_v44  ;;  %v1010_v63 = vrot.slane %v667_v50, %v7044_v47  ;;  %v1581_v4 = vcombine.high %v701_v62, %v701_v62  ;;  %v1588_v53 = vrot.slane %v701_v62, %v7044_v47 }
 0x1ed   :  { %v2553_v36 = vmax.f32 %v2551_v22, %v2552_v55  ;;  %v2566_v52 = vrot.slane %v2565_v35, 1  ;;  %v7672_v8 = vmax.f32 %v2558_v3, %v2559_v0  ;;  %v1017_v56 = vrot.slane %v1003_v46, %v7044_v47 }
 0x1ee   :  { %v2573_v15 = vrot.slane %v2572_v54, 1  ;;  %v1018_v6 = vcombine.high %v1010_v63, %v1010_v63  ;;  %v2491_v41 = vsel %vm2126_vm3, %v1010_v63, -inf  ;;  %v1595_v27 = vrot.slane %v1581_v4, %v7044_v47 }
 0x1ef   :  { %9549 = vst [vmem:[#allocation36_spill] sm:$0xff] %v7672_v8  ;;  %v7675_v48 = vmax.f32 %v2565_v35, %v2566_v52  ;;  %v7678_v23 = vsel %vm4181_vm7, %v2553_v36, %v4233_v14  ;;  %v1019_v61 = vcombine.high %v1017_v56, %v1017_v56  ;;  %v2492_v58 = vrot.slane %v2491_v41, 4 }
 0x1f0   :  { %9551 = vst [vmem:[#allocation38_spill] sm:$0xff] %v7678_v23  ;;  %v7682_v17 = vmax.f32 %v2572_v54, %v2573_v15  ;;  %v2498_v38 = vsel %vm2126_vm3, %v1018_v6, -inf  ;;  %v2505_v29 = vsel %vm2126_vm3, %v1017_v56, -inf  ;;  %v1596_v25 = vcombine.high %v1588_v53, %v1588_v53 }
 0x1f1   :  { %9550 = vst [vmem:[#allocation37_spill] sm:$0xff] %v7675_v48  ;;  %v2499_v22 = vrot.slane %v2498_v38, 4  ;;  %v1597_v3 = vcombine.high %v1595_v27, %v1595_v27  ;;  %v2493_v44 = vmax.f32 %v2491_v41, %v2492_v58  ;;  %v2506_v50 = vrot.slane %v2505_v29, 4 }
 0x1f2   :  { %9552 = vst [vmem:[#allocation39_spill] sm:$0xff] %v7682_v17  ;;  %v2512_v14 = vsel %vm2126_vm3, %v1019_v61, -inf  ;;  %v3443_v55 = vsel %vm2126_vm3, %v1588_v53, -inf  ;;  %v3450_v54 = vsel %vm2126_vm3, %v1596_v25, -inf  ;;  %v3457_v52 = vsel %vm2126_vm3, %v1595_v27, -inf }
 0x1f3   :  { %v2500_v35 = vmax.f32 %v2498_v38, %v2499_v22  ;;  %v2513_v62 = vrot.slane %v2512_v14, 4  ;;  %v3444_v0 = vrot.slane %v3443_v55, 4  ;;  %v2494_v46 = vrot.slane %v2493_v44, 2 }
 0x1f4   :  { %v2507_v63 = vmax.f32 %v2505_v29, %v2506_v50  ;;  %v3451_v36 = vrot.slane %v3450_v54, 4  ;;  %v3458_v6 = vrot.slane %v3457_v52, 4  ;;  %v3464_v61 = vsel %vm2126_vm3, %v1597_v3, -inf }
 0x1f5   :  { %v2501_v4 = vrot.slane %v2500_v35, 2  ;;  %v2514_v15 = vmax.f32 %v2512_v14, %v2513_v62  ;;  %v3445_v56 = vmax.f32 %v3443_v55, %v3444_v0  ;;  %v2495_v41 = vmax.f32 %v2493_v44, %v2494_v46 }
 0x1f6   :  { %v2508_v58 = vrot.slane %v2507_v63, 2  ;;  %v3452_v17 = vmax.f32 %v3450_v54, %v3451_v36  ;;  %v3459_v48 = vmax.f32 %v3457_v52, %v3458_v6  ;;  %v3465_v29 = vrot.slane %v3464_v61, 4 }
 0x1f7   :  { %v2502_v53 = vmax.f32 %v2500_v35, %v2501_v4  ;;  %v2515_v38 = vrot.slane %v2514_v15, 2  ;;  %v3446_v22 = vrot.slane %v3445_v56, 2  ;;  %v2496_v8 = vrot.slane %v2495_v41, 1 }
 0x1f8   :  { %v2509_v25 = vmax.f32 %v2507_v63, %v2508_v58  ;;  %v3453_v23 = vrot.slane %v3452_v17, 2  ;;  %v3460_v32 = vrot.slane %v3459_v48, 2  ;;  %v3466_v44 = vmax.f32 %v3464_v61, %v3465_v29 }
 0x1f9   :  { %v2503_v50 = vrot.slane %v2502_v53, 1  ;;  %v2516_v51 = vmax.f32 %v2514_v15, %v2515_v38  ;;  %v3447_v27 = vmax.f32 %v3445_v56, %v3446_v22  ;;  %v2497_v14 = vmax.f32 %v2495_v41, %v2496_v8 }
 0x1fa   :  { %v2510_v55 = vrot.slane %v2509_v25, 1  ;;  %v3454_v62 = vmax.f32 %v3452_v17, %v3453_v23  ;;  %v3461_v35 = vmax.f32 %v3459_v48, %v3460_v32  ;;  %v3467_v52 = vrot.slane %v3466_v44, 2  ;;  %v7711_v48 = vpop.f32.mrb[23].mxu0 }
 0x1fb   :  { %v7691_v0 = vmax.f32 %v2502_v53, %v2503_v50  ;;  %v2517_v54 = vrot.slane %v2516_v51, 1  ;;  %v3448_v3 = vrot.slane %v3447_v27, 1  ;;  %v7697_v63 = vsel %vm4181_vm7, %v2497_v14, %v7653_v39 }
 0x1fc   :  { %v7693_v46 = vmax.f32 %v2509_v25, %v2510_v55  ;;  %9555 = vst [vmem:[#allocation42_spill] sm:$0xff] %v7697_v63  ;;  %v3455_v36 = vrot.slane %v3454_v62, 1  ;;  %v3462_v8 = vrot.slane %v3461_v35, 1  ;;  %v699_v23 = vmax.f32 %v7664_v40, 0.0  ;;  %v7737_v55 = vpop.f32.mrb[23].mxu1 }
 0x1fd   :  { %9553 = vst [vmem:[#allocation40_spill] sm:$0xff] %v7691_v0  ;;  %v7699_v4 = vmax.f32 %v2516_v51, %v2517_v54  ;;  %v3449_v15 = vmax.f32 %v3447_v27, %v3448_v3  ;;  %v3468_v56 = vmax.f32 %v3466_v44, %v3467_v52  ;;  %v7707_v32 = vsel %vm4179_vm6, %v7639_v59, %v7643_v16 }
 0x1fe   :  { %9554 = vst [vmem:[#allocation41_spill] sm:$0xff] %v7693_v46  ;;  %v7702_v17 = vmax.f32 %v3454_v62, %v3455_v36  ;;  %v472_v39 = vadd.f32 %v7648_v28, %v7437_v9  ;;  %v7713_v6 = vmax.f32 %v3461_v35, %v3462_v8  ;;  %v1547_v40 = vcombine.high %v699_v23, %v699_v23 }
 0x1ff   :  { %9556 = vst [vmem:[#allocation43_spill] sm:$0xff] %v7699_v4  ;;  %v7717_v51 = vsel %vm4181_vm7, %v3449_v15, %v7660_v11  ;;  %v1554_v41 = vrot.slane %v699_v23, %v7044_v47  ;;  %v3469_v58 = vrot.slane %v3468_v56, 1  ;;  %v600_v59 = vadd.f32 %v7648_v28, %v7439_v45 }
 0x200   :  { %9557 = vst [vmem:[#allocation44_spill] sm:$0xff] %v7702_v17  ;;  %9558 = vst [vmem:[#allocation45_spill] sm:$0xff] %v7713_v6  ;;  %v672_v61 = vmax.f32 %v472_v39, 0.0  ;;  %v7724_v16 = vadd.f32 %v7648_v28, %v7458_v7  ;;  %v1561_v9 = vrot.slane %v1547_v40, %v7044_v47  ;;  %v7730_v11 = vadd.f32 %v7648_v28, %v7468_v37 }
 0x201   :  { %9559 = vst [vmem:[#allocation46_spill] sm:$0xff] %v7717_v51  ;;  %v1562_v53 = vcombine.high %v1554_v41, %v1554_v41  ;;  %v3387_v38 = vsel %vm2126_vm3, %v1554_v41, -inf  ;;  %v7732_v22 = vmax.f32 %v3468_v56, %v3469_v58  ;;  %v704_v14 = vmax.f32 %v600_v59, 0.0 }
 0x202   :  { %v3388_v25 = vrot.slane %v3387_v38, 4  ;;  %v1088_v29 = vcombine.high %v672_v61, %v672_v61  ;;  %v1095_v50 = vrot.slane %v672_v61, %v7044_v47  ;;  %v1563_v45 = vcombine.high %v1561_v9, %v1561_v9 }
 0x203   :  { %9560 = vst [vmem:[#allocation47_spill] sm:$0xff] %v7732_v22  ;;  %v3394_v27 = vsel %vm2126_vm3, %v1562_v53, -inf  ;;  %v3401_v7 = vsel %vm2126_vm3, %v1561_v9, -inf  ;;  %v1632_v52 = vcombine.high %v704_v14, %v704_v14 }
 0x204   :  { %v3389_v62 = vmax.f32 %v3387_v38, %v3388_v25  ;;  %v3395_v44 = vrot.slane %v3394_v27, 4  ;;  %v3402_v54 = vrot.slane %v3401_v7, 4  ;;  %v1102_v37 = vrot.slane %v1088_v29, %v7044_v47 }
 0x205   :  { %v3408_v3 = vsel %vm2126_vm3, %v1563_v45, -inf  ;;  %v1103_v35 = vcombine.high %v1095_v50, %v1095_v50  ;;  %v2631_v36 = vsel %vm2126_vm3, %v1095_v50, -inf }
 0x206   :  { %v3390_v15 = vrot.slane %v3389_v62, 2  ;;  %v3396_v8 = vmax.f32 %v3394_v27, %v3395_v44  ;;  %v3403_v23 = vmax.f32 %v3401_v7, %v3402_v54  ;;  %v3409_v56 = vrot.slane %v3408_v3, 4 }
 0x207   :  { %v1104_v39 = vcombine.high %v1102_v37, %v1102_v37  ;;  %v2632_v40 = vrot.slane %v2631_v36, 4  ;;  %v2638_v41 = vsel %vm2126_vm3, %v1103_v35, -inf  ;;  %v2645_v58 = vsel %vm2126_vm3, %v1102_v37, -inf }
 0x208   :  { %v3391_v61 = vmax.f32 %v3389_v62, %v3390_v15  ;;  %v3397_v59 = vrot.slane %v3396_v8, 2  ;;  %v3404_v9 = vrot.slane %v3403_v23, 2  ;;  %v3410_v53 = vmax.f32 %v3408_v3, %v3409_v56 }
 0x209   :  { %v2633_v38 = vmax.f32 %v2631_v36, %v2632_v40  ;;  %v2639_v25 = vrot.slane %v2638_v41, 4  ;;  %v2646_v29 = vrot.slane %v2645_v58, 4  ;;  %v2652_v50 = vsel %vm2126_vm3, %v1104_v39, -inf }
 0x20a   :  { %v3392_v45 = vrot.slane %v3391_v61, 1  ;;  %v3398_v22 = vmax.f32 %v3396_v8, %v3397_v59  ;;  %v3405_v27 = vmax.f32 %v3403_v23, %v3404_v9  ;;  %v3411_v7 = vrot.slane %v3410_v53, 2 }
 0x20b   :  { %v2634_v44 = vrot.slane %v2633_v38, 2  ;;  %v2640_v54 = vmax.f32 %v2638_v41, %v2639_v25  ;;  %v2647_v6 = vmax.f32 %v2645_v58, %v2646_v29  ;;  %v2653_v17 = vrot.slane %v2652_v50, 4 }
 0x20c   :  { %v3393_v35 = vmax.f32 %v3391_v61, %v3392_v45  ;;  %v3399_v51 = vrot.slane %v3398_v22, 1  ;;  %v3406_v37 = vrot.slane %v3405_v27, 1  ;;  %v3412_v62 = vmax.f32 %v3410_v53, %v3411_v7 }
 0x20d   :  { %v2635_v15 = vmax.f32 %v2633_v38, %v2634_v44  ;;  %v2641_v4 = vrot.slane %v2640_v54, 2  ;;  %v2648_v3 = vrot.slane %v2647_v6, 2  ;;  %v2654_v36 = vmax.f32 %v2652_v50, %v2653_v17 }
 0x20e   :  { %v7745_v56 = vmax.f32 %v3398_v22, %v3399_v51  ;;  %v7747_v40 = vmax.f32 %v3405_v27, %v3406_v37  ;;  %v3413_v39 = vrot.slane %v3412_v62, 1  ;;  %v7751_v8 = vsel %vm4181_vm7, %v3393_v35, %v7707_v32 }
 0x20f   :  { %9563 = vst [vmem:[#allocation50_spill] sm:$0xff] %v7751_v8  ;;  %v2636_v23 = vrot.slane %v2635_v15, 1  ;;  %v2642_v41 = vmax.f32 %v2640_v54, %v2641_v4  ;;  %v2649_v58 = vmax.f32 %v2647_v6, %v2648_v3  ;;  %v2655_v61 = vrot.slane %v2654_v36, 2 }
 0x210   :  { %9561 = vst [vmem:[#allocation48_spill] sm:$0xff] %v7745_v56  ;;  %9562 = vst [vmem:[#allocation49_spill] sm:$0xff] %v7747_v40  ;;  %v7753_v59 = vmax.f32 %v3412_v62, %v3413_v39  ;;  %v1639_v9 = vrot.slane %v704_v14, %v7044_v47  ;;  %v1646_v53 = vrot.slane %v1632_v52, %v7044_v47  ;;  %v670_v17 = vmax.f32 %v7724_v16, 0.0 }
 0x211   :  { %v2637_v51 = vmax.f32 %v2635_v15, %v2636_v23  ;;  %v2643_v22 = vrot.slane %v2642_v41, 1  ;;  %v2650_v38 = vrot.slane %v2649_v58, 1  ;;  %v2656_v25 = vmax.f32 %v2654_v36, %v2655_v61 }
 0x212   :  { %9564 = vst [vmem:[#allocation51_spill] sm:$0xff] %v7753_v59  ;;  %v1647_v29 = vcombine.high %v1639_v9, %v1639_v9  ;;  %v1648_v50 = vcombine.high %v1646_v53, %v1646_v53  ;;  %v3527_v32 = vsel %vm2126_vm3, %v1639_v9, -inf  ;;  %v3541_v4 = vsel %vm2126_vm3, %v1646_v53, -inf }
 0x213   :  { %v2644_v6 = vmax.f32 %v2642_v41, %v2643_v22  ;;  %v2651_v45 = vmax.f32 %v2649_v58, %v2650_v38  ;;  %v2657_v27 = vrot.slane %v2656_v25, 1  ;;  %v3528_v7 = vrot.slane %v3527_v32, 4 }
 0x214   :  { %v3534_v14 = vsel %vm2126_vm3, %v1647_v29, -inf  ;;  %v3542_v44 = vrot.slane %v3541_v4, 4  ;;  %v3548_v52 = vsel %vm2126_vm3, %v1648_v50, -inf  ;;  %v1054_v16 = vcombine.high %v670_v17, %v670_v17 }
 0x215   :  { %v7762_v54 = vmax.f32 %v2656_v25, %v2657_v27  ;;  %v4245_v35 = vsel %vm4175_vm4, %v2644_v6, %v2637_v51  ;;  %v3529_v37 = vmax.f32 %v3527_v32, %v3528_v7  ;;  %v3535_v62 = vrot.slane %v3534_v14, 4 }
 0x216   :  { %v7766_v15 = vsel %vm4177_vm5, %v2651_v45, %v4245_v35  ;;  %v3543_v3 = vmax.f32 %v3541_v4, %v3542_v44  ;;  %v3549_v36 = vrot.slane %v3548_v52, 4  ;;  %v1061_v39 = vrot.slane %v670_v17, %v7044_v47 }
 0x217   :  { %v3530_v23 = vrot.slane %v3529_v37, 2  ;;  %v3536_v41 = vmax.f32 %v3534_v14, %v3535_v62  ;;  %v1068_v58 = vrot.slane %v1054_v16, %v7044_v47  ;;  %v702_v61 = vmax.f32 %v7730_v11, 0.0 }
 0x218   :  { %v3544_v9 = vrot.slane %v3543_v3, 2  ;;  %v3550_v53 = vmax.f32 %v3548_v52, %v3549_v36  ;;  %v1069_v22 = vcombine.high %v1061_v39, %v1061_v39  ;;  %v2575_v51 = vsel %vm2126_vm3, %v1061_v39, -inf }
 0x219   :  { %v3531_v38 = vmax.f32 %v3529_v37, %v3530_v23  ;;  %v3537_v25 = vrot.slane %v3536_v41, 2  ;;  %v1070_v29 = vcombine.high %v1068_v58, %v1068_v58  ;;  %v2576_v50 = vrot.slane %v2575_v51, 4 }
 0x21a   :  { %v3545_v32 = vmax.f32 %v3543_v3, %v3544_v9  ;;  %v3551_v4 = vrot.slane %v3550_v53, 2  ;;  %v2582_v6 = vsel %vm2126_vm3, %v1069_v22, -inf  ;;  %v2589_v17 = vsel %vm2126_vm3, %v1068_v58, -inf }
 0x21b   :  { %v3532_v45 = vrot.slane %v3531_v38, 1  ;;  %v3538_v27 = vmax.f32 %v3536_v41, %v3537_v25  ;;  %v2577_v7 = vmax.f32 %v2575_v51, %v2576_v50  ;;  %v2583_v14 = vrot.slane %v2582_v6, 4 }
 0x21c   :  { %v3546_v11 = vrot.slane %v3545_v32, 1  ;;  %v3552_v44 = vmax.f32 %v3550_v53, %v3551_v4  ;;  %v2590_v52 = vrot.slane %v2589_v17, 4  ;;  %v2596_v16 = vsel %vm2126_vm3, %v1070_v29, -inf }
 0x21d   :  { %v3533_v35 = vmax.f32 %v3531_v38, %v3532_v45  ;;  %v3539_v37 = vrot.slane %v3538_v27, 1  ;;  %v2578_v62 = vrot.slane %v2577_v7, 2  ;;  %v2584_v36 = vmax.f32 %v2582_v6, %v2583_v14 }
 0x21e   :  { %v3547_v39 = vmax.f32 %v3545_v32, %v3546_v11  ;;  %v3553_v3 = vrot.slane %v3552_v44, 1  ;;  %v2591_v23 = vmax.f32 %v2589_v17, %v2590_v52  ;;  %v2597_v9 = vrot.slane %v2596_v16, 4 }
 0x21f   :  { %v3540_v22 = vmax.f32 %v3538_v27, %v3539_v37  ;;  %v2579_v59 = vmax.f32 %v2577_v7, %v2578_v62  ;;  %v2585_v58 = vrot.slane %v2584_v36, 2  ;;  %v1598_v40 = vcombine.high %v702_v61, %v702_v61 }
 0x220   :  { %v3554_v41 = vmax.f32 %v3552_v44, %v3553_v3  ;;  %v2592_v51 = vrot.slane %v2591_v23, 2  ;;  %v2598_v25 = vmax.f32 %v2596_v16, %v2597_v9  ;;  %v1605_v53 = vrot.slane %v702_v61, %v7044_v47 }
 0x221   :  { %v4357_v50 = vsel %vm4175_vm4, %v3540_v22, %v3533_v35  ;;  %v2580_v29 = vrot.slane %v2579_v59, 1  ;;  %v2586_v38 = vmax.f32 %v2584_v36, %v2585_v58  ;;  %v1612_v4 = vrot.slane %v1598_v40, %v7044_v47 }
 0x222   :  { %v4358_v32 = vsel %vm4177_vm5, %v3547_v39, %v4357_v50  ;;  %v2593_v6 = vmax.f32 %v2591_v23, %v2592_v51  ;;  %v2599_v17 = vrot.slane %v2598_v25, 2  ;;  %v1613_v45 = vcombine.high %v1605_v53, %v1605_v53 }
 0x223   :  { %v2581_v27 = vmax.f32 %v2579_v59, %v2580_v29  ;;  %v2587_v7 = vrot.slane %v2586_v38, 1  ;;  %v1614_v14 = vcombine.high %v1612_v4, %v1612_v4  ;;  %v3471_v11 = vsel %vm2126_vm3, %v1605_v53, -inf }
 0x224   :  { %v2594_v44 = vrot.slane %v2593_v6, 1  ;;  %v2600_v52 = vmax.f32 %v2598_v25, %v2599_v17  ;;  %v3472_v16 = vrot.slane %v3471_v11, 4  ;;  %v3478_v61 = vsel %vm2126_vm3, %v1613_v45, -inf }
 0x225   :  { %v2588_v35 = vmax.f32 %v2586_v38, %v2587_v7  ;;  %v3479_v37 = vrot.slane %v3478_v61, 4  ;;  %v3485_v62 = vsel %vm2126_vm3, %v1612_v4, -inf  ;;  %v3492_v40 = vsel %vm2126_vm3, %v1614_v14, -inf }
 0x226   :  { %v2595_v36 = vmax.f32 %v2593_v6, %v2594_v44  ;;  %v2601_v39 = vrot.slane %v2600_v52, 1  ;;  %v3473_v3 = vmax.f32 %v3471_v11, %v3472_v16  ;;  %v3486_v23 = vrot.slane %v3485_v62, 4 }
 0x227   :  { %v4238_v59 = vsel %vm4175_vm4, %v2588_v35, %v2581_v27  ;;  %v3480_v9 = vmax.f32 %v3478_v61, %v3479_v37  ;;  %v3493_v22 = vrot.slane %v3492_v40, 4  ;;  %v475_v58 = vadd.f32 %v7648_v28, %v7493_v43 }
 0x228   :  { %v7786_v51 = vmax.f32 %v2600_v52, %v2601_v39  ;;  %v7789_v25 = vsel %vm4177_vm5, %v2595_v36, %v4238_v59  ;;  %v3474_v53 = vrot.slane %v3473_v3, 2  ;;  %v3487_v50 = vmax.f32 %v3485_v62, %v3486_v23 }
 0x229   :  { %v3481_v29 = vrot.slane %v3480_v9, 2  ;;  %v3494_v38 = vmax.f32 %v3492_v40, %v3493_v22  ;;  %v673_v4 = vmax.f32 %v475_v58, 0.0  ;;  %v7794_v6 = vsel %vm4179_vm6, %v7762_v54, %v7766_v15 }
 0x22a   :  { %v3475_v17 = vmax.f32 %v3473_v3, %v3474_v53  ;;  %v3488_v45 = vrot.slane %v3487_v50, 2  ;;  %v603_v43 = vadd.f32 %v7648_v28, %v7518_v19  ;;  %v7799_v27 = vsel %vm4179_vm6, %v3554_v41, %v4358_v32 }
 0x22b   :  { %v3482_v7 = vmax.f32 %v3480_v9, %v3481_v29  ;;  %v3495_v14 = vrot.slane %v3494_v38, 2  ;;  %v1105_v11 = vcombine.high %v673_v4, %v673_v4  ;;  %v1112_v44 = vrot.slane %v673_v4, %v7044_v47 }
 0x22c   :  { %v3476_v52 = vrot.slane %v3475_v17, 1  ;;  %v3489_v16 = vmax.f32 %v3487_v50, %v3488_v45  ;;  %v705_v61 = vmax.f32 %v603_v43, 0.0  ;;  %v7804_v54 = vadd.f32 %v7648_v28, %v7526_v60 }
 0x22d   :  { %v3483_v15 = vrot.slane %v3482_v7, 1  ;;  %v3496_v35 = vmax.f32 %v3494_v38, %v3495_v14  ;;  %v1119_v37 = vrot.slane %v1105_v11, %v7044_v47  ;;  %v1120_v19 = vcombine.high %v1112_v44, %v1112_v44 }
 0x22e   :  { %v3477_v62 = vmax.f32 %v3475_v17, %v3476_v52  ;;  %v3490_v41 = vrot.slane %v3489_v16, 1  ;;  %v2659_v32 = vsel %vm2126_vm3, %v1112_v44, -inf  ;;  %v1649_v40 = vcombine.high %v705_v61, %v705_v61 }
 0x22f   :  { %v3484_v36 = vmax.f32 %v3482_v7, %v3483_v15  ;;  %v3497_v39 = vrot.slane %v3496_v35, 1  ;;  %v1121_v3 = vcombine.high %v1119_v37, %v1119_v37  ;;  %v2660_v23 = vrot.slane %v2659_v32, 4 }
 0x230   :  { %v3491_v59 = vmax.f32 %v3489_v16, %v3490_v41  ;;  %v2666_v9 = vsel %vm2126_vm3, %v1120_v19, -inf  ;;  %v2673_v60 = vsel %vm2126_vm3, %v1119_v37, -inf  ;;  %v1656_v22 = vrot.slane %v705_v61, %v7044_v47 }
 0x231   :  { %v7811_v58 = vmax.f32 %v3496_v35, %v3497_v39  ;;  %v4350_v53 = vsel %vm4175_vm4, %v3484_v36, %v3477_v62  ;;  %v2661_v50 = vmax.f32 %v2659_v32, %v2660_v23  ;;  %v2667_v29 = vrot.slane %v2666_v9, 4  ;;  %v7821_v36 = vpop.f32.mrb[24].mxu1 }
 0x232   :  { %v4351_v38 = vsel %vm4177_vm5, %v3491_v59, %v4350_v53  ;;  %v2674_v4 = vrot.slane %v2673_v60, 4  ;;  %v2680_v17 = vsel %vm2126_vm3, %v1121_v3, -inf  ;;  %v1663_v45 = vrot.slane %v1649_v40, %v7044_v47 }
 0x233   :  { %v2662_v43 = vrot.slane %v2661_v50, 2  ;;  %v2668_v7 = vmax.f32 %v2666_v9, %v2667_v29  ;;  %v2681_v14 = vrot.slane %v2680_v17, 4  ;;  %v1664_v11 = vcombine.high %v1656_v22, %v1656_v22 }
 0x234   :  { %v2675_v44 = vmax.f32 %v2673_v60, %v2674_v4  ;;  %v1665_v52 = vcombine.high %v1663_v45, %v1663_v45  ;;  %v3555_v16 = vsel %vm2126_vm3, %v1656_v22, -inf  ;;  %v3569_v61 = vsel %vm2126_vm3, %v1663_v45, -inf }
 0x235   :  { %v2663_v15 = vmax.f32 %v2661_v50, %v2662_v43  ;;  %v2669_v35 = vrot.slane %v2668_v7, 2  ;;  %v2682_v37 = vmax.f32 %v2680_v17, %v2681_v14  ;;  %v3556_v19 = vrot.slane %v3555_v16, 4 }
 0x236   :  { %v2676_v62 = vrot.slane %v2675_v44, 2  ;;  %v3562_v41 = vsel %vm2126_vm3, %v1664_v11, -inf  ;;  %v3570_v32 = vrot.slane %v3569_v61, 4  ;;  %v3576_v40 = vsel %vm2126_vm3, %v1665_v52, -inf }
 0x237   :  { %v2664_v39 = vrot.slane %v2663_v15, 1  ;;  %v2670_v3 = vmax.f32 %v2668_v7, %v2669_v35  ;;  %v2683_v23 = vrot.slane %v2682_v37, 2  ;;  %v3557_v59 = vmax.f32 %v3555_v16, %v3556_v19 }
 0x238   :  { %v2677_v9 = vmax.f32 %v2675_v44, %v2676_v62  ;;  %v3563_v60 = vrot.slane %v3562_v41, 4  ;;  %v3571_v22 = vmax.f32 %v3569_v61, %v3570_v32  ;;  %v3577_v53 = vrot.slane %v3576_v40, 4 }
 0x239   :  { %v2665_v50 = vmax.f32 %v2663_v15, %v2664_v39  ;;  %v2671_v29 = vrot.slane %v2670_v3, 1  ;;  %v2684_v4 = vmax.f32 %v2682_v37, %v2683_v23  ;;  %v3558_v17 = vrot.slane %v3557_v59, 2 }
 0x23a   :  { %v2678_v45 = vrot.slane %v2677_v9, 1  ;;  %v3564_v43 = vmax.f32 %v3562_v41, %v3563_v60  ;;  %v3572_v14 = vrot.slane %v3571_v22, 2  ;;  %v3578_v11 = vmax.f32 %v3576_v40, %v3577_v53 }
 0x23b   :  { %v2672_v56 = vmax.f32 %v2670_v3, %v2671_v29  ;;  %v2685_v52 = vrot.slane %v2684_v4, 1  ;;  %v4248_v8 = vsel %vm4181_vm7, %v2665_v50, %v7794_v6  ;;  %v3559_v7 = vmax.f32 %v3557_v59, %v3558_v17 }
 0x23c   :  { %v7825_v35 = vmax.f32 %v2677_v9, %v2678_v45  ;;  %v3565_v44 = vrot.slane %v3564_v43, 2  ;;  %v3573_v16 = vmax.f32 %v3571_v22, %v3572_v14  ;;  %v3579_v61 = vrot.slane %v3578_v11, 2 }
 0x23d   :  { %v7827_v19 = vmax.f32 %v2684_v4, %v2685_v52  ;;  %v7830_v15 = vsel %vm4183_vm8, %v2672_v56, %v4248_v8  ;;  %v3560_v37 = vrot.slane %v3559_v7, 1  ;;  %v671_v62 = vmax.f32 %v7804_v54, 0.0  ;;  %v7853_v4 = vpop.f32.mrb[24].mxu0 }
 0x23e   :  { %9565 = vst [vmem:[#allocation52_spill] sm:$0xff] %v7825_v35  ;;  %9567 = vst [vmem:[#allocation54_spill] sm:$0xff] %v7830_v15  ;;  %v3566_v41 = vmax.f32 %v3564_v43, %v3565_v44  ;;  %v3574_v32 = vrot.slane %v3573_v16, 1  ;;  %v3580_v40 = vmax.f32 %v3578_v11, %v3579_v61  ;;  %v7836_v6 = vsel %vm4179_vm6, %v7786_v51, %v7789_v25  ;;  %v7861_v43 = vpop.f32.mrb[25].mxu1 }
 0x23f   :  { %9566 = vst [vmem:[#allocation53_spill] sm:$0xff] %v7827_v19  ;;  %v3561_v39 = vmax.f32 %v3559_v7, %v3560_v37  ;;  %v1071_v3 = vcombine.high %v671_v62, %v671_v62  ;;  %v1078_v23 = vrot.slane %v671_v62, %v7044_v47  ;;  %v595_v59 = vadd.f32 %v7648_v28, %v7565_v31 }
 0x240   :  { %v3567_v56 = vrot.slane %v3566_v41, 1  ;;  %v7841_v8 = vmax.f32 %v3573_v16, %v3574_v32  ;;  %v3581_v9 = vrot.slane %v3580_v40, 1  ;;  %v7845_v54 = vsel %vm4179_vm6, %v7811_v58, %v4351_v38  ;;  %v7859_v38 = vpop.f32.mrb[25].mxu0 }
 0x241   :  { %v4360_v60 = vsel %vm4181_vm7, %v3561_v39, %v7799_v27  ;;  %v1085_v51 = vrot.slane %v1071_v3, %v7044_v47  ;;  %v1086_v25 = vcombine.high %v1078_v23, %v1078_v23  ;;  %v2603_v22 = vsel %vm2126_vm3, %v1078_v23, -inf }
 0x242   :  { %9568 = vst [vmem:[#allocation55_spill] sm:$0xff] %v7841_v8  ;;  %v3568_v53 = vmax.f32 %v3566_v41, %v3567_v56  ;;  %v7851_v50 = vmax.f32 %v3580_v40, %v3581_v9  ;;  %v2604_v31 = vrot.slane %v2603_v22, 4  ;;  %v703_v29 = vmax.f32 %v595_v59, 0.0  ;;  %v7870_v59 = vpop.f32.mrb[26].mxu0 }
 0x243   :  { %v1087_v17 = vcombine.high %v1085_v51, %v1085_v51  ;;  %v2610_v45 = vsel %vm2126_vm3, %v1086_v25, -inf  ;;  %v2617_v58 = vsel %vm2126_vm3, %v1085_v51, -inf  ;;  %v488_v27 = vadd.f32 %v7648_v28, %v7575_v57 }
 0x244   :  { %9569 = vst [vmem:[#allocation56_spill] sm:$0xff] %v7851_v50  ;;  %v7864_v14 = vsel %vm4183_vm8, %v3568_v53, %v4360_v60  ;;  %v2605_v11 = vmax.f32 %v2603_v22, %v2604_v31  ;;  %v2611_v52 = vrot.slane %v2610_v45, 4  ;;  %v2618_v7 = vrot.slane %v2617_v58, 4 }
 0x245   :  { %9570 = vst [vmem:[#allocation57_spill] sm:$0xff] %v7864_v14  ;;  %v2624_v44 = vsel %vm2126_vm3, %v1087_v17, -inf  ;;  %v1615_v16 = vcombine.high %v703_v29, %v703_v29  ;;  %v1622_v61 = vrot.slane %v703_v29, %v7044_v47  ;;  %v676_v37 = vmax.f32 %v488_v27, 0.0  ;;  %v7874_v27 = vpop.f32.mrb[26].mxu1 }
 0x246   :  { %v2606_v62 = vrot.slane %v2605_v11, 2  ;;  %v2612_v41 = vmax.f32 %v2610_v45, %v2611_v52  ;;  %v2619_v32 = vmax.f32 %v2617_v58, %v2618_v7  ;;  %v2625_v57 = vrot.slane %v2624_v44, 4 }
 0x247   :  { %v1629_v40 = vrot.slane %v1615_v16, %v7044_v47  ;;  %v1630_v39 = vcombine.high %v1622_v61, %v1622_v61  ;;  %v3499_v3 = vsel %vm2126_vm3, %v1622_v61, -inf  ;;  %v1156_v23 = vcombine.high %v676_v37, %v676_v37 }
 0x248   :  { %v2607_v56 = vmax.f32 %v2605_v11, %v2606_v62  ;;  %v2613_v9 = vrot.slane %v2612_v41, 2  ;;  %v2620_v60 = vrot.slane %v2619_v32, 2  ;;  %v2626_v51 = vmax.f32 %v2624_v44, %v2625_v57 }
 0x249   :  { %v1631_v25 = vcombine.high %v1629_v40, %v1629_v40  ;;  %v3500_v22 = vrot.slane %v3499_v3, 4  ;;  %v3506_v53 = vsel %vm2126_vm3, %v1630_v39, -inf  ;;  %v3513_v31 = vsel %vm2126_vm3, %v1629_v40, -inf }
 0x24a   :  { %v2608_v29 = vrot.slane %v2607_v56, 1  ;;  %v2614_v17 = vmax.f32 %v2612_v41, %v2613_v9  ;;  %v2621_v45 = vmax.f32 %v2619_v32, %v2620_v60  ;;  %v2627_v58 = vrot.slane %v2626_v51, 2 }
 0x24b   :  { %v3501_v52 = vmax.f32 %v3499_v3, %v3500_v22  ;;  %v3507_v7 = vrot.slane %v3506_v53, 4  ;;  %v3514_v16 = vrot.slane %v3513_v31, 4  ;;  %v3520_v11 = vsel %vm2126_vm3, %v1631_v25, -inf }
 0x24c   :  { %v2609_v61 = vmax.f32 %v2607_v56, %v2608_v29  ;;  %v2615_v62 = vrot.slane %v2614_v17, 1  ;;  %v2622_v44 = vrot.slane %v2621_v45, 1  ;;  %v2628_v57 = vmax.f32 %v2626_v51, %v2627_v58 }
 0x24d   :  { %v3502_v50 = vrot.slane %v3501_v52, 2  ;;  %v3508_v8 = vmax.f32 %v3506_v53, %v3507_v7  ;;  %v3515_v39 = vmax.f32 %v3513_v31, %v3514_v16  ;;  %v3521_v14 = vrot.slane %v3520_v11, 4 }
 0x24e   :  { %v2616_v40 = vmax.f32 %v2614_v17, %v2615_v62  ;;  %v7877_v19 = vmax.f32 %v2621_v45, %v2622_v44  ;;  %v2629_v41 = vrot.slane %v2628_v57, 1  ;;  %v4241_v32 = vsel %vm4181_vm7, %v2609_v61, %v7836_v6 }
 0x24f   :  { %v3503_v3 = vmax.f32 %v3501_v52, %v3502_v50  ;;  %v3509_v9 = vrot.slane %v3508_v8, 2  ;;  %v3516_v60 = vrot.slane %v3515_v39, 2  ;;  %v3522_v22 = vmax.f32 %v3520_v11, %v3521_v14 }
 0x250   :  { %9571 = vst [vmem:[#allocation58_spill] sm:$0xff] %v7877_v19  ;;  %v7881_v25 = vmax.f32 %v2628_v57, %v2629_v41  ;;  %v7884_v56 = vsel %vm4183_vm8, %v2616_v40, %v4241_v32  ;;  %v1163_v51 = vrot.slane %v676_v37, %v7044_v47  ;;  %v1170_v53 = vrot.slane %v1156_v23, %v7044_v47 }
 0x251   :  { %9573 = vst [vmem:[#allocation60_spill] sm:$0xff] %v7884_v56  ;;  %v3504_v31 = vrot.slane %v3503_v3, 1  ;;  %v3510_v29 = vmax.f32 %v3508_v8, %v3509_v9  ;;  %v3517_v17 = vmax.f32 %v3515_v39, %v3516_v60  ;;  %v3523_v45 = vrot.slane %v3522_v22, 2 }
 0x252   :  { %9572 = vst [vmem:[#allocation59_spill] sm:$0xff] %v7881_v25  ;;  %v1171_v58 = vcombine.high %v1163_v51, %v1163_v51  ;;  %v1172_v7 = vcombine.high %v1170_v53, %v1170_v53  ;;  %v2743_v6 = vsel %vm2126_vm3, %v1163_v51, -inf  ;;  %v2757_v50 = vsel %vm2126_vm3, %v1170_v53, -inf }
 0x253   :  { %v3505_v14 = vmax.f32 %v3503_v3, %v3504_v31  ;;  %v3511_v52 = vrot.slane %v3510_v29, 1  ;;  %v3518_v16 = vrot.slane %v3517_v17, 1  ;;  %v3524_v11 = vmax.f32 %v3522_v22, %v3523_v45 }
 0x254   :  { %v2744_v61 = vrot.slane %v2743_v6, 4  ;;  %v2750_v62 = vsel %vm2126_vm3, %v1171_v58, -inf  ;;  %v2758_v37 = vrot.slane %v2757_v50, 4  ;;  %v2764_v23 = vsel %vm2126_vm3, %v1172_v7, -inf }
 0x255   :  { %v3512_v44 = vmax.f32 %v3510_v29, %v3511_v52  ;;  %v7892_v8 = vmax.f32 %v3517_v17, %v3518_v16  ;;  %v3525_v57 = vrot.slane %v3524_v11, 1  ;;  %v4353_v39 = vsel %vm4181_vm7, %v3505_v14, %v7845_v54 }
 0x256   :  { %v2745_v40 = vmax.f32 %v2743_v6, %v2744_v61  ;;  %v2751_v41 = vrot.slane %v2750_v62, 4  ;;  %v2759_v32 = vmax.f32 %v2757_v50, %v2758_v37  ;;  %v2765_v3 = vrot.slane %v2764_v23, 4 }
 0x257   :  { %9574 = vst [vmem:[#allocation61_spill] sm:$0xff] %v7892_v8  ;;  %v7896_v9 = vmax.f32 %v3524_v11, %v3525_v57  ;;  %v7899_v60 = vsel %vm4183_vm8, %v3512_v44, %v4353_v39  ;;  %v616_v22 = vadd.f32 %v7648_v28, %v7593_v2  ;;  %v480_v51 = vadd.f32 %v7648_v28, %v7616_v5 }
 0x258   :  { %9576 = vst [vmem:[#allocation63_spill] sm:$0xff] %v7899_v60  ;;  %v2746_v53 = vrot.slane %v2745_v40, 2  ;;  %v2752_v31 = vmax.f32 %v2750_v62, %v2751_v41  ;;  %v2760_v29 = vrot.slane %v2759_v32, 2  ;;  %v2766_v17 = vmax.f32 %v2764_v23, %v2765_v3 }
 0x259   :  { %9575 = vst [vmem:[#allocation62_spill] sm:$0xff] %v7896_v9  ;;  %v708_v54 = vmax.f32 %v616_v22, 0.0  ;;  %v674_v45 = vmax.f32 %v480_v51, 0.0  ;;  %v7907_v58 = vadd.f32 %v7648_v28, %v7625_v42  ;;  %v7911_v7 = vadd.f32 %v7648_v28, %v7667_v34 }
 0x25a   :  { %v2747_v6 = vmax.f32 %v2745_v40, %v2746_v53  ;;  %v2753_v50 = vrot.slane %v2752_v31, 2  ;;  %v2761_v2 = vmax.f32 %v2759_v32, %v2760_v29  ;;  %v2767_v14 = vrot.slane %v2766_v17, 2 }
 0x25b   :  { %v1700_v52 = vcombine.high %v708_v54, %v708_v54  ;;  %v1707_v5 = vrot.slane %v708_v54, %v7044_v47  ;;  %v1122_v16 = vcombine.high %v674_v45, %v674_v45  ;;  %v1129_v11 = vrot.slane %v674_v45, %v7044_v47 }
 0x25c   :  { %v2748_v61 = vrot.slane %v2747_v6, 1  ;;  %v2754_v62 = vmax.f32 %v2752_v31, %v2753_v50  ;;  %v2762_v37 = vrot.slane %v2761_v2, 1  ;;  %v2768_v23 = vmax.f32 %v2766_v17, %v2767_v14 }
 0x25d   :  { %v1714_v42 = vrot.slane %v1700_v52, %v7044_v47  ;;  %v1715_v44 = vcombine.high %v1707_v5, %v1707_v5  ;;  %v3639_v28 = vsel %vm2126_vm3, %v1707_v5, -inf  ;;  %v1136_v34 = vrot.slane %v1122_v16, %v7044_v47 }
 0x25e   :  { %v2749_v57 = vmax.f32 %v2747_v6, %v2748_v61  ;;  %v2755_v39 = vrot.slane %v2754_v62, 1  ;;  %v2763_v40 = vmax.f32 %v2761_v2, %v2762_v37  ;;  %v2769_v41 = vrot.slane %v2768_v23, 1 }
 0x25f   :  { %v1716_v32 = vcombine.high %v1714_v42, %v1714_v42  ;;  %v3640_v3 = vrot.slane %v3639_v28, 4  ;;  %v3646_v22 = vsel %vm2126_vm3, %v1715_v44, -inf  ;;  %v3653_v51 = vsel %vm2126_vm3, %v1714_v42, -inf }
 0x260   :  { %v2756_v53 = vmax.f32 %v2754_v62, %v2755_v39  ;;  %v7920_v31 = vmax.f32 %v2768_v23, %v2769_v41  ;;  %v3647_v29 = vrot.slane %v3646_v22, 4  ;;  %v3654_v17 = vrot.slane %v3653_v51, 4 }
 0x261   :  { %v3641_v54 = vmax.f32 %v3639_v28, %v3640_v3  ;;  %v3660_v45 = vsel %vm2126_vm3, %v1716_v32, -inf  ;;  %v1137_v50 = vcombine.high %v1129_v11, %v1129_v11  ;;  %v1138_v14 = vcombine.high %v1136_v34, %v1136_v34 }
 0x262   :  { %v4259_v6 = vsel %vm4175_vm4, %v2756_v53, %v2749_v57  ;;  %v3648_v2 = vmax.f32 %v3646_v22, %v3647_v29  ;;  %v3655_v52 = vmax.f32 %v3653_v51, %v3654_v17  ;;  %v3661_v5 = vrot.slane %v3660_v45, 4 }
 0x263   :  { %v7925_v16 = vsel %vm4177_vm5, %v2763_v40, %v4259_v6  ;;  %v3642_v61 = vrot.slane %v3641_v54, 2  ;;  %v2687_v62 = vsel %vm2126_vm3, %v1129_v11, -inf  ;;  %v2694_v37 = vsel %vm2126_vm3, %v1137_v50, -inf }
 0x264   :  { %v3649_v23 = vrot.slane %v3648_v2, 2  ;;  %v3656_v42 = vrot.slane %v3655_v52, 2  ;;  %v3662_v44 = vmax.f32 %v3660_v45, %v3661_v5  ;;  %v2688_v28 = vrot.slane %v2687_v62, 4 }
 0x265   :  { %v3643_v39 = vmax.f32 %v3641_v54, %v3642_v61  ;;  %v2695_v41 = vrot.slane %v2694_v37, 4  ;;  %v2701_v32 = vsel %vm2126_vm3, %v1136_v34, -inf  ;;  %v2708_v57 = vsel %vm2126_vm3, %v1138_v14, -inf }
 0x266   :  { %v3650_v3 = vmax.f32 %v3648_v2, %v3649_v23  ;;  %v3657_v22 = vmax.f32 %v3655_v52, %v3656_v42  ;;  %v3663_v51 = vrot.slane %v3662_v44, 2  ;;  %v2689_v40 = vmax.f32 %v2687_v62, %v2688_v28 }
 0x267   :  { %v3644_v53 = vrot.slane %v3643_v39, 1  ;;  %v2696_v29 = vmax.f32 %v2694_v37, %v2695_v41  ;;  %v2702_v17 = vrot.slane %v2701_v32, 4  ;;  %v2709_v11 = vrot.slane %v2708_v57, 4 }
 0x268   :  { %v3651_v6 = vrot.slane %v3650_v3, 1  ;;  %v3658_v50 = vrot.slane %v3657_v22, 1  ;;  %v3664_v9 = vmax.f32 %v3662_v44, %v3663_v51  ;;  %v2690_v25 = vrot.slane %v2689_v40, 2 }
 0x269   :  { %v3645_v45 = vmax.f32 %v3643_v39, %v3644_v53  ;;  %v2697_v5 = vrot.slane %v2696_v29, 2  ;;  %v2703_v54 = vmax.f32 %v2701_v32, %v2702_v17  ;;  %v2710_v61 = vmax.f32 %v2708_v57, %v2709_v11 }
 0x26a   :  { %v3652_v8 = vmax.f32 %v3650_v3, %v3651_v6  ;;  %v3659_v34 = vmax.f32 %v3657_v22, %v3658_v50  ;;  %v3665_v60 = vrot.slane %v3664_v9, 1  ;;  %v2691_v14 = vmax.f32 %v2689_v40, %v2690_v25 }
 0x26b   :  { %v2698_v2 = vmax.f32 %v2696_v29, %v2697_v5  ;;  %v2704_v52 = vrot.slane %v2703_v54, 2  ;;  %v2711_v23 = vrot.slane %v2710_v61, 2  ;;  %v706_v62 = vmax.f32 %v7907_v58, 0.0 }
 0x26c   :  { %v7932_v37 = vmax.f32 %v3664_v9, %v3665_v60  ;;  %v4371_v42 = vsel %vm4175_vm4, %v3652_v8, %v3645_v45  ;;  %v2692_v28 = vrot.slane %v2691_v14, 1  ;;  %v677_v44 = vmax.f32 %v7911_v7, 0.0  ;;  %v7947_v45 = vpop.f32.mrb[27].mxu0 }
 0x26d   :  { %v7937_v39 = vsel %vm4177_vm5, %v3659_v34, %v4371_v42  ;;  %v2699_v41 = vrot.slane %v2698_v2, 1  ;;  %v2705_v32 = vmax.f32 %v2703_v54, %v2704_v52  ;;  %v2712_v57 = vmax.f32 %v2710_v61, %v2711_v23 }
 0x26e   :  { %v2693_v3 = vmax.f32 %v2691_v14, %v2692_v28  ;;  %v1666_v25 = vcombine.high %v706_v62, %v706_v62  ;;  %v1673_v22 = vrot.slane %v706_v62, %v7044_v47  ;;  %v1173_v51 = vcombine.high %v677_v44, %v677_v44  ;;  %v7954_v62 = vpop.f32.mrb[27].mxu1 }
 0x26f   :  { %v2700_v40 = vmax.f32 %v2698_v2, %v2699_v41  ;;  %v2706_v58 = vrot.slane %v2705_v32, 1  ;;  %v2713_v9 = vrot.slane %v2712_v57, 1  ;;  %v1180_v60 = vrot.slane %v677_v44, %v7044_v47 }
 0x270   :  { %v1680_v8 = vrot.slane %v1666_v25, %v7044_v47  ;;  %v1681_v53 = vcombine.high %v1673_v22, %v1673_v22  ;;  %v3583_v7 = vsel %vm2126_vm3, %v1673_v22, -inf  ;;  %v1187_v29 = vrot.slane %v1173_v51, %v7044_v47 }
 0x271   :  { %v2707_v17 = vmax.f32 %v2705_v32, %v2706_v58  ;;  %v7944_v11 = vmax.f32 %v2712_v57, %v2713_v9  ;;  %v4252_v6 = vsel %vm4175_vm4, %v2700_v40, %v2693_v3  ;;  %v3584_v50 = vrot.slane %v3583_v7, 4  ;;  %v7959_v32 = vpop.f32.mrb[28].mxu0  ;;  %v7961_v57 = vpop.f32.mrb[28].mxu1 }
 0x272   :  { %v1682_v5 = vcombine.high %v1680_v8, %v1680_v8  ;;  %v3590_v54 = vsel %vm2126_vm3, %v1681_v53, -inf  ;;  %v3597_v61 = vsel %vm2126_vm3, %v1680_v8, -inf  ;;  %v1188_v34 = vcombine.high %v1180_v60, %v1180_v60 }
 0x273   :  { %v7952_v14 = vsel %vm4177_vm5, %v2707_v17, %v4252_v6  ;;  %v3585_v2 = vmax.f32 %v3583_v7, %v3584_v50  ;;  %v3591_v52 = vrot.slane %v3590_v54, 4  ;;  %v3598_v23 = vrot.slane %v3597_v61, 4 }
 0x274   :  { %v3604_v42 = vsel %vm2126_vm3, %v1682_v5, -inf  ;;  %v1189_v28 = vcombine.high %v1187_v29, %v1187_v29  ;;  %v2771_v44 = vsel %vm2126_vm3, %v1180_v60, -inf  ;;  %v2778_v41 = vsel %vm2126_vm3, %v1188_v34, -inf }
 0x275   :  { %v3586_v3 = vrot.slane %v3585_v2, 2  ;;  %v3592_v25 = vmax.f32 %v3590_v54, %v3591_v52  ;;  %v3599_v22 = vmax.f32 %v3597_v61, %v3598_v23  ;;  %v3605_v51 = vrot.slane %v3604_v42, 4 }
 0x276   :  { %v2772_v40 = vrot.slane %v2771_v44, 4  ;;  %v2779_v58 = vrot.slane %v2778_v41, 4  ;;  %v2785_v9 = vsel %vm2126_vm3, %v1187_v29, -inf  ;;  %v2792_v8 = vsel %vm2126_vm3, %v1189_v28, -inf }
 0x277   :  { %v3587_v53 = vmax.f32 %v3585_v2, %v3586_v3  ;;  %v3593_v7 = vrot.slane %v3592_v25, 2  ;;  %v3600_v17 = vrot.slane %v3599_v22, 2  ;;  %v3606_v60 = vmax.f32 %v3604_v42, %v3605_v51 }
 0x278   :  { %v2773_v6 = vmax.f32 %v2771_v44, %v2772_v40  ;;  %v2780_v50 = vmax.f32 %v2778_v41, %v2779_v58  ;;  %v2786_v5 = vrot.slane %v2785_v9, 4  ;;  %v2793_v34 = vrot.slane %v2792_v8, 4 }
 0x279   :  { %v3588_v35 = vrot.slane %v3587_v53, 1  ;;  %v3594_v15 = vmax.f32 %v3592_v25, %v3593_v7  ;;  %v3601_v19 = vmax.f32 %v3599_v22, %v3600_v17  ;;  %v3607_v54 = vrot.slane %v3606_v60, 2 }
 0x27a   :  { %v2774_v61 = vrot.slane %v2773_v6, 2  ;;  %v2781_v52 = vrot.slane %v2780_v50, 2  ;;  %v2787_v23 = vmax.f32 %v2785_v9, %v2786_v5  ;;  %v2794_v56 = vmax.f32 %v2792_v8, %v2793_v34 }
 0x27b   :  { %v3589_v46 = vmax.f32 %v3587_v53, %v3588_v35  ;;  %v3595_v29 = vrot.slane %v3594_v15, 1  ;;  %v3602_v0 = vrot.slane %v3601_v19, 1  ;;  %v3608_v28 = vmax.f32 %v3606_v60, %v3607_v54  ;;  %v7972_v53 = vld [vmem:[%s9500_s2] ss:$0 sm:$0xff] }
 0x27c   :  { %v2775_v2 = vmax.f32 %v2773_v6, %v2774_v61  ;;  %v2782_v3 = vmax.f32 %v2780_v50, %v2781_v52  ;;  %v2788_v63 = vrot.slane %v2787_v23, 2  ;;  %v2795_v42 = vrot.slane %v2794_v56, 2 }
 0x27d   :  { %v3596_v44 = vmax.f32 %v3594_v15, %v3595_v29  ;;  %v3603_v41 = vmax.f32 %v3601_v19, %v3602_v0  ;;  %v3609_v51 = vrot.slane %v3608_v28, 1  ;;  %v4261_v25 = vsel %vm4179_vm6, %v7920_v31, %v7925_v16 }
 0x27e   :  { %v2776_v22 = vrot.slane %v2775_v2, 1  ;;  %v2783_v40 = vrot.slane %v2782_v3, 1  ;;  %v2789_v58 = vmax.f32 %v2787_v23, %v2788_v63  ;;  %v2796_v9 = vmax.f32 %v2794_v56, %v2795_v42 }
 0x27f   :  { %v3610_v8 = vmax.f32 %v3608_v28, %v3609_v51  ;;  %v4364_v35 = vsel %vm4175_vm4, %v3596_v44, %v3589_v46  ;;  %v619_v0 = vadd.f32 %v7972_v53, %v7669_v10  ;;  %v7979_v19 = vsel %vm4179_vm6, %v7932_v37, %v7937_v39 }
 0x280   :  { %v4365_v15 = vsel %vm4177_vm5, %v3603_v41, %v4364_v35  ;;  %v2777_v63 = vmax.f32 %v2775_v2, %v2776_v22  ;;  %v2784_v56 = vmax.f32 %v2782_v3, %v2783_v40  ;;  %v2790_v31 = vrot.slane %v2789_v58, 1 }
 0x281   :  { %v2797_v16 = vrot.slane %v2796_v9, 1  ;;  %v709_v46 = vmax.f32 %v619_v0, 0.0  ;;  %v483_v7 = vadd.f32 %v7972_v53, %v7711_v48  ;;  %v7987_v17 = vsel %vm4179_vm6, %v7944_v11, %v7952_v14 }
 0x282   :  { %v7989_v10 = vmax.f32 %v2789_v58, %v2790_v31  ;;  %v4262_v37 = vsel %vm4181_vm7, %v2777_v63, %v4261_v25  ;;  %v611_v39 = vadd.f32 %v7972_v53, %v7737_v55  ;;  %v7995_v60 = vsel %vm4179_vm6, %v3610_v8, %v4365_v15 }
 0x283   :  { %v7997_v6 = vmax.f32 %v2796_v9, %v2797_v16  ;;  %v8000_v50 = vsel %vm4183_vm8, %v2784_v56, %v4262_v37  ;;  %v1717_v48 = vcombine.high %v709_v46, %v709_v46  ;;  %v1724_v5 = vrot.slane %v709_v46, %v7044_v47 }
 0x284   :  { %9577 = vst [vmem:[#allocation64_spill] sm:$0xff] %v7989_v10  ;;  %9579 = vst [vmem:[#allocation66_spill] sm:$0xff] %v8000_v50  ;;  %v675_v11 = vmax.f32 %v483_v7, 0.0  ;;  %v707_v14 = vmax.f32 %v611_v39, 0.0  ;;  %v9580_v34 = vrot.slane %v7224_v12, 1  ;;  %v9581_v55 = vrot.slane %v7171_v20, 1 }
 0x285   :  { %9578 = vst [vmem:[#allocation65_spill] sm:$0xff] %v7997_v6  ;;  %v1731_v52 = vrot.slane %v1717_v48, %v7044_v47  ;;  %v1732_v23 = vcombine.high %v1724_v5, %v1724_v5  ;;  %v3667_v29 = vsel %vm2126_vm3, %v1724_v5, -inf  ;;  %v9582_v28 = vrot.slane %v7385_v13, 1 }
 0x286   :  { %v8006_v54 = vmax.f32 %v7224_v12, %v9580_v34  ;;  %v8011_v61 = vmax.f32 %v7171_v20, %v9581_v55  ;;  %v3668_v3 = vrot.slane %v3667_v29, 4  ;;  %v1139_v42 = vcombine.high %v675_v11, %v675_v11 }
 0x287   :  { %v8018_v2 = vmax.f32 %v7385_v13, %v9582_v28  ;;  %v1146_v12 = vrot.slane %v675_v11, %v7044_v47  ;;  %v1683_v44 = vcombine.high %v707_v14, %v707_v14  ;;  %v1733_v41 = vcombine.high %v1731_v52, %v1731_v52 }
 0x288   :  { %v3674_v51 = vsel %vm2126_vm3, %v1732_v23, -inf  ;;  %v3681_v20 = vsel %vm2126_vm3, %v1731_v52, -inf  ;;  %v1690_v25 = vrot.slane %v707_v14, %v7044_v47  ;;  %v3669_v22 = vmax.f32 %v3667_v29, %v3668_v3 }
 0x289   :  { %v3675_v40 = vrot.slane %v3674_v51, 4  ;;  %v3682_v58 = vrot.slane %v3681_v20, 4  ;;  %v1153_v9 = vrot.slane %v1139_v42, %v7044_v47  ;;  %v3688_v13 = vsel %vm2126_vm3, %v1733_v41, -inf }
 0x28a   :  { %v1154_v8 = vcombine.high %v1146_v12, %v1146_v12  ;;  %v2715_v35 = vsel %vm2126_vm3, %v1146_v12, -inf  ;;  %v1697_v0 = vrot.slane %v1683_v44, %v7044_v47  ;;  %v3670_v15 = vrot.slane %v3669_v22, 2 }
 0x28b   :  { %v3676_v63 = vmax.f32 %v3674_v51, %v3675_v40  ;;  %v3683_v56 = vmax.f32 %v3681_v20, %v3682_v58  ;;  %v3689_v31 = vrot.slane %v3688_v13, 4  ;;  %v1155_v16 = vcombine.high %v1153_v9, %v1153_v9 }
 0x28c   :  { %v2716_v46 = vrot.slane %v2715_v35, 4  ;;  %v2722_v7 = vsel %vm2126_vm3, %v1154_v8, -inf  ;;  %v2729_v37 = vsel %vm2126_vm3, %v1153_v9, -inf  ;;  %v3671_v39 = vmax.f32 %v3669_v22, %v3670_v15 }
 0x28d   :  { %v3677_v48 = vrot.slane %v3676_v63, 2  ;;  %v3684_v5 = vrot.slane %v3683_v56, 2  ;;  %v3690_v11 = vmax.f32 %v3688_v13, %v3689_v31  ;;  %v2723_v34 = vrot.slane %v2722_v7, 4 }
 0x28e   :  { %v2717_v14 = vmax.f32 %v2715_v35, %v2716_v46  ;;  %v2730_v55 = vrot.slane %v2729_v37, 4  ;;  %v2736_v52 = vsel %vm2126_vm3, %v1155_v16, -inf  ;;  %v3672_v23 = vrot.slane %v3671_v39, 1 }
 0x28f   :  { %v3678_v29 = vmax.f32 %v3676_v63, %v3677_v48  ;;  %v3685_v28 = vmax.f32 %v3683_v56, %v3684_v5  ;;  %v3691_v3 = vrot.slane %v3690_v11, 2  ;;  %v2724_v12 = vmax.f32 %v2722_v7, %v2723_v34 }
 0x290   :  { %v2718_v42 = vrot.slane %v2717_v14, 2  ;;  %v2731_v44 = vmax.f32 %v2729_v37, %v2730_v55  ;;  %v2737_v41 = vrot.slane %v2736_v52, 4  ;;  %v3673_v51 = vmax.f32 %v3671_v39, %v3672_v23 }
 0x291   :  { %v3679_v20 = vrot.slane %v3678_v29, 1  ;;  %v3686_v40 = vrot.slane %v3685_v28, 1  ;;  %v3692_v22 = vmax.f32 %v3690_v11, %v3691_v3  ;;  %v2725_v9 = vrot.slane %v2724_v12, 2 }
 0x292   :  { %v2719_v58 = vmax.f32 %v2717_v14, %v2718_v42  ;;  %v2732_v13 = vrot.slane %v2731_v44, 2  ;;  %v2738_v8 = vmax.f32 %v2736_v52, %v2737_v41  ;;  %v8037_v63 = vsel %vm4181_vm7, %v3673_v51, %v7979_v19 }
 0x293   :  { %v8031_v35 = vmax.f32 %v3678_v29, %v3679_v20  ;;  %v8033_v15 = vmax.f32 %v3685_v28, %v3686_v40  ;;  %v3693_v31 = vrot.slane %v3692_v22, 1  ;;  %9585 = vst [vmem:[#allocation69_spill] sm:$0xff] %v8037_v63  ;;  %v2726_v16 = vmax.f32 %v2724_v12, %v2725_v9 }
 0x294   :  { %v2720_v56 = vrot.slane %v2719_v58, 1  ;;  %v2733_v46 = vmax.f32 %v2731_v44, %v2732_v13  ;;  %v2739_v7 = vrot.slane %v2738_v8, 2  ;;  %v1698_v39 = vcombine.high %v1690_v25, %v1690_v25 }
 0x295   :  { %9583 = vst [vmem:[#allocation67_spill] sm:$0xff] %v8031_v35  ;;  %9584 = vst [vmem:[#allocation68_spill] sm:$0xff] %v8033_v15  ;;  %v8039_v37 = vmax.f32 %v3692_v22, %v3693_v31  ;;  %v1699_v48 = vcombine.high %v1697_v0, %v1697_v0  ;;  %v3611_v5 = vsel %vm2126_vm3, %v1690_v25, -inf  ;;  %v2727_v14 = vrot.slane %v2726_v16, 1  ;;  %v8060_v31 = vpop.f32.mrb[29].mxu0 }
 0x296   :  { %v2721_v11 = vmax.f32 %v2719_v58, %v2720_v56  ;;  %v2734_v34 = vrot.slane %v2733_v46, 1  ;;  %v2740_v55 = vmax.f32 %v2738_v8, %v2739_v7  ;;  %v3612_v52 = vrot.slane %v3611_v5, 4 }
 0x297   :  { %9586 = vst [vmem:[#allocation70_spill] sm:$0xff] %v8039_v37  ;;  %v3618_v23 = vsel %vm2126_vm3, %v1698_v39, -inf  ;;  %v3625_v19 = vsel %vm2126_vm3, %v1697_v0, -inf  ;;  %v3632_v29 = vsel %vm2126_vm3, %v1699_v48, -inf  ;;  %v2728_v28 = vmax.f32 %v2726_v16, %v2727_v14  ;;  %v9591_v48 = vld [vmem:[#allocation3_spill] sm:$0xff] }
 0x298   :  { %v8045_v3 = vmax.f32 %v2733_v46, %v2734_v34  ;;  %v2741_v42 = vrot.slane %v2740_v55, 1  ;;  %v4255_v12 = vsel %vm4181_vm7, %v2721_v11, %v7987_v17  ;;  %v3613_v44 = vmax.f32 %v3611_v5, %v3612_v52  ;;  %v9592_v11 = vld [vmem:[#allocation19_spill] sm:$0xff] }
 0x299   :  { %v3619_v25 = vrot.slane %v3618_v23, 4  ;;  %v3626_v41 = vrot.slane %v3625_v19, 4  ;;  %v3633_v51 = vrot.slane %v3632_v29, 4  ;;  %v8052_v40 = vsel %vm4183_vm8, %v2728_v28, %v4255_v12 }
 0x29a   :  { %9587 = vst [vmem:[#allocation71_spill] sm:$0xff] %v8045_v3  ;;  %v8049_v20 = vmax.f32 %v2740_v55, %v2741_v42  ;;  %9589 = vst [vmem:[#allocation73_spill] sm:$0xff] %v8052_v40  ;;  %v9590_v0 = vrot.slane %v7331_v1, 1  ;;  %v4184_v58 = vsel %vm4183_vm8, %v7229_v21, %v7235_v30  ;;  %v3614_v9 = vrot.slane %v3613_v44, 2  ;;  %v8068_v30 = vpop.f32.mrb[29].mxu1 }
 0x29b   :  { %v3620_v13 = vmax.f32 %v3618_v23, %v3619_v25  ;;  %v3627_v17 = vmax.f32 %v3625_v19, %v3626_v41  ;;  %v3634_v8 = vmax.f32 %v3632_v29, %v3633_v51  ;;  %v4193_v56 = vsel %vm4183_vm8, %v7174_v49, %v7180_v33  ;;  %v9593_v49 = vld [vmem:[#allocation12_spill] sm:$0xff]  ;;  %v9594_v33 = vld [vmem:[#allocation13_spill] sm:$0xff]  ;;  %v9595_v29 = vld [vmem:[#allocation14_spill] sm:$0xff]  ;;  %v8255_v3 = vpop.f32.mrb[30].mxu1 }
 0x29c   :  { %9588 = vst [vmem:[#allocation72_spill] sm:$0xff] %v8049_v20  ;;  %v2350_v22 = vmax.f32 %v7331_v1, %v9590_v0  ;;  %v4200_v1 = vsel %vm4183_vm8, %v7391_v26, %v7397_v18  ;;  %v3615_v16 = vmax.f32 %v3613_v44, %v3614_v9  ;;  %v4186_v39 = vsel %vm4185_vm9, %v7231_v24, %v4184_v58 }
 0x29d   :  { %v3621_v46 = vrot.slane %v3620_v13, 2  ;;  %v3628_v7 = vrot.slane %v3627_v17, 2  ;;  %v3635_v21 = vrot.slane %v3634_v8, 2  ;;  %v4194_v5 = vsel %vm4185_vm9, %v9591_v48, %v4193_v56 }
 0x29e   :  { %v4201_v14 = vsel %vm4185_vm9, %v9592_v11, %v4200_v1  ;;  %v4207_v34 = vsel %vm4183_vm8, %v9594_v33, %v9593_v49  ;;  %v3616_v26 = vrot.slane %v3615_v16, 1  ;;  %v4188_v23 = vsel %vm4187_vm10, %v8006_v54, %v4186_v39  ;;  %v9604_v39 = vld [vmem:[#allocation8_spill] sm:$0xff] }
 0x29f   :  { %v3622_v18 = vmax.f32 %v3620_v13, %v3621_v46  ;;  %v3629_v55 = vmax.f32 %v3627_v17, %v3628_v7  ;;  %v3636_v52 = vmax.f32 %v3634_v8, %v3635_v21  ;;  %v4195_v24 = vsel %vm4187_vm10, %v8011_v61, %v4194_v5  ;;  %v9603_v21 = vld [vmem:[#allocation10_spill] sm:$0xff]  ;;  %v9606_v11 = vld [vmem:[#allocation4_spill] sm:$0xff] }
 0x2a0   :  { %v4202_v19 = vsel %vm4187_vm10, %v8018_v2, %v4201_v14  ;;  %v4208_v28 = vsel %vm4185_vm9, %v9595_v29, %v4207_v34  ;;  %v3617_v42 = vmax.f32 %v3615_v16, %v3616_v26  ;;  %v8089_v51 = vrot.slane %v4188_v23, %v7044_v47  ;;  %v9605_v5 = vld [vmem:[#allocation6_spill] sm:$0xff]  ;;  %v9607_v26 = vld [vmem:[#allocation9_spill] sm:$0xff]  ;;  %v9611_v29 = vld [vmem:[#allocation20_spill] sm:$0xff] }
 0x2a1   :  { %v3623_v12 = vrot.slane %v3622_v18, 1  ;;  %v3630_v44 = vrot.slane %v3629_v55, 1  ;;  %v3637_v25 = vrot.slane %v3636_v52, 1  ;;  %v4209_v41 = vsel %vm4187_vm10, %v2350_v22, %v4208_v28 }
 0x2a2   :  { %v8092_v54 = vrot.slane %v4195_v24, %v7044_v47  ;;  %v8102_v58 = vsel %vm4181_vm7, %v3617_v42, %v7995_v60  ;;  %v9503_v9 = vmov 0.0   ;;  %v6877_v8 = vmov 1934713408   ;;  %v9612_v42 = vld [vmem:[#allocation16_spill] sm:$0xff] }
 0x2a3   :  { %v8094_v0 = vmax.f32 %v3622_v18, %v3623_v12  ;;  %v8096_v61 = vmax.f32 %v3629_v55, %v3630_v44  ;;  %v8098_v2 = vmax.f32 %v3636_v52, %v3637_v25  ;;  %9599 = vst [vmem:[#allocation13_spill] sm:$0xff] %v8102_v58  ;;  %v8105_v13 = vcombine.high %v4195_v24, %v9503_v9  ;;  %v9608_v55 = vld [vmem:[#allocation11_spill] sm:$0xff]  ;;  %v9614_v25 = vld [vmem:[#allocation2_spill] sm:$0xff] }
 0x2a4   :  { %v4469_v22 = vcombine.high %v8089_v51, %v8092_v54  ;;  %v8110_v17 = vcombine.high %v4202_v19, %v9503_v9  ;;  %v4471_v56 = vunpack.c.l.s4 %v6877_v8  ;;  %v8113_v1 = vrot.slane %v4202_v19, %v7044_v47  ;;  %v9610_v19 = vld [vmem:[#allocation21_spill] sm:$0xff]  ;;  %v9613_v12 = vld [vmem:[#allocation15_spill] sm:$0xff] }
 0x2a5   :  { %9596 = vst [vmem:[#allocation3_spill] sm:$0xff] %v8094_v0  ;;  %9597 = vst [vmem:[#allocation19_spill] sm:$0xff] %v8096_v61  ;;  %v8116_v16 = vcombine.high %v4209_v41, %v9503_v9  ;;  %v8119_v60 = vrot.slane %v4209_v41, %v7044_v47  ;;  %v8122_v46 = vcombine.high %v4188_v23, %v9503_v9  ;;  %v9609_v23 = vld [vmem:[#allocation5_spill] sm:$0xff]  ;;  %v9615_v8 = vld [vmem:[#allocation7_spill] sm:$0xff] }
 0x2a6   :  { %9598 = vst [vmem:[#allocation12_spill] sm:$0xff] %v8098_v2  ;;  %9600 = vst [vmem:[#allocation14_spill] sm:$0xff] %v8105_v13  ;;  %v4298_v48 = vsel %vm4183_vm8, %v9604_v39, %v9603_v21  ;;  %v4305_v14 = vsel %vm4183_vm8, %v9606_v11, %v9605_v5  ;;  %v4472_v49 = vunpack.c.0.s8 %v4471_v56  ;;  %v4312_v28 = vsel %vm4183_vm8, %v9611_v29, %v9610_v19  ;;  %v9616_v21 = vld [vmem:[#allocation22_spill] sm:$0xff]  ;;  %v9618_v11 = vld [vmem:[#allocation23_spill] sm:$0xff] }
 0x2a7   :  { %9601 = vst [vmem:[#allocation74_spill] sm:$0xff] %v8110_v17  ;;  %9602 = vst [vmem:[#allocation75_spill] sm:$0xff] %v8116_v16  ;;  %v4535_v34 = vcombine.high %v8113_v1, %v8119_v60  ;;  %v4299_v18 = vsel %vm4185_vm9, %v9607_v26, %v4298_v48  ;;  %v4306_v24 = vsel %vm4185_vm9, %v9609_v23, %v4305_v14  ;;  %v9617_v48 = vld [vmem:[#allocation17_spill] sm:$0xff]  ;;  %v9619_v26 = vld [vmem:[#allocation18_spill] sm:$0xff] }
 0x2a8   :  { %v4300_v52 = vsel %vm4187_vm10, %v9608_v55, %v4299_v18  ;;  %v4319_v44 = vsel %vm4183_vm8, %v9613_v12, %v9612_v42  ;;  %v8149_v41 = vsub.s32 %v4472_v49, %v9614_v25  ;;  %v4307_v56 = vsel %vm4187_vm10, %v9615_v8, %v4306_v24 }
 0x2a9   :  { %v4313_v39 = vsel %vm4185_vm9, %v9616_v21, %v4312_v28  ;;  %v4320_v5 = vsel %vm4185_vm9, %v9617_v48, %v4319_v44  ;;  %v4966_v55 = vcombine.high %v4300_v52, %v9503_v9  ;;  %v4981_v49 = vcombine.high %v4307_v56, %v9503_v9  ;;  %v8197_v48 = vpop.f32.mrb[30].mxu0 }
 0x2aa   :  { %v4314_v14 = vsel %vm4187_vm10, %v9618_v11, %v4313_v39  ;;  %v4321_v18 = vsel %vm4187_vm10, %v9619_v26, %v4320_v5  ;;  %v4483_v23 = vrot.slane %v4469_v22, %v8149_v41  ;;  %v4549_v24 = vrot.slane %v4535_v34, %v8149_v41 }
 0x2ab   :  { %v5032_v19 = vcombine.high %v4314_v14, %v9503_v9  ;;  %v5047_v29 = vcombine.high %v4321_v18, %v9503_v9  ;;  %v8168_v28 = vrot.slane %v4966_v55, %v7044_v47  ;;  %v8171_v42 = vrot.slane %v4981_v49, %v7044_v47 }
 0x2ac   :  { %v8174_v12 = vrot.slane %v4300_v52, %v7044_v47  ;;  %v8177_v44 = vrot.slane %v4307_v56, %v7044_v47  ;;  %v8180_v22 = vcombine.high %v4549_v24, %v9503_v9  ;;  %v6596_v34 = vpack.i.bf16 %v4549_v24, %v4483_v23 }
 0x2ad   :  { %9620 = vst [vmem:[#allocation10_spill] sm:$0xff] %v8168_v28  ;;  %9621 = vst [vmem:[#allocation8_spill] sm:$0xff] %v8171_v42  ;;  %v8183_v25 = vcombine.high %v4483_v23, %v9503_v9  ;;  %v8186_v8 = vrot.slane %v5032_v19, %v7044_v47  ;;  %v5013_v21 = vcombine.high %v8168_v28, %v8171_v42  ;;  %v8257_v42 = vpop.f32.mrb[31].mxu0 }
 0x2ae   :  { %v8191_v39 = vrot.slane %v5047_v29, %v7044_v47  ;;  %v4997_v56 = vcombine.high %v8174_v12, %v8177_v44  ;;  %6597 = vrot.lane.b32.xlu0 %v6596_v34, %s6878_s30  ;;  %v8201_v5 = vrot.slane %v4314_v14, %v7044_v47  ;;  %v8204_v11 = vrot.slane %v4321_v18, %v7044_v47 }
 0x2af   :  { %v632_v26 = vadd.f32 %v7972_v53, %v7821_v36  ;;  %v504_v55 = vadd.f32 %v7972_v53, %v7853_v4  ;;  %v5027_v49 = vrot.slane %v5013_v21, %v8149_v41  ;;  %v496_v36 = vadd.f32 %v7972_v53, %v7859_v38 }
 0x2b0   :  { %v5079_v24 = vcombine.high %v8186_v8, %v8191_v39  ;;  %v8216_v14 = vrot.slane %v4997_v56, %v8149_v41  ;;  %v5063_v18 = vcombine.high %v8201_v5, %v8204_v11  ;;  %v8226_v21 = vadd.f32 %v7972_v53, %v7861_v43 }
 0x2b1   :  { %v712_v19 = vmax.f32 %v632_v26, 0.0  ;;  %v680_v29 = vmax.f32 %v504_v55, 0.0  ;;  %v5031_v34 = vcombine.high %v5027_v49, %v9503_v9  ;;  %v8230_v56 = vadd.f32 %v7972_v53, %v7870_v59 }
 0x2b2   :  { %v5093_v4 = vrot.slane %v5079_v24, %v8149_v41  ;;  %v8233_v52 = vrot.slane %v5063_v18, %v8149_v41  ;;  %v8238_v7 = vmax.f32 %v496_v36, 0.0 }
 0x2b3   :  { %v1768_v26 = vcombine.high %v712_v19, %v712_v19  ;;  %v1775_v55 = vrot.slane %v712_v19, %v7044_v47  ;;  %v1224_v23 = vcombine.high %v680_v29, %v680_v29  ;;  %v1231_v33 = vrot.slane %v680_v29, %v7044_v47 }
 0x2b4   :  { %v5097_v38 = vcombine.high %v5093_v4, %v9503_v9  ;;  %v6631_v24 = vpack.i.bf16 %v5093_v4, %v5027_v49  ;;  %v6601_v43 = vpack.i.bf16 %v8233_v52, %v8216_v14 }
 0x2b5   :  { %v1782_v59 = vrot.slane %v1768_v26, %v7044_v47  ;;  %v1783_v37 = vcombine.high %v1775_v55, %v1775_v55  ;;  %v3751_v18 = vsel %vm2126_vm3, %v1775_v55, -inf  ;;  %v1238_v2 = vrot.slane %v1224_v23, %v7044_v47 }
 0x2b6   :  { %6632 = vrot.lane.b32.xlu1 %v6631_v24, %s6878_s30  ;;  %v3752_v15 = vrot.slane %v3751_v18, 4  ;;  %v6646_v19 = vpack.i.bf16 %v5097_v38, %v5031_v34  ;;  %v1239_v9 = vcombine.high %v1231_v33, %v1231_v33  ;;  %6602 = vrot.lane.b32.xlu0 %v6601_v43, %s6878_s30  ;;  %v2855_v4 = vsel %vm2126_vm3, %v1231_v33, -inf }
 0x2b7   :  { %v1784_v49 = vcombine.high %v1782_v59, %v1782_v59  ;;  %v3758_v29 = vsel %vm2126_vm3, %v1783_v37, -inf  ;;  %v3765_v36 = vsel %vm2126_vm3, %v1782_v59, -inf  ;;  %v1240_v55 = vcombine.high %v1238_v2, %v1238_v2 }
 0x2b8   :  { %v3753_v26 = vmax.f32 %v3751_v18, %v3752_v15  ;;  %v3759_v61 = vrot.slane %v3758_v29, 4  ;;  %v3766_v35 = vrot.slane %v3765_v36, 4  ;;  %v2856_v63 = vrot.slane %v2855_v4, 4 }
 0x2b9   :  { %v3772_v24 = vsel %vm2126_vm3, %v1784_v49, -inf  ;;  %v2862_v34 = vsel %vm2126_vm3, %v1239_v9, -inf  ;;  %v2869_v23 = vsel %vm2126_vm3, %v1238_v2, -inf  ;;  %v2876_v59 = vsel %vm2126_vm3, %v1240_v55, -inf }
 0x2ba   :  { %v3754_v38 = vrot.slane %v3753_v26, 2  ;;  %v3760_v43 = vmax.f32 %v3758_v29, %v3759_v61  ;;  %v3767_v0 = vmax.f32 %v3765_v36, %v3766_v35  ;;  %v3773_v58 = vrot.slane %v3772_v24, 4  ;;  %6647 = vrot.lane.b32.xlu1 %v6646_v19, %s6879_s4 }
 0x2bb   :  { %v2857_v37 = vmax.f32 %v2855_v4, %v2856_v63  ;;  %v2863_v33 = vrot.slane %v2862_v34, 4  ;;  %v2870_v15 = vrot.slane %v2869_v23, 4  ;;  %v2877_v2 = vrot.slane %v2876_v59, 4 }
 0x2bc   :  { %v3755_v18 = vmax.f32 %v3753_v26, %v3754_v38  ;;  %v3761_v6 = vrot.slane %v3760_v43, 2  ;;  %v3768_v49 = vrot.slane %v3767_v0, 2  ;;  %v3774_v10 = vmax.f32 %v3772_v24, %v3773_v58  ;;  %v8259_v26 = vpop.f32.mrb[31].mxu1 }
 0x2bd   :  { %v2858_v50 = vrot.slane %v2857_v37, 2  ;;  %v2864_v9 = vmax.f32 %v2862_v34, %v2863_v33  ;;  %v2871_v20 = vmax.f32 %v2869_v23, %v2870_v15  ;;  %v2878_v40 = vmax.f32 %v2876_v59, %v2877_v2 }
 0x2be   :  { %v3756_v35 = vrot.slane %v3755_v18, 1  ;;  %v3762_v61 = vmax.f32 %v3760_v43, %v3761_v6  ;;  %v3769_v29 = vmax.f32 %v3767_v0, %v3768_v49  ;;  %v3775_v36 = vrot.slane %v3774_v10, 2 }
 0x2bf   :  { %v2859_v19 = vmax.f32 %v2857_v37, %v2858_v50  ;;  %v2865_v63 = vrot.slane %v2864_v9, 2  ;;  %v2872_v4 = vrot.slane %v2871_v20, 2  ;;  %v2879_v15 = vrot.slane %v2878_v40, 2 }
 0x2c0   :  { %v3757_v55 = vmax.f32 %v3755_v18, %v3756_v35  ;;  %v3763_v58 = vrot.slane %v3762_v61, 1  ;;  %v3770_v24 = vrot.slane %v3769_v29, 1  ;;  %v3776_v34 = vmax.f32 %v3774_v10, %v3775_v36 }
 0x2c1   :  { %v2860_v23 = vrot.slane %v2859_v19, 1  ;;  %v2866_v38 = vmax.f32 %v2864_v9, %v2865_v63  ;;  %v2873_v33 = vmax.f32 %v2871_v20, %v2872_v4  ;;  %v1190_v50 = vcombine.high %v8238_v7, %v8238_v7 }
 0x2c2   :  { %v3764_v28 = vmax.f32 %v3762_v61, %v3763_v58  ;;  %v3771_v6 = vmax.f32 %v3769_v29, %v3770_v24  ;;  %v3777_v0 = vrot.slane %v3776_v34, 1  ;;  %v2880_v49 = vmax.f32 %v2878_v40, %v2879_v15 }
 0x2c3   :  { %v2861_v43 = vmax.f32 %v2859_v19, %v2860_v23  ;;  %v2867_v37 = vrot.slane %v2866_v38, 1  ;;  %v2874_v59 = vrot.slane %v2873_v33, 1  ;;  %v1197_v10 = vrot.slane %v8238_v7, %v7044_v47 }
 0x2c4   :  { %v8263_v2 = vmax.f32 %v3776_v34, %v3777_v0  ;;  %v4385_v18 = vsel %vm4175_vm4, %v3764_v28, %v3757_v55  ;;  %v1204_v20 = vrot.slane %v1190_v50, %v7044_v47  ;;  %v2881_v29 = vrot.slane %v2880_v49, 1 }
 0x2c5   :  { %v8270_v9 = vsel %vm4177_vm5, %v3771_v6, %v4385_v18  ;;  %v2868_v35 = vmax.f32 %v2866_v38, %v2867_v37  ;;  %v2875_v61 = vmax.f32 %v2873_v33, %v2874_v59  ;;  %v1205_v36 = vcombine.high %v1197_v10, %v1197_v10 }
 0x2c6   :  { %v1206_v19 = vcombine.high %v1204_v20, %v1204_v20  ;;  %v2799_v63 = vsel %vm2126_vm3, %v1197_v10, -inf  ;;  %v2813_v40 = vsel %vm2126_vm3, %v1204_v20, -inf  ;;  %v2882_v4 = vmax.f32 %v2880_v49, %v2881_v29 }
 0x2c7   :  { %v4273_v28 = vsel %vm4175_vm4, %v2868_v35, %v2861_v43  ;;  %v2800_v55 = vrot.slane %v2799_v63, 4  ;;  %v2814_v58 = vrot.slane %v2813_v40, 4  ;;  %v2806_v24 = vsel %vm2126_vm3, %v1205_v36, -inf }
 0x2c8   :  { %v4274_v7 = vsel %vm4177_vm5, %v2875_v61, %v4273_v28  ;;  %v2820_v34 = vsel %vm2126_vm3, %v1206_v19, -inf  ;;  %v710_v23 = vmax.f32 %v8226_v21, 0.0  ;;  %v2807_v33 = vrot.slane %v2806_v24, 4 }
 0x2c9   :  { %v2801_v38 = vmax.f32 %v2799_v63, %v2800_v55  ;;  %v2815_v15 = vmax.f32 %v2813_v40, %v2814_v58  ;;  %v2821_v6 = vrot.slane %v2820_v34, 4  ;;  %v681_v37 = vmax.f32 %v8230_v56, 0.0 }
 0x2ca   :  { %v1734_v0 = vcombine.high %v710_v23, %v710_v23  ;;  %v1741_v50 = vrot.slane %v710_v23, %v7044_v47  ;;  %v8282_v43 = vsel %vm4179_vm6, %v2882_v4, %v4274_v7  ;;  %v2808_v49 = vmax.f32 %v2806_v24, %v2807_v33 }
 0x2cb   :  { %v2802_v59 = vrot.slane %v2801_v38, 2  ;;  %v2816_v18 = vrot.slane %v2815_v15, 2  ;;  %v2822_v10 = vmax.f32 %v2820_v34, %v2821_v6  ;;  %v1241_v61 = vcombine.high %v681_v37, %v681_v37 }
 0x2cc   :  { %v1748_v20 = vrot.slane %v1734_v0, %v7044_v47  ;;  %v1749_v35 = vcombine.high %v1741_v50, %v1741_v50  ;;  %v3695_v21 = vsel %vm2126_vm3, %v1741_v50, -inf  ;;  %v2809_v36 = vrot.slane %v2808_v49, 2 }
 0x2cd   :  { %v2803_v29 = vmax.f32 %v2801_v38, %v2802_v59  ;;  %v2817_v19 = vmax.f32 %v2815_v15, %v2816_v18  ;;  %v2823_v63 = vrot.slane %v2822_v10, 2  ;;  %v3696_v28 = vrot.slane %v3695_v21, 4 }
 0x2ce   :  { %v1750_v40 = vcombine.high %v1748_v20, %v1748_v20  ;;  %v3702_v56 = vsel %vm2126_vm3, %v1749_v35, -inf  ;;  %v3709_v4 = vsel %vm2126_vm3, %v1748_v20, -inf  ;;  %v2810_v58 = vmax.f32 %v2808_v49, %v2809_v36 }
 0x2cf   :  { %v2804_v55 = vrot.slane %v2803_v29, 1  ;;  %v2818_v7 = vrot.slane %v2817_v19, 1  ;;  %v2824_v24 = vmax.f32 %v2822_v10, %v2823_v63  ;;  %v3697_v34 = vmax.f32 %v3695_v21, %v3696_v28 }
 0x2d0   :  { %v3703_v23 = vrot.slane %v3702_v56, 4  ;;  %v3710_v33 = vrot.slane %v3709_v4, 4  ;;  %v3716_v6 = vsel %vm2126_vm3, %v1750_v40, -inf  ;;  %v2811_v38 = vrot.slane %v2810_v58, 1 }
 0x2d1   :  { %v2805_v0 = vmax.f32 %v2803_v29, %v2804_v55  ;;  %v2819_v50 = vmax.f32 %v2817_v19, %v2818_v7  ;;  %v2825_v15 = vrot.slane %v2824_v24, 1  ;;  %v3698_v59 = vrot.slane %v3697_v34, 2 }
 0x2d2   :  { %v3704_v18 = vmax.f32 %v3702_v56, %v3703_v23  ;;  %v3711_v16 = vmax.f32 %v3709_v4, %v3710_v33  ;;  %v3717_v17 = vrot.slane %v3716_v6, 4  ;;  %v2812_v35 = vmax.f32 %v2810_v58, %v2811_v38 }
 0x2d3   :  { %v8289_v13 = vmax.f32 %v2824_v24, %v2825_v15  ;;  %v1248_v49 = vrot.slane %v681_v37, %v7044_v47  ;;  %v1255_v10 = vrot.slane %v1241_v61, %v7044_v47  ;;  %v3699_v20 = vmax.f32 %v3697_v34, %v3698_v59 }
 0x2d4   :  { %v3705_v21 = vrot.slane %v3704_v18, 2  ;;  %v3712_v36 = vrot.slane %v3711_v16, 2  ;;  %v3718_v63 = vmax.f32 %v3716_v6, %v3717_v17  ;;  %v4266_v29 = vsel %vm4175_vm4, %v2812_v35, %v2805_v0 }
 0x2d5   :  { %v1256_v40 = vcombine.high %v1248_v49, %v1248_v49  ;;  %v1257_v19 = vcombine.high %v1255_v10, %v1255_v10  ;;  %v2883_v28 = vsel %vm2126_vm3, %v1248_v49, -inf  ;;  %v8296_v56 = vsel %vm4177_vm5, %v2819_v50, %v4266_v29 }
 0x2d6   :  { %v3700_v4 = vrot.slane %v3699_v20, 1  ;;  %v3706_v55 = vmax.f32 %v3704_v18, %v3705_v21  ;;  %v3713_v58 = vmax.f32 %v3711_v16, %v3712_v36  ;;  %v3719_v7 = vrot.slane %v3718_v63, 2 }
 0x2d7   :  { %v2884_v37 = vrot.slane %v2883_v28, 4  ;;  %v2890_v61 = vsel %vm2126_vm3, %v1256_v40, -inf  ;;  %v2897_v24 = vsel %vm2126_vm3, %v1255_v10, -inf  ;;  %v2904_v15 = vsel %vm2126_vm3, %v1257_v19, -inf }
 0x2d8   :  { %v3701_v34 = vmax.f32 %v3699_v20, %v3700_v4  ;;  %v3707_v17 = vrot.slane %v3706_v55, 1  ;;  %v3714_v23 = vrot.slane %v3713_v58, 1  ;;  %v2891_v33 = vrot.slane %v2890_v61, 4 }
 0x2d9   :  { %v3720_v6 = vmax.f32 %v3718_v63, %v3719_v7  ;;  %v2885_v0 = vmax.f32 %v2883_v28, %v2884_v37  ;;  %v2898_v38 = vrot.slane %v2897_v24, 4  ;;  %v2905_v18 = vrot.slane %v2904_v15, 4 }
 0x2da   :  { %v3708_v50 = vmax.f32 %v3706_v55, %v3707_v17  ;;  %v3715_v59 = vmax.f32 %v3713_v58, %v3714_v23  ;;  %v2892_v35 = vmax.f32 %v2890_v61, %v2891_v33  ;;  %v635_v36 = vadd.f32 %v7972_v53, %v7874_v27 }
 0x2db   :  { %v3721_v16 = vrot.slane %v3720_v6, 1  ;;  %v2886_v49 = vrot.slane %v2885_v0, 2  ;;  %v2899_v21 = vmax.f32 %v2897_v24, %v2898_v38  ;;  %v2906_v29 = vmax.f32 %v2904_v15, %v2905_v18 }
 0x2dc   :  { %v4378_v10 = vsel %vm4175_vm4, %v3708_v50, %v3701_v34  ;;  %v2893_v20 = vrot.slane %v2892_v35, 2  ;;  %v8307_v63 = vsel %vm4179_vm6, %v8263_v2, %v8270_v9  ;;  %v713_v7 = vmax.f32 %v635_v36, 0.0 }
 0x2dd   :  { %v3722_v40 = vmax.f32 %v3720_v6, %v3721_v16  ;;  %v4379_v19 = vsel %vm4177_vm5, %v3715_v59, %v4378_v10  ;;  %v2887_v28 = vmax.f32 %v2885_v0, %v2886_v49  ;;  %v2900_v4 = vrot.slane %v2899_v21, 2 }
 0x2de   :  { %v2894_v55 = vmax.f32 %v2892_v35, %v2893_v20  ;;  %v2907_v58 = vrot.slane %v2906_v29, 2  ;;  %v9622_v27 = vcombine.low %v8089_v51, %v8092_v54  ;;  %v9624_v2 = vcombine.low %v8113_v1, %v8119_v60 }
 0x2df   :  { %v2888_v61 = vrot.slane %v2887_v28, 1  ;;  %v2901_v24 = vmax.f32 %v2899_v21, %v2900_v4  ;;  %v499_v34 = vadd.f32 %v7972_v53, %v7947_v45  ;;  %v1785_v33 = vcombine.high %v713_v7, %v713_v7 }
 0x2e0   :  { %v8314_v37 = vrot.slane %v9622_v27, %v8149_v41  ;;  %v8320_v9 = vrot.slane %v9624_v2, %v8149_v41  ;;  %v2895_v17 = vrot.slane %v2894_v55, 1  ;;  %v2908_v23 = vmax.f32 %v2906_v29, %v2907_v58 }
 0x2e1   :  { %v1792_v6 = vrot.slane %v713_v7, %v7044_v47  ;;  %v2889_v0 = vmax.f32 %v2887_v28, %v2888_v61  ;;  %v2902_v51 = vrot.slane %v2901_v24, 1  ;;  %v9626_v54 = vmov 0.0  }
 0x2e2   :  { %9623 = vst [vmem:[#allocation6_spill] sm:$0xff] %v8314_v37  ;;  %9625 = vst [vmem:[#allocation4_spill] sm:$0xff] %v8320_v9  ;;  %v4500_v38 = vcombine.high %v8314_v37, %v9626_v54  ;;  %v4566_v15 = vcombine.high %v8320_v9, %v9626_v54  ;;  %v2896_v50 = vmax.f32 %v2894_v55, %v2895_v17  ;;  %v2909_v1 = vrot.slane %v2908_v23, 1 }
 0x2e3   :  { %v1799_v60 = vrot.slane %v1785_v33, %v7044_v47  ;;  %v1800_v59 = vcombine.high %v1792_v6, %v1792_v6  ;;  %v8330_v35 = vmax.f32 %v2901_v24, %v2902_v51  ;;  %v4276_v45 = vsel %vm4181_vm7, %v2889_v0, %v8282_v43 }
 0x2e4   :  { %v3779_v18 = vsel %vm2126_vm3, %v1792_v6, -inf  ;;  %v6606_v16 = vpack.i.bf16 %v4566_v15, %v4500_v38  ;;  %v8335_v49 = vmax.f32 %v2908_v23, %v2909_v1  ;;  %v8338_v21 = vsel %vm4183_vm8, %v2896_v50, %v4276_v45 }
 0x2e5   :  { %9627 = vst [vmem:[#allocation9_spill] sm:$0xff] %v8330_v35  ;;  %9629 = vst [vmem:[#allocation5_spill] sm:$0xff] %v8338_v21  ;;  %v1801_v36 = vcombine.high %v1799_v60, %v1799_v60  ;;  %v3780_v10 = vrot.slane %v3779_v18, 4  ;;  %v3786_v20 = vsel %vm2126_vm3, %v1800_v59, -inf  ;;  %v3793_v29 = vsel %vm2126_vm3, %v1799_v60, -inf }
 0x2e6   :  { %9628 = vst [vmem:[#allocation11_spill] sm:$0xff] %v8335_v49  ;;  %6607 = vrot.lane.b32.xlu0 %v6606_v16, %s6880_s5  ;;  %v679_v28 = vmax.f32 %v499_v34, 0.0  ;;  %v8346_v43 = vsel %vm4179_vm6, %v8289_v13, %v8296_v56  ;;  %v3787_v55 = vrot.slane %v3786_v20, 4  ;;  %v3794_v58 = vrot.slane %v3793_v29, 4 }
 0x2e7   :  { %v3781_v4 = vmax.f32 %v3779_v18, %v3780_v10  ;;  %v3800_v7 = vsel %vm2126_vm3, %v1801_v36, -inf  ;;  %v627_v2 = vadd.f32 %v7972_v53, %v7954_v62  ;;  %v8353_v33 = vsel %vm4179_vm6, %v3722_v40, %v4379_v19 }
 0x2e8   :  { %v3801_v27 = vrot.slane %v3800_v7, 4  ;;  %v1207_v61 = vcombine.high %v679_v28, %v679_v28  ;;  %v1214_v24 = vrot.slane %v679_v28, %v7044_v47  ;;  %v3788_v23 = vmax.f32 %v3786_v20, %v3787_v55 }
 0x2e9   :  { %v3782_v17 = vrot.slane %v3781_v4, 2  ;;  %v3795_v34 = vmax.f32 %v3793_v29, %v3794_v58 }
 0x2ea   :  { %v3802_v13 = vmax.f32 %v3800_v7, %v3801_v27  ;;  %v1221_v56 = vrot.slane %v1207_v61, %v7044_v47  ;;  %v1222_v6 = vcombine.high %v1214_v24, %v1214_v24  ;;  %v2827_v0 = vsel %vm2126_vm3, %v1214_v24, -inf }
 0x2eb   :  { %v3783_v51 = vmax.f32 %v3781_v4, %v3782_v17  ;;  %v3789_v38 = vrot.slane %v3788_v23, 2  ;;  %v3796_v15 = vrot.slane %v3795_v34, 2  ;;  %v2828_v50 = vrot.slane %v2827_v0, 4 }
 0x2ec   :  { %v3803_v1 = vrot.slane %v3802_v13, 2  ;;  %v1223_v60 = vcombine.high %v1221_v56, %v1221_v56  ;;  %v2834_v62 = vsel %vm2126_vm3, %v1222_v6, -inf  ;;  %v2841_v59 = vsel %vm2126_vm3, %v1221_v56, -inf }
 0x2ed   :  { %v3784_v45 = vrot.slane %v3783_v51, 1  ;;  %v3790_v18 = vmax.f32 %v3788_v23, %v3789_v38  ;;  %v3797_v40 = vmax.f32 %v3795_v34, %v3796_v15  ;;  %v2829_v19 = vmax.f32 %v2827_v0, %v2828_v50 }
 0x2ee   :  { %v3804_v16 = vmax.f32 %v3802_v13, %v3803_v1  ;;  %v2835_v36 = vrot.slane %v2834_v62, 4  ;;  %v2842_v10 = vrot.slane %v2841_v59, 4  ;;  %v2848_v20 = vsel %vm2126_vm3, %v1223_v60, -inf }
 0x2ef   :  { %v3785_v29 = vmax.f32 %v3783_v51, %v3784_v45  ;;  %v3791_v28 = vrot.slane %v3790_v18, 1  ;;  %v3798_v4 = vrot.slane %v3797_v40, 1  ;;  %v2830_v55 = vrot.slane %v2829_v19, 2 }
 0x2f0   :  { %v3805_v58 = vrot.slane %v3804_v16, 1  ;;  %v2836_v7 = vmax.f32 %v2834_v62, %v2835_v36  ;;  %v2843_v27 = vmax.f32 %v2841_v59, %v2842_v10  ;;  %v2849_v61 = vrot.slane %v2848_v20, 4 }
 0x2f1   :  { %v3792_v24 = vmax.f32 %v3790_v18, %v3791_v28  ;;  %v8360_v17 = vmax.f32 %v3797_v40, %v3798_v4  ;;  %v4388_v23 = vsel %vm4181_vm7, %v3785_v29, %v8307_v63  ;;  %v2831_v34 = vmax.f32 %v2829_v19, %v2830_v55 }
 0x2f2   :  { %v8364_v13 = vmax.f32 %v3804_v16, %v3805_v58  ;;  %v2837_v56 = vrot.slane %v2836_v7, 2  ;;  %v2844_v6 = vrot.slane %v2843_v27, 2  ;;  %v2850_v0 = vmax.f32 %v2848_v20, %v2849_v61 }
 0x2f3   :  { %9630 = vst [vmem:[#allocation21_spill] sm:$0xff] %v8360_v17  ;;  %v8367_v51 = vsel %vm4183_vm8, %v3792_v24, %v4388_v23  ;;  %v2832_v38 = vrot.slane %v2831_v34, 1  ;;  %v711_v15 = vmax.f32 %v627_v2, 0.0  ;;  %v520_v50 = vadd.f32 %v7972_v53, %v7959_v32 }
 0x2f4   :  { %9631 = vst [vmem:[#allocation20_spill] sm:$0xff] %v8364_v13  ;;  %9632 = vst [vmem:[#allocation16_spill] sm:$0xff] %v8367_v51  ;;  %v2838_v1 = vmax.f32 %v2836_v7, %v2837_v56  ;;  %v2845_v60 = vmax.f32 %v2843_v27, %v2844_v6  ;;  %v2851_v62 = vrot.slane %v2850_v0, 2  ;;  %v648_v63 = vadd.f32 %v7972_v53, %v7961_v57 }
 0x2f5   :  { %v2833_v59 = vmax.f32 %v2831_v34, %v2832_v38  ;;  %v1751_v45 = vcombine.high %v711_v15, %v711_v15  ;;  %v1758_v18 = vrot.slane %v711_v15, %v7044_v47  ;;  %v684_v40 = vmax.f32 %v520_v50, 0.0 }
 0x2f6   :  { %v2839_v19 = vrot.slane %v2838_v1, 1  ;;  %v2846_v16 = vrot.slane %v2845_v60, 1  ;;  %v2852_v36 = vmax.f32 %v2850_v0, %v2851_v62  ;;  %v8374_v10 = vmax.f32 %v648_v63, 0.0 }
 0x2f7   :  { %v4269_v2 = vsel %vm4181_vm7, %v2833_v59, %v8346_v43  ;;  %v1765_v32 = vrot.slane %v1751_v45, %v7044_v47  ;;  %v1766_v20 = vcombine.high %v1758_v18, %v1758_v18  ;;  %v3723_v29 = vsel %vm2126_vm3, %v1758_v18, -inf }
 0x2f8   :  { %v2840_v28 = vmax.f32 %v2838_v1, %v2839_v19  ;;  %v8380_v57 = vmax.f32 %v2845_v60, %v2846_v16  ;;  %v2853_v53 = vrot.slane %v2852_v36, 1  ;;  %v3724_v4 = vrot.slane %v3723_v29, 4 }
 0x2f9   :  { %v1767_v55 = vcombine.high %v1765_v32, %v1765_v32  ;;  %v3730_v58 = vsel %vm2126_vm3, %v1766_v20, -inf  ;;  %v3737_v7 = vsel %vm2126_vm3, %v1765_v32, -inf  ;;  %v1292_v27 = vcombine.high %v684_v40, %v684_v40 }
 0x2fa   :  { %9633 = vst [vmem:[#allocation15_spill] sm:$0xff] %v8380_v57  ;;  %v8384_v61 = vmax.f32 %v2852_v36, %v2853_v53  ;;  %v8387_v43 = vsel %vm4183_vm8, %v2840_v28, %v4269_v2  ;;  %v3725_v24 = vmax.f32 %v3723_v29, %v3724_v4  ;;  %v3731_v23 = vrot.slane %v3730_v58, 4 }
 0x2fb   :  { %9635 = vst [vmem:[#allocation7_spill] sm:$0xff] %v8387_v43  ;;  %v3738_v34 = vrot.slane %v3737_v7, 4  ;;  %v3744_v56 = vsel %vm2126_vm3, %v1767_v55, -inf  ;;  %v1299_v6 = vrot.slane %v684_v40, %v7044_v47  ;;  %v1306_v0 = vrot.slane %v1292_v27, %v7044_v47 }
 0x2fc   :  { %9634 = vst [vmem:[#allocation2_spill] sm:$0xff] %v8384_v61  ;;  %v3726_v38 = vrot.slane %v3725_v24, 2  ;;  %v3732_v15 = vmax.f32 %v3730_v58, %v3731_v23  ;;  %v3745_v50 = vrot.slane %v3744_v56, 4  ;;  %v1836_v1 = vcombine.high %v8374_v10, %v8374_v10 }
 0x2fd   :  { %v3739_v60 = vmax.f32 %v3737_v7, %v3738_v34  ;;  %v1307_v62 = vcombine.high %v1299_v6, %v1299_v6  ;;  %v1308_v63 = vcombine.high %v1306_v0, %v1306_v0  ;;  %v2967_v59 = vsel %vm2126_vm3, %v1299_v6, -inf }
 0x2fe   :  { %v3727_v45 = vmax.f32 %v3725_v24, %v3726_v38  ;;  %v3733_v18 = vrot.slane %v3732_v15, 2  ;;  %v3746_v19 = vmax.f32 %v3744_v56, %v3745_v50  ;;  %v2968_v16 = vrot.slane %v2967_v59, 4 }
 0x2ff   :  { %v3740_v36 = vrot.slane %v3739_v60, 2  ;;  %v2974_v40 = vsel %vm2126_vm3, %v1307_v62, -inf  ;;  %v2981_v2 = vsel %vm2126_vm3, %v1306_v0, -inf  ;;  %v2988_v32 = vsel %vm2126_vm3, %v1308_v63, -inf }
 0x300   :  { %v3728_v20 = vrot.slane %v3727_v45, 1  ;;  %v3734_v29 = vmax.f32 %v3732_v15, %v3733_v18  ;;  %v3747_v28 = vrot.slane %v3746_v19, 2  ;;  %v2969_v53 = vmax.f32 %v2967_v59, %v2968_v16 }
 0x301   :  { %v3741_v4 = vmax.f32 %v3739_v60, %v3740_v36  ;;  %v2975_v55 = vrot.slane %v2974_v40, 4  ;;  %v2982_v58 = vrot.slane %v2981_v2, 4  ;;  %v2989_v7 = vrot.slane %v2988_v32, 4 }
 0x302   :  { %v3729_v27 = vmax.f32 %v3727_v45, %v3728_v20  ;;  %v3735_v24 = vrot.slane %v3734_v29, 1  ;;  %v3748_v23 = vmax.f32 %v3746_v19, %v3747_v28  ;;  %v2970_v34 = vrot.slane %v2969_v53, 2 }
 0x303   :  { %v3742_v56 = vrot.slane %v3741_v4, 1  ;;  %v2976_v6 = vmax.f32 %v2974_v40, %v2975_v55  ;;  %v2983_v38 = vmax.f32 %v2981_v2, %v2982_v58  ;;  %v2990_v50 = vmax.f32 %v2988_v32, %v2989_v7  ;;  %v9640_v55 = vld [vmem:[#allocation30_spill] sm:$0xff] }
 0x304   :  { %v3736_v62 = vmax.f32 %v3734_v29, %v3735_v24  ;;  %v3749_v0 = vrot.slane %v3748_v23, 1  ;;  %v4381_v63 = vsel %vm4181_vm7, %v3729_v27, %v8353_v33  ;;  %v2971_v15 = vmax.f32 %v2969_v53, %v2970_v34 }
 0x305   :  { %v8400_v18 = vmax.f32 %v3741_v4, %v3742_v56  ;;  %v2977_v60 = vrot.slane %v2976_v6, 2  ;;  %v2984_v59 = vrot.slane %v2983_v38, 2  ;;  %v2991_v16 = vrot.slane %v2990_v50, 2  ;;  %v9639_v4 = vld [vmem:[#allocation32_spill] sm:$0xff] }
 0x306   :  { %v8402_v36 = vmax.f32 %v3748_v23, %v3749_v0  ;;  %v8405_v45 = vsel %vm4183_vm8, %v3736_v62, %v4381_v63  ;;  %v2972_v19 = vrot.slane %v2971_v15, 1  ;;  %v1843_v40 = vrot.slane %v8374_v10, %v7044_v47 }
 0x307   :  { %9636 = vst [vmem:[#allocation22_spill] sm:$0xff] %v8400_v18  ;;  %9638 = vst [vmem:[#allocation23_spill] sm:$0xff] %v8405_v45  ;;  %v2978_v2 = vmax.f32 %v2976_v6, %v2977_v60  ;;  %v2985_v32 = vmax.f32 %v2983_v38, %v2984_v59  ;;  %v2992_v20 = vmax.f32 %v2990_v50, %v2991_v16  ;;  %v9641_v6 = vld [vmem:[#allocation31_spill] sm:$0xff]  ;;  %v9642_v59 = vld [vmem:[#allocation25_spill] sm:$0xff] }
 0x308   :  { %9637 = vst [vmem:[#allocation17_spill] sm:$0xff] %v8402_v36  ;;  %v1850_v33 = vrot.slane %v1836_v1, %v7044_v47  ;;  %v2973_v29 = vmax.f32 %v2971_v15, %v2972_v19  ;;  %v1851_v28 = vcombine.high %v1843_v40, %v1843_v40  ;;  %v3863_v53 = vsel %vm2126_vm3, %v1843_v40, -inf  ;;  %v9643_v16 = vld [vmem:[#allocation24_spill] sm:$0xff] }
 0x309   :  { %v4215_v58 = vsel %vm4185_vm9, %v9640_v55, %v9639_v4  ;;  %v2979_v7 = vrot.slane %v2978_v2, 1  ;;  %v2986_v27 = vrot.slane %v2985_v32, 1  ;;  %v2993_v24 = vrot.slane %v2992_v20, 1  ;;  %v9644_v4 = vld [vmem:[#allocation26_spill] sm:$0xff] }
 0x30a   :  { %v1852_v23 = vcombine.high %v1850_v33, %v1850_v33  ;;  %v3864_v34 = vrot.slane %v3863_v53, 4  ;;  %v3870_v10 = vsel %vm2126_vm3, %v1851_v28, -inf  ;;  %v3877_v56 = vsel %vm2126_vm3, %v1850_v33, -inf }
 0x30b   :  { %v8418_v1 = vsel %vm4187_vm10, %v9641_v6, %v4215_v58  ;;  %v2980_v38 = vmax.f32 %v2978_v2, %v2979_v7  ;;  %v2987_v50 = vmax.f32 %v2985_v32, %v2986_v27  ;;  %v8420_v62 = vmax.f32 %v2992_v20, %v2993_v24  ;;  %v9646_v58 = vld [vmem:[#allocation33_spill] sm:$0xff] }
 0x30c   :  { %v3871_v0 = vrot.slane %v3870_v10, 4  ;;  %v3865_v63 = vmax.f32 %v3863_v53, %v3864_v34  ;;  %v3878_v15 = vrot.slane %v3877_v56, 4  ;;  %v3884_v60 = vsel %vm2126_vm3, %v1852_v23, -inf  ;;  %v9645_v53 = vld [vmem:[#allocation35_spill] sm:$0xff]  ;;  %v9647_v23 = vld [vmem:[#allocation34_spill] sm:$0xff]  ;;  %v9648_v34 = vld [vmem:[#allocation29_spill] sm:$0xff] }
 0x30d   :  { %v4222_v19 = vsel %vm4185_vm9, %v9643_v16, %v9642_v59  ;;  %v4287_v40 = vsel %vm4175_vm4, %v2980_v38, %v2973_v29  ;;  %v3885_v28 = vrot.slane %v3884_v60, 4  ;;  %v4327_v7 = vsel %vm4185_vm9, %v9646_v58, %v9645_v53 }
 0x30e   :  { %v3872_v33 = vmax.f32 %v3870_v10, %v3871_v0  ;;  %v8429_v55 = vsel %vm4187_vm10, %v9644_v4, %v4222_v19  ;;  %v8432_v2 = vsel %vm4177_vm5, %v2987_v50, %v4287_v40  ;;  %v3866_v32 = vrot.slane %v3865_v63, 2  ;;  %v9649_v10 = vld [vmem:[#allocation27_spill] sm:$0xff]  ;;  %v9650_v50 = vld [vmem:[#allocation28_spill] sm:$0xff] }
 0x30f   :  { %v3879_v20 = vmax.f32 %v3877_v56, %v3878_v15  ;;  %v3886_v24 = vmax.f32 %v3884_v60, %v3885_v28  ;;  %v8439_v29 = vsel %vm4187_vm10, %v9647_v23, %v4327_v7  ;;  %v4334_v6 = vsel %vm4185_vm9, %v9649_v10, %v9648_v34 }
 0x310   :  { %v3873_v27 = vrot.slane %v3872_v33, 2  ;;  %v3867_v38 = vmax.f32 %v3865_v63, %v3866_v32  ;;  %v8446_v59 = vsel %vm4187_vm10, %v9650_v50, %v4334_v6  ;;  %v4570_v56 = vcombine.high %v8418_v1, %v9626_v54 }
 0x311   :  { %v3880_v0 = vrot.slane %v3879_v20, 2  ;;  %v3887_v16 = vrot.slane %v3886_v24, 2  ;;  %v4585_v60 = vcombine.high %v8429_v55, %v9626_v54  ;;  %v5098_v19 = vcombine.high %v8439_v29, %v9626_v54 }
 0x312   :  { %v3874_v15 = vmax.f32 %v3872_v33, %v3873_v27  ;;  %v3868_v40 = vrot.slane %v3867_v38, 1  ;;  %v8455_v63 = vrot.slane %v4570_v56, %v7044_v47  ;;  %v5113_v4 = vcombine.high %v8446_v59, %v9626_v54 }
 0x313   :  { %v3881_v28 = vmax.f32 %v3879_v20, %v3880_v0  ;;  %v3888_v53 = vmax.f32 %v3886_v24, %v3887_v16  ;;  %v8460_v58 = vrot.slane %v4585_v60, %v7044_v47  ;;  %v8463_v33 = vrot.slane %v5098_v19, %v7044_v47  ;;  %v8471_v20 = vld [vmem:[%s9500_s2] ss:$0 sm:$0xff] }
 0x314   :  { %9651 = vst [vmem:[#allocation18_spill] sm:$0xff] %v8455_v63  ;;  %v3875_v32 = vrot.slane %v3874_v15, 1  ;;  %v3869_v7 = vmax.f32 %v3867_v38, %v3868_v40  ;;  %v8466_v23 = vrot.slane %v5113_v4, %v7044_v47  ;;  %v512_v34 = vadd.f32 %v8471_v20, %v8060_v31 }
 0x315   :  { %v3882_v27 = vrot.slane %v3881_v28, 1  ;;  %v3889_v10 = vrot.slane %v3888_v53, 1  ;;  %v4617_v6 = vcombine.high %v8455_v63, %v8460_v58  ;;  %v640_v38 = vadd.f32 %v8471_v20, %v8068_v30 }
 0x316   :  { %v3876_v24 = vmax.f32 %v3874_v15, %v3875_v32  ;;  %v5145_v50 = vcombine.high %v8463_v33, %v8466_v23  ;;  %v682_v56 = vmax.f32 %v512_v34, 0.0  ;;  %v4996_v16 = vcombine.low %v8174_v12, %v8177_v44 }
 0x317   :  { %v3883_v0 = vmax.f32 %v3881_v28, %v3882_v27  ;;  %v8483_v60 = vmax.f32 %v3888_v53, %v3889_v10  ;;  %v8487_v15 = vrot.slane %v4617_v6, %v8149_v41  ;;  %v714_v19 = vmax.f32 %v640_v38, 0.0 }
 0x318   :  { %v4399_v31 = vsel %vm4175_vm4, %v3876_v24, %v3869_v7  ;;  %v8493_v30 = vrot.slane %v5145_v50, %v8149_v41  ;;  %v1258_v28 = vcombine.high %v682_v56, %v682_v56  ;;  %v1265_v4 = vrot.slane %v682_v56, %v7044_v47 }
 0x319   :  { %v8490_v40 = vsel %vm4177_vm5, %v3883_v0, %v4399_v31  ;;  %v1802_v32 = vcombine.high %v714_v19, %v714_v19  ;;  %v1809_v12 = vrot.slane %v714_v19, %v7044_v47  ;;  %v8498_v44 = vrot.slane %v4996_v16, %v8149_v41 }
 0x31a   :  { %v5062_v53 = vcombine.low %v8201_v5, %v8204_v11  ;;  %v6651_v7 = vpack.i.bf16 %v8493_v30, %v8487_v15  ;;  %v1272_v27 = vrot.slane %v1258_v28, %v7044_v47  ;;  %v1273_v34 = vcombine.high %v1265_v4, %v1265_v4 }
 0x31b   :  { %v2911_v24 = vsel %vm2126_vm3, %v1265_v4, -inf  ;;  %v1816_v6 = vrot.slane %v1802_v32, %v7044_v47  ;;  %v1817_v38 = vcombine.high %v1809_v12, %v1809_v12  ;;  %v3807_v0 = vsel %vm2126_vm3, %v1809_v12, -inf }
 0x31c   :  { %v2912_v10 = vrot.slane %v2911_v24, 4  ;;  %6652 = vrot.lane.b32.xlu1 %v6651_v7, %s6878_s30  ;;  %v1274_v50 = vcombine.high %v1272_v27, %v1272_v27  ;;  %v2918_v56 = vsel %vm2126_vm3, %v1273_v34, -inf  ;;  %v2925_v5 = vsel %vm2126_vm3, %v1272_v27, -inf }
 0x31d   :  { %v3808_v11 = vrot.slane %v3807_v0, 4  ;;  %v2919_v31 = vrot.slane %v2918_v56, 4  ;;  %v2926_v19 = vrot.slane %v2925_v5, 4  ;;  %v1818_v28 = vcombine.high %v1816_v6, %v1816_v6 }
 0x31e   :  { %v2913_v16 = vmax.f32 %v2911_v24, %v2912_v10  ;;  %v2932_v4 = vsel %vm2126_vm3, %v1274_v50, -inf  ;;  %v3814_v32 = vsel %vm2126_vm3, %v1817_v38, -inf  ;;  %v3821_v9 = vsel %vm2126_vm3, %v1816_v6, -inf }
 0x31f   :  { %v3809_v37 = vmax.f32 %v3807_v0, %v3808_v11  ;;  %v2920_v13 = vmax.f32 %v2918_v56, %v2919_v31  ;;  %v2927_v7 = vmax.f32 %v2925_v5, %v2926_v19  ;;  %v2933_v17 = vrot.slane %v2932_v4, 4 }
 0x320   :  { %v2914_v12 = vrot.slane %v2913_v16, 2  ;;  %v3815_v34 = vrot.slane %v3814_v32, 4  ;;  %v3822_v36 = vrot.slane %v3821_v9, 4  ;;  %v3828_v27 = vsel %vm2126_vm3, %v1818_v28, -inf }
 0x321   :  { %v3810_v51 = vrot.slane %v3809_v37, 2  ;;  %v2921_v10 = vrot.slane %v2920_v13, 2  ;;  %v2928_v18 = vrot.slane %v2927_v7, 2  ;;  %v2934_v45 = vmax.f32 %v2932_v4, %v2933_v17 }
 0x322   :  { %v2915_v24 = vmax.f32 %v2913_v16, %v2914_v12  ;;  %v3816_v50 = vmax.f32 %v3814_v32, %v3815_v34  ;;  %v3823_v0 = vmax.f32 %v3821_v9, %v3822_v36  ;;  %v3829_v11 = vrot.slane %v3828_v27, 4 }
 0x323   :  { %v3811_v49 = vmax.f32 %v3809_v37, %v3810_v51  ;;  %v2922_v35 = vmax.f32 %v2920_v13, %v2921_v10  ;;  %v2929_v6 = vmax.f32 %v2927_v7, %v2928_v18  ;;  %v2935_v21 = vrot.slane %v2934_v45, 2 }
 0x324   :  { %v2916_v38 = vrot.slane %v2915_v24, 1  ;;  %v3817_v5 = vrot.slane %v3816_v50, 2  ;;  %v3824_v31 = vrot.slane %v3823_v0, 2  ;;  %v3830_v19 = vmax.f32 %v3828_v27, %v3829_v11 }
 0x325   :  { %v3812_v56 = vrot.slane %v3811_v49, 1  ;;  %v2923_v57 = vrot.slane %v2922_v35, 1  ;;  %v2930_v43 = vrot.slane %v2929_v6, 1  ;;  %v2936_v28 = vmax.f32 %v2934_v45, %v2935_v21 }
 0x326   :  { %v2917_v61 = vmax.f32 %v2915_v24, %v2916_v38  ;;  %v3818_v12 = vmax.f32 %v3816_v50, %v3817_v5  ;;  %v3825_v63 = vmax.f32 %v3823_v0, %v3824_v31  ;;  %v3831_v17 = vrot.slane %v3830_v19, 2 }
 0x327   :  { %v3813_v16 = vmax.f32 %v3811_v49, %v3812_v56  ;;  %v2924_v37 = vmax.f32 %v2922_v35, %v2923_v57  ;;  %v2931_v51 = vmax.f32 %v2929_v6, %v2930_v43  ;;  %v2937_v9 = vrot.slane %v2936_v28, 1 }
 0x328   :  { %v5028_v13 = vcombine.high %v8498_v44, %v9626_v54  ;;  %v3819_v18 = vrot.slane %v3818_v12, 1  ;;  %v3826_v36 = vrot.slane %v3825_v63, 1  ;;  %v3832_v4 = vmax.f32 %v3830_v19, %v3831_v17 }
 0x329   :  { %v8518_v32 = vrot.slane %v5062_v53, %v8149_v41  ;;  %v2938_v7 = vmax.f32 %v2936_v28, %v2937_v9  ;;  %v4280_v34 = vsel %vm4175_vm4, %v2924_v37, %v2917_v61  ;;  %v523_v49 = vadd.f32 %v8471_v20, %v8197_v48 }
 0x32a   :  { %v8526_v35 = vsel %vm4179_vm6, %v8420_v62, %v8432_v2  ;;  %v4281_v21 = vsel %vm4177_vm5, %v2931_v51, %v4280_v34  ;;  %v3820_v57 = vmax.f32 %v3818_v12, %v3819_v18  ;;  %v3827_v43 = vmax.f32 %v3825_v63, %v3826_v36 }
 0x32b   :  { %v3833_v45 = vrot.slane %v3832_v4, 1  ;;  %v5094_v53 = vcombine.high %v8518_v32, %v9626_v54  ;;  %v685_v27 = vmax.f32 %v523_v49, 0.0  ;;  %v651_v61 = vadd.f32 %v8471_v20, %v8255_v3 }
 0x32c   :  { %v8536_v48 = vsel %vm4179_vm6, %v8483_v60, %v8490_v40  ;;  %v4392_v62 = vsel %vm4175_vm4, %v3820_v57, %v3813_v16  ;;  %v9652_v2 = vcombine.low %v8186_v8, %v8191_v39  ;;  %v5144_v10 = vcombine.low %v8463_v33, %v8466_v23 }
 0x32d   :  { %v8538_v24 = vmax.f32 %v3832_v4, %v3833_v45  ;;  %v8550_v3 = vsel %vm4177_vm5, %v3827_v43, %v4392_v62  ;;  %v6611_v50 = vpack.i.bf16 %v5094_v53, %v5028_v13  ;;  %v1309_v0 = vcombine.high %v685_v27, %v685_v27 }
 0x32e   :  { %v8545_v63 = vrot.slane %v9652_v2, %v8149_v41  ;;  %v1316_v60 = vrot.slane %v685_v27, %v7044_v47  ;;  %v717_v40 = vmax.f32 %v651_v61, 0.0  ;;  %v8556_v38 = vrot.slane %v5144_v10, %v8149_v41 }
 0x32f   :  { %v515_v8 = vadd.f32 %v8471_v20, %v8257_v42  ;;  %6612 = vrot.lane.b32.xlu0 %v6611_v50, %s6880_s5  ;;  %v1323_v39 = vrot.slane %v1309_v0, %v7044_v47  ;;  %v8564_v6 = vsel %vm4179_vm6, %v2938_v7, %v4281_v21 }
 0x330   :  { %v5096_v11 = vcombine.high %v8545_v63, %v9626_v54  ;;  %v1324_v33 = vcombine.high %v1316_v60, %v1316_v60  ;;  %v2995_v23 = vsel %vm2126_vm3, %v1316_v60, -inf  ;;  %v1853_v5 = vcombine.high %v717_v40, %v717_v40 }
 0x331   :  { %v2996_v56 = vrot.slane %v2995_v23, 4  ;;  %v1860_v31 = vrot.slane %v717_v40, %v7044_v47  ;;  %v5162_v19 = vcombine.high %v8556_v38, %v9626_v54  ;;  %v1325_v28 = vcombine.high %v1323_v39, %v1323_v39 }
 0x332   :  { %v3002_v42 = vsel %vm2126_vm3, %v1324_v33, -inf  ;;  %v3009_v16 = vsel %vm2126_vm3, %v1323_v39, -inf  ;;  %v683_v12 = vmax.f32 %v515_v8, 0.0  ;;  %v1867_v9 = vrot.slane %v1853_v5, %v7044_v47 }
 0x333   :  { %v2997_v17 = vmax.f32 %v2995_v23, %v2996_v56  ;;  %v3003_v37 = vrot.slane %v3002_v42, 4  ;;  %v3010_v51 = vrot.slane %v3009_v16, 4  ;;  %v3016_v13 = vsel %vm2126_vm3, %v1325_v28, -inf }
 0x334   :  { %v1868_v18 = vcombine.high %v1860_v31, %v1860_v31  ;;  %v3891_v36 = vsel %vm2126_vm3, %v1860_v31, -inf  ;;  %v6656_v4 = vpack.i.bf16 %v5162_v19, %v5096_v11  ;;  %v3017_v21 = vrot.slane %v3016_v13, 4 }
 0x335   :  { %v2998_v7 = vrot.slane %v2997_v17, 2  ;;  %v3004_v34 = vmax.f32 %v3002_v42, %v3003_v37  ;;  %v3011_v49 = vmax.f32 %v3009_v16, %v3010_v51  ;;  %v1869_v57 = vcombine.high %v1867_v9, %v1867_v9 }
 0x336   :  { %v3892_v43 = vrot.slane %v3891_v36, 4  ;;  %v3898_v45 = vsel %vm2126_vm3, %v1868_v18, -inf  ;;  %v3905_v53 = vsel %vm2126_vm3, %v1867_v9, -inf  ;;  %6657 = vrot.lane.b32.xlu1 %v6656_v4, %s6880_s5  ;;  %v3018_v2 = vmax.f32 %v3016_v13, %v3017_v21 }
 0x337   :  { %v2999_v27 = vmax.f32 %v2997_v17, %v2998_v7  ;;  %v3005_v61 = vrot.slane %v3004_v34, 2  ;;  %v3012_v62 = vrot.slane %v3011_v49, 2  ;;  %v3899_v50 = vrot.slane %v3898_v45, 4 }
 0x338   :  { %v3893_v10 = vmax.f32 %v3891_v36, %v3892_v43  ;;  %v3906_v0 = vrot.slane %v3905_v53, 4  ;;  %v3912_v60 = vsel %vm2126_vm3, %v1869_v57, -inf  ;;  %v3019_v39 = vrot.slane %v3018_v2, 2 }
 0x339   :  { %v3000_v40 = vrot.slane %v2999_v27, 1  ;;  %v3006_v11 = vmax.f32 %v3004_v34, %v3005_v61  ;;  %v3013_v8 = vmax.f32 %v3011_v49, %v3012_v62  ;;  %v3900_v23 = vmax.f32 %v3898_v45, %v3899_v50 }
 0x33a   :  { %v3894_v33 = vrot.slane %v3893_v10, 2  ;;  %v3907_v56 = vmax.f32 %v3905_v53, %v3906_v0  ;;  %v3913_v5 = vrot.slane %v3912_v60, 4  ;;  %v3020_v42 = vmax.f32 %v3018_v2, %v3019_v39 }
 0x33b   :  { %v3001_v31 = vmax.f32 %v2999_v27, %v3000_v40  ;;  %v3007_v19 = vrot.slane %v3006_v11, 1  ;;  %v3014_v28 = vrot.slane %v3013_v8, 1  ;;  %v3901_v17 = vrot.slane %v3900_v23, 2 }
 0x33c   :  { %v3895_v16 = vmax.f32 %v3893_v10, %v3894_v33  ;;  %v3908_v37 = vrot.slane %v3907_v56, 2  ;;  %v3914_v51 = vmax.f32 %v3912_v60, %v3913_v5  ;;  %v3021_v18 = vrot.slane %v3020_v42, 1 }
 0x33d   :  { %v8578_v9 = vmax.f32 %v3006_v11, %v3007_v19  ;;  %v8580_v13 = vmax.f32 %v3013_v8, %v3014_v28  ;;  %v8584_v36 = vsel %vm4181_vm7, %v3001_v31, %v8526_v35  ;;  %v3902_v7 = vmax.f32 %v3900_v23, %v3901_v17 }
 0x33e   :  { %v3896_v4 = vrot.slane %v3895_v16, 1  ;;  %v3909_v34 = vmax.f32 %v3907_v56, %v3908_v37  ;;  %v3915_v49 = vrot.slane %v3914_v51, 2  ;;  %v8586_v21 = vmax.f32 %v3020_v42, %v3021_v18 }
 0x33f   :  { %v1275_v57 = vcombine.high %v683_v12, %v683_v12  ;;  %v1282_v43 = vrot.slane %v683_v12, %v7044_v47  ;;  %v643_v45 = vadd.f32 %v8471_v20, %v8259_v26  ;;  %v3903_v27 = vrot.slane %v3902_v7, 1 }
 0x340   :  { %v3897_v53 = vmax.f32 %v3895_v16, %v3896_v4  ;;  %v3910_v61 = vrot.slane %v3909_v34, 1  ;;  %v3916_v62 = vmax.f32 %v3914_v51, %v3915_v49  ;;  %v6616_v4 = vpack.i.bf16 %v8180_v22, %v8183_v25 }
 0x341   :  { %v1289_v2 = vrot.slane %v1275_v57, %v7044_v47  ;;  %v1290_v35 = vcombine.high %v1282_v43, %v1282_v43  ;;  %v2939_v10 = vsel %vm2126_vm3, %v1282_v43, -inf  ;;  %v715_v50 = vmax.f32 %v643_v45, 0.0 }
 0x342   :  { %v8593_v0 = vmax.f32 %v3902_v7, %v3903_v27  ;;  %v8595_v60 = vmax.f32 %v3909_v34, %v3910_v61  ;;  %v3917_v40 = vrot.slane %v3916_v62, 1  ;;  %v8599_v12 = vsel %vm4181_vm7, %v3897_v53, %v8536_v48  ;;  %6617 = vrot.lane.b32.xlu0 %v6616_v4, %s6879_s4 }
 0x343   :  { %v1291_v26 = vcombine.high %v1289_v2, %v1289_v2  ;;  %v2940_v20 = vrot.slane %v2939_v10, 4  ;;  %v2946_v11 = vsel %vm2126_vm3, %v1290_v35, -inf  ;;  %v2953_v8 = vsel %vm2126_vm3, %v1289_v2, -inf }
 0x344   :  { %v8603_v39 = vmax.f32 %v3916_v62, %v3917_v40  ;;  %v2947_v33 = vrot.slane %v2946_v11, 4  ;;  %v2954_v23 = vrot.slane %v2953_v8, 4  ;;  %v1819_v56 = vcombine.high %v715_v50, %v715_v50 }
 0x345   :  { %v2941_v5 = vmax.f32 %v2939_v10, %v2940_v20  ;;  %v2960_v31 = vsel %vm2126_vm3, %v1291_v26, -inf  ;;  %v1826_v19 = vrot.slane %v715_v50, %v7044_v47  ;;  %v8610_v48 = vsel %vm4179_vm6, %v8538_v24, %v8550_v3 }
 0x346   :  { %v2948_v28 = vmax.f32 %v2946_v11, %v2947_v33  ;;  %v2955_v42 = vmax.f32 %v2953_v8, %v2954_v23  ;;  %v2961_v16 = vrot.slane %v2960_v31, 4  ;;  %v1833_v17 = vrot.slane %v1819_v56, %v7044_v47 }
 0x347   :  { %v2942_v37 = vrot.slane %v2941_v5, 2  ;;  %v1834_v51 = vcombine.high %v1826_v19, %v1826_v19  ;;  %v3835_v18 = vsel %vm2126_vm3, %v1826_v19, -inf }
 0x348   :  { %v2949_v7 = vrot.slane %v2948_v28, 2  ;;  %v2956_v34 = vrot.slane %v2955_v42, 2  ;;  %v2962_v49 = vmax.f32 %v2960_v31, %v2961_v16  ;;  %v1835_v57 = vcombine.high %v1833_v17, %v1833_v17 }
 0x349   :  { %v2943_v43 = vmax.f32 %v2941_v5, %v2942_v37  ;;  %v3836_v45 = vrot.slane %v3835_v18, 4  ;;  %v3842_v24 = vsel %vm2126_vm3, %v1834_v51, -inf  ;;  %v3849_v3 = vsel %vm2126_vm3, %v1833_v17, -inf }
 0x34a   :  { %v2950_v53 = vmax.f32 %v2948_v28, %v2949_v7  ;;  %v2957_v27 = vmax.f32 %v2955_v42, %v2956_v34  ;;  %v2963_v61 = vrot.slane %v2962_v49, 2  ;;  %v3843_v62 = vrot.slane %v3842_v24, 4 }
 0x34b   :  { %v2944_v2 = vrot.slane %v2943_v43, 1  ;;  %v3837_v35 = vmax.f32 %v3835_v18, %v3836_v45  ;;  %v3850_v10 = vrot.slane %v3849_v3, 4  ;;  %v3856_v22 = vsel %vm2126_vm3, %v1835_v57, -inf  ;;  %v9653_v45 = vld [vmem:[#allocation42_spill] sm:$0xff] }
 0x34c   :  { %v2951_v25 = vrot.slane %v2950_v53, 1  ;;  %v2958_v50 = vrot.slane %v2957_v27, 1  ;;  %v2964_v40 = vmax.f32 %v2962_v49, %v2963_v61  ;;  %v3844_v26 = vmax.f32 %v3842_v24, %v3843_v62  ;;  %v9654_v24 = vld [vmem:[#allocation40_spill] sm:$0xff]  ;;  %v9655_v61 = vld [vmem:[#allocation41_spill] sm:$0xff] }
 0x34d   :  { %v2945_v20 = vmax.f32 %v2943_v43, %v2944_v2  ;;  %v3838_v11 = vrot.slane %v3837_v35, 2  ;;  %v3851_v8 = vmax.f32 %v3849_v3, %v3850_v10  ;;  %v3857_v33 = vrot.slane %v3856_v22, 4  ;;  %v9656_v2 = vld [vmem:[#allocation43_spill] sm:$0xff]  ;;  %v9658_v10 = vld [vmem:[#allocation36_spill] sm:$0xff] }
 0x34e   :  { %v8620_v23 = vmax.f32 %v2950_v53, %v2951_v25  ;;  %v8622_v56 = vmax.f32 %v2957_v27, %v2958_v50  ;;  %v2965_v5 = vrot.slane %v2964_v40, 1  ;;  %v3845_v31 = vrot.slane %v3844_v26, 2 }
 0x34f   :  { %v8626_v19 = vsel %vm4181_vm7, %v2945_v20, %v8564_v6  ;;  %v3839_v28 = vmax.f32 %v3837_v35, %v3838_v11  ;;  %v3852_v42 = vrot.slane %v3851_v8, 2  ;;  %v3858_v16 = vmax.f32 %v3856_v22, %v3857_v33  ;;  %v9660_v11 = vld [vmem:[#allocation39_spill] sm:$0xff] }
 0x350   :  { %v8628_v17 = vmax.f32 %v2964_v40, %v2965_v5  ;;  %v3846_v37 = vmax.f32 %v3844_v26, %v3845_v31  ;;  %v4635_v51 = vcombine.high %v8487_v15, %v9626_v54  ;;  %v5163_v18 = vcombine.high %v8493_v30, %v9626_v54  ;;  %v9659_v26 = vld [vmem:[#allocation37_spill] sm:$0xff] }
 0x351   :  { %v3840_v4 = vrot.slane %v3839_v28, 1  ;;  %v3853_v7 = vmax.f32 %v3851_v8, %v3852_v42  ;;  %v3859_v34 = vrot.slane %v3858_v16, 2  ;;  %v5029_v49 = vcombine.high %v8216_v14, %v9626_v54 }
 0x352   :  { %v3847_v6 = vrot.slane %v3846_v37, 1  ;;  %v6661_v57 = vpack.i.bf16 %v5163_v18, %v4635_v51  ;;  %v5095_v43 = vcombine.high %v8233_v52, %v9626_v54  ;;  %v4228_v3 = vsel %vm4183_vm8, %v9654_v24, %v9653_v45  ;;  %v9657_v52 = vld [vmem:[#allocation38_spill] sm:$0xff]  ;;  %v9668_v24 = vld [vmem:[#allocation44_spill] sm:$0xff] }
 0x353   :  { %v3841_v53 = vmax.f32 %v3839_v28, %v3840_v4  ;;  %v3854_v15 = vrot.slane %v3853_v7, 1  ;;  %v3860_v27 = vmax.f32 %v3858_v16, %v3859_v34  ;;  %v4229_v30 = vsel %vm4185_vm9, %v9655_v61, %v4228_v3  ;;  %v9661_v16 = vld [vmem:[#allocation14_spill] sm:$0xff]  ;;  %v9665_v34 = vld [vmem:[#allocation48_spill] sm:$0xff] }
 0x354   :  { %v8643_v62 = vmax.f32 %v3846_v37, %v3847_v6  ;;  %6662 = vrot.lane.b32.xlu1 %v6661_v57, %s6879_s4  ;;  %v6621_v14 = vpack.i.bf16 %v5095_v43, %v5029_v49  ;;  %v8648_v35 = vsel %vm4187_vm10, %v9656_v2, %v4229_v30  ;;  %v4235_v22 = vsel %vm4183_vm8, %v9658_v10, %v9657_v52  ;;  %v9666_v43 = vld [vmem:[#allocation49_spill] sm:$0xff]  ;;  %v9667_v45 = vld [vmem:[#allocation46_spill] sm:$0xff]  ;;  %v9671_v10 = vld [vmem:[#allocation47_spill] sm:$0xff] }
 0x355   :  { %v8653_v25 = vmax.f32 %v3853_v7, %v3854_v15  ;;  %v3861_v50 = vrot.slane %v3860_v27, 1  ;;  %v8657_v40 = vsel %vm4181_vm7, %v3841_v53, %v8610_v48  ;;  %v4236_v20 = vsel %vm4185_vm9, %v9659_v26, %v4235_v22  ;;  %v9664_v7 = vld [vmem:[#allocation50_spill] sm:$0xff]  ;;  %v9670_v30 = vld [vmem:[#allocation45_spill] sm:$0xff] }
 0x356   :  { %6622 = vrot.lane.b32.xlu0 %v6621_v14, %s6879_s4  ;;  %v8664_v8 = vsel %vm4187_vm10, %v9660_v11, %v4236_v20  ;;  %v4577_v33 = vrot.slane %v8418_v1, %v7044_v47  ;;  %v4592_v5 = vrot.slane %v8429_v55, %v7044_v47  ;;  %v8672_v31 = vrot.slane %v8648_v35, %v7044_v47  ;;  %v9662_v1 = vld [vmem:[#allocation74_spill] sm:$0xff]  ;;  %v9663_v55 = vld [vmem:[#allocation75_spill] sm:$0xff] }
 0x357   :  { %v8674_v48 = vmax.f32 %v3860_v27, %v3861_v50  ;;  %v4658_v28 = vrot.slane %v8664_v8, %v7044_v47  ;;  %v4452_v42 = vrot.slane %v8122_v46, %v7044_v47  ;;  %v4467_v37 = vrot.slane %v9661_v16, %v7044_v47  ;;  %v9669_v27 = vld [vmem:[#allocation51_spill] sm:$0xff] }
 0x358   :  { %v4601_v51 = vcombine.high %v4577_v33, %v4592_v5  ;;  %v4518_v18 = vrot.slane %v9662_v1, %v7044_v47  ;;  %v4533_v4 = vrot.slane %v9663_v55, %v7044_v47  ;;  %v4340_v49 = vsel %vm4183_vm8, %v9665_v34, %v9664_v7 }
 0x359   :  { %v4667_v6 = vcombine.high %v8672_v31, %v4658_v28  ;;  %v4485_v57 = vcombine.high %v4452_v42, %v4467_v37  ;;  %v4341_v46 = vsel %vm4185_vm9, %v9666_v43, %v4340_v49  ;;  %v4347_v3 = vsel %vm4183_vm8, %v9668_v24, %v9667_v45 }
 0x35a   :  { %v4615_v53 = vrot.slane %v4601_v51, %v8149_v41  ;;  %v4551_v15 = vcombine.high %v4518_v18, %v4533_v4  ;;  %v4342_v61 = vsel %vm4187_vm10, %v9669_v27, %v4341_v46  ;;  %v4348_v14 = vsel %vm4185_vm9, %v9670_v30, %v4347_v3 }
 0x35b   :  { %v4681_v2 = vrot.slane %v4667_v6, %v8149_v41  ;;  %v4499_v52 = vrot.slane %v4485_v57, %v8149_v41  ;;  %v4349_v22 = vsel %vm4187_vm10, %v9671_v10, %v4348_v14  ;;  %v5105_v50 = vrot.slane %v8439_v29, %v7044_v47 }
 0x35c   :  { %v4565_v26 = vrot.slane %v4551_v15, %v8149_v41  ;;  %v5120_v20 = vrot.slane %v8446_v59, %v7044_v47  ;;  %v5171_v11 = vrot.slane %v4342_v61, %v7044_v47  ;;  %v5186_v16 = vrot.slane %v4349_v22, %v7044_v47 }
 0x35d   :  { %v6666_v51 = vpack.i.bf16 %v4681_v2, %v4615_v53  ;;  %v4484_v1 = vcombine.low %v4452_v42, %v4467_v37  ;;  %v4550_v55 = vcombine.low %v4518_v18, %v4533_v4  ;;  %v4503_v7 = vcombine.high %v4499_v52, %v9626_v54 }
 0x35e   :  { %v6626_v34 = vpack.i.bf16 %v4565_v26, %v4499_v52  ;;  %v5129_v49 = vcombine.high %v5105_v50, %v5120_v20  ;;  %v5195_v6 = vcombine.high %v5171_v11, %v5186_v16  ;;  %v5128_v57 = vcombine.low %v5105_v50, %v5120_v20 }
 0x35f   :  { %6667 = vrot.lane.b32.xlu1 %v6666_v51, %s6878_s30  ;;  %v8714_v29 = vrot.slane %v4484_v1, %v8149_v41  ;;  %v8717_v59 = vrot.slane %v4550_v55, %v8149_v41  ;;  %v5194_v43 = vcombine.low %v5171_v11, %v5186_v16  ;;  %v4569_v46 = vcombine.high %v4565_v26, %v9626_v54 }
 0x360   :  { %6627 = vrot.lane.b32.xlu0 %v6626_v34, %s6878_s30  ;;  %v5143_v42 = vrot.slane %v5129_v49, %v8149_v41  ;;  %v5209_v37 = vrot.slane %v5195_v6, %v8149_v41  ;;  %v8724_v18 = vrot.slane %v5128_v57, %v8149_v41  ;;  %v4633_v4 = vcombine.high %v4615_v53, %v9626_v54  ;;  %v9672_v6 = vld [vmem:[#allocation18_spill] sm:$0xff]  ;;  %v9673_v57 = vld [vmem:[#allocation60_spill] sm:$0xff] }
 0x361   :  { %v4502_v45 = vcombine.high %v8714_v29, %v9626_v54  ;;  %v4568_v24 = vcombine.high %v8717_v59, %v9626_v54  ;;  %v8732_v3 = vrot.slane %v5194_v43, %v8149_v41  ;;  %v6641_v15 = vpack.i.bf16 %v4569_v46, %v4503_v7  ;;  %v9674_v43 = vld [vmem:[#allocation58_spill] sm:$0xff] }
 0x362   :  { %v6671_v27 = vpack.i.bf16 %v5209_v37, %v5143_v42  ;;  %v5160_v30 = vcombine.high %v8724_v18, %v9626_v54  ;;  %v4699_v14 = vcombine.high %v4681_v2, %v9626_v54  ;;  %v4600_v52 = vcombine.low %v4577_v33, %v4592_v5 }
 0x363   :  { %v6636_v10 = vpack.i.bf16 %v4568_v24, %v4502_v45  ;;  %v5226_v53 = vcombine.high %v8732_v3, %v9626_v54  ;;  %v4666_v50 = vcombine.low %v8672_v31, %v4658_v28  ;;  %v5161_v26 = vcombine.high %v5143_v42, %v9626_v54  ;;  %v9675_v42 = vld [vmem:[#allocation54_spill] sm:$0xff]  ;;  %v9678_v45 = vld [vmem:[#allocation61_spill] sm:$0xff] }
 0x364   :  { %6672 = vrot.lane.b32.xlu1 %v6671_v27, %s6878_s30  ;;  %v6686_v20 = vpack.i.bf16 %v4699_v14, %v4633_v4  ;;  %v8743_v11 = vrot.slane %v4600_v52, %v8149_v41  ;;  %v5227_v16 = vcombine.high %v5209_v37, %v9626_v54  ;;  %v4636_v2 = vcombine.high %v8648_v35, %v9626_v54  ;;  %v9677_v4 = vld [vmem:[#allocation63_spill] sm:$0xff] }
 0x365   :  { %6637 = vrot.lane.b32.xlu0 %v6636_v10, %s6880_s5  ;;  %v6681_v33 = vpack.i.bf16 %v5226_v53, %v5160_v30  ;;  %v8750_v5 = vrot.slane %v4666_v50, %v8149_v41  ;;  %v4651_v31 = vcombine.high %v8664_v8, %v9626_v54  ;;  %v5164_v28 = vcombine.high %v4342_v61, %v9626_v54  ;;  %v9679_v10 = vld [vmem:[#allocation59_spill] sm:$0xff]  ;;  %v9680_v50 = vld [vmem:[#allocation53_spill] sm:$0xff] }
 0x366   :  { %v4632_v51 = vcombine.high %v8743_v11, %v9626_v54  ;;  %v6691_v1 = vpack.i.bf16 %v5227_v16, %v5161_v26  ;;  %v4650_v55 = vrot.slane %v4636_v2, %v7044_v47  ;;  %v5179_v7 = vcombine.high %v4349_v22, %v9626_v54  ;;  %v9676_v22 = vld [vmem:[#allocation52_spill] sm:$0xff]  ;;  %v9681_v16 = vld [vmem:[#allocation62_spill] sm:$0xff] }
 0x367   :  { %v4698_v35 = vcombine.high %v8750_v5, %v9626_v54  ;;  %v4665_v34 = vrot.slane %v4651_v31, %v7044_v47  ;;  %v5178_v49 = vrot.slane %v5164_v28, %v7044_v47  ;;  %v4616_v8 = vcombine.low %v9672_v6, %v8460_v58  ;;  %v9682_v28 = vld [vmem:[#allocation57_spill] sm:$0xff] }
 0x368   :  { %6682 = vrot.lane.b32.xlu1 %v6681_v33, %s6880_s5  ;;  %v5193_v61 = vrot.slane %v5179_v7, %v7044_v47  ;;  %v4243_v46 = vsel %vm4185_vm9, %v9674_v43, %v9673_v57  ;;  %v4250_v37 = vsel %vm4185_vm9, %v9676_v22, %v9675_v42  ;;  %v4355_v24 = vsel %vm4185_vm9, %v9678_v45, %v9677_v4 }
 0x369   :  { %6642 = vrot.lane.b32.xlu0 %v6641_v15, %s6879_s4  ;;  %v6676_v27 = vpack.i.bf16 %v4698_v35, %v4632_v51  ;;  %v4683_v58 = vcombine.high %v4650_v55, %v4665_v34  ;;  %v8778_v30 = vrot.slane %v4616_v8, %v8149_v41  ;;  %v4682_v14 = vcombine.low %v4650_v55, %v4665_v34  ;;  %v9683_v51 = vld [vmem:[#allocation55_spill] sm:$0xff]  ;;  %v9684_v35 = vld [vmem:[#allocation56_spill] sm:$0xff] }
 0x36a   :  { %v5211_v52 = vcombine.high %v5178_v49, %v5193_v61  ;;  %v4244_v53 = vsel %vm4187_vm10, %v9679_v10, %v4243_v46  ;;  %v4251_v26 = vsel %vm4187_vm10, %v9680_v50, %v4250_v37  ;;  %v8786_v2 = vsel %vm4187_vm10, %v9681_v16, %v4355_v24 }
 0x36b   :  { %v4697_v33 = vrot.slane %v4683_v58, %v8149_v41  ;;  %v4634_v15 = vcombine.high %v8778_v30, %v9626_v54  ;;  %v8792_v31 = vrot.slane %v4682_v14, %v8149_v41  ;;  %v4362_v55 = vsel %vm4185_vm9, %v9683_v51, %v9682_v28  ;;  %v9685_v58 = vld [vmem:[#allocation10_spill] sm:$0xff]  ;;  %v9686_v14 = vld [vmem:[#allocation8_spill] sm:$0xff] }
 0x36c   :  { %6687 = vrot.lane.b32.xlu1 %v6686_v20, %s6879_s4  ;;  %v5225_v7 = vrot.slane %v5211_v52, %v8149_v41  ;;  %v8801_v34 = vsel %vm4187_vm10, %v9684_v35, %v4362_v55  ;;  %v4702_v6 = vcombine.high %v4244_v53, %v9626_v54  ;;  %v4717_v8 = vcombine.high %v4251_v26, %v9626_v54  ;;  %v9689_v35 = vld [vmem:[#allocation71_spill] sm:$0xff] }
 0x36d   :  { %6677 = vrot.lane.b32.xlu0 %v6676_v27, %s6880_s5  ;;  %v4700_v57 = vcombine.high %v8792_v31, %v9626_v54  ;;  %v4701_v43 = vcombine.high %v4697_v33, %v9626_v54  ;;  %v5230_v20 = vcombine.high %v8786_v2, %v9626_v54  ;;  %v5245_v46 = vcombine.high %v8801_v34, %v9626_v54 }
 0x36e   :  { %v6696_v42 = vpack.i.bf16 %v5225_v7, %v4697_v33  ;;  %v5229_v22 = vcombine.high %v5225_v7, %v9626_v54  ;;  %v4716_v37 = vrot.slane %v4702_v6, %v7044_v47  ;;  %v4731_v4 = vrot.slane %v4717_v8, %v7044_v47  ;;  %v9688_v7 = vld [vmem:[#allocation73_spill] sm:$0xff] }
 0x36f   :  { %v6701_v45 = vpack.i.bf16 %v4700_v57, %v4634_v15  ;;  %v5244_v24 = vrot.slane %v5230_v20, %v7044_v47  ;;  %v5259_v27 = vrot.slane %v5245_v46, %v7044_v47  ;;  %v9687_v52 = vcombine.low %v9685_v58, %v9686_v14  ;;  %v9694_v46 = vld [vmem:[#allocation66_spill] sm:$0xff]  ;;  %v9696_v58 = vld [vmem:[#allocation65_spill] sm:$0xff] }
 0x370   :  { %6692 = vrot.lane.b32.xlu1 %v6691_v1, %s6879_s4  ;;  %v6706_v50 = vpack.i.bf16 %v5229_v22, %v4701_v43  ;;  %v4749_v16 = vcombine.high %v4716_v37, %v4731_v4  ;;  %v4748_v33 = vcombine.low %v4716_v37, %v4731_v4  ;;  %v5210_v28 = vcombine.low %v5178_v49, %v5193_v61  ;;  %v9692_v49 = vld [vmem:[#allocation72_spill] sm:$0xff] }
 0x371   :  { %v8822_v10 = vrot.slane %v9687_v52, %v8149_v41  ;;  %6697 = vrot.lane.b32.xlu0 %v6696_v42, %s6878_s30  ;;  %v5277_v51 = vcombine.high %v5244_v24, %v5259_v27  ;;  %v5276_v55 = vcombine.low %v5244_v24, %v5259_v27  ;;  %v4257_v6 = vsel %vm4185_vm9, %v9689_v35, %v9688_v7  ;;  %v9695_v42 = vld [vmem:[#allocation64_spill] sm:$0xff]  ;;  %v9698_v7 = vld [vmem:[#allocation15_spill] sm:$0xff] }
 0x372   :  { %v4763_v8 = vrot.slane %v4749_v16, %v8149_v41  ;;  %v8833_v57 = vrot.slane %v4748_v33, %v8149_v41  ;;  %v8836_v1 = vrot.slane %v5210_v28, %v8149_v41  ;;  %v8840_v61 = vsel %vm4187_vm10, %v9692_v49, %v4257_v6 }
 0x373   :  { %v5030_v15 = vcombine.high %v8822_v10, %v9626_v54  ;;  %v5291_v43 = vrot.slane %v5277_v51, %v8149_v41  ;;  %v8844_v20 = vrot.slane %v5276_v55, %v8149_v41  ;;  %v4264_v22 = vsel %vm4185_vm9, %v9695_v42, %v9694_v46  ;;  %v9697_v55 = vld [vmem:[#allocation7_spill] sm:$0xff]  ;;  %v9700_v42 = vld [vmem:[#allocation5_spill] sm:$0xff] }
 0x374   :  { %9690 = vst [vmem:[#allocation32_spill] sm:$0xff] %v8833_v57  ;;  %9691 = vst [vmem:[#allocation30_spill] sm:$0xff] %v8836_v1  ;;  %v4709_v37 = vrot.slane %v4244_v53, %v7044_v47  ;;  %6702 = vrot.lane.b32.xlu1 %v6701_v45, %s6880_s5  ;;  %v4766_v4 = vcombine.high %v8833_v57, %v9626_v54  ;;  %v4767_v24 = vcombine.high %v4763_v8, %v9626_v54  ;;  %v9717_v57 = vld [vmem:[#allocation68_spill] sm:$0xff] }
 0x375   :  { %9693 = vst [vmem:[#allocation31_spill] sm:$0xff] %v8844_v20  ;;  %v5228_v27 = vcombine.high %v8836_v1, %v9626_v54  ;;  %v8858_v14 = vsel %vm4187_vm10, %v9696_v58, %v4264_v22  ;;  %6707 = vrot.lane.b32.xlu0 %v6706_v50, %s6879_s4  ;;  %v6711_v52 = vpack.i.bf16 %v5291_v43, %v4763_v8  ;;  %v9701_v22 = vld [vmem:[#allocation9_spill] sm:$0xff]  ;;  %v9715_v1 = vld [vmem:[#allocation19_spill] sm:$0xff] }
 0x376   :  { %v5295_v16 = vcombine.high %v5291_v43, %v9626_v54  ;;  %v5294_v53 = vcombine.high %v8844_v20, %v9626_v54  ;;  %v4724_v45 = vrot.slane %v4251_v26, %v7044_v47  ;;  %v6716_v33 = vpack.i.bf16 %v5030_v15, %v4766_v4  ;;  %v9699_v26 = vld [vmem:[#allocation2_spill] sm:$0xff] }
 0x377   :  { %v4775_v28 = vrot.slane %v8840_v61, %v7044_v47  ;;  %v4790_v51 = vrot.slane %v8858_v14, %v7044_v47  ;;  %v4271_v35 = vsel %vm4185_vm9, %v9698_v7, %v9697_v55  ;;  %v4278_v4 = vsel %vm4185_vm9, %v9701_v22, %v9700_v42  ;;  %v9708_v55 = vld [vmem:[#allocation16_spill] sm:$0xff]  ;;  %v9709_v7 = vld [vmem:[#allocation21_spill] sm:$0xff] }
 0x378   :  { %v6726_v50 = vpack.i.bf16 %v5295_v16, %v4767_v24  ;;  %v6721_v6 = vpack.i.bf16 %v5294_v53, %v5228_v27  ;;  %v4732_v8 = vcombine.low %v4709_v37, %v4724_v45  ;;  %v4733_v49 = vcombine.high %v4709_v37, %v4724_v45  ;;  %6712 = vrot.lane.b32.xlu1 %v6711_v52, %s6878_s30  ;;  %v9703_v37 = vld [vmem:[#allocation11_spill] sm:$0xff]  ;;  %v9705_v16 = vld [vmem:[#allocation22_spill] sm:$0xff] }
 0x379   :  { %v4798_v43 = vcombine.low %v4775_v28, %v4790_v51  ;;  %v4799_v46 = vcombine.high %v4775_v28, %v4790_v51  ;;  %v8875_v15 = vsel %vm4187_vm10, %v9699_v26, %v4271_v35  ;;  %6717 = vrot.lane.b32.xlu0 %v6716_v33, %s6880_s5  ;;  %v8889_v27 = vsel %vm4187_vm10, %v9703_v37, %v4278_v4  ;;  %v9704_v52 = vld [vmem:[#allocation23_spill] sm:$0xff]  ;;  %v9707_v33 = vld [vmem:[#allocation17_spill] sm:$0xff] }
 0x37a   :  { %v8882_v58 = vrot.slane %v4732_v8, %v8149_v41  ;;  %v8885_v24 = vrot.slane %v4733_v49, %v8149_v41  ;;  %v4383_v53 = vsel %vm4185_vm9, %v9705_v16, %v9704_v52  ;;  %v4390_v35 = vsel %vm4185_vm9, %v9709_v7, %v9708_v55  ;;  %v9710_v49 = vld [vmem:[#allocation20_spill] sm:$0xff]  ;;  %v9713_v55 = vld [vmem:[#allocation69_spill] sm:$0xff]  ;;  %v9714_v7 = vld [vmem:[#allocation67_spill] sm:$0xff] }
 0x37b   :  { %v8895_v45 = vrot.slane %v4798_v43, %v8149_v41  ;;  %v8898_v28 = vrot.slane %v4799_v46, %v8149_v41  ;;  %v8902_v51 = vsel %vm4187_vm10, %v9707_v33, %v4383_v53  ;;  %v8911_v26 = vsel %vm4187_vm10, %v9710_v49, %v4390_v35  ;;  %v9711_v53 = vld [vmem:[#allocation13_spill] sm:$0xff] }
 0x37c   :  { %9702 = vst [vmem:[#allocation25_spill] sm:$0xff] %v8882_v58  ;;  %v4764_v8 = vcombine.high %v8882_v58, %v9626_v54  ;;  %v4834_v43 = vcombine.high %v8875_v15, %v9626_v54  ;;  %v4849_v46 = vcombine.high %v8889_v27, %v9626_v54  ;;  %6727 = vrot.lane.b32.xlu1 %v6726_v50, %s6879_s4  ;;  %v9712_v50 = vld [vmem:[#allocation3_spill] sm:$0xff] }
 0x37d   :  { %9706 = vst [vmem:[#allocation24_spill] sm:$0xff] %v8895_v45  ;;  %v4830_v42 = vcombine.high %v8895_v45, %v9626_v54  ;;  %v6731_v22 = vpack.i.bf16 %v8898_v28, %v8885_v24  ;;  %v5362_v4 = vcombine.high %v8902_v51, %v9626_v54  ;;  %v5377_v37 = vcombine.high %v8911_v26, %v9626_v54 }
 0x37e   :  { %6722 = vrot.lane.b32.xlu0 %v6721_v6, %s6880_s5  ;;  %v4848_v52 = vrot.slane %v4834_v43, %v7044_v47  ;;  %v4863_v16 = vrot.slane %v4849_v46, %v7044_v47  ;;  %v4368_v33 = vsel %vm4183_vm8, %v9712_v50, %v9711_v53  ;;  %v4375_v35 = vsel %vm4183_vm8, %v9714_v7, %v9713_v55  ;;  %v9716_v43 = vld [vmem:[#allocation12_spill] sm:$0xff] }
 0x37f   :  { %v6741_v49 = vpack.i.bf16 %v4830_v42, %v4764_v8  ;;  %v5376_v58 = vrot.slane %v5362_v4, %v7044_v47  ;;  %v5391_v45 = vrot.slane %v5377_v37, %v7044_v47  ;;  %v4369_v6 = vsel %vm4185_vm9, %v9715_v1, %v4368_v33  ;;  %v9718_v42 = vld [vmem:[#allocation70_spill] sm:$0xff] }
 0x380   :  { %v4881_v20 = vcombine.high %v4848_v52, %v4863_v16  ;;  %v8941_v46 = vsel %vm4187_vm10, %v9716_v43, %v4369_v6  ;;  %v4376_v53 = vsel %vm4185_vm9, %v9717_v57, %v4375_v35  ;;  %v5237_v50 = vrot.slane %v8786_v2, %v7044_v47 }
 0x381   :  { %6742 = vrot.lane.b32.xlu1 %v6741_v49, %s6880_s5  ;;  %v5409_v8 = vcombine.high %v5376_v58, %v5391_v45  ;;  %v8950_v4 = vsel %vm4187_vm10, %v9718_v42, %v4376_v53  ;;  %v5252_v1 = vrot.slane %v8801_v34, %v7044_v47  ;;  %v5303_v37 = vrot.slane %v8941_v46, %v7044_v47 }
 0x382   :  { %6732 = vrot.lane.b32.xlu0 %v6731_v22, %s6878_s30  ;;  %v8958_v57 = vrot.slane %v4881_v20, %v8149_v41  ;;  %v5318_v2 = vrot.slane %v8950_v4, %v7044_v47  ;;  %v4880_v33 = vcombine.low %v4848_v52, %v4863_v16  ;;  %v5408_v55 = vcombine.low %v5376_v58, %v5391_v45 }
 0x383   :  { %v8963_v7 = vrot.slane %v5409_v8, %v8149_v41  ;;  %v5261_v35 = vcombine.high %v5237_v50, %v5252_v1  ;;  %v5260_v49 = vcombine.low %v5237_v50, %v5252_v1  ;;  %v4284_v34 = vsel %vm4183_vm8, %v8620_v23, %v8626_v19 }
 0x384   :  { %v5327_v6 = vcombine.high %v5303_v37, %v5318_v2  ;;  %v8969_v22 = vrot.slane %v4880_v33, %v8149_v41  ;;  %v8972_v20 = vrot.slane %v5408_v55, %v8149_v41  ;;  %v5326_v43 = vcombine.low %v5303_v37, %v5318_v2 }
 0x385   :  { %v6776_v58 = vpack.i.bf16 %v8963_v7, %v8958_v57  ;;  %v5275_v45 = vrot.slane %v5261_v35, %v8149_v41  ;;  %v8978_v52 = vrot.slane %v5260_v49, %v8149_v41  ;;  %v4285_v16 = vsel %vm4185_vm9, %v8622_v56, %v4284_v34 }
 0x386   :  { %v5341_v23 = vrot.slane %v5327_v6, %v8149_v41  ;;  %v4898_v19 = vcombine.high %v8969_v22, %v9626_v54  ;;  %v5426_v53 = vcombine.high %v8972_v20, %v9626_v54  ;;  %v8988_v50 = vrot.slane %v5326_v43, %v8149_v41 }
 0x387   :  { %6777 = vrot.lane.b32.xlu1 %v6776_v58, %s6878_s30  ;;  %v5292_v8 = vcombine.high %v8978_v52, %v9626_v54  ;;  %v4286_v42 = vsel %vm4187_vm10, %v8628_v17, %v4285_v16  ;;  %v4291_v56 = vsel %vm4183_vm8, %v8578_v9, %v8584_v36  ;;  %v4841_v1 = vrot.slane %v8875_v15, %v7044_v47 }
 0x388   :  { %v6736_v37 = vpack.i.bf16 %v5341_v23, %v5275_v45  ;;  %v6781_v2 = vpack.i.bf16 %v5426_v53, %v4898_v19  ;;  %v5358_v33 = vcombine.high %v8988_v50, %v9626_v54  ;;  %v4292_v55 = vsel %vm4185_vm9, %v8580_v13, %v4291_v56 }
 0x389   :  { %v4293_v35 = vsel %vm4187_vm10, %v8586_v21, %v4292_v55  ;;  %v4856_v17 = vrot.slane %v8889_v27, %v7044_v47  ;;  %v9009_v49 = vcombine.high %v4286_v42, %v9626_v54  ;;  %v4907_v9 = vrot.slane %v4286_v42, %v7044_v47 }
 0x38a   :  { %6737 = vrot.lane.b32.xlu0 %v6736_v37, %s6878_s30  ;;  %v6746_v36 = vpack.i.bf16 %v5358_v33, %v5292_v8  ;;  %v9014_v15 = vcombine.high %v4293_v35, %v9626_v54  ;;  %v4922_v34 = vrot.slane %v4293_v35, %v7044_v47  ;;  %v4765_v13 = vcombine.high %v8885_v24, %v9626_v54 }
 0x38b   :  { %6782 = vrot.lane.b32.xlu1 %v6781_v2, %s6880_s5  ;;  %v4865_v21 = vcombine.high %v4841_v1, %v4856_v17  ;;  %v4831_v27 = vcombine.high %v8898_v28, %v9626_v54  ;;  %v4396_v6 = vsel %vm4183_vm8, %v8643_v62, %v8657_v40  ;;  %v4403_v43 = vsel %vm4183_vm8, %v8593_v0, %v8599_v12 }
 0x38c   :  { %v4931_v58 = vcombine.high %v4907_v9, %v4922_v34  ;;  %v4397_v16 = vsel %vm4185_vm9, %v8653_v25, %v4396_v6  ;;  %v4404_v24 = vsel %vm4185_vm9, %v8595_v60, %v4403_v43  ;;  %v5369_v19 = vrot.slane %v8902_v51, %v7044_v47 }
 0x38d   :  { %v4879_v28 = vrot.slane %v4865_v21, %v8149_v41  ;;  %v6751_v53 = vpack.i.bf16 %v4831_v27, %v4765_v13  ;;  %v4398_v62 = vsel %vm4187_vm10, %v8674_v48, %v4397_v16  ;;  %v4405_v40 = vsel %vm4187_vm10, %v8603_v39, %v4404_v24 }
 0x38e   :  { %6747 = vrot.lane.b32.xlu0 %v6746_v36, %s6880_s5  ;;  %v4945_v0 = vrot.slane %v4931_v58, %v8149_v41  ;;  %v5384_v12 = vrot.slane %v8911_v26, %v7044_v47  ;;  %v5428_v60 = vcombine.high %v4398_v62, %v9626_v54  ;;  %v5435_v25 = vrot.slane %v4398_v62, %v7044_v47 }
 0x38f   :  { %v5443_v51 = vcombine.high %v4405_v40, %v9626_v54  ;;  %v5450_v8 = vrot.slane %v4405_v40, %v7044_v47  ;;  %v5293_v48 = vcombine.high %v5275_v45, %v9626_v54  ;;  %v5359_v42 = vcombine.high %v5341_v23, %v9626_v54 }
 0x390   :  { %v6786_v39 = vpack.i.bf16 %v4945_v0, %v4879_v28  ;;  %v5393_v56 = vcombine.high %v5369_v19, %v5384_v12  ;;  %v4864_v37 = vcombine.low %v4841_v1, %v4856_v17  ;;  %v4930_v2 = vcombine.low %v4907_v9, %v4922_v34 }
 0x391   :  { %v5459_v33 = vcombine.high %v5435_v25, %v5450_v8  ;;  %v6756_v55 = vpack.i.bf16 %v5359_v42, %v5293_v48  ;;  %v4768_v26 = vcombine.high %v8840_v61, %v9626_v54  ;;  %v4783_v35 = vcombine.high %v8858_v14, %v9626_v54 }
 0x392   :  { %6787 = vrot.lane.b32.xlu1 %v6786_v39, %s6878_s30  ;;  %6752 = vrot.lane.b32.xlu0 %v6751_v53, %s6879_s4  ;;  %v5407_v45 = vrot.slane %v5393_v56, %v8149_v41  ;;  %v9057_v23 = vrot.slane %v4864_v37, %v8149_v41  ;;  %v9060_v1 = vrot.slane %v4930_v2, %v8149_v41 }
 0x393   :  { %v5473_v17 = vrot.slane %v5459_v33, %v8149_v41  ;;  %v4782_v9 = vrot.slane %v4768_v26, %v7044_v47  ;;  %v4797_v61 = vrot.slane %v4783_v35, %v7044_v47  ;;  %v5296_v14 = vcombine.high %v8941_v46, %v9626_v54 }
 0x394   :  { %v4896_v36 = vcombine.high %v9057_v23, %v9626_v54  ;;  %v4962_v34 = vcombine.high %v9060_v1, %v9626_v54  ;;  %v5311_v13 = vcombine.high %v8950_v4, %v9626_v54  ;;  %v5392_v21 = vcombine.low %v5369_v19, %v5384_v12  ;;  %v9086_v12 = vpop.permute.xlu1 %6632 }
 0x395   :  { %v6791_v27 = vpack.i.bf16 %v5473_v17, %v5407_v45  ;;  %v4815_v6 = vcombine.high %v4782_v9, %v4797_v61  ;;  %v5310_v43 = vrot.slane %v5296_v14, %v7044_v47  ;;  %v5458_v58 = vcombine.low %v5435_v25, %v5450_v8 }
 0x396   :  { %6757 = vrot.lane.b32.xlu0 %v6756_v55, %s6879_s4  ;;  %v6796_v16 = vpack.i.bf16 %v4962_v34, %v4896_v36  ;;  %v5325_v46 = vrot.slane %v5311_v13, %v7044_v47  ;;  %v9077_v24 = vrot.slane %v5392_v21, %v8149_v41  ;;  %v4814_v53 = vcombine.low %v4782_v9, %v4797_v61 }
 0x397   :  { %6792 = vrot.lane.b32.xlu1 %v6791_v27, %s6878_s30  ;;  %v4829_v62 = vrot.slane %v4815_v6, %v8149_v41  ;;  %v9082_v4 = vrot.slane %v5458_v58, %v8149_v41  ;;  %v4897_v19 = vcombine.high %v4879_v28, %v9626_v54  ;;  %v4963_v40 = vcombine.high %v4945_v0, %v9626_v54 }
 0x398   :  { %v5343_v25 = vcombine.high %v5310_v43, %v5325_v46  ;;  %v5424_v8 = vcombine.high %v9077_v24, %v9626_v54  ;;  %v9091_v48 = vrot.slane %v4814_v53, %v8149_v41  ;;  %v5342_v42 = vcombine.low %v5310_v43, %v5325_v46 }
 0x399   :  { %v5490_v39 = vcombine.high %v9082_v4, %v9626_v54  ;;  %v6806_v56 = vpack.i.bf16 %v4963_v40, %v4897_v19  ;;  %v4833_v37 = vcombine.high %v4829_v62, %v9626_v54  ;;  %v5425_v28 = vcombine.high %v5407_v45, %v9626_v54 }
 0x39a   :  { %v5357_v0 = vrot.slane %v5343_v25, %v8149_v41  ;;  %v4832_v2 = vcombine.high %v9091_v48, %v9626_v54  ;;  %v9101_v33 = vrot.slane %v5342_v42, %v8149_v41  ;;  %v5491_v55 = vcombine.high %v5473_v17, %v9626_v54 }
 0x39b   :  { %6797 = vrot.lane.b32.xlu1 %v6796_v16, %s6880_s5  ;;  %v6801_v26 = vpack.i.bf16 %v5490_v39, %v5424_v8  ;;  %v4914_v35 = vrot.slane %v9009_v49, %v7044_v47  ;;  %v4929_v9 = vrot.slane %v9014_v15, %v7044_v47  ;;  %v5442_v45 = vrot.slane %v5428_v60, %v7044_v47  ;;  %v9116_v49 = vpop.permute.xlu1 %6647  ;;  %v6598_v8 = vpop.permute.xlu0 %6597 }
 0x39c   :  { %v6761_v61 = vpack.i.bf16 %v5357_v0, %v4829_v62  ;;  %v5360_v14 = vcombine.high %v9101_v33, %v9626_v54  ;;  %v5361_v36 = vcombine.high %v5357_v0, %v9626_v54  ;;  %v6811_v34 = vpack.i.bf16 %v5491_v55, %v5425_v28 }
 0x39d   :  { %v4946_v13 = vcombine.low %v4914_v35, %v4929_v9  ;;  %v5457_v17 = vrot.slane %v5443_v51, %v7044_v47  ;;  %v4947_v21 = vcombine.high %v4914_v35, %v4929_v9  ;;  %v4899_v27 = vcombine.high %v8958_v57, %v9626_v54 }
 0x39e   :  { %6762 = vrot.lane.b32.xlu0 %v6761_v61, %s6878_s30  ;;  %v6771_v15 = vpack.i.bf16 %v5361_v36, %v4833_v37  ;;  %v5427_v60 = vcombine.high %v8963_v7, %v9626_v54  ;;  %v6766_v16 = vpack.i.bf16 %v5360_v14, %v4832_v2  ;;  %v6635_v0 = vunpack.i.h.bf16 %v9086_v12 }
 0x39f   :  { %6802 = vrot.lane.b32.xlu1 %v6801_v26, %s6880_s5  ;;  %v5474_v6 = vcombine.low %v5442_v45, %v5457_v17  ;;  %v4961_v43 = vrot.slane %v4947_v21, %v8149_v41  ;;  %v5475_v58 = vcombine.high %v5442_v45, %v5457_v17  ;;  %v9124_v47 = vrot.slane %v4946_v13, %v8149_v41  ;;  %v9134_v19 = vpop.permute.xlu1 %6652  ;;  %v9719_v13 = vld [vmem:[#allocation4_spill] sm:$0xff]  ;;  %v9720_v17 = vld [vmem:[#allocation6_spill] sm:$0xff] }
 0x3a0   :  { %v6826_v51 = vpack.i.bf16 %v5427_v60, %v4899_v27  ;;  %v6650_v2 = vunpack.i.h.bf16 %v9116_v49  ;;  %v6600_v21 = vunpack.i.h.bf16 %v6598_v8  ;;  %v6599_v27 = vunpack.i.l.bf16 %v6598_v8 }
 0x3a1   :  { %v9127_v57 = vrot.slane %v5474_v6, %v8149_v41  ;;  %v5489_v46 = vrot.slane %v5475_v58, %v8149_v41  ;;  %v4965_v53 = vcombine.high %v4961_v43, %v9626_v54  ;;  %v4964_v40 = vcombine.high %v9124_v47, %v9626_v54 }
 0x3a2   :  { %6767 = vrot.lane.b32.xlu0 %v6766_v16, %s6880_s5 }
 0x3a3   :  { %6807 = vrot.lane.b32.xlu1 %v6806_v56, %s6879_s4  ;;  %v6816_v7 = vpack.i.bf16 %v5489_v46, %v4961_v43  ;;  %v5493_v62 = vcombine.high %v5489_v46, %v9626_v54  ;;  %v5492_v25 = vcombine.high %v9127_v57, %v9626_v54  ;;  %v6603_v56 = vpop.permute.xlu0 %6602  ;;  %v6655_v54 = vunpack.i.h.bf16 %v9134_v19 }
 0x3a5   :  { %v6831_v42 = vpack.i.bf16 %v5493_v62, %v4965_v53  ;;  %v6821_v41 = vpack.i.bf16 %v5492_v25, %v4964_v40 }
 0x3a6   :  { %6772 = vrot.lane.b32.xlu0 %v6771_v15, %s6879_s4 }
 0x3a7   :  { %6812 = vrot.lane.b32.xlu1 %v6811_v34, %s6879_s4  ;;  %v6608_v61 = vpop.permute.xlu0 %6607 }
 0x3a8   :  { %v6658_v39 = vpop.permute.xlu1 %6657  ;;  %v6610_v36 = vunpack.i.h.bf16 %v6608_v61  ;;  %v6609_v34 = vunpack.i.l.bf16 %v6608_v61 }
 0x3a9   :  { %v6660_v37 = vunpack.i.h.bf16 %v6658_v39  ;;  %v6659_v28 = vunpack.i.l.bf16 %v6658_v39  ;;  %v6605_v39 = vunpack.i.h.bf16 %v6603_v56 }
 0x3aa   :  { %6822 = vrot.lane.b32.xlu0 %v6821_v41, %s6880_s5 }
 0x3ab   :  { %6817 = vrot.lane.b32.xlu1 %v6816_v7, %s6878_s30  ;;  %v5939_v55 = vsel %vm5878_vm11, %v8556_v38, %v6660_v37  ;;  %v5938_v26 = vsel %vm5878_vm11, %v8545_v63, %v6659_v28  ;;  %v6613_v14 = vpop.permute.xlu0 %6612  ;;  %v5880_v38 = vsel %vm5878_vm11, %v9719_v13, %v6610_v36  ;;  %v5879_v63 = vsel %vm5878_vm11, %v9720_v17, %v6609_v34 }
 0x3ac   :  { %v5954_v35 = vsel %vm5895_vm13, %v5938_v26, %v6635_v0  ;;  %v5955_v9 = vsel %vm5895_vm13, %v5939_v55, %v6655_v54  ;;  %v5896_v43 = vsel %vm5895_vm13, %v5879_v63, %v6599_v27  ;;  %v5897_v58 = vsel %vm5895_vm13, %v5880_v38, %v6600_v21 }
 0x3ad   :  { %v5970_v45 = vsel %vm5912_vm12, %v5954_v35, %v6650_v2  ;;  %v6615_v53 = vunpack.i.h.bf16 %v6613_v14  ;;  %v6614_v7 = vunpack.i.l.bf16 %v6613_v14  ;;  %v6604_v37 = vunpack.i.l.bf16 %v6603_v56 }
 0x3ae   :  { %6827 = vrot.lane.b32.xlu0 %v6826_v51, %s6879_s4  ;;  %v6111_v46 = vsel %vm5977_vm14, %v5970_v45, -inf }
 0x3af   :  { %6832 = vrot.lane.b32.xlu1 %v6831_v42, %s6879_s4  ;;  %v6112_v62 = vrot.slane %v6111_v46, 4  ;;  %v5888_v25 = vsel %vm5878_vm11, %v8518_v32, %v6615_v53  ;;  %v5887_v8 = vsel %vm5878_vm11, %v8498_v44, %v6614_v7 }
 0x3b0   :  { %v5904_v35 = vsel %vm5895_vm13, %v5887_v8, %v6604_v37  ;;  %v5905_v32 = vsel %vm5895_vm13, %v5888_v25, %v6605_v39 }
 0x3b1   :  { %v6113_v42 = vmax.f32 %v6111_v46, %v6112_v62 }
 0x3b3   :  { %v6114_v45 = vrot.slane %v6113_v42, 2 }
 0x3b4   :  { %v6618_v15 = vpop.permute.xlu0 %6617 }
 0x3b5   :  { %v6620_v60 = vunpack.i.h.bf16 %v6618_v15  ;;  %v6619_v6 = vunpack.i.l.bf16 %v6618_v15  ;;  %v6115_v34 = vmax.f32 %v6113_v42, %v6114_v45 }
 0x3b7   :  { %v5913_v16 = vsel %vm5912_vm12, %v5896_v43, %v6619_v6  ;;  %v5914_v51 = vsel %vm5912_vm12, %v5897_v58, %v6620_v60  ;;  %v6116_v15 = vrot.slane %v6115_v34, 1 }
 0x3b8   :  { %v5978_v55 = vsel %vm5977_vm14, %v5913_v16, -inf  ;;  %v5992_v26 = vsel %vm5977_vm14, %v5914_v51, -inf }
 0x3b9   :  { %v5979_v14 = vrot.slane %v5978_v55, 4  ;;  %v5993_v36 = vrot.slane %v5992_v26, 4  ;;  %v6117_v46 = vmax.f32 %v6115_v34, %v6116_v15 }
 0x3bb   :  { %v5980_v38 = vmax.f32 %v5978_v55, %v5979_v14  ;;  %v5994_v17 = vmax.f32 %v5992_v26, %v5993_v36 }
 0x3bd   :  { %v5981_v6 = vrot.slane %v5980_v38, 2  ;;  %v5995_v43 = vrot.slane %v5994_v17, 2 }
 0x3bf   :  { %v5982_v8 = vmax.f32 %v5980_v38, %v5981_v6  ;;  %v9183_v42 = vmax.f32 %v5994_v17, %v5995_v43 }
 0x3c1   :  { %v5997_v14 = vrot.slane %v9183_v42, 1 }
 0x3c6   :  { %v9165_v40 = vpop.permute.xlu1 %6662 }
 0x3c7   :  { %v6665_v41 = vunpack.i.h.bf16 %v9165_v40 }
 0x3c8   :  { %v6623_v28 = vpop.permute.xlu0 %6622 }
 0x3c9   :  { %v5971_v0 = vsel %vm5912_vm12, %v5955_v9, %v6665_v41  ;;  %v6625_v54 = vunpack.i.h.bf16 %v6623_v28  ;;  %v6624_v2 = vunpack.i.l.bf16 %v6623_v28 }
 0x3ca   :  { %v6125_v51 = vsel %vm5977_vm14, %v5971_v0, -inf }
 0x3cb   :  { %v5921_v44 = vsel %vm5912_vm12, %v5904_v35, %v6624_v2  ;;  %v5922_v61 = vsel %vm5912_vm12, %v5905_v32, %v6625_v54  ;;  %v6126_v39 = vrot.slane %v6125_v51, 4  ;;  %v6634_v35 = vunpack.i.l.bf16 %v9086_v12 }
 0x3cc   :  { %v6104_v56 = vsel %vm5977_vm14, %v5922_v61, -inf  ;;  %v6090_v0 = vsel %vm5977_vm14, %v5921_v44, -inf  ;;  %v6654_v32 = vunpack.i.l.bf16 %v9134_v19 }
 0x3cd   :  { %v6105_v9 = vrot.slane %v6104_v56, 4  ;;  %v9199_v36 = vmax.f32 %v6125_v51, %v6126_v39 }
 0x3cf   :  { %v6106_v13 = vmax.f32 %v6104_v56, %v6105_v9  ;;  %v5983_v56 = vrot.slane %v5982_v8, 1  ;;  %v6091_v9 = vrot.slane %v6090_v0, 4 }
 0x3d1   :  { %v6107_v63 = vrot.slane %v6106_v13, 2  ;;  %v6668_v21 = vpop.permute.xlu1 %6667 }
 0x3d2   :  { %v6628_v27 = vpop.permute.xlu0 %6627  ;;  %v6670_v38 = vunpack.i.h.bf16 %v6668_v21  ;;  %v6669_v51 = vunpack.i.l.bf16 %v6668_v21 }
 0x3d3   :  { %v6108_v60 = vmax.f32 %v6106_v13, %v6107_v63  ;;  %v6630_v2 = vunpack.i.h.bf16 %v6628_v27  ;;  %v6629_v55 = vunpack.i.l.bf16 %v6628_v27 }
 0x3d5   :  { %v6109_v58 = vrot.slane %v6108_v60, 1 }
 0x3d6   :  { %v9180_v16 = vpop.permute.xlu1 %6672 }
 0x3d7   :  { %v6110_v53 = vmax.f32 %v6108_v60, %v6109_v58  ;;  %v6638_v7 = vpop.permute.xlu0 %6637 }
 0x3d8   :  { %v6640_v62 = vunpack.i.h.bf16 %v6638_v7  ;;  %v6639_v25 = vunpack.i.l.bf16 %v6638_v7 }
 0x3d9   :  { %v9185_v41 = vpack.c.bf16 %v6117_v46, %v6110_v53  ;;  %v6674_v46 = vunpack.i.l.bf16 %v9180_v16 }
 0x3da   :  { %v5930_v37 = vsel %vm5878_vm11, %v8717_v59, %v6640_v62  ;;  %v5929_v28 = vsel %vm5878_vm11, %v8714_v29, %v6639_v25  ;;  %v9191_v54 = vpop.permute.xlu1 %6682 }
 0x3db   :  { %v6643_v26 = vpop.permute.xlu0 %6642  ;;  %v5945_v59 = vsel %vm5895_vm13, %v5929_v28, %v6629_v55  ;;  %v5946_v29 = vsel %vm5895_vm13, %v5930_v37, %v6630_v2  ;;  %v6684_v17 = vunpack.i.l.bf16 %v9191_v54 }
 0x3dc   :  { %v6645_v45 = vunpack.i.h.bf16 %v6643_v26  ;;  %v6644_v61 = vunpack.i.l.bf16 %v6643_v26 }
 0x3dd   :  { %v5889_v2 = vsel %vm5878_vm11, %v8724_v18, %v6684_v17 }
 0x3de   :  { %v5961_v44 = vsel %vm5912_vm12, %v5945_v59, %v6644_v61  ;;  %v5962_v34 = vsel %vm5912_vm12, %v5946_v29, %v6645_v45  ;;  %v6688_v13 = vpop.permute.xlu1 %6687 }
 0x3df   :  { %v5985_v63 = vsel %vm5977_vm14, %v5961_v44, -inf  ;;  %v5999_v27 = vsel %vm5977_vm14, %v5962_v34, -inf  ;;  %v6678_v15 = vpop.permute.xlu0 %6677  ;;  %v6690_v53 = vunpack.i.h.bf16 %v6688_v13  ;;  %v6689_v7 = vunpack.i.l.bf16 %v6688_v13 }
 0x3e0   :  { %v5986_v60 = vrot.slane %v5985_v63, 4  ;;  %v6000_v6 = vrot.slane %v5999_v27, 4  ;;  %v6680_v43 = vunpack.i.h.bf16 %v6678_v15  ;;  %v6679_v58 = vunpack.i.l.bf16 %v6678_v15 }
 0x3e1   :  { %v6092_v44 = vmax.f32 %v6090_v0, %v6091_v9  ;;  %v6664_v13 = vunpack.i.l.bf16 %v9165_v40  ;;  %v5984_v15 = vmax.f32 %v5982_v8, %v5983_v56  ;;  %v6128_v0 = vrot.slane %v9199_v36, 2 }
 0x3e2   :  { %v5987_v62 = vmax.f32 %v5985_v63, %v5986_v60  ;;  %v6001_v25 = vmax.f32 %v5999_v27, %v6000_v6  ;;  %v5882_v39 = vsel %vm5878_vm11, %v8750_v5, %v6680_v43  ;;  %v5881_v37 = vsel %vm5878_vm11, %v8743_v11, %v6679_v58  ;;  %v6693_v28 = vpop.permute.xlu1 %6692 }
 0x3e3   :  { %v5899_v55 = vsel %vm5895_vm13, %v5882_v39, %v6670_v38  ;;  %v5898_v21 = vsel %vm5895_vm13, %v5881_v37, %v6669_v51  ;;  %v6694_v26 = vunpack.i.l.bf16 %v6693_v28  ;;  %v9215_v45 = vpop.permute.xlu0 %6697  ;;  %v6685_v11 = vunpack.i.h.bf16 %v9191_v54 }
 0x3e4   :  { %v5988_v61 = vrot.slane %v5987_v62, 2  ;;  %v6002_v59 = vrot.slane %v6001_v25, 2  ;;  %v5916_v29 = vsel %vm5912_vm12, %v5899_v55, %v6690_v53  ;;  %v5915_v5 = vsel %vm5912_vm12, %v5898_v21, %v6689_v7 }
 0x3e5   :  { %v6020_v34 = vsel %vm5977_vm14, %v5916_v29, -inf  ;;  %v6006_v18 = vsel %vm5977_vm14, %v5915_v5, -inf  ;;  %v5906_v63 = vsel %vm5895_vm13, %v5889_v2, %v6674_v46  ;;  %v5998_v54 = vmax.f32 %v9183_v42, %v5997_v14 }
 0x3e6   :  { %v5989_v38 = vmax.f32 %v5987_v62, %v5988_v61  ;;  %v6003_v17 = vmax.f32 %v6001_v25, %v6002_v59  ;;  %v6703_v27 = vpop.permute.xlu1 %6702  ;;  %v6021_v60 = vrot.slane %v6020_v34, 4  ;;  %v6007_v6 = vrot.slane %v6006_v18, 4 }
 0x3e7   :  { %v5923_v43 = vsel %vm5912_vm12, %v5906_v63, %v6694_v26  ;;  %v9225_v58 = vpop.permute.xlu0 %6707  ;;  %v6093_v53 = vrot.slane %v6092_v44, 2  ;;  %v5890_v40 = vsel %vm5878_vm11, %v8732_v3, %v6685_v11  ;;  %v6695_v7 = vunpack.i.h.bf16 %v6693_v28 }
 0x3e8   :  { %v5990_v9 = vrot.slane %v5989_v38, 1  ;;  %v6004_v51 = vrot.slane %v6003_v17, 1  ;;  %v6704_v46 = vunpack.i.l.bf16 %v6703_v27  ;;  %v6675_v8 = vunpack.i.h.bf16 %v9180_v16 }
 0x3e9   :  { %v6118_v25 = vsel %vm5977_vm14, %v5923_v43, -inf  ;;  %v6022_v37 = vmax.f32 %v6020_v34, %v6021_v60  ;;  %v6008_v42 = vmax.f32 %v6006_v18, %v6007_v6  ;;  %v6705_v14 = vunpack.i.h.bf16 %v6703_v27 }
 0x3ea   :  { %v5991_v56 = vmax.f32 %v5989_v38, %v5990_v9  ;;  %v6005_v62 = vmax.f32 %v6003_v17, %v6004_v51  ;;  %v9233_v39 = vpop.permute.xlu1 %6712  ;;  %v5931_v2 = vsel %vm5878_vm11, %v8778_v30, %v6704_v46  ;;  %v9238_v21 = vmax.f32 %v9199_v36, %v6128_v0 }
 0x3eb   :  { %v6718_v55 = vpop.permute.xlu0 %6717  ;;  %v5907_v16 = vsel %vm5895_vm13, %v5890_v40, %v6675_v8  ;;  %v9241_v26 = vmax.f32 %v6092_v44, %v6093_v53  ;;  %v6119_v59 = vrot.slane %v6118_v25, 4  ;;  %v5947_v29 = vsel %vm5895_vm13, %v5931_v2, %v6654_v32 }
 0x3ec   :  { %v6467_v3 = vpack.c.bf16 %v5991_v56, %v5984_v15  ;;  %v6468_v28 = vpack.c.bf16 %v6005_v62, %v5998_v54  ;;  %v5924_v61 = vsel %vm5912_vm12, %v5907_v16, %v6695_v7  ;;  %v6023_v36 = vrot.slane %v6022_v37, 2 }
 0x3ed   :  { %v6009_v38 = vrot.slane %v6008_v42, 2  ;;  %v6699_v17 = vunpack.i.l.bf16 %v9215_v45  ;;  %v5932_v44 = vsel %vm5878_vm11, %v8792_v31, %v6705_v14  ;;  %v5963_v32 = vsel %vm5912_vm12, %v5947_v29, %v6664_v13 }
 0x3ee   :  { %v6314_v5 = vunpack.c.l.b16 %v6467_v3  ;;  %v6315_v11 = vunpack.c.h.b16 %v6467_v3  ;;  %v6316_v30 = vunpack.c.l.b16 %v6468_v28  ;;  %v6317_v34 = vunpack.c.h.b16 %v6468_v28  ;;  %v9247_v18 = vpop.permute.xlu1 %6727 }
 0x3ef   :  { %v6709_v15 = vunpack.i.l.bf16 %v9225_v58  ;;  %v6649_v60 = vunpack.i.l.bf16 %v9116_v49  ;;  %v6130_v6 = vrot.slane %v9238_v21, 1  ;;  %v6120_v43 = vmax.f32 %v6118_v25, %v6119_v59 }
 0x3f0   :  { %v6723_v63 = vpop.permute.xlu0 %6722  ;;  %v9253_v27 = vsel %vm4175_vm4, %v6316_v30, %v6314_v5  ;;  %v9256_v19 = vsel %vm4175_vm4, %v6317_v34, %v6315_v11  ;;  %v6013_v54 = vsel %vm5977_vm14, %v5963_v32, -inf  ;;  %v6095_v31 = vrot.slane %v9241_v26, 1 }
 0x3f1   :  { %v6132_v0 = vsel %vm5977_vm14, %v5924_v61, -inf  ;;  %v6014_v9 = vrot.slane %v6013_v54, 4  ;;  %v5948_v51 = vsel %vm5895_vm13, %v5932_v44, %v6699_v17  ;;  %v6024_v40 = vmax.f32 %v6022_v37, %v6023_v36  ;;  %v9722_v36 = vld [vmem:[#allocation31_spill] sm:$0xff] }
 0x3f2   :  { %v6010_v13 = vmax.f32 %v6008_v42, %v6009_v38  ;;  %v6700_v7 = vunpack.i.h.bf16 %v9215_v45  ;;  %v5964_v49 = vsel %vm5912_vm12, %v5948_v51, %v6709_v15  ;;  %v6720_v56 = vunpack.i.h.bf16 %v6718_v55  ;;  %v9721_v45 = vld [vmem:[#allocation32_spill] sm:$0xff] }
 0x3f3   :  { %v9266_v53 = vpop.permute.xlu1 %6742  ;;  %v6015_v46 = vmax.f32 %v6013_v54, %v6014_v9  ;;  %v6027_v8 = vsel %vm5977_vm14, %v5964_v49, -inf  ;;  %v6719_v62 = vunpack.i.l.bf16 %v6718_v55  ;;  %v6121_v25 = vrot.slane %v6120_v43, 2 }
 0x3f4   :  { %v6028_v14 = vrot.slane %v6027_v8, 4  ;;  %v6714_v2 = vunpack.i.l.bf16 %v9233_v39  ;;  %v6729_v3 = vunpack.i.l.bf16 %v9247_v18  ;;  %v9273_v28 = vpop.permute.xlu0 %6732  ;;  %v5937_v37 = vsel %vm5878_vm11, %v8822_v10, %v6720_v56 }
 0x3f5   :  { %v6016_v16 = vrot.slane %v6015_v46, 2  ;;  %v5933_v42 = vsel %vm5878_vm11, %v9721_v45, %v6719_v62  ;;  %v6725_v61 = vunpack.i.h.bf16 %v6723_v63  ;;  %v6011_v59 = vrot.slane %v6010_v13, 1 }
 0x3f6   :  { %v6029_v29 = vmax.f32 %v6027_v8, %v6028_v14  ;;  %v6715_v55 = vunpack.i.h.bf16 %v9233_v39  ;;  %v5953_v5 = vsel %vm5895_vm13, %v5937_v37, %v6634_v35  ;;  %v5949_v34 = vsel %vm5895_vm13, %v5933_v42, %v6714_v2  ;;  %v9723_v37 = vld [vmem:[#allocation30_spill] sm:$0xff] }
 0x3f7   :  { %v6017_v11 = vmax.f32 %v6015_v46, %v6016_v16  ;;  %v5969_v30 = vsel %vm5912_vm12, %v5953_v5, %v6649_v60  ;;  %v5941_v10 = vsel %vm5878_vm11, %v9722_v36, %v6725_v61  ;;  %v5965_v32 = vsel %vm5912_vm12, %v5949_v34, %v6729_v3 }
 0x3f8   :  { %v6030_v17 = vrot.slane %v6029_v29, 2  ;;  %v6097_v44 = vsel %vm5977_vm14, %v5969_v30, -inf  ;;  %v5957_v39 = vsel %vm5895_vm13, %v5941_v10, %v6715_v55  ;;  %v6025_v12 = vrot.slane %v6024_v40, 1 }
 0x3f9   :  { %v9287_v38 = vpop.permute.xlu1 %6777  ;;  %v6018_v15 = vrot.slane %v6017_v11, 1  ;;  %v6098_v35 = vrot.slane %v6097_v44, 4  ;;  %v6730_v54 = vunpack.i.h.bf16 %v9247_v18  ;;  %v6012_v60 = vmax.f32 %v6010_v13, %v6011_v59 }
 0x3fa   :  { %v6133_v9 = vrot.slane %v6132_v0, 4  ;;  %v6031_v51 = vmax.f32 %v6029_v29, %v6030_v17  ;;  %v6724_v49 = vunpack.i.l.bf16 %v6723_v63  ;;  %v6041_v62 = vsel %vm5977_vm14, %v5965_v32, -inf }
 0x3fb   :  { %v6019_v8 = vmax.f32 %v6017_v11, %v6018_v15  ;;  %v6099_v56 = vmax.f32 %v6097_v44, %v6098_v35  ;;  %v5973_v14 = vsel %vm5912_vm12, %v5957_v39, %v6730_v54  ;;  %v6122_v2 = vmax.f32 %v6120_v43, %v6121_v25 }
 0x3fc   :  { %v9293_v46 = vpop.permute.xlu0 %6737  ;;  %v6710_v3 = vunpack.i.h.bf16 %v9225_v58  ;;  %v6032_v16 = vrot.slane %v6031_v51, 1  ;;  %v5940_v45 = vsel %vm5878_vm11, %v9723_v37, %v6724_v49  ;;  %v6026_v42 = vmax.f32 %v6024_v40, %v6025_v12 }
 0x3fd   :  { %v9300_v18 = vpop.permute.xlu1 %6782  ;;  %v6469_v13 = vpack.c.bf16 %v6019_v8, %v6012_v60  ;;  %v6100_v63 = vrot.slane %v6099_v56, 2  ;;  %v5956_v61 = vsel %vm5895_vm13, %v5940_v45, %v6700_v7  ;;  %v6042_v29 = vrot.slane %v6041_v62, 4 }
 0x3fe   :  { %v6033_v59 = vmax.f32 %v6031_v51, %v6032_v16  ;;  %v6153_v55 = vsel %vm5977_vm14, %v5973_v14, -inf  ;;  %v5972_v5 = vsel %vm5912_vm12, %v5956_v61, %v6710_v3  ;;  %v6134_v25 = vmax.f32 %v6132_v0, %v6133_v9 }
 0x3ff   :  { %v6318_v58 = vunpack.c.l.b16 %v6469_v13  ;;  %v6319_v11 = vunpack.c.h.b16 %v6469_v13  ;;  %v6101_v30 = vmax.f32 %v6099_v56, %v6100_v63  ;;  %v6131_v34 = vmax.f32 %v9238_v21, %v6130_v6  ;;  %v9724_v13 = vld [vmem:[#allocation24_spill] sm:$0xff] }
 0x400   :  { %v6748_v43 = vpop.permute.xlu0 %6747  ;;  %v6123_v36 = vrot.slane %v6122_v2, 1  ;;  %v6470_v40 = vpack.c.bf16 %v6033_v59, %v6026_v42  ;;  %v6139_v10 = vsel %vm5977_vm14, %v5972_v5, -inf  ;;  %v6154_v32 = vrot.slane %v6153_v55, 4 }
 0x401   :  { %v6347_v7 = vsel %vm4177_vm5, %v6318_v58, %v9253_v27  ;;  %v6354_v17 = vsel %vm4177_vm5, %v6319_v11, %v9256_v19  ;;  %v6102_v44 = vrot.slane %v6101_v30, 1  ;;  %v6043_v12 = vmax.f32 %v6041_v62, %v6042_v29  ;;  %v9725_v58 = vld [vmem:[#allocation25_spill] sm:$0xff] }
 0x402   :  { %v6320_v0 = vunpack.c.l.b16 %v6470_v40  ;;  %v6321_v39 = vunpack.c.h.b16 %v6470_v40  ;;  %v6140_v15 = vrot.slane %v6139_v10, 4  ;;  %v6096_v21 = vmax.f32 %v9241_v26, %v6095_v31 }
 0x403   :  { %v6135_v6 = vrot.slane %v6134_v25, 2  ;;  %v6103_v54 = vmax.f32 %v6101_v30, %v6102_v44  ;;  %v6745_v60 = vunpack.i.h.bf16 %v9266_v53  ;;  %v6124_v9 = vmax.f32 %v6122_v2, %v6123_v36 }
 0x404   :  { %v9313_v35 = vpop.permute.xlu1 %6787  ;;  %v6753_v27 = vpop.permute.xlu0 %6752  ;;  %v9320_v19 = vsel %vm4179_vm6, %v6320_v0, %v6347_v7  ;;  %v9323_v51 = vsel %vm4179_vm6, %v6321_v39, %v6354_v17  ;;  %v6141_v49 = vmax.f32 %v6139_v10, %v6140_v15  ;;  %v6332_v8 = vunpack.c.l.b16 %v9185_v41 }
 0x405   :  { %v6333_v56 = vunpack.c.h.b16 %v9185_v41  ;;  %v6475_v62 = vpack.c.bf16 %v6103_v54, %v6096_v21  ;;  %v6744_v26 = vunpack.i.l.bf16 %v9266_v53  ;;  %v6044_v31 = vrot.slane %v6043_v12, 2 }
 0x406   :  { %v6155_v14 = vmax.f32 %v6153_v55, %v6154_v32  ;;  %v6142_v3 = vrot.slane %v6141_v49, 2  ;;  %v6735_v16 = vunpack.i.h.bf16 %v9273_v28  ;;  %v6136_v2 = vmax.f32 %v6134_v25, %v6135_v6 }
 0x407   :  { %v6330_v37 = vunpack.c.l.b16 %v6475_v62  ;;  %v6331_v45 = vunpack.c.h.b16 %v6475_v62  ;;  %v5884_v42 = vsel %vm5878_vm11, %v9724_v13, %v6745_v60  ;;  %v6477_v61 = vpack.c.bf16 %v6131_v34, %v6124_v9 }
 0x408   :  { %v6734_v59 = vunpack.i.l.bf16 %v9273_v28  ;;  %v6750_v41 = vunpack.i.h.bf16 %v6748_v43  ;;  %v6749_v29 = vunpack.i.l.bf16 %v6748_v43  ;;  %v6143_v5 = vmax.f32 %v6141_v49, %v6142_v3  ;;  %v6758_v11 = vpop.permute.xlu0 %6757 }
 0x409   :  { %v9331_v63 = vpop.permute.xlu1 %6792  ;;  %v6360_v53 = vsel %vm4175_vm4, %v6332_v8, %v6330_v37  ;;  %v6367_v55 = vsel %vm4175_vm4, %v6333_v56, %v6331_v45  ;;  %v5883_v25 = vsel %vm5878_vm11, %v9725_v58, %v6744_v26  ;;  %v6045_v30 = vmax.f32 %v6043_v12, %v6044_v31 }
 0x40a   :  { %v6156_v36 = vrot.slane %v6155_v14, 2  ;;  %v5901_v40 = vsel %vm5895_vm13, %v5884_v42, %v6735_v16  ;;  %v5891_v34 = vsel %vm5878_vm11, %v8978_v52, %v6749_v29  ;;  %v6739_v28 = vunpack.i.l.bf16 %v9293_v46 }
 0x40b   :  { %v5892_v43 = vsel %vm5878_vm11, %v8988_v50, %v6750_v41  ;;  %v6755_v10 = vunpack.i.h.bf16 %v6753_v27  ;;  %v6754_v7 = vunpack.i.l.bf16 %v6753_v27  ;;  %v5900_v44 = vsel %vm5895_vm13, %v5883_v25, %v6734_v59 }
 0x40c   :  { %v6740_v32 = vunpack.i.h.bf16 %v9293_v46  ;;  %v6760_v0 = vunpack.i.h.bf16 %v6758_v11  ;;  %v6759_v39 = vunpack.i.l.bf16 %v6758_v11  ;;  %v6144_v12 = vrot.slane %v6143_v5, 1 }
 0x40d   :  { %v9344_v17 = vpop.permute.xlu1 %6797  ;;  %v5917_v15 = vsel %vm5912_vm12, %v5900_v44, %v6754_v7  ;;  %v5918_v52 = vsel %vm5912_vm12, %v5901_v40, %v6755_v10  ;;  %v5908_v21 = vsel %vm5895_vm13, %v5891_v34, %v6739_v28  ;;  %v6334_v27 = vunpack.c.l.b16 %v6477_v61 }
 0x40e   :  { %v6034_v6 = vsel %vm5977_vm14, %v5917_v15, -inf  ;;  %v6048_v50 = vsel %vm5977_vm14, %v5918_v52, -inf  ;;  %v5909_v54 = vsel %vm5895_vm13, %v5892_v43, %v6740_v32  ;;  %v5925_v60 = vsel %vm5912_vm12, %v5908_v21, %v6759_v39 }
 0x40f   :  { %v6035_v9 = vrot.slane %v6034_v6, 4  ;;  %v5926_v46 = vsel %vm5912_vm12, %v5909_v54, %v6760_v0  ;;  %v6146_v49 = vsel %vm5977_vm14, %v5925_v60, -inf  ;;  %v6137_v56 = vrot.slane %v6136_v2, 1 }
 0x410   :  { %v9357_v8 = vpop.permute.xlu0 %6762  ;;  %v6335_v62 = vunpack.c.h.b16 %v6477_v61  ;;  %v6147_v26 = vrot.slane %v6146_v49, 4  ;;  %v6160_v31 = vsel %vm5977_vm14, %v5926_v46, -inf  ;;  %v9360_v3 = vmax.f32 %v6155_v14, %v6156_v36 }
 0x411   :  { %v6049_v16 = vrot.slane %v6048_v50, 4  ;;  %v9363_v37 = vsel %vm4177_vm5, %v6334_v27, %v6360_v53  ;;  %v9365_v45 = vpop.permute.xlu1 %6802  ;;  %v6046_v13 = vrot.slane %v6045_v30, 1  ;;  %v6145_v42 = vmax.f32 %v6143_v5, %v6144_v12 }
 0x412   :  { %v9368_v59 = vsel %vm4177_vm5, %v6335_v62, %v6367_v55  ;;  %v6036_v41 = vmax.f32 %v6034_v6, %v6035_v9  ;;  %v6148_v29 = vmax.f32 %v6146_v49, %v6147_v26  ;;  %v6161_v58 = vrot.slane %v6160_v31, 4 }
 0x413   :  { %v6138_v61 = vmax.f32 %v6136_v2, %v6137_v56  ;;  %v6785_v25 = vunpack.i.h.bf16 %v9300_v18  ;;  %v6158_v14 = vrot.slane %v9360_v3, 1  ;;  %v6050_v11 = vmax.f32 %v6048_v50, %v6049_v16 }
 0x414   :  { %v6799_v36 = vunpack.i.l.bf16 %v9344_v17  ;;  %v6768_v53 = vpop.permute.xlu0 %6767  ;;  %v9373_v40 = vmax.f32 %v6045_v30, %v6046_v13  ;;  %v6780_v5 = vunpack.i.h.bf16 %v9287_v38  ;;  %v6779_v55 = vunpack.i.l.bf16 %v9287_v38 }
 0x415   :  { %v9375_v34 = vpack.c.bf16 %v6145_v42, %v6138_v61  ;;  %v6784_v28 = vunpack.i.l.bf16 %v9300_v18  ;;  %v6037_v43 = vrot.slane %v6036_v41, 2  ;;  %v6149_v2 = vrot.slane %v6148_v29, 2  ;;  %v6808_v7 = vpop.permute.xlu1 %6807 }
 0x416   :  { %v6162_v10 = vmax.f32 %v6160_v31, %v6161_v58  ;;  %v9382_v44 = vsel %vm5878_vm11, %v8972_v20, %v6785_v25  ;;  %v6790_v32 = vunpack.i.h.bf16 %v9313_v35  ;;  %v6789_v30 = vunpack.i.l.bf16 %v9313_v35 }
 0x417   :  { %v6800_v0 = vunpack.i.h.bf16 %v9344_v17  ;;  %v6051_v39 = vrot.slane %v6050_v11, 2  ;;  %v6795_v12 = vunpack.i.h.bf16 %v9331_v63  ;;  %v5885_v15 = vsel %vm5878_vm11, %v9057_v23, %v6799_v36 }
 0x418   :  { %v6769_v52 = vunpack.i.l.bf16 %v6768_v53  ;;  %v6336_v21 = vunpack.c.l.b16 %v9375_v34  ;;  %v6794_v6 = vunpack.i.l.bf16 %v9331_v63  ;;  %v6770_v50 = vunpack.i.h.bf16 %v6768_v53  ;;  %v6773_v9 = vpop.permute.xlu0 %6772 }
 0x419   :  { %v6809_v20 = vunpack.i.l.bf16 %v6808_v7  ;;  %v6337_v54 = vunpack.c.h.b16 %v9375_v34  ;;  %v6038_v60 = vmax.f32 %v6036_v41, %v6037_v43  ;;  %v6150_v27 = vmax.f32 %v6148_v29, %v6149_v2  ;;  %v6813_v42 = vpop.permute.xlu1 %6812 }
 0x41a   :  { %v6163_v35 = vrot.slane %v6162_v10, 2  ;;  %v5886_v17 = vsel %vm5878_vm11, %v9060_v1, %v6800_v0  ;;  %v6765_v46 = vunpack.i.h.bf16 %v9357_v8  ;;  %v6804_v23 = vunpack.i.l.bf16 %v9365_v45 }
 0x41b   :  { %v5902_v49 = vsel %vm5895_vm13, %v5885_v15, %v6789_v30  ;;  %v6052_v56 = vmax.f32 %v6050_v11, %v6051_v39  ;;  %v5934_v63 = vsel %vm5878_vm11, %v9091_v48, %v6769_v52  ;;  %v6810_v62 = vunpack.i.h.bf16 %v6808_v7 }
 0x41c   :  { %v5919_v26 = vsel %vm5912_vm12, %v5902_v49, %v6809_v20  ;;  %v6764_v31 = vunpack.i.l.bf16 %v9357_v8  ;;  %v6805_v16 = vunpack.i.h.bf16 %v9365_v45  ;;  %v5942_v1 = vsel %vm5878_vm11, %v9101_v33, %v6770_v50  ;;  %v6823_v39 = vpop.permute.xlu0 %6822 }
 0x41d   :  { %v6775_v13 = vunpack.i.h.bf16 %v6773_v9  ;;  %v6039_v41 = vrot.slane %v6038_v60, 1  ;;  %v6151_v29 = vrot.slane %v6150_v27, 1  ;;  %v6164_v58 = vmax.f32 %v6162_v10, %v6163_v35 }
 0x41e   :  { %v6774_v61 = vunpack.i.l.bf16 %v6773_v9  ;;  %v5893_v25 = vsel %vm5878_vm11, %v9077_v24, %v6804_v23  ;;  %v5903_v48 = vsel %vm5895_vm13, %v5886_v17, %v6790_v32  ;;  %v6062_v11 = vsel %vm5977_vm14, %v5919_v26, -inf }
 0x41f   :  { %v5950_v8 = vsel %vm5895_vm13, %v5934_v63, %v6764_v31  ;;  %v5920_v45 = vsel %vm5912_vm12, %v5903_v48, %v6810_v62  ;;  %v5958_v36 = vsel %vm5895_vm13, %v5942_v1, %v6765_v46  ;;  %v6814_v53 = vunpack.i.l.bf16 %v6813_v42  ;;  %v6818_v46 = vpop.permute.xlu1 %6817 }
 0x420   :  { %v5966_v33 = vsel %vm5912_vm12, %v5950_v8, %v6774_v61  ;;  %v5894_v43 = vsel %vm5878_vm11, %v9082_v4, %v6805_v16  ;;  %v5974_v2 = vsel %vm5912_vm12, %v5958_v36, %v6775_v13  ;;  %v6815_v10 = vunpack.i.h.bf16 %v6813_v42 }
 0x421   :  { %v6055_v24 = vsel %vm5977_vm14, %v5966_v33, -inf  ;;  %v6063_v7 = vrot.slane %v6062_v11, 4  ;;  %v6167_v30 = vsel %vm5977_vm14, %v5974_v2, -inf  ;;  %v5910_v0 = vsel %vm5895_vm13, %v5893_v25, %v6794_v6 }
 0x422   :  { %v6056_v32 = vrot.slane %v6055_v24, 4  ;;  %v6053_v15 = vrot.slane %v6052_v56, 1  ;;  %v6076_v52 = vsel %vm5977_vm14, %v5920_v45, -inf  ;;  %v6168_v50 = vrot.slane %v6167_v30, 4 }
 0x423   :  { %v5927_v20 = vsel %vm5912_vm12, %v5910_v0, %v6814_v53  ;;  %v6040_v35 = vmax.f32 %v6038_v60, %v6039_v41  ;;  %v5911_v9 = vsel %vm5895_vm13, %v5894_v43, %v6795_v12  ;;  %v6165_v23 = vrot.slane %v6164_v58, 1 }
 0x424   :  { %v6057_v4 = vmax.f32 %v6055_v24, %v6056_v32  ;;  %v6174_v17 = vsel %vm5977_vm14, %v5927_v20, -inf  ;;  %v6169_v49 = vmax.f32 %v6167_v30, %v6168_v50  ;;  %v5928_v63 = vsel %vm5912_vm12, %v5911_v9, %v6815_v10 }
 0x425   :  { %v6175_v62 = vrot.slane %v6174_v17, 4  ;;  %v6152_v6 = vmax.f32 %v6150_v27, %v6151_v29  ;;  %v6064_v26 = vmax.f32 %v6062_v11, %v6063_v7  ;;  %v6077_v31 = vrot.slane %v6076_v52, 4 }
 0x426   :  { %v6058_v16 = vrot.slane %v6057_v4, 2  ;;  %v5935_v60 = vsel %vm5878_vm11, %v8969_v22, %v6784_v28  ;;  %v6159_v12 = vmax.f32 %v9360_v3, %v6158_v14  ;;  %v6825_v1 = vunpack.i.h.bf16 %v6823_v39  ;;  %v6828_v22 = vpop.permute.xlu0 %6827 }
 0x427   :  { %v6824_v13 = vunpack.i.l.bf16 %v6823_v39  ;;  %v9435_v42 = vsel %vm4179_vm6, %v6336_v21, %v9363_v37  ;;  %v9439_v27 = vsel %vm4179_vm6, %v6337_v54, %v9368_v59  ;;  %v6170_v18 = vrot.slane %v6169_v49, 2  ;;  %v6833_v21 = vpop.permute.xlu1 %6832 }
 0x428   :  { %v6188_v41 = vsel %vm5977_vm14, %v5928_v63, -inf  ;;  %v6054_v28 = vmax.f32 %v6052_v56, %v6053_v15  ;;  %v9443_v29 = vpack.c.bf16 %v9373_v40, %v6040_v35  ;;  %v6166_v3 = vmax.f32 %v6164_v58, %v6165_v23 }
 0x429   :  { %v6176_v14 = vmax.f32 %v6174_v17, %v6175_v62  ;;  %v9445_v61 = vpack.c.bf16 %v6159_v12, %v6152_v6  ;;  %v6065_v34 = vrot.slane %v6064_v26, 2  ;;  %v6078_v25 = vmax.f32 %v6076_v52, %v6077_v31 }
 0x42a   :  { %v6059_v37 = vmax.f32 %v6057_v4, %v6058_v16  ;;  %v6189_v48 = vrot.slane %v6188_v41, 4  ;;  %v5944_v59 = vsel %vm5878_vm11, %v9127_v57, %v6825_v1  ;;  %v5936_v54 = vsel %vm5878_vm11, %v9124_v47, %v6824_v13 }
 0x42b   :  { %v6830_v11 = vunpack.i.h.bf16 %v6828_v22  ;;  %v6171_v56 = vmax.f32 %v6169_v49, %v6170_v18  ;;  %v6819_v8 = vunpack.i.l.bf16 %v6818_v46  ;;  %v5959_v40 = vsel %vm5895_vm13, %v9382_v44, %v6780_v5 }
 0x42c   :  { %v6829_v58 = vunpack.i.l.bf16 %v6828_v22  ;;  %v6177_v45 = vrot.slane %v6176_v14, 2  ;;  %v5951_v36 = vsel %vm5895_vm13, %v5935_v60, %v6779_v55  ;;  %v6834_v57 = vunpack.i.l.bf16 %v6833_v21 }
 0x42d   :  { %v5975_v33 = vsel %vm5912_vm12, %v5959_v40, %v6830_v11  ;;  %v6060_v53 = vrot.slane %v6059_v37, 1  ;;  %v6820_v43 = vunpack.i.h.bf16 %v6818_v46  ;;  %v6190_v24 = vmax.f32 %v6188_v41, %v6189_v48 }
 0x42e   :  { %v6181_v47 = vsel %vm5977_vm14, %v5975_v33, -inf  ;;  %v5967_v2 = vsel %vm5912_vm12, %v5951_v36, %v6829_v58  ;;  %v6835_v5 = vunpack.i.h.bf16 %v6833_v21  ;;  %v6322_v44 = vunpack.c.l.b16 %v9443_v29 }
 0x42f   :  { %v6182_v10 = vrot.slane %v6181_v47, 4  ;;  %v6069_v7 = vsel %vm5977_vm14, %v5967_v2, -inf  ;;  %v6172_v32 = vrot.slane %v6171_v56, 1  ;;  %v5952_v38 = vsel %vm5895_vm13, %v5936_v54, %v6819_v8 }
 0x430   :  { %v6070_v55 = vrot.slane %v6069_v7, 4  ;;  %v6323_v30 = vunpack.c.h.b16 %v9443_v29  ;;  %v6178_v0 = vmax.f32 %v6176_v14, %v6177_v45  ;;  %v5968_v15 = vsel %vm5912_vm12, %v5952_v38, %v6834_v57 }
 0x431   :  { %v6183_v39 = vmax.f32 %v6181_v47, %v6182_v10  ;;  %v6066_v52 = vmax.f32 %v6064_v26, %v6065_v34  ;;  %v6079_v50 = vrot.slane %v6078_v25, 2  ;;  %v5960_v20 = vsel %vm5895_vm13, %v5944_v59, %v6820_v43 }
 0x432   :  { %v6071_v35 = vmax.f32 %v6069_v7, %v6070_v55  ;;  %v6061_v4 = vmax.f32 %v6059_v37, %v6060_v53  ;;  %v6191_v9 = vrot.slane %v6190_v24, 2  ;;  %v5976_v46 = vsel %vm5912_vm12, %v5960_v20, %v6835_v5 }
 0x433   :  { %v6184_v17 = vrot.slane %v6183_v39, 2  ;;  %v6173_v23 = vmax.f32 %v6171_v56, %v6172_v32  ;;  %v6083_v63 = vsel %vm5977_vm14, %v5968_v15, -inf  ;;  %v6195_v62 = vsel %vm5977_vm14, %v5976_v46, -inf }
 0x434   :  { %v6072_v49 = vrot.slane %v6071_v35, 2  ;;  %v6179_v6 = vrot.slane %v6178_v0, 1  ;;  %v6084_v16 = vrot.slane %v6083_v63, 4  ;;  %v6196_v60 = vrot.slane %v6195_v62, 4 }
 0x435   :  { %v6185_v31 = vmax.f32 %v6183_v39, %v6184_v17  ;;  %v6338_v26 = vunpack.c.l.b16 %v9445_v61  ;;  %v6067_v12 = vrot.slane %v6066_v52, 1  ;;  %v6080_v1 = vmax.f32 %v6078_v25, %v6079_v50 }
 0x436   :  { %v6073_v13 = vmax.f32 %v6071_v35, %v6072_v49  ;;  %v6192_v18 = vmax.f32 %v6190_v24, %v6191_v9  ;;  %v6085_v22 = vmax.f32 %v6083_v63, %v6084_v16  ;;  %v6197_v29 = vmax.f32 %v6195_v62, %v6196_v60 }
 0x437   :  { %v6186_v41 = vrot.slane %v6185_v31, 1  ;;  %v6339_v14 = vunpack.c.h.b16 %v9445_v61  ;;  %v6472_v34 = vpack.c.bf16 %v6061_v4, %v6054_v28  ;;  %v6480_v37 = vpack.c.bf16 %v6173_v23, %v6166_v3 }
 0x438   :  { %v6074_v21 = vrot.slane %v6073_v13, 1  ;;  %v6180_v48 = vmax.f32 %v6178_v0, %v6179_v6  ;;  %v6086_v54 = vrot.slane %v6085_v22, 2  ;;  %v6198_v11 = vrot.slane %v6197_v29, 2 }
 0x439   :  { %v6187_v59 = vmax.f32 %v6185_v31, %v6186_v41  ;;  %v6349_v56 = vsel %vm4181_vm7, %v6322_v44, %v9320_v19  ;;  %v6068_v8 = vmax.f32 %v6066_v52, %v6067_v12  ;;  %v6081_v40 = vrot.slane %v6080_v1, 1 }
 0x43a   :  { %v6075_v25 = vmax.f32 %v6073_v13, %v6074_v21  ;;  %v6193_v58 = vrot.slane %v6192_v18, 1  ;;  %v6087_v36 = vmax.f32 %v6085_v22, %v6086_v54  ;;  %v6199_v33 = vmax.f32 %v6197_v29, %v6198_v11 }
 0x43b   :  { %v6481_v45 = vpack.c.bf16 %v6187_v59, %v6180_v48  ;;  %v6356_v61 = vsel %vm4181_vm7, %v6323_v30, %v9323_v51  ;;  %v6324_v28 = vunpack.c.l.b16 %v6472_v34  ;;  %v6325_v3 = vunpack.c.h.b16 %v6472_v34 }
 0x43c   :  { %v6473_v57 = vpack.c.bf16 %v6075_v25, %v6068_v8  ;;  %v6340_v53 = vunpack.c.l.b16 %v6480_v37  ;;  %v6341_v43 = vunpack.c.h.b16 %v6480_v37  ;;  %v6088_v47 = vrot.slane %v6087_v36, 1 }
 0x43d   :  { %v6200_v2 = vrot.slane %v6199_v33, 1  ;;  %v6342_v24 = vunpack.c.l.b16 %v6481_v45  ;;  %v6343_v10 = vunpack.c.h.b16 %v6481_v45  ;;  %v6082_v5 = vmax.f32 %v6080_v1, %v6081_v40 }
 0x43e   :  { %v6326_v19 = vunpack.c.l.b16 %v6473_v57  ;;  %v6327_v7 = vunpack.c.h.b16 %v6473_v57  ;;  %v6194_v44 = vmax.f32 %v6192_v18, %v6193_v58  ;;  %v6089_v32 = vmax.f32 %v6087_v36, %v6088_v47 }
 0x43f   :  { %v6201_v38 = vmax.f32 %v6199_v33, %v6200_v2  ;;  %v6363_v55 = vsel %vm4181_vm7, %v6338_v26, %v9435_v42  ;;  %v6370_v51 = vsel %vm4181_vm7, %v6339_v14, %v9439_v27  ;;  %v6350_v30 = vsel %vm4183_vm8, %v6324_v28, %v6349_v56 }
 0x440   :  { %v6357_v0 = vsel %vm4183_vm8, %v6325_v3, %v6356_v61  ;;  %v6364_v39 = vsel %vm4183_vm8, %v6340_v53, %v6363_v55  ;;  %v6371_v15 = vsel %vm4183_vm8, %v6341_v43, %v6370_v51  ;;  %v6474_v52 = vpack.c.bf16 %v6089_v32, %v6082_v5 }
 0x441   :  { %v6482_v50 = vpack.c.bf16 %v6201_v38, %v6194_v44  ;;  %v6351_v20 = vsel %vm4185_vm9, %v6326_v19, %v6350_v30  ;;  %v6358_v35 = vsel %vm4185_vm9, %v6327_v7, %v6357_v0  ;;  %v6365_v4 = vsel %vm4185_vm9, %v6342_v24, %v6364_v39 }
 0x442   :  { %v6372_v42 = vsel %vm4185_vm9, %v6343_v10, %v6371_v15  ;;  %v6328_v9 = vunpack.c.l.b16 %v6474_v52  ;;  %v6329_v27 = vunpack.c.h.b16 %v6474_v52 }
 0x443   :  { %v6344_v17 = vunpack.c.l.b16 %v6482_v50  ;;  %v6345_v46 = vunpack.c.h.b16 %v6482_v50 }
 0x444   :  { %v6352_v23 = vsel %vm4187_vm10, %v6328_v9, %v6351_v20  ;;  %v6359_v49 = vsel %vm4187_vm10, %v6329_v27, %v6358_v35 }
 0x445   :  { %v6366_v63 = vsel %vm4187_vm10, %v6344_v17, %v6365_v4  ;;  %v6373_v62 = vsel %vm4187_vm10, %v6345_v46, %v6372_v42  ;;  %v6374_v6 = vpack.c.b16 %v6359_v49, %v6352_v23 }
 0x446   :  { %v6375_v31 = vpack.c.b16 %v6373_v62, %v6366_v63 }
 0x447   :  { %6378 = vst [vmem:[%s9501_s3] sm:$0xff] %v6374_v6 }
 0x448   :  { %6379 = vst [vmem:[%s9501_s3 + $0x8] sm:$0xff] %v6375_v31 }

// kernel: gaze_cnn_forward.5
= control target key start
LH: loop header
LB: loop body
LE: loop exit
PB: predicated region body
PF: predicated region fallthrough
CT: control target
= control target key end

     0   :  { %v162_v28 = vlaneseq  ;;  %v1194_v36 = vmov 1966171168   ;;  %s1478_s0 = inlined_call_operand.vmem [shape: bf16[2,1024], index: 0, kind: input, shape index: {}]   ;;  %s1479_s1 = inlined_call_operand.vmem [shape: bf16[1024,128], index: 1, kind: input, shape index: {}]   ;;  %s1480_s2 = inlined_call_operand.vmem [shape: f32[1,128], index: 2, kind: input, shape index: {}]   ;;  %s1481_s3 = inlined_call_operand.vmem [shape: bf16[128,4], index: 3, kind: input, shape index: {}]   ;;  %s1482_s4 = inlined_call_operand.vmem [shape: f32[1,4], index: 4, kind: input, shape index: {}]   ;;  %s1483_s5 = inlined_call_operand.hbm [shape: f32[2,4], index: 5, kind: output, shape index: {}]  }
   0x1   :  { %v1097_v0 = vld [vmem:[%s1479_s1 + $0x40] sm:$0xff]   ;;  %v1101_v4 = vld [vmem:[%s1479_s1 + $0x48] sm:$0xff]   ;;  %v1105_v8 = vld [vmem:[%s1479_s1 + $0x50] sm:$0xff]   ;;  %v160_v37 = vunpack.c.l.s4 %v1194_v36 }
   0x2   :  { %v1098_v1 = vld [vmem:[%s1479_s1 + $0xc0] sm:$0xff]   ;;  %976 = vmatprep.subr.bf16.mxu0 %v1097_v0  ;;  %v1102_v5 = vld [vmem:[%s1479_s1 + $0xc8] sm:$0xff]   ;;  %v1106_v9 = vld [vmem:[%s1479_s1 + $0xd0] sm:$0xff]   ;;  %v163_v33 = vshrl.u32 %v162_v28, 7 }
   0x3   :  { %v1099_v2 = vld [vmem:[%s1479_s1] sm:$0xff]   ;;  %998 = vmatprep.subr.bf16.mxu1 %v1098_v1  ;;  %v1103_v6 = vld [vmem:[%s1479_s1 + $0x8] sm:$0xff]   ;;  %v1107_v10 = vld [vmem:[%s1479_s1 + $0x10] sm:$0xff]   ;;  %v161_v40 = vunpack.c.0.s8 %v160_v37 }
   0x4   :  { %v1100_v3 = vld [vmem:[%s1479_s1 + $0x80] sm:$0xff]   ;;  %977 = vmatpush3.bf16.msra.mxu0 %v1099_v2  ;;  %v1104_v7 = vld [vmem:[%s1479_s1 + $0x88] sm:$0xff]   ;;  %v1108_v11 = vld [vmem:[%s1479_s1 + $0x90] sm:$0xff]  }
   0x5   :  { %999 = vmatpush3.bf16.msra.mxu1 %v1100_v3  ;;  %978 = vmatprep.subr.bf16.mxu0 %v1101_v4  ;;  %v1109_v12 = vld [vmem:[%s1479_s1 + $0x58] sm:$0xff]   ;;  %v1113_v16 = vld [vmem:[%s1479_s1 + $0x60] sm:$0xff]   ;;  %v1117_v20 = vld [vmem:[%s1479_s1 + $0x68] sm:$0xff]   ;;  %v1333_v41 = vsub.s32 %v161_v40, %v163_v33 }
   0x6   :  { %1000 = vmatprep.subr.bf16.mxu1 %v1102_v5  ;;  %v1110_v13 = vld [vmem:[%s1479_s1 + $0xd8] sm:$0xff]   ;;  %v1114_v17 = vld [vmem:[%s1479_s1 + $0xe0] sm:$0xff]   ;;  %v1118_v21 = vld [vmem:[%s1479_s1 + $0xe8] sm:$0xff]  }
   0x7   :  { %v1111_v14 = vld [vmem:[%s1479_s1 + $0x18] sm:$0xff]   ;;  %v1115_v18 = vld [vmem:[%s1479_s1 + $0x20] sm:$0xff]   ;;  %v1119_v22 = vld [vmem:[%s1479_s1 + $0x28] sm:$0xff]  }
   0x8   :  { %979 = vmatpush3.bf16.msra.mxu0 %v1103_v6  ;;  %v1112_v15 = vld [vmem:[%s1479_s1 + $0x98] sm:$0xff]   ;;  %v1116_v19 = vld [vmem:[%s1479_s1 + $0xa0] sm:$0xff]   ;;  %v1120_v23 = vld [vmem:[%s1479_s1 + $0xa8] sm:$0xff]  }
   0x9   :  { %1001 = vmatpush3.bf16.msra.mxu1 %v1104_v7  ;;  %980 = vmatprep.subr.bf16.mxu0 %v1105_v8  ;;  %v1121_v24 = vld [vmem:[%s1479_s1 + $0x70] sm:$0xff]   ;;  %v1125_v29 = vld [vmem:[%s1479_s1 + $0x78] sm:$0xff]   ;;  %v28_v34 = vld [vmem:[%s1478_s0] sm:$0xff] }
   0xa   :  { %1002 = vmatprep.subr.bf16.mxu1 %v1106_v9  ;;  %v1122_v25 = vld [vmem:[%s1479_s1 + $0xf0] sm:$0xff]   ;;  %v1126_v30 = vld [vmem:[%s1479_s1 + $0xf8] sm:$0xff]   ;;  %v1130_v35 = vld [vmem:[%s1479_s1 + $0x140] sm:$0xff]   ;;  %v158_v39 = vcombine.high %v28_v34, %v28_v34  ;;  %v165_v42 = vrot.slane %v28_v34, %v1333_v41 }
   0xb   :  { %v1123_v26 = vld [vmem:[%s1479_s1 + $0x30] sm:$0xff]   ;;  %v1127_v31 = vld [vmem:[%s1479_s1 + $0x38] sm:$0xff]   ;;  %v1131_v38 = vld [vmem:[%s1479_s1 + $0x1c0] sm:$0xff]  }
   0xc   :  { %981 = vmatpush3.bf16.msra.mxu0 %v1107_v10  ;;  %v1124_v27 = vld [vmem:[%s1479_s1 + $0xb0] sm:$0xff]   ;;  %v1128_v32 = vld [vmem:[%s1479_s1 + $0xb8] sm:$0xff]   ;;  %v1337_v43 = vrot.slane %v158_v39, %v1333_v41  ;;  %v173_v44 = vcombine.high %v165_v42, %v165_v42  ;;  %v181_v45 = vrot.slane %v165_v42, %v1333_v41  ;;  %v1132_v47 = vld [vmem:[%s1479_s1 + $0x100] sm:$0xff]  }
   0xd   :  { %1003 = vmatpush3.bf16.msra.mxu1 %v1108_v11  ;;  %982 = vmatprep.subr.bf16.mxu0 %v1109_v12  ;;  %v1133_v49 = vld [vmem:[%s1479_s1 + $0x180] sm:$0xff]   ;;  %v1134_v52 = vld [vmem:[%s1479_s1 + $0x148] sm:$0xff]   ;;  %v1138_v58 = vld [vmem:[%s1479_s1 + $0x150] sm:$0xff]  }
   0xe   :  { %1004 = vmatprep.subr.bf16.mxu1 %v1110_v13  ;;  %v174_v46 = vcombine.high %v1337_v43, %v1337_v43  ;;  %v195_v48 = vrot.slane %v173_v44, %v1333_v41  ;;  %v203_v51 = vcombine.high %v181_v45, %v181_v45  ;;  %v1135_v54 = vld [vmem:[%s1479_s1 + $0x1c8] sm:$0xff]   ;;  %v1139_v59 = vld [vmem:[%s1479_s1 + $0x1d0] sm:$0xff]   ;;  %v1142_v62 = vld [vmem:[%s1479_s1 + $0x158] sm:$0xff]  }
   0xf   :  { %v1136_v55 = vld [vmem:[%s1479_s1 + $0x108] sm:$0xff]   ;;  %v1140_v60 = vld [vmem:[%s1479_s1 + $0x110] sm:$0xff]   ;;  %v1143_v63 = vld [vmem:[%s1479_s1 + $0x1d8] sm:$0xff]  }
  0x10   :  { %983 = vmatpush3.bf16.msra.mxu0 %v1111_v14  ;;  %v202_v50 = vrot.slane %v174_v46, %v1333_v41  ;;  %631 = vmatprep.mubr.bf16.mxu0 %v195_v48  ;;  %v205_v53 = vcombine.high %v195_v48, %v195_v48  ;;  %v1137_v57 = vld [vmem:[%s1479_s1 + $0x188] sm:$0xff]   ;;  %v1141_v61 = vld [vmem:[%s1479_s1 + $0x190] sm:$0xff]   ;;  %v1144_v0 = vld [vmem:[%s1479_s1 + $0x118] sm:$0xff]  }
  0x11   :  { %1005 = vmatpush3.bf16.msra.mxu1 %v1112_v15  ;;  %984 = vmatprep.subr.bf16.mxu0 %v1113_v16  ;;  %v1145_v1 = vld [vmem:[%s1479_s1 + $0x198] sm:$0xff]   ;;  %v1146_v2 = vld [vmem:[%s1479_s1 + $0x160] sm:$0xff]   ;;  %v1150_v6 = vld [vmem:[%s1479_s1 + $0x168] sm:$0xff]  }
  0x12   :  { %1006 = vmatprep.subr.bf16.mxu1 %v1114_v17  ;;  %v206_v56 = vcombine.high %v202_v50, %v202_v50  ;;  %671 = vmatprep.mubr.bf16.mxu1 %v205_v53  ;;  %v1147_v3 = vld [vmem:[%s1479_s1 + $0x1e0] sm:$0xff]   ;;  %v1151_v7 = vld [vmem:[%s1479_s1 + $0x1e8] sm:$0xff]   ;;  %v1154_v10 = vld [vmem:[%s1479_s1 + $0x170] sm:$0xff]  }
  0x13   :  { %v1148_v4 = vld [vmem:[%s1479_s1 + $0x120] sm:$0xff]   ;;  %v1152_v8 = vld [vmem:[%s1479_s1 + $0x128] sm:$0xff]   ;;  %v1155_v11 = vld [vmem:[%s1479_s1 + $0x1f0] sm:$0xff]  }
  0x14   :  { %985 = vmatpush3.bf16.msra.mxu0 %v1115_v18  ;;  %v1149_v5 = vld [vmem:[%s1479_s1 + $0x1a0] sm:$0xff]   ;;  %v1153_v9 = vld [vmem:[%s1479_s1 + $0x1a8] sm:$0xff]   ;;  %v1156_v12 = vld [vmem:[%s1479_s1 + $0x130] sm:$0xff]  }
  0x15   :  { %1007 = vmatpush3.bf16.msra.mxu1 %v1116_v19  ;;  %986 = vmatprep.subr.bf16.mxu0 %v1117_v20  ;;  %v1158_v13 = vld [vmem:[%s1479_s1 + $0x178] sm:$0xff]   ;;  %v1157_v14 = vld [vmem:[%s1479_s1 + $0x1b0] sm:$0xff]  }
  0x16   :  { %1008 = vmatprep.subr.bf16.mxu1 %v1118_v21 }
  0x18   :  { %987 = vmatpush3.bf16.msra.mxu0 %v1119_v22 }
  0x19   :  { %1009 = vmatpush3.bf16.msra.mxu1 %v1120_v23  ;;  %988 = vmatprep.subr.bf16.mxu0 %v1121_v24 }
  0x1a   :  { %1010 = vmatprep.subr.bf16.mxu1 %v1122_v25 }
  0x1c   :  { %989 = vmatpush3.bf16.msra.mxu0 %v1123_v26 }
  0x1d   :  { %1011 = vmatpush3.bf16.msra.mxu1 %v1124_v27  ;;  %990 = vmatprep.subr.bf16.mxu0 %v1125_v29 }
  0x1e   :  { %1012 = vmatprep.subr.bf16.mxu1 %v1126_v30 }
  0x20   :  { %991 = vmatpush3.bf16.msra.mxu0 %v1127_v31 }
  0x21   :  { %1013 = vmatpush3.bf16.msra.mxu1 %v1128_v32  ;;  %1020 = vmatprep.subr.bf16.mxu0 %v1130_v35 }
  0x22   :  { %1042 = vmatprep.subr.bf16.mxu1 %v1131_v38 }
  0x23   :  { %632 = vmatmul.mubr.bf16.vlgmr.msra.gmra.mrb[0].mxu0 %v181_v45 }
  0x24   :  { %1021 = vmatpush3.bf16.msra.mxu0 %v1132_v47  ;;  %672 = vmatmul.mubr.bf16.vlgmr.msra.gmra.mrb[0].mxu1 %v203_v51 }
  0x25   :  { %1022 = vmatprep.subr.bf16.mxu0 %v1134_v52  ;;  %1043 = vmatpush3.bf16.msra.mxu1 %v1133_v49 }
  0x26   :  { %711 = vmatprep.mubr.bf16.mxu0 %v202_v50  ;;  %1044 = vmatprep.subr.bf16.mxu1 %v1135_v54 }
  0x27   :  { %751 = vmatprep.mubr.bf16.mxu1 %v206_v56 }
  0x28   :  { %1023 = vmatpush3.bf16.msra.mxu0 %v1136_v55 }
  0x29   :  { %1024 = vmatprep.subr.bf16.mxu0 %v1138_v58  ;;  %1045 = vmatpush3.bf16.msra.mxu1 %v1137_v57 }
  0x2a   :  { %1046 = vmatprep.subr.bf16.mxu1 %v1139_v59 }
  0x2c   :  { %1025 = vmatpush3.bf16.msra.mxu0 %v1140_v60 }
  0x2d   :  { %1026 = vmatprep.subr.bf16.mxu0 %v1142_v62  ;;  %1047 = vmatpush3.bf16.msra.mxu1 %v1141_v61 }
  0x2e   :  { %1048 = vmatprep.subr.bf16.mxu1 %v1143_v63 }
  0x30   :  { %1027 = vmatpush3.bf16.msra.mxu0 %v1144_v0 }
  0x31   :  { %1028 = vmatprep.subr.bf16.mxu0 %v1146_v2  ;;  %1049 = vmatpush3.bf16.msra.mxu1 %v1145_v1 }
  0x32   :  { %1050 = vmatprep.subr.bf16.mxu1 %v1147_v3 }
  0x34   :  { %1029 = vmatpush3.bf16.msra.mxu0 %v1148_v4 }
  0x35   :  { %1030 = vmatprep.subr.bf16.mxu0 %v1150_v6  ;;  %1051 = vmatpush3.bf16.msra.mxu1 %v1149_v5 }
  0x36   :  { %1052 = vmatprep.subr.bf16.mxu1 %v1151_v7 }
  0x38   :  { %1031 = vmatpush3.bf16.msra.mxu0 %v1152_v8 }
  0x39   :  { %1032 = vmatprep.subr.bf16.mxu0 %v1154_v10  ;;  %1053 = vmatpush3.bf16.msra.mxu1 %v1153_v9 }
  0x3a   :  { %10 = vsyncpa [#allocation4], 0  ;;  %1054 = vmatprep.subr.bf16.mxu1 %v1155_v11  ;;  %v1159_v15 = vld [vmem:[%s1479_s1 + $0x1f8] sm:$0xff]   ;;  %v188_v17 = vrot.slane %v1337_v43, %v1333_v41  ;;  %v1162_v20 = vld [vmem:[%s1481_s3] sm:$0xff]   ;;  %v1195_v21 = vmov 0.0   ;;  %vm1196_vm0 = vmmov 0  }
  0x3b   :  { %v1160_v16 = vld [vmem:[%s1479_s1 + $0x138] sm:$0xff]   ;;  %26 = vst [vmem:[#allocation2] sm:$0x3] %v1195_v21  ;;  %v1163_v22 = vld [vmem:[%s1481_s3 + $0x8] sm:$0xff]   ;;  %v1164_v23 = vld [vmem:[%s1481_s3 + $0x10] sm:$0xff]   ;;  %s1197_s0 = smov [#allocation3]  }
  0x3c   :  { %1033 = vmatpush3.bf16.msra.mxu0 %v1156_v12  ;;  %v1161_v18 = vld [vmem:[%s1479_s1 + $0x1b8] sm:$0xff]   ;;  %v204_v19 = vcombine.high %v188_v17, %v188_v17  ;;  %v1166_v25 = vld [vmem:[%s1481_s3 + $0x20] sm:$0xff]   ;;  %v1167_v26 = vld [vmem:[%s1481_s3 + $0x28] sm:$0xff]   ;;  %s894_s13 = sshll.u32 %s1197_s0, 4  ;;  %vm886_vm1 = vcmask 25600   ;;  %s895_s13 = int_to_ptr.vmem [resolvable:$true] %s894_s13 }
  0x3d   :  { %1034 = vmatprep.subr.bf16.mxu0 %v1158_v13  ;;  %1055 = vmatpush3.bf16.msra.mxu1 %v1157_v14  ;;  %v1165_v24 = vld [vmem:[%s1481_s3 + $0x18] sm:$0xff]   ;;  %v1168_v27 = vld [vmem:[%s1481_s3 + $0x30] sm:$0xff]   ;;  %v966_v54 = vld [vmem:[%s1480_s2] ss:$0 sm:$0xff]  ;;  %s1170_s2 = scalar_lea.vmem %s895_s13, 32  ;;  %p1175_p1 = scmp.lt.s32.totalorder %s895_s13, %s895_s13 }
  0x3e   :  { %1056 = vmatprep.subr.bf16.mxu1 %v1159_v15  ;;  %v1169_v28 = vld [vmem:[%s1481_s3 + $0x38] sm:$0xff]   ;;  %v967_v59 = vld [vmem:[%s1482_s4] ss:$0 sm:$0xff]  ;;  %p1171_p0 = scmp.ne.s32.totalorder %s895_s13, %s1170_s2  ;;  %p1176_p2 = scmp.lt.s32.totalorder %s1170_s2, %s1170_s2 }
  0x40   :  { %1035 = vmatpush3.bf16.msra.mxu0 %v1160_v16  ;;  %p1177_p3 = por %p1176_p2, %p1175_p1 }
  0x41   :  { %1057 = vmatpush3.bf16.msra.mxu1 %v1161_v18  ;;  %1073 = vmatprep.subr.bf16.mxu0 %v1195_v21 }
  0x42   :  { %v27_v50 = vld [vmem:[#allocation2] sm:$0x3]  ;;  %p1178_p4 = pnand %p1177_p3, %p1171_p0 }
  0x43   :  { %712 = vmatmul.mubr.bf16.vlgmr.msra.gmra.mrb[4].mxu0 %v188_v17 }
  0x44   :  { %752 = vmatmul.mubr.bf16.vlgmr.msra.gmra.mrb[4].mxu1 %v204_v19  ;;  %1074 = vmatpush3.bf16.msra.mxu0 %v1162_v20 }
  0x45   :  { %1075 = vmatprep.subr.bf16.mxu0 %v1195_v21  ;;  %1089 = vmatprep.mubr.msk.bf16.mxu0 %vm1196_vm0, %v1195_v21 }
  0x48   :  { %1076 = vmatpush3.bf16.msra.mxu0 %v1163_v22 }
  0x49   :  { %1077 = vmatprep.subr.bf16.mxu0 %v1195_v21 }
  0x4c   :  { %1078 = vmatpush3.bf16.msra.mxu0 %v1164_v23 }
  0x4d   :  { %1079 = vmatprep.subr.bf16.mxu0 %v1195_v21 }
  0x50   :  { %1080 = vmatpush3.bf16.msra.mxu0 %v1165_v24 }
  0x51   :  { %1081 = vmatprep.subr.bf16.mxu0 %v1195_v21 }
  0x54   :  { %1082 = vmatpush3.bf16.msra.mxu0 %v1166_v25 }
  0x55   :  { %1083 = vmatprep.subr.bf16.mxu0 %v1195_v21 }
  0x58   :  { %1084 = vmatpush3.bf16.msra.mxu0 %v1167_v26 }
  0x59   :  { %1085 = vmatprep.subr.bf16.mxu0 %v1195_v21 }
  0x5c   :  { %1086 = vmatpush3.bf16.msra.mxu0 %v1168_v27 }
  0x5d   :  { %1087 = vmatprep.subr.bf16.mxu0 %v1195_v21 }
  0x60   :  { %1088 = vmatpush3.bf16.msra.mxu0 %v1169_v28 }
  0xf6   :  { %v992_v29 = vpop.f32.mrb[0].mxu0 }
  0xf7   :  { %v993_v30 = vpop.f32.mrb[1].mxu0  ;;  %v1014_v31 = vpop.f32.mrb[0].mxu1 }
  0xf8   :  { %v994_v32 = vadd.f32 %v993_v30, %v992_v29  ;;  %v995_v33 = vpop.f32.mrb[2].mxu0  ;;  %v1015_v34 = vpop.f32.mrb[1].mxu1 }
  0xf9   :  { %v996_v35 = vpop.f32.mrb[3].mxu0  ;;  %v1016_v36 = vadd.f32 %v1015_v34, %v1014_v31  ;;  %v1017_v37 = vpop.f32.mrb[2].mxu1 }
  0xfa   :  { %v1018_v38 = vpop.f32.mrb[3].mxu1 }
  0xfb   :  { %v674_v39 = vadd.f32 %v1016_v36, %v994_v32 }
 0x116   :  { %v1036_v40 = vpop.f32.mrb[4].mxu0 }
 0x117   :  { %v1037_v41 = vpop.f32.mrb[5].mxu0  ;;  %v1058_v42 = vpop.f32.mrb[4].mxu1 }
 0x118   :  { %v1038_v43 = vadd.f32 %v1037_v41, %v1036_v40  ;;  %v1039_v44 = vpop.f32.mrb[6].mxu0  ;;  %v1059_v45 = vpop.f32.mrb[5].mxu1 }
 0x119   :  { %v1040_v46 = vpop.f32.mrb[7].mxu0  ;;  %v1060_v48 = vadd.f32 %v1059_v45, %v1058_v42  ;;  %v1061_v49 = vpop.f32.mrb[6].mxu1 }
 0x11a   :  { %v714_v47 = vadd.f32 %v1038_v43, %v674_v39  ;;  %v1062_v51 = vpop.f32.mrb[7].mxu1 }
 0x11c   :  { %v754_v52 = vadd.f32 %v1060_v48, %v714_v47 }
 0x11e   :  { %v759_v53 = vadd.f32 %v754_v52, %v27_v50 }
 0x120   :  { %760 = vst [vmem:[#allocation2] sm:$0x3] %v759_v53 }
 0x127   :  { %v764_v55 = vld [vmem:[#allocation2] sm:$0x3] }
 0x128   :  { %v772_v56 = vadd.f32 %v966_v54, %v764_v55 }
 0x12a   :  { %v773_v57 = vmax.f32 %v772_v56, 0.0 }
 0x12c   :  { %v774_v58 = vpack.c.bf16 %v773_v57, %v773_v57 }
 0x12e   :  { %1090 = vmatmul.mubr.bf16.vlgmr.msra.gmra.mrb[8].mxu0 %v774_v58 }
 0x201   :  { %v880_v60 = vpop.f32.mrb[8].mxu0 }
 0x202   :  { %v881_v61 = vadd.f32 %v967_v59, %v880_v60  ;;  %v1091_v62 = vpop.f32.mrb[9].mxu0 }
 0x203   :  { %v883_v63 = vpop.f32.mrb[10].mxu0 }
 0x204   :  { %v1092_v0 = vpop.f32.mrb[11].mxu0  ;;  %887 = vst.msk [vmem:[#allocation3] sm:$0x3] %vm886_vm1, %v881_v61 }
 0x205   :  { %1181 = shalt.err (!%p1178_p4)
}
 0x206   :  { %s1182_s4 = scalar_lea.hbm %s1483_s5, 32 }
 0x207   :  { %p1183_p5 = scmp.ne.s32.totalorder %s1483_s5, %s1182_s4  ;;  %p1186_p6 = scmp.lt.u32.totalorder %s1182_s4, %s1483_s5 }
 0x209   :  { %p1188_p7 = pnand %p1186_p6, %p1183_p5 }
 0x20b   :  { %1191 = shalt.err (!%p1188_p7)
}
 0x20c   :  { %897 = dma.vmem_to_hbm [thread:$0]  %s895_s13, 32, %s1483_s5, [#allocation4]  }
 0x20d   :  { %1192 = dma.done.wait [#allocation4], 32  }
 0x20e   :  { %1193 = vsyncadd [#allocation4], 4294967264 }
 0x20f   :  { %901 = vsyncpa [#allocation4], 1 }

</bundles_post_ra>
